<compile_context>
chip_gen: v6e
topology: v6e:2x2x1
jax: 0.10.0
libtpu: 0.0.40
codegen_flags: <defaults>
</compile_context>

<pallas_src>
import functools

import jax
import jax.numpy as jnp
from jax import lax
from jax.experimental import pallas as pl
from jax.experimental.pallas import tpu as pltpu


LANE = 128        # lane tile (last dim)
SUBLANE_PAD = 16  # batch padding: valid sublane tiling for both f32 (8) and bf16 (16)


def _round_up(x, m):
    return (x + m - 1) // m * m


def _aligned(idx, m):
    """Alignment hint for dynamic slice starts (no-op on concrete ints)."""
    if isinstance(idx, int):
        return idx
    return pl.multiple_of(idx, m)


def _choose_time_chunk(T, Bp, Dp0, Hp, Op, num_layers,
                       budget_bytes=40 * 1024 * 1024, cap=128):
    """Largest time-chunk whose real per-chunk VMEM footprint fits the budget."""
    # Resident (chunk-size independent) bytes: single-buffered weights/biases,
    # carried h/c state, (tiny) double-buffered output block.
    fixed = (Dp0 * 4 * Hp * 2                      # W_ih layer 0 (bf16)
             + (num_layers - 1) * Hp * 4 * Hp * 2  # W_ih layers 1..L-1 (bf16)
             + num_layers * Hp * 4 * Hp * 2        # W_hh (bf16)
             + num_layers * 4 * Hp * 4             # bias (f32)
             + Hp * Op * 2 + Op * 4                # fc weight (bf16) / bias (f32)
             + num_layers * Bp * Hp * (2 + 4)      # h (bf16) + c (f32) state
             + 2 * Bp * Op * 4)                    # out block (double-buffered)
    # Per-timestep bytes: double-buffered bf16 x block, f32 gates scratch,
    # bf16 inter-layer hidden chunk.
    per_t = Bp * (2 * Dp0 * 2 + 4 * Hp * 4 + Hp * 2)
    avail = max(budget_bytes - fixed, per_t)
    return int(max(1, min(cap, T, avail // per_t)))


def _const_spec(shape, single_buffer):
    """BlockSpec for an input whose block never changes across the time grid."""
    def index_map(t):
        return (0,) * len(shape)
    if single_buffer:
        try:
            return pl.BlockSpec(shape, index_map, pipeline_mode=pl.Buffered(1))
        except TypeError:
            pass  # older Pallas without pipeline_mode: fall back to default buffering
    return pl.BlockSpec(shape, index_map)


# ----------------------------------------------------------------------------
# Fused kernel: all LSTM layers + final Linear
# ----------------------------------------------------------------------------
def _fused_lstm_fc_kernel(*refs, num_layers, tt, bp, hp, t_valid, t_total, unroll):
    """One time-chunk of the whole stacked LSTM (+ fused final FC on last step).

    refs layout:
      x_ref                         (Tt*Bp, Dp0)  bf16  time-major input chunk
      [w_ih, w_hh, b] * num_layers  bf16/bf16/f32 (gate order [i,f,o,g], 0.5-scaled i/f/o)
      fc_w, fc_b                    (Hp, Op) bf16 / (1, Op) f32
      out_ref                       (Bp, Op) f32
      h_sc                          (L, Bp, Hp)   bf16  carried hidden state
      c_sc                          (L, Bp, Hp)   f32   carried cell state
      gx_sc                         (Tt*Bp, 4Hp)  f32   hoisted input projection
      hbuf_sc                       (Tt*Bp, Hp)   bf16  inter-layer hidden chunk
    """
    x_ref = refs[0]
    layer_refs = [refs[1 + 3 * l: 4 + 3 * l] for l in range(num_layers)]
    fcw_ref = refs[1 + 3 * num_layers]
    fcb_ref = refs[2 + 3 * num_layers]
    out_ref = refs[3 + 3 * num_layers]
    h_sc, c_sc, gx_sc, hbuf_sc = refs[4 + 3 * num_layers:]

    t0 = pl.program_id(0)
    need_mask = (t_valid != t_total)  # static: only when T was padded up to the chunk

    @pl.when(t0 == 0)
    def _init():
        h_sc[...] = jnp.zeros_like(h_sc)
        c_sc[...] = jnp.zeros_like(c_sc)

    for li, (wih_ref, whh_ref, b_ref) in enumerate(layer_refs):
        is_last_layer = (li == num_layers - 1)
        src_ref = x_ref if li == 0 else hbuf_sc

        # Hoisted input projection for this layer's chunk: ONE big MXU matmul.
        gx_sc[...] = (
            jnp.dot(src_ref[...], wih_ref[...], preferred_element_type=jnp.float32)
            + b_ref[...]
        )

        whh = whh_ref[...]  # load once per chunk, reused across all steps

        def step(i, carry, li=li, whh=whh, is_last=is_last_layer):
            row = _aligned(i * bp, bp)
            h_prev = h_sc[li]   # bf16 (Bp, Hp)
            c_prev = c_sc[li]   # f32  (Bp, Hp)
            gates = gx_sc[pl.ds(row, bp), :] + jnp.dot(
                whh.T.T if False else h_prev, whh,
                preferred_element_type=jnp.float32)
            # One tanh over the full 4Hp pre-activation. Gate order is [i, f, o, g]
            # with the 0.5 pre-scale of sigmoid(x)=0.5*tanh(x/2)+0.5 baked into the
            # i/f/o weight columns, so i/f/o = 0.5*t+0.5 and g = t.
            t_act = jnp.tanh(gates)
            ifo = t_act[:, 0:3 * hp] * 0.5 + 0.5
            i_g = ifo[:, 0 * hp:1 * hp]
            f_g = ifo[:, 1 * hp:2 * hp]
            o_g = ifo[:, 2 * hp:3 * hp]
            g_g = t_act[:, 3 * hp:4 * hp]
            c_new = f_g * c_prev + i_g * g_g
            h_new_bf = (o_g * jnp.tanh(c_new)).astype(jnp.bfloat16)
            if need_mask:
                valid = (t0 * tt + i) < t_valid
                c_new = jnp.where(valid, c_new, c_prev)
                h_new_bf = jnp.where(valid, h_new_bf, h_prev)
            c_sc[li] = c_new
            h_sc[li] = h_new_bf
            if not is_last:
                hbuf_sc[pl.ds(row, bp), :] = h_new_bf
            return carry

        lax.fori_loop(0, tt, step, 0, unroll=unroll)

    @pl.when(t0 == pl.num_programs(0) - 1)
    def _final():
        # dropout(p=0.2) -> identity (eval mode); fused final Linear on last h.
        out_ref[...] = (
            jnp.dot(h_sc[num_layers - 1], fcw_ref[...],
                    preferred_element_type=jnp.float32)
            + fcb_ref[...]
        )


# ----------------------------------------------------------------------------
# pallas_call wrapper
# ----------------------------------------------------------------------------
def _run_fused(x_flat, layer_params, fc_w_t, fc_b, *, T, T_pad, Tt, Bp, Hp, Dp0, Op,
               single_buffer_weights):
    num_layers = len(layer_params)
    kernel = functools.partial(
        _fused_lstm_fc_kernel, num_layers=num_layers, tt=Tt, bp=Bp, hp=Hp,
        t_valid=T, t_total=T_pad, unroll=min(Tt, 8))

    in_specs = [pl.BlockSpec((Tt * Bp, Dp0), lambda t: (t, 0))]
    inputs = [x_flat]
    for (w_ih_t, w_hh_t, bias) in layer_params:
        in_specs += [_const_spec(w_ih_t.shape, single_buffer_weights),
                     _const_spec(w_hh_t.shape, single_buffer_weights),
                     _const_spec(bias.shape, single_buffer_weights)]
        inputs += [w_ih_t, w_hh_t, bias]
    in_specs += [_const_spec(fc_w_t.shape, single_buffer_weights),
                 _const_spec(fc_b.shape, single_buffer_weights)]
    inputs += [fc_w_t, fc_b]

    return pl.pallas_call(
        kernel,
        out_shape=jax.ShapeDtypeStruct((Bp, Op), jnp.float32),
        grid=(T_pad // Tt,),
        in_specs=in_specs,
        out_specs=pl.BlockSpec((Bp, Op), lambda t: (0, 0)),
        scratch_shapes=[
            pltpu.VMEM((num_layers, Bp, Hp), jnp.bfloat16),   # h state (bf16)
            pltpu.VMEM((num_layers, Bp, Hp), jnp.float32),    # c state (f32)
            pltpu.VMEM((Tt * Bp, 4 * Hp), jnp.float32),       # hoisted gates_x
            pltpu.VMEM((Tt * Bp, Hp), jnp.bfloat16),          # inter-layer hidden chunk
        ],
        compiler_params=pltpu.CompilerParams(
            dimension_semantics=("arbitrary",),
            vmem_limit_bytes=56 * 1024 * 1024),               # v7x-safe (<64 MiB)
    )(*inputs)


# ----------------------------------------------------------------------------
# Forward pass
# ----------------------------------------------------------------------------
def make_forward(cfg, single_buffer_weights=True):
    Hp, Dp0, Op = cfg["Hp"], cfg["Dp0"], cfg["Op"]
    out_size = cfg["output_size"]

    def forward(x, params):
        B, T, I = x.shape
        num_layers = len(params["lstm_layers"])
        Bp = _round_up(B, SUBLANE_PAD)
        Tt = _choose_time_chunk(T, Bp, Dp0, Hp, Op, num_layers)
        T_pad = _round_up(T, Tt)

        # Time-major, pad time/batch/features, flatten to (T_pad*Bp, Dp0), bf16 once.
        x_t = jnp.transpose(x, (1, 0, 2))
        x_t = jnp.pad(x_t, ((0, T_pad - T), (0, Bp - B), (0, Dp0 - I)))
        x_flat = x_t.reshape(T_pad * Bp, Dp0).astype(jnp.bfloat16)

        out = _run_fused(
            x_flat, params["lstm_layers"], params["fc_w_t"], params["fc_b"],
            T=T, T_pad=T_pad, Tt=Tt, Bp=Bp, Hp=Hp, Dp0=Dp0, Op=Op,
            single_buffer_weights=single_buffer_weights)
        return out[:B, :out_size]

    return jax.jit(forward)


# ----------------------------------------------------------------------------
# Deterministic parameter construction (mimics PyTorch init ranges) + padding
# ----------------------------------------------------------------------------
def _prep_lstm_layer(w_ih, w_hh, b_ih, b_hh, H, Hp, d_in, d_in_p):
    """Reorder gates [i,f,g,o]->[i,f,o,g], bake the sigmoid 0.5 pre-scale into
    i/f/o, pad each gate block to Hp, transpose, cast matmul weights to bf16."""
    order = (0, 1, 3, 2)            # PyTorch [i, f, g, o] -> kernel [i, f, o, g]
    scales = (0.5, 0.5, 0.5, 1.0)   # sigmoid(x) = 0.5*tanh(x/2) + 0.5 for i/f/o

    def pack_rows(w, in_dim, in_dim_p):
        blocks = []
        for dst, g in enumerate(order):
            blk = w[g * H:(g + 1) * H] * scales[dst]       # exact in bf16 (0.5 scale)
            blocks.append(jnp.pad(blk, ((0, Hp - H), (0, in_dim_p - in_dim))))
        return jnp.concatenate(blocks, axis=0)             # (4Hp, in_dim_p)

    w_ih_t = pack_rows(w_ih, d_in, d_in_p).T.astype(jnp.bfloat16)   # (Dp, 4Hp)
    w_hh_t = pack_rows(w_hh, H, Hp).T.astype(jnp.bfloat16)          # (Hp, 4Hp)
    bias = b_ih + b_hh
    bias_blocks = [jnp.pad(bias[g * H:(g + 1) * H] * scales[dst], (0, Hp - H))
                   for dst, g in enumerate(order)]
    bias_p = jnp.concatenate(bias_blocks).reshape(1, 4 * Hp).astype(jnp.float32)
    return (w_ih_t, w_hh_t, bias_p)


def init_params(key, input_size, hidden_size, num_layers, output_size):
    H = hidden_size
    Hp = _round_up(H, LANE)
    Dp0 = _round_up(input_size, LANE)
    Op = _round_up(output_size, LANE)

    params = {"lstm_layers": []}
    k_lstm = 1.0 / (hidden_size ** 0.5)
    for layer in range(num_layers):
        d_in = input_size if layer == 0 else hidden_size
        d_in_p = Dp0 if layer == 0 else Hp
        key, k1, k2, k3, k4 = jax.random.split(key, 5)
        w_ih = jax.random.uniform(k1, (4 * H, d_in), jnp.float32, -k_lstm, k_lstm)
        w_hh = jax.random.uniform(k2, (4 * H, H), jnp.float32, -k_lstm, k_lstm)
        b_ih = jax.random.uniform(k3, (4 * H,), jnp.float32, -k_lstm, k_lstm)
        b_hh = jax.random.uniform(k4, (4 * H,), jnp.float32, -k_lstm, k_lstm)
        params["lstm_layers"].append(
            _prep_lstm_layer(w_ih, w_hh, b_ih, b_hh, H, Hp, d_in, d_in_p))

    k_fc = 1.0 / (hidden_size ** 0.5)
    key, k5, k6 = jax.random.split(key, 3)
    fc_w = jax.random.uniform(k5, (output_size, hidden_size), jnp.float32,
                              -k_fc, k_fc)
    fc_b = jax.random.uniform(k6, (output_size,), jnp.float32, -k_fc, k_fc)
    params["fc_w_t"] = jnp.pad(
        fc_w, ((0, Op - output_size), (0, Hp - hidden_size))
    ).T.astype(jnp.bfloat16)                               # (Hp, Op)
    params["fc_b"] = jnp.pad(fc_b, (0, Op - output_size)).reshape(1, Op)

    cfg = {"hidden_size": hidden_size, "output_size": output_size,
           "Hp": Hp, "Dp0": Dp0, "Op": Op}
    return params, cfg


if __name__ == "__main__":
    # Small shapes consistent with the module's forward:
    # x: [batch_size, seq_len, input_size]
    batch_size, seq_len = 2, 8
    input_size, hidden_size, num_layers, output_size = 4, 32, 2, 1

    key = jax.random.PRNGKey(0)
    key, kx = jax.random.split(key)
    x = jax.random.normal(kx, (batch_size, seq_len, input_size), jnp.float32)

    params, cfg = init_params(key, input_size, hidden_size, num_layers, output_size)

    forward = make_forward(cfg, single_buffer_weights=True)
    try:
        out = forward(x, params)
        jax.block_until_ready(out)
    except Exception:
        # Fallback: some Pallas versions may reject single-buffered (Buffered(1))
        # constant weight blocks at lowering time; retry with default buffering.
        forward = make_forward(cfg, single_buffer_weights=False)
        out = forward(x, params)
        jax.block_until_ready(out)

    assert out.shape == (batch_size, output_size)
    print("KERNEL_OK")
</pallas_src>

<mosaic_0001>
module attributes {stable_mosaic.version = 11 : i64} {
  func.func @_fused_lstm_fc_kernel(%arg0: i32, %arg1: memref<128x128xbf16, #tpu.memory_space<vmem>>, %arg2: memref<128x512xbf16, #tpu.memory_space<vmem>>, %arg3: memref<128x512xbf16, #tpu.memory_space<vmem>>, %arg4: memref<1x512xf32, #tpu.memory_space<vmem>>, %arg5: memref<128x512xbf16, #tpu.memory_space<vmem>>, %arg6: memref<128x512xbf16, #tpu.memory_space<vmem>>, %arg7: memref<1x512xf32, #tpu.memory_space<vmem>>, %arg8: memref<128x128xbf16, #tpu.memory_space<vmem>>, %arg9: memref<1x128xf32, #tpu.memory_space<vmem>>, %arg10: memref<16x128xf32, #tpu.memory_space<vmem>>, %arg11: memref<2x16x128xbf16, #tpu.memory_space<vmem>>, %arg12: memref<2x16x128xf32, #tpu.memory_space<vmem>>, %arg13: memref<128x512xf32, #tpu.memory_space<vmem>>, %arg14: memref<128x128xbf16, #tpu.memory_space<vmem>>) attributes {dimension_semantics = [#tpu.dimension_semantics<arbitrary>], iteration_bounds = array<i64: 1>, scalar_prefetch = 0 : i64, scratch_operands = 4 : i64, tpu.core_type = #tpu.core_type<tc>, window_params = [{transform_indices = @transform_0, window_bounds = array<i64: 128, 128>}, {pipeline_mode = #tpu.pipeline_mode<synchronous>, transform_indices = @transform_1, window_bounds = array<i64: 128, 512>}, {pipeline_mode = #tpu.pipeline_mode<synchronous>, transform_indices = @transform_2, window_bounds = array<i64: 128, 512>}, {pipeline_mode = #tpu.pipeline_mode<synchronous>, transform_indices = @transform_3, window_bounds = array<i64: 1, 512>}, {pipeline_mode = #tpu.pipeline_mode<synchronous>, transform_indices = @transform_4, window_bounds = array<i64: 128, 512>}, {pipeline_mode = #tpu.pipeline_mode<synchronous>, transform_indices = @transform_5, window_bounds = array<i64: 128, 512>}, {pipeline_mode = #tpu.pipeline_mode<synchronous>, transform_indices = @transform_6, window_bounds = array<i64: 1, 512>}, {pipeline_mode = #tpu.pipeline_mode<synchronous>, transform_indices = @transform_7, window_bounds = array<i64: 128, 128>}, {pipeline_mode = #tpu.pipeline_mode<synchronous>, transform_indices = @transform_8, window_bounds = array<i64: 1, 128>}, {pipeline_mode = #tpu.pipeline_mode<synchronous>, transform_indices = @transform_9, window_bounds = array<i64: 16, 128>}]} {
    %c0_i32 = arith.constant 0 : i32
    %0 = arith.cmpi eq, %arg0, %c0_i32 : i32
    %1 = arith.extui %0 : i1 to i32
    %c0_i32_0 = arith.constant 0 : i32
    %2 = arith.cmpi ne, %1, %c0_i32_0 : i32
    scf.if %2 {
      %cst_311 = arith.constant 0.000000e+00 : bf16
      %550 = vector.broadcast %cst_311 : bf16 to vector<2x16x128xbf16>
      %c0_312 = arith.constant 0 : index
      %c0_313 = arith.constant 0 : index
      %c0_314 = arith.constant 0 : index
      %551 = vector.load %arg11[%c0_312, %c0_313, %c0_314] : memref<2x16x128xbf16, #tpu.memory_space<vmem>>, vector<2x16x128xbf16>
      tpu.vector_store %arg11[%c0_312, %c0_313, %c0_314], %550 {strides = array<i32>} : memref<2x16x128xbf16, #tpu.memory_space<vmem>>, vector<2x16x128xbf16>,
      %cst_315 = arith.constant 0.000000e+00 : f32
      %552 = vector.broadcast %cst_315 : f32 to vector<2x16x128xf32>
      %c0_316 = arith.constant 0 : index
      %c0_317 = arith.constant 0 : index
      %c0_318 = arith.constant 0 : index
      %553 = vector.load %arg12[%c0_316, %c0_317, %c0_318] : memref<2x16x128xf32, #tpu.memory_space<vmem>>, vector<2x16x128xf32>
      tpu.vector_store %arg12[%c0_316, %c0_317, %c0_318], %552 {strides = array<i32>} : memref<2x16x128xf32, #tpu.memory_space<vmem>>, vector<2x16x128xf32>,
    } else {
    }
    %c0 = arith.constant 0 : index
    %c0_1 = arith.constant 0 : index
    %3 = vector.load %arg1[%c0, %c0_1] : memref<128x128xbf16, #tpu.memory_space<vmem>>, vector<128x128xbf16>
    %c0_2 = arith.constant 0 : index
    %c0_3 = arith.constant 0 : index
    %4 = vector.load %arg2[%c0_2, %c0_3] : memref<128x512xbf16, #tpu.memory_space<vmem>>, vector<128x512xbf16>
    %cst = arith.constant dense<0.000000e+00> : vector<128x512xf32>
    %5 = tpu.matmul %3, %4, %cst {dimension_numbers = #tpu.dot_dimension_numbers<[1], [0], [0], [1], [0, 0, 1, 1], [], []>} : vector<128x128xbf16>, vector<128x512xbf16>, vector<128x512xf32> -> vector<128x512xf32>
    %c0_4 = arith.constant 0 : index
    %c0_5 = arith.constant 0 : index
    %6 = vector.load %arg4[%c0_4, %c0_5] : memref<1x512xf32, #tpu.memory_space<vmem>>, vector<1x512xf32>
    %7 = vector.broadcast %6 : vector<1x512xf32> to vector<128x512xf32>
    %8 = arith.addf %5, %7 : vector<128x512xf32>
    %c0_6 = arith.constant 0 : index
    %c0_7 = arith.constant 0 : index
    %9 = vector.load %arg13[%c0_6, %c0_7] : memref<128x512xf32, #tpu.memory_space<vmem>>, vector<128x512xf32>
    tpu.vector_store %arg13[%c0_6, %c0_7], %8 {strides = array<i32>} : memref<128x512xf32, #tpu.memory_space<vmem>>, vector<128x512xf32>,
    %c0_8 = arith.constant 0 : index
    %c0_9 = arith.constant 0 : index
    %10 = vector.load %arg3[%c0_8, %c0_9] : memref<128x512xbf16, #tpu.memory_space<vmem>>, vector<128x512xbf16>
    %c0_i32_10 = arith.constant 0 : i32
    %c16_i32 = arith.constant 16 : i32
    %11 = arith.muli %c0_i32_10, %c16_i32 : i32
    %12 = tpu.assume_multiple %11, 16 : i32
    %c0_11 = arith.constant 0 : index
    %c0_12 = arith.constant 0 : index
    %c0_13 = arith.constant 0 : index
    %13 = vector.load %arg11[%c0_11, %c0_12, %c0_13] : memref<2x16x128xbf16, #tpu.memory_space<vmem>>, vector<1x16x128xbf16>
    %14 = vector.shape_cast %13 : vector<1x16x128xbf16> to vector<16x128xbf16>
    %c0_14 = arith.constant 0 : index
    %c0_15 = arith.constant 0 : index
    %c0_16 = arith.constant 0 : index
    %15 = vector.load %arg12[%c0_14, %c0_15, %c0_16] : memref<2x16x128xf32, #tpu.memory_space<vmem>>, vector<1x16x128xf32>
    %16 = vector.shape_cast %15 : vector<1x16x128xf32> to vector<16x128xf32>
    %17 = arith.index_cast %12 : i32 to index
    %c0_17 = arith.constant 0 : index
    %18 = vector.load %arg13[%17, %c0_17] : memref<128x512xf32, #tpu.memory_space<vmem>>, vector<16x512xf32>
    %cst_18 = arith.constant dense<0.000000e+00> : vector<16x512xf32>
    %19 = tpu.matmul %14, %10, %cst_18 {dimension_numbers = #tpu.dot_dimension_numbers<[1], [0], [0], [1], [0, 0, 1, 1], [], []>} : vector<16x128xbf16>, vector<128x512xbf16>, vector<16x512xf32> -> vector<16x512xf32>
    %20 = arith.addf %18, %19 : vector<16x512xf32>
    %21 = math.tanh %20 : vector<16x512xf32>
    %22 = vector.extract_strided_slice %21 {offsets = [0, 0], sizes = [16, 384], strides = [1, 1]} : vector<16x512xf32> to vector<16x384xf32>
    %cst_19 = arith.constant 5.000000e-01 : f32
    %23 = vector.broadcast %cst_19 : f32 to vector<16x384xf32>
    %24 = arith.mulf %22, %23 : vector<16x384xf32>
    %cst_20 = arith.constant 5.000000e-01 : f32
    %25 = vector.broadcast %cst_20 : f32 to vector<16x384xf32>
    %26 = arith.addf %24, %25 : vector<16x384xf32>
    %27 = vector.extract_strided_slice %26 {offsets = [0, 0], sizes = [16, 128], strides = [1, 1]} : vector<16x384xf32> to vector<16x128xf32>
    %28 = vector.extract_strided_slice %26 {offsets = [0, 128], sizes = [16, 128], strides = [1, 1]} : vector<16x384xf32> to vector<16x128xf32>
    %29 = vector.extract_strided_slice %26 {offsets = [0, 256], sizes = [16, 128], strides = [1, 1]} : vector<16x384xf32> to vector<16x128xf32>
    %30 = vector.extract_strided_slice %21 {offsets = [0, 384], sizes = [16, 128], strides = [1, 1]} : vector<16x512xf32> to vector<16x128xf32>
    %31 = arith.mulf %28, %16 : vector<16x128xf32>
    %32 = arith.mulf %27, %30 : vector<16x128xf32>
    %33 = arith.addf %31, %32 : vector<16x128xf32>
    %34 = math.tanh %33 : vector<16x128xf32>
    %35 = arith.mulf %29, %34 : vector<16x128xf32>
    %36 = arith.truncf %35 : vector<16x128xf32> to vector<16x128xbf16>
    %c0_21 = arith.constant 0 : index
    %c0_22 = arith.constant 0 : index
    %c0_23 = arith.constant 0 : index
    %37 = vector.load %arg12[%c0_21, %c0_22, %c0_23] : memref<2x16x128xf32, #tpu.memory_space<vmem>>, vector<1x16x128xf32>
    %38 = vector.shape_cast %37 : vector<1x16x128xf32> to vector<16x128xf32>
    %39 = vector.shape_cast %33 : vector<16x128xf32> to vector<1x16x128xf32>
    tpu.vector_store %arg12[%c0_21, %c0_22, %c0_23], %39 {strides = array<i32>} : memref<2x16x128xf32, #tpu.memory_space<vmem>>, vector<1x16x128xf32>,
    %c0_24 = arith.constant 0 : index
    %c0_25 = arith.constant 0 : index
    %c0_26 = arith.constant 0 : index
    %40 = vector.load %arg11[%c0_24, %c0_25, %c0_26] : memref<2x16x128xbf16, #tpu.memory_space<vmem>>, vector<1x16x128xbf16>
    %41 = vector.shape_cast %40 : vector<1x16x128xbf16> to vector<16x128xbf16>
    %42 = vector.shape_cast %36 : vector<16x128xbf16> to vector<1x16x128xbf16>
    tpu.vector_store %arg11[%c0_24, %c0_25, %c0_26], %42 {strides = array<i32>} : memref<2x16x128xbf16, #tpu.memory_space<vmem>>, vector<1x16x128xbf16>,
    %43 = arith.index_cast %12 : i32 to index
    %c0_27 = arith.constant 0 : index
    %44 = vector.load %arg14[%43, %c0_27] : memref<128x128xbf16, #tpu.memory_space<vmem>>, vector<16x128xbf16>
    tpu.vector_store %arg14[%43, %c0_27], %36 {strides = array<i32>} : memref<128x128xbf16, #tpu.memory_space<vmem>>, vector<16x128xbf16>,
    %c1_i32 = arith.constant 1 : i32
    %c16_i32_28 = arith.constant 16 : i32
    %45 = arith.muli %c1_i32, %c16_i32_28 : i32
    %46 = tpu.assume_multiple %45, 16 : i32
    %c0_29 = arith.constant 0 : index
    %c0_30 = arith.constant 0 : index
    %c0_31 = arith.constant 0 : index
    %47 = vector.load %arg11[%c0_29, %c0_30, %c0_31] : memref<2x16x128xbf16, #tpu.memory_space<vmem>>, vector<1x16x128xbf16>
    %48 = vector.shape_cast %47 : vector<1x16x128xbf16> to vector<16x128xbf16>
    %c0_32 = arith.constant 0 : index
    %c0_33 = arith.constant 0 : index
    %c0_34 = arith.constant 0 : index
    %49 = vector.load %arg12[%c0_32, %c0_33, %c0_34] : memref<2x16x128xf32, #tpu.memory_space<vmem>>, vector<1x16x128xf32>
    %50 = vector.shape_cast %49 : vector<1x16x128xf32> to vector<16x128xf32>
    %51 = arith.index_cast %46 : i32 to index
    %c0_35 = arith.constant 0 : index
    %52 = vector.load %arg13[%51, %c0_35] : memref<128x512xf32, #tpu.memory_space<vmem>>, vector<16x512xf32>
    %cst_36 = arith.constant dense<0.000000e+00> : vector<16x512xf32>
    %53 = tpu.matmul %48, %10, %cst_36 {dimension_numbers = #tpu.dot_dimension_numbers<[1], [0], [0], [1], [0, 0, 1, 1], [], []>} : vector<16x128xbf16>, vector<128x512xbf16>, vector<16x512xf32> -> vector<16x512xf32>
    %54 = arith.addf %52, %53 : vector<16x512xf32>
    %55 = math.tanh %54 : vector<16x512xf32>
    %56 = vector.extract_strided_slice %55 {offsets = [0, 0], sizes = [16, 384], strides = [1, 1]} : vector<16x512xf32> to vector<16x384xf32>
    %cst_37 = arith.constant 5.000000e-01 : f32
    %57 = vector.broadcast %cst_37 : f32 to vector<16x384xf32>
    %58 = arith.mulf %56, %57 : vector<16x384xf32>
    %cst_38 = arith.constant 5.000000e-01 : f32
    %59 = vector.broadcast %cst_38 : f32 to vector<16x384xf32>
    %60 = arith.addf %58, %59 : vector<16x384xf32>
    %61 = vector.extract_strided_slice %60 {offsets = [0, 0], sizes = [16, 128], strides = [1, 1]} : vector<16x384xf32> to vector<16x128xf32>
    %62 = vector.extract_strided_slice %60 {offsets = [0, 128], sizes = [16, 128], strides = [1, 1]} : vector<16x384xf32> to vector<16x128xf32>
    %63 = vector.extract_strided_slice %60 {offsets = [0, 256], sizes = [16, 128], strides = [1, 1]} : vector<16x384xf32> to vector<16x128xf32>
    %64 = vector.extract_strided_slice %55 {offsets = [0, 384], sizes = [16, 128], strides = [1, 1]} : vector<16x512xf32> to vector<16x128xf32>
    %65 = arith.mulf %62, %50 : vector<16x128xf32>
    %66 = arith.mulf %61, %64 : vector<16x128xf32>
    %67 = arith.addf %65, %66 : vector<16x128xf32>
    %68 = math.tanh %67 : vector<16x128xf32>
    %69 = arith.mulf %63, %68 : vector<16x128xf32>
    %70 = arith.truncf %69 : vector<16x128xf32> to vector<16x128xbf16>
    %c0_39 = arith.constant 0 : index
    %c0_40 = arith.constant 0 : index
    %c0_41 = arith.constant 0 : index
    %71 = vector.load %arg12[%c0_39, %c0_40, %c0_41] : memref<2x16x128xf32, #tpu.memory_space<vmem>>, vector<1x16x128xf32>
    %72 = vector.shape_cast %71 : vector<1x16x128xf32> to vector<16x128xf32>
    %73 = vector.shape_cast %67 : vector<16x128xf32> to vector<1x16x128xf32>
    tpu.vector_store %arg12[%c0_39, %c0_40, %c0_41], %73 {strides = array<i32>} : memref<2x16x128xf32, #tpu.memory_space<vmem>>, vector<1x16x128xf32>,
    %c0_42 = arith.constant 0 : index
    %c0_43 = arith.constant 0 : index
    %c0_44 = arith.constant 0 : index
    %74 = vector.load %arg11[%c0_42, %c0_43, %c0_44] : memref<2x16x128xbf16, #tpu.memory_space<vmem>>, vector<1x16x128xbf16>
    %75 = vector.shape_cast %74 : vector<1x16x128xbf16> to vector<16x128xbf16>
    %76 = vector.shape_cast %70 : vector<16x128xbf16> to vector<1x16x128xbf16>
    tpu.vector_store %arg11[%c0_42, %c0_43, %c0_44], %76 {strides = array<i32>} : memref<2x16x128xbf16, #tpu.memory_space<vmem>>, vector<1x16x128xbf16>,
    %77 = arith.index_cast %46 : i32 to index
    %c0_45 = arith.constant 0 : index
    %78 = vector.load %arg14[%77, %c0_45] : memref<128x128xbf16, #tpu.memory_space<vmem>>, vector<16x128xbf16>
    tpu.vector_store %arg14[%77, %c0_45], %70 {strides = array<i32>} : memref<128x128xbf16, #tpu.memory_space<vmem>>, vector<16x128xbf16>,
    %c2_i32 = arith.constant 2 : i32
    %c16_i32_46 = arith.constant 16 : i32
    %79 = arith.muli %c2_i32, %c16_i32_46 : i32
    %80 = tpu.assume_multiple %79, 16 : i32
    %c0_47 = arith.constant 0 : index
    %c0_48 = arith.constant 0 : index
    %c0_49 = arith.constant 0 : index
    %81 = vector.load %arg11[%c0_47, %c0_48, %c0_49] : memref<2x16x128xbf16, #tpu.memory_space<vmem>>, vector<1x16x128xbf16>
    %82 = vector.shape_cast %81 : vector<1x16x128xbf16> to vector<16x128xbf16>
    %c0_50 = arith.constant 0 : index
    %c0_51 = arith.constant 0 : index
    %c0_52 = arith.constant 0 : index
    %83 = vector.load %arg12[%c0_50, %c0_51, %c0_52] : memref<2x16x128xf32, #tpu.memory_space<vmem>>, vector<1x16x128xf32>
    %84 = vector.shape_cast %83 : vector<1x16x128xf32> to vector<16x128xf32>
    %85 = arith.index_cast %80 : i32 to index
    %c0_53 = arith.constant 0 : index
    %86 = vector.load %arg13[%85, %c0_53] : memref<128x512xf32, #tpu.memory_space<vmem>>, vector<16x512xf32>
    %cst_54 = arith.constant dense<0.000000e+00> : vector<16x512xf32>
    %87 = tpu.matmul %82, %10, %cst_54 {dimension_numbers = #tpu.dot_dimension_numbers<[1], [0], [0], [1], [0, 0, 1, 1], [], []>} : vector<16x128xbf16>, vector<128x512xbf16>, vector<16x512xf32> -> vector<16x512xf32>
    %88 = arith.addf %86, %87 : vector<16x512xf32>
    %89 = math.tanh %88 : vector<16x512xf32>
    %90 = vector.extract_strided_slice %89 {offsets = [0, 0], sizes = [16, 384], strides = [1, 1]} : vector<16x512xf32> to vector<16x384xf32>
    %cst_55 = arith.constant 5.000000e-01 : f32
    %91 = vector.broadcast %cst_55 : f32 to vector<16x384xf32>
    %92 = arith.mulf %90, %91 : vector<16x384xf32>
    %cst_56 = arith.constant 5.000000e-01 : f32
    %93 = vector.broadcast %cst_56 : f32 to vector<16x384xf32>
    %94 = arith.addf %92, %93 : vector<16x384xf32>
    %95 = vector.extract_strided_slice %94 {offsets = [0, 0], sizes = [16, 128], strides = [1, 1]} : vector<16x384xf32> to vector<16x128xf32>
    %96 = vector.extract_strided_slice %94 {offsets = [0, 128], sizes = [16, 128], strides = [1, 1]} : vector<16x384xf32> to vector<16x128xf32>
    %97 = vector.extract_strided_slice %94 {offsets = [0, 256], sizes = [16, 128], strides = [1, 1]} : vector<16x384xf32> to vector<16x128xf32>
    %98 = vector.extract_strided_slice %89 {offsets = [0, 384], sizes = [16, 128], strides = [1, 1]} : vector<16x512xf32> to vector<16x128xf32>
    %99 = arith.mulf %96, %84 : vector<16x128xf32>
    %100 = arith.mulf %95, %98 : vector<16x128xf32>
    %101 = arith.addf %99, %100 : vector<16x128xf32>
    %102 = math.tanh %101 : vector<16x128xf32>
    %103 = arith.mulf %97, %102 : vector<16x128xf32>
    %104 = arith.truncf %103 : vector<16x128xf32> to vector<16x128xbf16>
    %c0_57 = arith.constant 0 : index
    %c0_58 = arith.constant 0 : index
    %c0_59 = arith.constant 0 : index
    %105 = vector.load %arg12[%c0_57, %c0_58, %c0_59] : memref<2x16x128xf32, #tpu.memory_space<vmem>>, vector<1x16x128xf32>
    %106 = vector.shape_cast %105 : vector<1x16x128xf32> to vector<16x128xf32>
    %107 = vector.shape_cast %101 : vector<16x128xf32> to vector<1x16x128xf32>
    tpu.vector_store %arg12[%c0_57, %c0_58, %c0_59], %107 {strides = array<i32>} : memref<2x16x128xf32, #tpu.memory_space<vmem>>, vector<1x16x128xf32>,
    %c0_60 = arith.constant 0 : index
    %c0_61 = arith.constant 0 : index
    %c0_62 = arith.constant 0 : index
    %108 = vector.load %arg11[%c0_60, %c0_61, %c0_62] : memref<2x16x128xbf16, #tpu.memory_space<vmem>>, vector<1x16x128xbf16>
    %109 = vector.shape_cast %108 : vector<1x16x128xbf16> to vector<16x128xbf16>
    %110 = vector.shape_cast %104 : vector<16x128xbf16> to vector<1x16x128xbf16>
    tpu.vector_store %arg11[%c0_60, %c0_61, %c0_62], %110 {strides = array<i32>} : memref<2x16x128xbf16, #tpu.memory_space<vmem>>, vector<1x16x128xbf16>,
    %111 = arith.index_cast %80 : i32 to index
    %c0_63 = arith.constant 0 : index
    %112 = vector.load %arg14[%111, %c0_63] : memref<128x128xbf16, #tpu.memory_space<vmem>>, vector<16x128xbf16>
    tpu.vector_store %arg14[%111, %c0_63], %104 {strides = array<i32>} : memref<128x128xbf16, #tpu.memory_space<vmem>>, vector<16x128xbf16>,
    %c3_i32 = arith.constant 3 : i32
    %c16_i32_64 = arith.constant 16 : i32
    %113 = arith.muli %c3_i32, %c16_i32_64 : i32
    %114 = tpu.assume_multiple %113, 16 : i32
    %c0_65 = arith.constant 0 : index
    %c0_66 = arith.constant 0 : index
    %c0_67 = arith.constant 0 : index
    %115 = vector.load %arg11[%c0_65, %c0_66, %c0_67] : memref<2x16x128xbf16, #tpu.memory_space<vmem>>, vector<1x16x128xbf16>
    %116 = vector.shape_cast %115 : vector<1x16x128xbf16> to vector<16x128xbf16>
    %c0_68 = arith.constant 0 : index
    %c0_69 = arith.constant 0 : index
    %c0_70 = arith.constant 0 : index
    %117 = vector.load %arg12[%c0_68, %c0_69, %c0_70] : memref<2x16x128xf32, #tpu.memory_space<vmem>>, vector<1x16x128xf32>
    %118 = vector.shape_cast %117 : vector<1x16x128xf32> to vector<16x128xf32>
    %119 = arith.index_cast %114 : i32 to index
    %c0_71 = arith.constant 0 : index
    %120 = vector.load %arg13[%119, %c0_71] : memref<128x512xf32, #tpu.memory_space<vmem>>, vector<16x512xf32>
    %cst_72 = arith.constant dense<0.000000e+00> : vector<16x512xf32>
    %121 = tpu.matmul %116, %10, %cst_72 {dimension_numbers = #tpu.dot_dimension_numbers<[1], [0], [0], [1], [0, 0, 1, 1], [], []>} : vector<16x128xbf16>, vector<128x512xbf16>, vector<16x512xf32> -> vector<16x512xf32>
    %122 = arith.addf %120, %121 : vector<16x512xf32>
    %123 = math.tanh %122 : vector<16x512xf32>
    %124 = vector.extract_strided_slice %123 {offsets = [0, 0], sizes = [16, 384], strides = [1, 1]} : vector<16x512xf32> to vector<16x384xf32>
    %cst_73 = arith.constant 5.000000e-01 : f32
    %125 = vector.broadcast %cst_73 : f32 to vector<16x384xf32>
    %126 = arith.mulf %124, %125 : vector<16x384xf32>
    %cst_74 = arith.constant 5.000000e-01 : f32
    %127 = vector.broadcast %cst_74 : f32 to vector<16x384xf32>
    %128 = arith.addf %126, %127 : vector<16x384xf32>
    %129 = vector.extract_strided_slice %128 {offsets = [0, 0], sizes = [16, 128], strides = [1, 1]} : vector<16x384xf32> to vector<16x128xf32>
    %130 = vector.extract_strided_slice %128 {offsets = [0, 128], sizes = [16, 128], strides = [1, 1]} : vector<16x384xf32> to vector<16x128xf32>
    %131 = vector.extract_strided_slice %128 {offsets = [0, 256], sizes = [16, 128], strides = [1, 1]} : vector<16x384xf32> to vector<16x128xf32>
    %132 = vector.extract_strided_slice %123 {offsets = [0, 384], sizes = [16, 128], strides = [1, 1]} : vector<16x512xf32> to vector<16x128xf32>
    %133 = arith.mulf %130, %118 : vector<16x128xf32>
    %134 = arith.mulf %129, %132 : vector<16x128xf32>
    %135 = arith.addf %133, %134 : vector<16x128xf32>
    %136 = math.tanh %135 : vector<16x128xf32>
    %137 = arith.mulf %131, %136 : vector<16x128xf32>
    %138 = arith.truncf %137 : vector<16x128xf32> to vector<16x128xbf16>
    %c0_75 = arith.constant 0 : index
    %c0_76 = arith.constant 0 : index
    %c0_77 = arith.constant 0 : index
    %139 = vector.load %arg12[%c0_75, %c0_76, %c0_77] : memref<2x16x128xf32, #tpu.memory_space<vmem>>, vector<1x16x128xf32>
    %140 = vector.shape_cast %139 : vector<1x16x128xf32> to vector<16x128xf32>
    %141 = vector.shape_cast %135 : vector<16x128xf32> to vector<1x16x128xf32>
    tpu.vector_store %arg12[%c0_75, %c0_76, %c0_77], %141 {strides = array<i32>} : memref<2x16x128xf32, #tpu.memory_space<vmem>>, vector<1x16x128xf32>,
    %c0_78 = arith.constant 0 : index
    %c0_79 = arith.constant 0 : index
    %c0_80 = arith.constant 0 : index
    %142 = vector.load %arg11[%c0_78, %c0_79, %c0_80] : memref<2x16x128xbf16, #tpu.memory_space<vmem>>, vector<1x16x128xbf16>
    %143 = vector.shape_cast %142 : vector<1x16x128xbf16> to vector<16x128xbf16>
    %144 = vector.shape_cast %138 : vector<16x128xbf16> to vector<1x16x128xbf16>
    tpu.vector_store %arg11[%c0_78, %c0_79, %c0_80], %144 {strides = array<i32>} : memref<2x16x128xbf16, #tpu.memory_space<vmem>>, vector<1x16x128xbf16>,
    %145 = arith.index_cast %114 : i32 to index
    %c0_81 = arith.constant 0 : index
    %146 = vector.load %arg14[%145, %c0_81] : memref<128x128xbf16, #tpu.memory_space<vmem>>, vector<16x128xbf16>
    tpu.vector_store %arg14[%145, %c0_81], %138 {strides = array<i32>} : memref<128x128xbf16, #tpu.memory_space<vmem>>, vector<16x128xbf16>,
    %c4_i32 = arith.constant 4 : i32
    %c16_i32_82 = arith.constant 16 : i32
    %147 = arith.muli %c4_i32, %c16_i32_82 : i32
    %148 = tpu.assume_multiple %147, 16 : i32
    %c0_83 = arith.constant 0 : index
    %c0_84 = arith.constant 0 : index
    %c0_85 = arith.constant 0 : index
    %149 = vector.load %arg11[%c0_83, %c0_84, %c0_85] : memref<2x16x128xbf16, #tpu.memory_space<vmem>>, vector<1x16x128xbf16>
    %150 = vector.shape_cast %149 : vector<1x16x128xbf16> to vector<16x128xbf16>
    %c0_86 = arith.constant 0 : index
    %c0_87 = arith.constant 0 : index
    %c0_88 = arith.constant 0 : index
    %151 = vector.load %arg12[%c0_86, %c0_87, %c0_88] : memref<2x16x128xf32, #tpu.memory_space<vmem>>, vector<1x16x128xf32>
    %152 = vector.shape_cast %151 : vector<1x16x128xf32> to vector<16x128xf32>
    %153 = arith.index_cast %148 : i32 to index
    %c0_89 = arith.constant 0 : index
    %154 = vector.load %arg13[%153, %c0_89] : memref<128x512xf32, #tpu.memory_space<vmem>>, vector<16x512xf32>
    %cst_90 = arith.constant dense<0.000000e+00> : vector<16x512xf32>
    %155 = tpu.matmul %150, %10, %cst_90 {dimension_numbers = #tpu.dot_dimension_numbers<[1], [0], [0], [1], [0, 0, 1, 1], [], []>} : vector<16x128xbf16>, vector<128x512xbf16>, vector<16x512xf32> -> vector<16x512xf32>
    %156 = arith.addf %154, %155 : vector<16x512xf32>
    %157 = math.tanh %156 : vector<16x512xf32>
    %158 = vector.extract_strided_slice %157 {offsets = [0, 0], sizes = [16, 384], strides = [1, 1]} : vector<16x512xf32> to vector<16x384xf32>
    %cst_91 = arith.constant 5.000000e-01 : f32
    %159 = vector.broadcast %cst_91 : f32 to vector<16x384xf32>
    %160 = arith.mulf %158, %159 : vector<16x384xf32>
    %cst_92 = arith.constant 5.000000e-01 : f32
    %161 = vector.broadcast %cst_92 : f32 to vector<16x384xf32>
    %162 = arith.addf %160, %161 : vector<16x384xf32>
    %163 = vector.extract_strided_slice %162 {offsets = [0, 0], sizes = [16, 128], strides = [1, 1]} : vector<16x384xf32> to vector<16x128xf32>
    %164 = vector.extract_strided_slice %162 {offsets = [0, 128], sizes = [16, 128], strides = [1, 1]} : vector<16x384xf32> to vector<16x128xf32>
    %165 = vector.extract_strided_slice %162 {offsets = [0, 256], sizes = [16, 128], strides = [1, 1]} : vector<16x384xf32> to vector<16x128xf32>
    %166 = vector.extract_strided_slice %157 {offsets = [0, 384], sizes = [16, 128], strides = [1, 1]} : vector<16x512xf32> to vector<16x128xf32>
    %167 = arith.mulf %164, %152 : vector<16x128xf32>
    %168 = arith.mulf %163, %166 : vector<16x128xf32>
    %169 = arith.addf %167, %168 : vector<16x128xf32>
    %170 = math.tanh %169 : vector<16x128xf32>
    %171 = arith.mulf %165, %170 : vector<16x128xf32>
    %172 = arith.truncf %171 : vector<16x128xf32> to vector<16x128xbf16>
    %c0_93 = arith.constant 0 : index
    %c0_94 = arith.constant 0 : index
    %c0_95 = arith.constant 0 : index
    %173 = vector.load %arg12[%c0_93, %c0_94, %c0_95] : memref<2x16x128xf32, #tpu.memory_space<vmem>>, vector<1x16x128xf32>
    %174 = vector.shape_cast %173 : vector<1x16x128xf32> to vector<16x128xf32>
    %175 = vector.shape_cast %169 : vector<16x128xf32> to vector<1x16x128xf32>
    tpu.vector_store %arg12[%c0_93, %c0_94, %c0_95], %175 {strides = array<i32>} : memref<2x16x128xf32, #tpu.memory_space<vmem>>, vector<1x16x128xf32>,
    %c0_96 = arith.constant 0 : index
    %c0_97 = arith.constant 0 : index
    %c0_98 = arith.constant 0 : index
    %176 = vector.load %arg11[%c0_96, %c0_97, %c0_98] : memref<2x16x128xbf16, #tpu.memory_space<vmem>>, vector<1x16x128xbf16>
    %177 = vector.shape_cast %176 : vector<1x16x128xbf16> to vector<16x128xbf16>
    %178 = vector.shape_cast %172 : vector<16x128xbf16> to vector<1x16x128xbf16>
    tpu.vector_store %arg11[%c0_96, %c0_97, %c0_98], %178 {strides = array<i32>} : memref<2x16x128xbf16, #tpu.memory_space<vmem>>, vector<1x16x128xbf16>,
    %179 = arith.index_cast %148 : i32 to index
    %c0_99 = arith.constant 0 : index
    %180 = vector.load %arg14[%179, %c0_99] : memref<128x128xbf16, #tpu.memory_space<vmem>>, vector<16x128xbf16>
    tpu.vector_store %arg14[%179, %c0_99], %172 {strides = array<i32>} : memref<128x128xbf16, #tpu.memory_space<vmem>>, vector<16x128xbf16>,
    %c5_i32 = arith.constant 5 : i32
    %c16_i32_100 = arith.constant 16 : i32
    %181 = arith.muli %c5_i32, %c16_i32_100 : i32
    %182 = tpu.assume_multiple %181, 16 : i32
    %c0_101 = arith.constant 0 : index
    %c0_102 = arith.constant 0 : index
    %c0_103 = arith.constant 0 : index
    %183 = vector.load %arg11[%c0_101, %c0_102, %c0_103] : memref<2x16x128xbf16, #tpu.memory_space<vmem>>, vector<1x16x128xbf16>
    %184 = vector.shape_cast %183 : vector<1x16x128xbf16> to vector<16x128xbf16>
    %c0_104 = arith.constant 0 : index
    %c0_105 = arith.constant 0 : index
    %c0_106 = arith.constant 0 : index
    %185 = vector.load %arg12[%c0_104, %c0_105, %c0_106] : memref<2x16x128xf32, #tpu.memory_space<vmem>>, vector<1x16x128xf32>
    %186 = vector.shape_cast %185 : vector<1x16x128xf32> to vector<16x128xf32>
    %187 = arith.index_cast %182 : i32 to index
    %c0_107 = arith.constant 0 : index
    %188 = vector.load %arg13[%187, %c0_107] : memref<128x512xf32, #tpu.memory_space<vmem>>, vector<16x512xf32>
    %cst_108 = arith.constant dense<0.000000e+00> : vector<16x512xf32>
    %189 = tpu.matmul %184, %10, %cst_108 {dimension_numbers = #tpu.dot_dimension_numbers<[1], [0], [0], [1], [0, 0, 1, 1], [], []>} : vector<16x128xbf16>, vector<128x512xbf16>, vector<16x512xf32> -> vector<16x512xf32>
    %190 = arith.addf %188, %189 : vector<16x512xf32>
    %191 = math.tanh %190 : vector<16x512xf32>
    %192 = vector.extract_strided_slice %191 {offsets = [0, 0], sizes = [16, 384], strides = [1, 1]} : vector<16x512xf32> to vector<16x384xf32>
    %cst_109 = arith.constant 5.000000e-01 : f32
    %193 = vector.broadcast %cst_109 : f32 to vector<16x384xf32>
    %194 = arith.mulf %192, %193 : vector<16x384xf32>
    %cst_110 = arith.constant 5.000000e-01 : f32
    %195 = vector.broadcast %cst_110 : f32 to vector<16x384xf32>
    %196 = arith.addf %194, %195 : vector<16x384xf32>
    %197 = vector.extract_strided_slice %196 {offsets = [0, 0], sizes = [16, 128], strides = [1, 1]} : vector<16x384xf32> to vector<16x128xf32>
    %198 = vector.extract_strided_slice %196 {offsets = [0, 128], sizes = [16, 128], strides = [1, 1]} : vector<16x384xf32> to vector<16x128xf32>
    %199 = vector.extract_strided_slice %196 {offsets = [0, 256], sizes = [16, 128], strides = [1, 1]} : vector<16x384xf32> to vector<16x128xf32>
    %200 = vector.extract_strided_slice %191 {offsets = [0, 384], sizes = [16, 128], strides = [1, 1]} : vector<16x512xf32> to vector<16x128xf32>
    %201 = arith.mulf %198, %186 : vector<16x128xf32>
    %202 = arith.mulf %197, %200 : vector<16x128xf32>
    %203 = arith.addf %201, %202 : vector<16x128xf32>
    %204 = math.tanh %203 : vector<16x128xf32>
    %205 = arith.mulf %199, %204 : vector<16x128xf32>
    %206 = arith.truncf %205 : vector<16x128xf32> to vector<16x128xbf16>
    %c0_111 = arith.constant 0 : index
    %c0_112 = arith.constant 0 : index
    %c0_113 = arith.constant 0 : index
    %207 = vector.load %arg12[%c0_111, %c0_112, %c0_113] : memref<2x16x128xf32, #tpu.memory_space<vmem>>, vector<1x16x128xf32>
    %208 = vector.shape_cast %207 : vector<1x16x128xf32> to vector<16x128xf32>
    %209 = vector.shape_cast %203 : vector<16x128xf32> to vector<1x16x128xf32>
    tpu.vector_store %arg12[%c0_111, %c0_112, %c0_113], %209 {strides = array<i32>} : memref<2x16x128xf32, #tpu.memory_space<vmem>>, vector<1x16x128xf32>,
    %c0_114 = arith.constant 0 : index
    %c0_115 = arith.constant 0 : index
    %c0_116 = arith.constant 0 : index
    %210 = vector.load %arg11[%c0_114, %c0_115, %c0_116] : memref<2x16x128xbf16, #tpu.memory_space<vmem>>, vector<1x16x128xbf16>
    %211 = vector.shape_cast %210 : vector<1x16x128xbf16> to vector<16x128xbf16>
    %212 = vector.shape_cast %206 : vector<16x128xbf16> to vector<1x16x128xbf16>
    tpu.vector_store %arg11[%c0_114, %c0_115, %c0_116], %212 {strides = array<i32>} : memref<2x16x128xbf16, #tpu.memory_space<vmem>>, vector<1x16x128xbf16>,
    %213 = arith.index_cast %182 : i32 to index
    %c0_117 = arith.constant 0 : index
    %214 = vector.load %arg14[%213, %c0_117] : memref<128x128xbf16, #tpu.memory_space<vmem>>, vector<16x128xbf16>
    tpu.vector_store %arg14[%213, %c0_117], %206 {strides = array<i32>} : memref<128x128xbf16, #tpu.memory_space<vmem>>, vector<16x128xbf16>,
    %c6_i32 = arith.constant 6 : i32
    %c16_i32_118 = arith.constant 16 : i32
    %215 = arith.muli %c6_i32, %c16_i32_118 : i32
    %216 = tpu.assume_multiple %215, 16 : i32
    %c0_119 = arith.constant 0 : index
    %c0_120 = arith.constant 0 : index
    %c0_121 = arith.constant 0 : index
    %217 = vector.load %arg11[%c0_119, %c0_120, %c0_121] : memref<2x16x128xbf16, #tpu.memory_space<vmem>>, vector<1x16x128xbf16>
    %218 = vector.shape_cast %217 : vector<1x16x128xbf16> to vector<16x128xbf16>
    %c0_122 = arith.constant 0 : index
    %c0_123 = arith.constant 0 : index
    %c0_124 = arith.constant 0 : index
    %219 = vector.load %arg12[%c0_122, %c0_123, %c0_124] : memref<2x16x128xf32, #tpu.memory_space<vmem>>, vector<1x16x128xf32>
    %220 = vector.shape_cast %219 : vector<1x16x128xf32> to vector<16x128xf32>
    %221 = arith.index_cast %216 : i32 to index
    %c0_125 = arith.constant 0 : index
    %222 = vector.load %arg13[%221, %c0_125] : memref<128x512xf32, #tpu.memory_space<vmem>>, vector<16x512xf32>
    %cst_126 = arith.constant dense<0.000000e+00> : vector<16x512xf32>
    %223 = tpu.matmul %218, %10, %cst_126 {dimension_numbers = #tpu.dot_dimension_numbers<[1], [0], [0], [1], [0, 0, 1, 1], [], []>} : vector<16x128xbf16>, vector<128x512xbf16>, vector<16x512xf32> -> vector<16x512xf32>
    %224 = arith.addf %222, %223 : vector<16x512xf32>
    %225 = math.tanh %224 : vector<16x512xf32>
    %226 = vector.extract_strided_slice %225 {offsets = [0, 0], sizes = [16, 384], strides = [1, 1]} : vector<16x512xf32> to vector<16x384xf32>
    %cst_127 = arith.constant 5.000000e-01 : f32
    %227 = vector.broadcast %cst_127 : f32 to vector<16x384xf32>
    %228 = arith.mulf %226, %227 : vector<16x384xf32>
    %cst_128 = arith.constant 5.000000e-01 : f32
    %229 = vector.broadcast %cst_128 : f32 to vector<16x384xf32>
    %230 = arith.addf %228, %229 : vector<16x384xf32>
    %231 = vector.extract_strided_slice %230 {offsets = [0, 0], sizes = [16, 128], strides = [1, 1]} : vector<16x384xf32> to vector<16x128xf32>
    %232 = vector.extract_strided_slice %230 {offsets = [0, 128], sizes = [16, 128], strides = [1, 1]} : vector<16x384xf32> to vector<16x128xf32>
    %233 = vector.extract_strided_slice %230 {offsets = [0, 256], sizes = [16, 128], strides = [1, 1]} : vector<16x384xf32> to vector<16x128xf32>
    %234 = vector.extract_strided_slice %225 {offsets = [0, 384], sizes = [16, 128], strides = [1, 1]} : vector<16x512xf32> to vector<16x128xf32>
    %235 = arith.mulf %232, %220 : vector<16x128xf32>
    %236 = arith.mulf %231, %234 : vector<16x128xf32>
    %237 = arith.addf %235, %236 : vector<16x128xf32>
    %238 = math.tanh %237 : vector<16x128xf32>
    %239 = arith.mulf %233, %238 : vector<16x128xf32>
    %240 = arith.truncf %239 : vector<16x128xf32> to vector<16x128xbf16>
    %c0_129 = arith.constant 0 : index
    %c0_130 = arith.constant 0 : index
    %c0_131 = arith.constant 0 : index
    %241 = vector.load %arg12[%c0_129, %c0_130, %c0_131] : memref<2x16x128xf32, #tpu.memory_space<vmem>>, vector<1x16x128xf32>
    %242 = vector.shape_cast %241 : vector<1x16x128xf32> to vector<16x128xf32>
    %243 = vector.shape_cast %237 : vector<16x128xf32> to vector<1x16x128xf32>
    tpu.vector_store %arg12[%c0_129, %c0_130, %c0_131], %243 {strides = array<i32>} : memref<2x16x128xf32, #tpu.memory_space<vmem>>, vector<1x16x128xf32>,
    %c0_132 = arith.constant 0 : index
    %c0_133 = arith.constant 0 : index
    %c0_134 = arith.constant 0 : index
    %244 = vector.load %arg11[%c0_132, %c0_133, %c0_134] : memref<2x16x128xbf16, #tpu.memory_space<vmem>>, vector<1x16x128xbf16>
    %245 = vector.shape_cast %244 : vector<1x16x128xbf16> to vector<16x128xbf16>
    %246 = vector.shape_cast %240 : vector<16x128xbf16> to vector<1x16x128xbf16>
    tpu.vector_store %arg11[%c0_132, %c0_133, %c0_134], %246 {strides = array<i32>} : memref<2x16x128xbf16, #tpu.memory_space<vmem>>, vector<1x16x128xbf16>,
    %247 = arith.index_cast %216 : i32 to index
    %c0_135 = arith.constant 0 : index
    %248 = vector.load %arg14[%247, %c0_135] : memref<128x128xbf16, #tpu.memory_space<vmem>>, vector<16x128xbf16>
    tpu.vector_store %arg14[%247, %c0_135], %240 {strides = array<i32>} : memref<128x128xbf16, #tpu.memory_space<vmem>>, vector<16x128xbf16>,
    %c7_i32 = arith.constant 7 : i32
    %c16_i32_136 = arith.constant 16 : i32
    %249 = arith.muli %c7_i32, %c16_i32_136 : i32
    %250 = tpu.assume_multiple %249, 16 : i32
    %c0_137 = arith.constant 0 : index
    %c0_138 = arith.constant 0 : index
    %c0_139 = arith.constant 0 : index
    %251 = vector.load %arg11[%c0_137, %c0_138, %c0_139] : memref<2x16x128xbf16, #tpu.memory_space<vmem>>, vector<1x16x128xbf16>
    %252 = vector.shape_cast %251 : vector<1x16x128xbf16> to vector<16x128xbf16>
    %c0_140 = arith.constant 0 : index
    %c0_141 = arith.constant 0 : index
    %c0_142 = arith.constant 0 : index
    %253 = vector.load %arg12[%c0_140, %c0_141, %c0_142] : memref<2x16x128xf32, #tpu.memory_space<vmem>>, vector<1x16x128xf32>
    %254 = vector.shape_cast %253 : vector<1x16x128xf32> to vector<16x128xf32>
    %255 = arith.index_cast %250 : i32 to index
    %c0_143 = arith.constant 0 : index
    %256 = vector.load %arg13[%255, %c0_143] : memref<128x512xf32, #tpu.memory_space<vmem>>, vector<16x512xf32>
    %cst_144 = arith.constant dense<0.000000e+00> : vector<16x512xf32>
    %257 = tpu.matmul %252, %10, %cst_144 {dimension_numbers = #tpu.dot_dimension_numbers<[1], [0], [0], [1], [0, 0, 1, 1], [], []>} : vector<16x128xbf16>, vector<128x512xbf16>, vector<16x512xf32> -> vector<16x512xf32>
    %258 = arith.addf %256, %257 : vector<16x512xf32>
    %259 = math.tanh %258 : vector<16x512xf32>
    %260 = vector.extract_strided_slice %259 {offsets = [0, 0], sizes = [16, 384], strides = [1, 1]} : vector<16x512xf32> to vector<16x384xf32>
    %cst_145 = arith.constant 5.000000e-01 : f32
    %261 = vector.broadcast %cst_145 : f32 to vector<16x384xf32>
    %262 = arith.mulf %260, %261 : vector<16x384xf32>
    %cst_146 = arith.constant 5.000000e-01 : f32
    %263 = vector.broadcast %cst_146 : f32 to vector<16x384xf32>
    %264 = arith.addf %262, %263 : vector<16x384xf32>
    %265 = vector.extract_strided_slice %264 {offsets = [0, 0], sizes = [16, 128], strides = [1, 1]} : vector<16x384xf32> to vector<16x128xf32>
    %266 = vector.extract_strided_slice %264 {offsets = [0, 128], sizes = [16, 128], strides = [1, 1]} : vector<16x384xf32> to vector<16x128xf32>
    %267 = vector.extract_strided_slice %264 {offsets = [0, 256], sizes = [16, 128], strides = [1, 1]} : vector<16x384xf32> to vector<16x128xf32>
    %268 = vector.extract_strided_slice %259 {offsets = [0, 384], sizes = [16, 128], strides = [1, 1]} : vector<16x512xf32> to vector<16x128xf32>
    %269 = arith.mulf %266, %254 : vector<16x128xf32>
    %270 = arith.mulf %265, %268 : vector<16x128xf32>
    %271 = arith.addf %269, %270 : vector<16x128xf32>
    %272 = math.tanh %271 : vector<16x128xf32>
    %273 = arith.mulf %267, %272 : vector<16x128xf32>
    %274 = arith.truncf %273 : vector<16x128xf32> to vector<16x128xbf16>
    %c0_147 = arith.constant 0 : index
    %c0_148 = arith.constant 0 : index
    %c0_149 = arith.constant 0 : index
    %275 = vector.load %arg12[%c0_147, %c0_148, %c0_149] : memref<2x16x128xf32, #tpu.memory_space<vmem>>, vector<1x16x128xf32>
    %276 = vector.shape_cast %275 : vector<1x16x128xf32> to vector<16x128xf32>
    %277 = vector.shape_cast %271 : vector<16x128xf32> to vector<1x16x128xf32>
    tpu.vector_store %arg12[%c0_147, %c0_148, %c0_149], %277 {strides = array<i32>} : memref<2x16x128xf32, #tpu.memory_space<vmem>>, vector<1x16x128xf32>,
    %c0_150 = arith.constant 0 : index
    %c0_151 = arith.constant 0 : index
    %c0_152 = arith.constant 0 : index
    %278 = vector.load %arg11[%c0_150, %c0_151, %c0_152] : memref<2x16x128xbf16, #tpu.memory_space<vmem>>, vector<1x16x128xbf16>
    %279 = vector.shape_cast %278 : vector<1x16x128xbf16> to vector<16x128xbf16>
    %280 = vector.shape_cast %274 : vector<16x128xbf16> to vector<1x16x128xbf16>
    tpu.vector_store %arg11[%c0_150, %c0_151, %c0_152], %280 {strides = array<i32>} : memref<2x16x128xbf16, #tpu.memory_space<vmem>>, vector<1x16x128xbf16>,
    %281 = arith.index_cast %250 : i32 to index
    %c0_153 = arith.constant 0 : index
    %282 = vector.load %arg14[%281, %c0_153] : memref<128x128xbf16, #tpu.memory_space<vmem>>, vector<16x128xbf16>
    tpu.vector_store %arg14[%281, %c0_153], %274 {strides = array<i32>} : memref<128x128xbf16, #tpu.memory_space<vmem>>, vector<16x128xbf16>,
    %c8_i32 = arith.constant 8 : i32
    %c0_154 = arith.constant 0 : index
    %c0_155 = arith.constant 0 : index
    %283 = vector.load %arg14[%c0_154, %c0_155] : memref<128x128xbf16, #tpu.memory_space<vmem>>, vector<128x128xbf16>
    %c0_156 = arith.constant 0 : index
    %c0_157 = arith.constant 0 : index
    %284 = vector.load %arg5[%c0_156, %c0_157] : memref<128x512xbf16, #tpu.memory_space<vmem>>, vector<128x512xbf16>
    %cst_158 = arith.constant dense<0.000000e+00> : vector<128x512xf32>
    %285 = tpu.matmul %283, %284, %cst_158 {dimension_numbers = #tpu.dot_dimension_numbers<[1], [0], [0], [1], [0, 0, 1, 1], [], []>} : vector<128x128xbf16>, vector<128x512xbf16>, vector<128x512xf32> -> vector<128x512xf32>
    %c0_159 = arith.constant 0 : index
    %c0_160 = arith.constant 0 : index
    %286 = vector.load %arg7[%c0_159, %c0_160] : memref<1x512xf32, #tpu.memory_space<vmem>>, vector<1x512xf32>
    %287 = vector.broadcast %286 : vector<1x512xf32> to vector<128x512xf32>
    %288 = arith.addf %285, %287 : vector<128x512xf32>
    %c0_161 = arith.constant 0 : index
    %c0_162 = arith.constant 0 : index
    %289 = vector.load %arg13[%c0_161, %c0_162] : memref<128x512xf32, #tpu.memory_space<vmem>>, vector<128x512xf32>
    tpu.vector_store %arg13[%c0_161, %c0_162], %288 {strides = array<i32>} : memref<128x512xf32, #tpu.memory_space<vmem>>, vector<128x512xf32>,
    %c0_163 = arith.constant 0 : index
    %c0_164 = arith.constant 0 : index
    %290 = vector.load %arg6[%c0_163, %c0_164] : memref<128x512xbf16, #tpu.memory_space<vmem>>, vector<128x512xbf16>
    %c0_i32_165 = arith.constant 0 : i32
    %c16_i32_166 = arith.constant 16 : i32
    %291 = arith.muli %c0_i32_165, %c16_i32_166 : i32
    %292 = tpu.assume_multiple %291, 16 : i32
    %c1 = arith.constant 1 : index
    %c0_167 = arith.constant 0 : index
    %c0_168 = arith.constant 0 : index
    %293 = vector.load %arg11[%c1, %c0_167, %c0_168] : memref<2x16x128xbf16, #tpu.memory_space<vmem>>, vector<1x16x128xbf16>
    %294 = vector.shape_cast %293 : vector<1x16x128xbf16> to vector<16x128xbf16>
    %c1_169 = arith.constant 1 : index
    %c0_170 = arith.constant 0 : index
    %c0_171 = arith.constant 0 : index
    %295 = vector.load %arg12[%c1_169, %c0_170, %c0_171] : memref<2x16x128xf32, #tpu.memory_space<vmem>>, vector<1x16x128xf32>
    %296 = vector.shape_cast %295 : vector<1x16x128xf32> to vector<16x128xf32>
    %297 = arith.index_cast %292 : i32 to index
    %c0_172 = arith.constant 0 : index
    %298 = vector.load %arg13[%297, %c0_172] : memref<128x512xf32, #tpu.memory_space<vmem>>, vector<16x512xf32>
    %cst_173 = arith.constant dense<0.000000e+00> : vector<16x512xf32>
    %299 = tpu.matmul %294, %290, %cst_173 {dimension_numbers = #tpu.dot_dimension_numbers<[1], [0], [0], [1], [0, 0, 1, 1], [], []>} : vector<16x128xbf16>, vector<128x512xbf16>, vector<16x512xf32> -> vector<16x512xf32>
    %300 = arith.addf %298, %299 : vector<16x512xf32>
    %301 = math.tanh %300 : vector<16x512xf32>
    %302 = vector.extract_strided_slice %301 {offsets = [0, 0], sizes = [16, 384], strides = [1, 1]} : vector<16x512xf32> to vector<16x384xf32>
    %cst_174 = arith.constant 5.000000e-01 : f32
    %303 = vector.broadcast %cst_174 : f32 to vector<16x384xf32>
    %304 = arith.mulf %302, %303 : vector<16x384xf32>
    %cst_175 = arith.constant 5.000000e-01 : f32
    %305 = vector.broadcast %cst_175 : f32 to vector<16x384xf32>
    %306 = arith.addf %304, %305 : vector<16x384xf32>
    %307 = vector.extract_strided_slice %306 {offsets = [0, 0], sizes = [16, 128], strides = [1, 1]} : vector<16x384xf32> to vector<16x128xf32>
    %308 = vector.extract_strided_slice %306 {offsets = [0, 128], sizes = [16, 128], strides = [1, 1]} : vector<16x384xf32> to vector<16x128xf32>
    %309 = vector.extract_strided_slice %306 {offsets = [0, 256], sizes = [16, 128], strides = [1, 1]} : vector<16x384xf32> to vector<16x128xf32>
    %310 = vector.extract_strided_slice %301 {offsets = [0, 384], sizes = [16, 128], strides = [1, 1]} : vector<16x512xf32> to vector<16x128xf32>
    %311 = arith.mulf %308, %296 : vector<16x128xf32>
    %312 = arith.mulf %307, %310 : vector<16x128xf32>
    %313 = arith.addf %311, %312 : vector<16x128xf32>
    %314 = math.tanh %313 : vector<16x128xf32>
    %315 = arith.mulf %309, %314 : vector<16x128xf32>
    %316 = arith.truncf %315 : vector<16x128xf32> to vector<16x128xbf16>
    %c1_176 = arith.constant 1 : index
    %c0_177 = arith.constant 0 : index
    %c0_178 = arith.constant 0 : index
    %317 = vector.load %arg12[%c1_176, %c0_177, %c0_178] : memref<2x16x128xf32, #tpu.memory_space<vmem>>, vector<1x16x128xf32>
    %318 = vector.shape_cast %317 : vector<1x16x128xf32> to vector<16x128xf32>
    %319 = vector.shape_cast %313 : vector<16x128xf32> to vector<1x16x128xf32>
    tpu.vector_store %arg12[%c1_176, %c0_177, %c0_178], %319 {strides = array<i32>} : memref<2x16x128xf32, #tpu.memory_space<vmem>>, vector<1x16x128xf32>,
    %c1_179 = arith.constant 1 : index
    %c0_180 = arith.constant 0 : index
    %c0_181 = arith.constant 0 : index
    %320 = vector.load %arg11[%c1_179, %c0_180, %c0_181] : memref<2x16x128xbf16, #tpu.memory_space<vmem>>, vector<1x16x128xbf16>
    %321 = vector.shape_cast %320 : vector<1x16x128xbf16> to vector<16x128xbf16>
    %322 = vector.shape_cast %316 : vector<16x128xbf16> to vector<1x16x128xbf16>
    tpu.vector_store %arg11[%c1_179, %c0_180, %c0_181], %322 {strides = array<i32>} : memref<2x16x128xbf16, #tpu.memory_space<vmem>>, vector<1x16x128xbf16>,
    %c1_i32_182 = arith.constant 1 : i32
    %c16_i32_183 = arith.constant 16 : i32
    %323 = arith.muli %c1_i32_182, %c16_i32_183 : i32
    %324 = tpu.assume_multiple %323, 16 : i32
    %c1_184 = arith.constant 1 : index
    %c0_185 = arith.constant 0 : index
    %c0_186 = arith.constant 0 : index
    %325 = vector.load %arg11[%c1_184, %c0_185, %c0_186] : memref<2x16x128xbf16, #tpu.memory_space<vmem>>, vector<1x16x128xbf16>
    %326 = vector.shape_cast %325 : vector<1x16x128xbf16> to vector<16x128xbf16>
    %c1_187 = arith.constant 1 : index
    %c0_188 = arith.constant 0 : index
    %c0_189 = arith.constant 0 : index
    %327 = vector.load %arg12[%c1_187, %c0_188, %c0_189] : memref<2x16x128xf32, #tpu.memory_space<vmem>>, vector<1x16x128xf32>
    %328 = vector.shape_cast %327 : vector<1x16x128xf32> to vector<16x128xf32>
    %329 = arith.index_cast %324 : i32 to index
    %c0_190 = arith.constant 0 : index
    %330 = vector.load %arg13[%329, %c0_190] : memref<128x512xf32, #tpu.memory_space<vmem>>, vector<16x512xf32>
    %cst_191 = arith.constant dense<0.000000e+00> : vector<16x512xf32>
    %331 = tpu.matmul %326, %290, %cst_191 {dimension_numbers = #tpu.dot_dimension_numbers<[1], [0], [0], [1], [0, 0, 1, 1], [], []>} : vector<16x128xbf16>, vector<128x512xbf16>, vector<16x512xf32> -> vector<16x512xf32>
    %332 = arith.addf %330, %331 : vector<16x512xf32>
    %333 = math.tanh %332 : vector<16x512xf32>
    %334 = vector.extract_strided_slice %333 {offsets = [0, 0], sizes = [16, 384], strides = [1, 1]} : vector<16x512xf32> to vector<16x384xf32>
    %cst_192 = arith.constant 5.000000e-01 : f32
    %335 = vector.broadcast %cst_192 : f32 to vector<16x384xf32>
    %336 = arith.mulf %334, %335 : vector<16x384xf32>
    %cst_193 = arith.constant 5.000000e-01 : f32
    %337 = vector.broadcast %cst_193 : f32 to vector<16x384xf32>
    %338 = arith.addf %336, %337 : vector<16x384xf32>
    %339 = vector.extract_strided_slice %338 {offsets = [0, 0], sizes = [16, 128], strides = [1, 1]} : vector<16x384xf32> to vector<16x128xf32>
    %340 = vector.extract_strided_slice %338 {offsets = [0, 128], sizes = [16, 128], strides = [1, 1]} : vector<16x384xf32> to vector<16x128xf32>
    %341 = vector.extract_strided_slice %338 {offsets = [0, 256], sizes = [16, 128], strides = [1, 1]} : vector<16x384xf32> to vector<16x128xf32>
    %342 = vector.extract_strided_slice %333 {offsets = [0, 384], sizes = [16, 128], strides = [1, 1]} : vector<16x512xf32> to vector<16x128xf32>
    %343 = arith.mulf %340, %328 : vector<16x128xf32>
    %344 = arith.mulf %339, %342 : vector<16x128xf32>
    %345 = arith.addf %343, %344 : vector<16x128xf32>
    %346 = math.tanh %345 : vector<16x128xf32>
    %347 = arith.mulf %341, %346 : vector<16x128xf32>
    %348 = arith.truncf %347 : vector<16x128xf32> to vector<16x128xbf16>
    %c1_194 = arith.constant 1 : index
    %c0_195 = arith.constant 0 : index
    %c0_196 = arith.constant 0 : index
    %349 = vector.load %arg12[%c1_194, %c0_195, %c0_196] : memref<2x16x128xf32, #tpu.memory_space<vmem>>, vector<1x16x128xf32>
    %350 = vector.shape_cast %349 : vector<1x16x128xf32> to vector<16x128xf32>
    %351 = vector.shape_cast %345 : vector<16x128xf32> to vector<1x16x128xf32>
    tpu.vector_store %arg12[%c1_194, %c0_195, %c0_196], %351 {strides = array<i32>} : memref<2x16x128xf32, #tpu.memory_space<vmem>>, vector<1x16x128xf32>,
    %c1_197 = arith.constant 1 : index
    %c0_198 = arith.constant 0 : index
    %c0_199 = arith.constant 0 : index
    %352 = vector.load %arg11[%c1_197, %c0_198, %c0_199] : memref<2x16x128xbf16, #tpu.memory_space<vmem>>, vector<1x16x128xbf16>
    %353 = vector.shape_cast %352 : vector<1x16x128xbf16> to vector<16x128xbf16>
    %354 = vector.shape_cast %348 : vector<16x128xbf16> to vector<1x16x128xbf16>
    tpu.vector_store %arg11[%c1_197, %c0_198, %c0_199], %354 {strides = array<i32>} : memref<2x16x128xbf16, #tpu.memory_space<vmem>>, vector<1x16x128xbf16>,
    %c2_i32_200 = arith.constant 2 : i32
    %c16_i32_201 = arith.constant 16 : i32
    %355 = arith.muli %c2_i32_200, %c16_i32_201 : i32
    %356 = tpu.assume_multiple %355, 16 : i32
    %c1_202 = arith.constant 1 : index
    %c0_203 = arith.constant 0 : index
    %c0_204 = arith.constant 0 : index
    %357 = vector.load %arg11[%c1_202, %c0_203, %c0_204] : memref<2x16x128xbf16, #tpu.memory_space<vmem>>, vector<1x16x128xbf16>
    %358 = vector.shape_cast %357 : vector<1x16x128xbf16> to vector<16x128xbf16>
    %c1_205 = arith.constant 1 : index
    %c0_206 = arith.constant 0 : index
    %c0_207 = arith.constant 0 : index
    %359 = vector.load %arg12[%c1_205, %c0_206, %c0_207] : memref<2x16x128xf32, #tpu.memory_space<vmem>>, vector<1x16x128xf32>
    %360 = vector.shape_cast %359 : vector<1x16x128xf32> to vector<16x128xf32>
    %361 = arith.index_cast %356 : i32 to index
    %c0_208 = arith.constant 0 : index
    %362 = vector.load %arg13[%361, %c0_208] : memref<128x512xf32, #tpu.memory_space<vmem>>, vector<16x512xf32>
    %cst_209 = arith.constant dense<0.000000e+00> : vector<16x512xf32>
    %363 = tpu.matmul %358, %290, %cst_209 {dimension_numbers = #tpu.dot_dimension_numbers<[1], [0], [0], [1], [0, 0, 1, 1], [], []>} : vector<16x128xbf16>, vector<128x512xbf16>, vector<16x512xf32> -> vector<16x512xf32>
    %364 = arith.addf %362, %363 : vector<16x512xf32>
    %365 = math.tanh %364 : vector<16x512xf32>
    %366 = vector.extract_strided_slice %365 {offsets = [0, 0], sizes = [16, 384], strides = [1, 1]} : vector<16x512xf32> to vector<16x384xf32>
    %cst_210 = arith.constant 5.000000e-01 : f32
    %367 = vector.broadcast %cst_210 : f32 to vector<16x384xf32>
    %368 = arith.mulf %366, %367 : vector<16x384xf32>
    %cst_211 = arith.constant 5.000000e-01 : f32
    %369 = vector.broadcast %cst_211 : f32 to vector<16x384xf32>
    %370 = arith.addf %368, %369 : vector<16x384xf32>
    %371 = vector.extract_strided_slice %370 {offsets = [0, 0], sizes = [16, 128], strides = [1, 1]} : vector<16x384xf32> to vector<16x128xf32>
    %372 = vector.extract_strided_slice %370 {offsets = [0, 128], sizes = [16, 128], strides = [1, 1]} : vector<16x384xf32> to vector<16x128xf32>
    %373 = vector.extract_strided_slice %370 {offsets = [0, 256], sizes = [16, 128], strides = [1, 1]} : vector<16x384xf32> to vector<16x128xf32>
    %374 = vector.extract_strided_slice %365 {offsets = [0, 384], sizes = [16, 128], strides = [1, 1]} : vector<16x512xf32> to vector<16x128xf32>
    %375 = arith.mulf %372, %360 : vector<16x128xf32>
    %376 = arith.mulf %371, %374 : vector<16x128xf32>
    %377 = arith.addf %375, %376 : vector<16x128xf32>
    %378 = math.tanh %377 : vector<16x128xf32>
    %379 = arith.mulf %373, %378 : vector<16x128xf32>
    %380 = arith.truncf %379 : vector<16x128xf32> to vector<16x128xbf16>
    %c1_212 = arith.constant 1 : index
    %c0_213 = arith.constant 0 : index
    %c0_214 = arith.constant 0 : index
    %381 = vector.load %arg12[%c1_212, %c0_213, %c0_214] : memref<2x16x128xf32, #tpu.memory_space<vmem>>, vector<1x16x128xf32>
    %382 = vector.shape_cast %381 : vector<1x16x128xf32> to vector<16x128xf32>
    %383 = vector.shape_cast %377 : vector<16x128xf32> to vector<1x16x128xf32>
    tpu.vector_store %arg12[%c1_212, %c0_213, %c0_214], %383 {strides = array<i32>} : memref<2x16x128xf32, #tpu.memory_space<vmem>>, vector<1x16x128xf32>,
    %c1_215 = arith.constant 1 : index
    %c0_216 = arith.constant 0 : index
    %c0_217 = arith.constant 0 : index
    %384 = vector.load %arg11[%c1_215, %c0_216, %c0_217] : memref<2x16x128xbf16, #tpu.memory_space<vmem>>, vector<1x16x128xbf16>
    %385 = vector.shape_cast %384 : vector<1x16x128xbf16> to vector<16x128xbf16>
    %386 = vector.shape_cast %380 : vector<16x128xbf16> to vector<1x16x128xbf16>
    tpu.vector_store %arg11[%c1_215, %c0_216, %c0_217], %386 {strides = array<i32>} : memref<2x16x128xbf16, #tpu.memory_space<vmem>>, vector<1x16x128xbf16>,
    %c3_i32_218 = arith.constant 3 : i32
    %c16_i32_219 = arith.constant 16 : i32
    %387 = arith.muli %c3_i32_218, %c16_i32_219 : i32
    %388 = tpu.assume_multiple %387, 16 : i32
    %c1_220 = arith.constant 1 : index
    %c0_221 = arith.constant 0 : index
    %c0_222 = arith.constant 0 : index
    %389 = vector.load %arg11[%c1_220, %c0_221, %c0_222] : memref<2x16x128xbf16, #tpu.memory_space<vmem>>, vector<1x16x128xbf16>
    %390 = vector.shape_cast %389 : vector<1x16x128xbf16> to vector<16x128xbf16>
    %c1_223 = arith.constant 1 : index
    %c0_224 = arith.constant 0 : index
    %c0_225 = arith.constant 0 : index
    %391 = vector.load %arg12[%c1_223, %c0_224, %c0_225] : memref<2x16x128xf32, #tpu.memory_space<vmem>>, vector<1x16x128xf32>
    %392 = vector.shape_cast %391 : vector<1x16x128xf32> to vector<16x128xf32>
    %393 = arith.index_cast %388 : i32 to index
    %c0_226 = arith.constant 0 : index
    %394 = vector.load %arg13[%393, %c0_226] : memref<128x512xf32, #tpu.memory_space<vmem>>, vector<16x512xf32>
    %cst_227 = arith.constant dense<0.000000e+00> : vector<16x512xf32>
    %395 = tpu.matmul %390, %290, %cst_227 {dimension_numbers = #tpu.dot_dimension_numbers<[1], [0], [0], [1], [0, 0, 1, 1], [], []>} : vector<16x128xbf16>, vector<128x512xbf16>, vector<16x512xf32> -> vector<16x512xf32>
    %396 = arith.addf %394, %395 : vector<16x512xf32>
    %397 = math.tanh %396 : vector<16x512xf32>
    %398 = vector.extract_strided_slice %397 {offsets = [0, 0], sizes = [16, 384], strides = [1, 1]} : vector<16x512xf32> to vector<16x384xf32>
    %cst_228 = arith.constant 5.000000e-01 : f32
    %399 = vector.broadcast %cst_228 : f32 to vector<16x384xf32>
    %400 = arith.mulf %398, %399 : vector<16x384xf32>
    %cst_229 = arith.constant 5.000000e-01 : f32
    %401 = vector.broadcast %cst_229 : f32 to vector<16x384xf32>
    %402 = arith.addf %400, %401 : vector<16x384xf32>
    %403 = vector.extract_strided_slice %402 {offsets = [0, 0], sizes = [16, 128], strides = [1, 1]} : vector<16x384xf32> to vector<16x128xf32>
    %404 = vector.extract_strided_slice %402 {offsets = [0, 128], sizes = [16, 128], strides = [1, 1]} : vector<16x384xf32> to vector<16x128xf32>
    %405 = vector.extract_strided_slice %402 {offsets = [0, 256], sizes = [16, 128], strides = [1, 1]} : vector<16x384xf32> to vector<16x128xf32>
    %406 = vector.extract_strided_slice %397 {offsets = [0, 384], sizes = [16, 128], strides = [1, 1]} : vector<16x512xf32> to vector<16x128xf32>
    %407 = arith.mulf %404, %392 : vector<16x128xf32>
    %408 = arith.mulf %403, %406 : vector<16x128xf32>
    %409 = arith.addf %407, %408 : vector<16x128xf32>
    %410 = math.tanh %409 : vector<16x128xf32>
    %411 = arith.mulf %405, %410 : vector<16x128xf32>
    %412 = arith.truncf %411 : vector<16x128xf32> to vector<16x128xbf16>
    %c1_230 = arith.constant 1 : index
    %c0_231 = arith.constant 0 : index
    %c0_232 = arith.constant 0 : index
    %413 = vector.load %arg12[%c1_230, %c0_231, %c0_232] : memref<2x16x128xf32, #tpu.memory_space<vmem>>, vector<1x16x128xf32>
    %414 = vector.shape_cast %413 : vector<1x16x128xf32> to vector<16x128xf32>
    %415 = vector.shape_cast %409 : vector<16x128xf32> to vector<1x16x128xf32>
    tpu.vector_store %arg12[%c1_230, %c0_231, %c0_232], %415 {strides = array<i32>} : memref<2x16x128xf32, #tpu.memory_space<vmem>>, vector<1x16x128xf32>,
    %c1_233 = arith.constant 1 : index
    %c0_234 = arith.constant 0 : index
    %c0_235 = arith.constant 0 : index
    %416 = vector.load %arg11[%c1_233, %c0_234, %c0_235] : memref<2x16x128xbf16, #tpu.memory_space<vmem>>, vector<1x16x128xbf16>
    %417 = vector.shape_cast %416 : vector<1x16x128xbf16> to vector<16x128xbf16>
    %418 = vector.shape_cast %412 : vector<16x128xbf16> to vector<1x16x128xbf16>
    tpu.vector_store %arg11[%c1_233, %c0_234, %c0_235], %418 {strides = array<i32>} : memref<2x16x128xbf16, #tpu.memory_space<vmem>>, vector<1x16x128xbf16>,
    %c4_i32_236 = arith.constant 4 : i32
    %c16_i32_237 = arith.constant 16 : i32
    %419 = arith.muli %c4_i32_236, %c16_i32_237 : i32
    %420 = tpu.assume_multiple %419, 16 : i32
    %c1_238 = arith.constant 1 : index
    %c0_239 = arith.constant 0 : index
    %c0_240 = arith.constant 0 : index
    %421 = vector.load %arg11[%c1_238, %c0_239, %c0_240] : memref<2x16x128xbf16, #tpu.memory_space<vmem>>, vector<1x16x128xbf16>
    %422 = vector.shape_cast %421 : vector<1x16x128xbf16> to vector<16x128xbf16>
    %c1_241 = arith.constant 1 : index
    %c0_242 = arith.constant 0 : index
    %c0_243 = arith.constant 0 : index
    %423 = vector.load %arg12[%c1_241, %c0_242, %c0_243] : memref<2x16x128xf32, #tpu.memory_space<vmem>>, vector<1x16x128xf32>
    %424 = vector.shape_cast %423 : vector<1x16x128xf32> to vector<16x128xf32>
    %425 = arith.index_cast %420 : i32 to index
    %c0_244 = arith.constant 0 : index
    %426 = vector.load %arg13[%425, %c0_244] : memref<128x512xf32, #tpu.memory_space<vmem>>, vector<16x512xf32>
    %cst_245 = arith.constant dense<0.000000e+00> : vector<16x512xf32>
    %427 = tpu.matmul %422, %290, %cst_245 {dimension_numbers = #tpu.dot_dimension_numbers<[1], [0], [0], [1], [0, 0, 1, 1], [], []>} : vector<16x128xbf16>, vector<128x512xbf16>, vector<16x512xf32> -> vector<16x512xf32>
    %428 = arith.addf %426, %427 : vector<16x512xf32>
    %429 = math.tanh %428 : vector<16x512xf32>
    %430 = vector.extract_strided_slice %429 {offsets = [0, 0], sizes = [16, 384], strides = [1, 1]} : vector<16x512xf32> to vector<16x384xf32>
    %cst_246 = arith.constant 5.000000e-01 : f32
    %431 = vector.broadcast %cst_246 : f32 to vector<16x384xf32>
    %432 = arith.mulf %430, %431 : vector<16x384xf32>
    %cst_247 = arith.constant 5.000000e-01 : f32
    %433 = vector.broadcast %cst_247 : f32 to vector<16x384xf32>
    %434 = arith.addf %432, %433 : vector<16x384xf32>
    %435 = vector.extract_strided_slice %434 {offsets = [0, 0], sizes = [16, 128], strides = [1, 1]} : vector<16x384xf32> to vector<16x128xf32>
    %436 = vector.extract_strided_slice %434 {offsets = [0, 128], sizes = [16, 128], strides = [1, 1]} : vector<16x384xf32> to vector<16x128xf32>
    %437 = vector.extract_strided_slice %434 {offsets = [0, 256], sizes = [16, 128], strides = [1, 1]} : vector<16x384xf32> to vector<16x128xf32>
    %438 = vector.extract_strided_slice %429 {offsets = [0, 384], sizes = [16, 128], strides = [1, 1]} : vector<16x512xf32> to vector<16x128xf32>
    %439 = arith.mulf %436, %424 : vector<16x128xf32>
    %440 = arith.mulf %435, %438 : vector<16x128xf32>
    %441 = arith.addf %439, %440 : vector<16x128xf32>
    %442 = math.tanh %441 : vector<16x128xf32>
    %443 = arith.mulf %437, %442 : vector<16x128xf32>
    %444 = arith.truncf %443 : vector<16x128xf32> to vector<16x128xbf16>
    %c1_248 = arith.constant 1 : index
    %c0_249 = arith.constant 0 : index
    %c0_250 = arith.constant 0 : index
    %445 = vector.load %arg12[%c1_248, %c0_249, %c0_250] : memref<2x16x128xf32, #tpu.memory_space<vmem>>, vector<1x16x128xf32>
    %446 = vector.shape_cast %445 : vector<1x16x128xf32> to vector<16x128xf32>
    %447 = vector.shape_cast %441 : vector<16x128xf32> to vector<1x16x128xf32>
    tpu.vector_store %arg12[%c1_248, %c0_249, %c0_250], %447 {strides = array<i32>} : memref<2x16x128xf32, #tpu.memory_space<vmem>>, vector<1x16x128xf32>,
    %c1_251 = arith.constant 1 : index
    %c0_252 = arith.constant 0 : index
    %c0_253 = arith.constant 0 : index
    %448 = vector.load %arg11[%c1_251, %c0_252, %c0_253] : memref<2x16x128xbf16, #tpu.memory_space<vmem>>, vector<1x16x128xbf16>
    %449 = vector.shape_cast %448 : vector<1x16x128xbf16> to vector<16x128xbf16>
    %450 = vector.shape_cast %444 : vector<16x128xbf16> to vector<1x16x128xbf16>
    tpu.vector_store %arg11[%c1_251, %c0_252, %c0_253], %450 {strides = array<i32>} : memref<2x16x128xbf16, #tpu.memory_space<vmem>>, vector<1x16x128xbf16>,
    %c5_i32_254 = arith.constant 5 : i32
    %c16_i32_255 = arith.constant 16 : i32
    %451 = arith.muli %c5_i32_254, %c16_i32_255 : i32
    %452 = tpu.assume_multiple %451, 16 : i32
    %c1_256 = arith.constant 1 : index
    %c0_257 = arith.constant 0 : index
    %c0_258 = arith.constant 0 : index
    %453 = vector.load %arg11[%c1_256, %c0_257, %c0_258] : memref<2x16x128xbf16, #tpu.memory_space<vmem>>, vector<1x16x128xbf16>
    %454 = vector.shape_cast %453 : vector<1x16x128xbf16> to vector<16x128xbf16>
    %c1_259 = arith.constant 1 : index
    %c0_260 = arith.constant 0 : index
    %c0_261 = arith.constant 0 : index
    %455 = vector.load %arg12[%c1_259, %c0_260, %c0_261] : memref<2x16x128xf32, #tpu.memory_space<vmem>>, vector<1x16x128xf32>
    %456 = vector.shape_cast %455 : vector<1x16x128xf32> to vector<16x128xf32>
    %457 = arith.index_cast %452 : i32 to index
    %c0_262 = arith.constant 0 : index
    %458 = vector.load %arg13[%457, %c0_262] : memref<128x512xf32, #tpu.memory_space<vmem>>, vector<16x512xf32>
    %cst_263 = arith.constant dense<0.000000e+00> : vector<16x512xf32>
    %459 = tpu.matmul %454, %290, %cst_263 {dimension_numbers = #tpu.dot_dimension_numbers<[1], [0], [0], [1], [0, 0, 1, 1], [], []>} : vector<16x128xbf16>, vector<128x512xbf16>, vector<16x512xf32> -> vector<16x512xf32>
    %460 = arith.addf %458, %459 : vector<16x512xf32>
    %461 = math.tanh %460 : vector<16x512xf32>
    %462 = vector.extract_strided_slice %461 {offsets = [0, 0], sizes = [16, 384], strides = [1, 1]} : vector<16x512xf32> to vector<16x384xf32>
    %cst_264 = arith.constant 5.000000e-01 : f32
    %463 = vector.broadcast %cst_264 : f32 to vector<16x384xf32>
    %464 = arith.mulf %462, %463 : vector<16x384xf32>
    %cst_265 = arith.constant 5.000000e-01 : f32
    %465 = vector.broadcast %cst_265 : f32 to vector<16x384xf32>
    %466 = arith.addf %464, %465 : vector<16x384xf32>
    %467 = vector.extract_strided_slice %466 {offsets = [0, 0], sizes = [16, 128], strides = [1, 1]} : vector<16x384xf32> to vector<16x128xf32>
    %468 = vector.extract_strided_slice %466 {offsets = [0, 128], sizes = [16, 128], strides = [1, 1]} : vector<16x384xf32> to vector<16x128xf32>
    %469 = vector.extract_strided_slice %466 {offsets = [0, 256], sizes = [16, 128], strides = [1, 1]} : vector<16x384xf32> to vector<16x128xf32>
    %470 = vector.extract_strided_slice %461 {offsets = [0, 384], sizes = [16, 128], strides = [1, 1]} : vector<16x512xf32> to vector<16x128xf32>
    %471 = arith.mulf %468, %456 : vector<16x128xf32>
    %472 = arith.mulf %467, %470 : vector<16x128xf32>
    %473 = arith.addf %471, %472 : vector<16x128xf32>
    %474 = math.tanh %473 : vector<16x128xf32>
    %475 = arith.mulf %469, %474 : vector<16x128xf32>
    %476 = arith.truncf %475 : vector<16x128xf32> to vector<16x128xbf16>
    %c1_266 = arith.constant 1 : index
    %c0_267 = arith.constant 0 : index
    %c0_268 = arith.constant 0 : index
    %477 = vector.load %arg12[%c1_266, %c0_267, %c0_268] : memref<2x16x128xf32, #tpu.memory_space<vmem>>, vector<1x16x128xf32>
    %478 = vector.shape_cast %477 : vector<1x16x128xf32> to vector<16x128xf32>
    %479 = vector.shape_cast %473 : vector<16x128xf32> to vector<1x16x128xf32>
    tpu.vector_store %arg12[%c1_266, %c0_267, %c0_268], %479 {strides = array<i32>} : memref<2x16x128xf32, #tpu.memory_space<vmem>>, vector<1x16x128xf32>,
    %c1_269 = arith.constant 1 : index
    %c0_270 = arith.constant 0 : index
    %c0_271 = arith.constant 0 : index
    %480 = vector.load %arg11[%c1_269, %c0_270, %c0_271] : memref<2x16x128xbf16, #tpu.memory_space<vmem>>, vector<1x16x128xbf16>
    %481 = vector.shape_cast %480 : vector<1x16x128xbf16> to vector<16x128xbf16>
    %482 = vector.shape_cast %476 : vector<16x128xbf16> to vector<1x16x128xbf16>
    tpu.vector_store %arg11[%c1_269, %c0_270, %c0_271], %482 {strides = array<i32>} : memref<2x16x128xbf16, #tpu.memory_space<vmem>>, vector<1x16x128xbf16>,
    %c6_i32_272 = arith.constant 6 : i32
    %c16_i32_273 = arith.constant 16 : i32
    %483 = arith.muli %c6_i32_272, %c16_i32_273 : i32
    %484 = tpu.assume_multiple %483, 16 : i32
    %c1_274 = arith.constant 1 : index
    %c0_275 = arith.constant 0 : index
    %c0_276 = arith.constant 0 : index
    %485 = vector.load %arg11[%c1_274, %c0_275, %c0_276] : memref<2x16x128xbf16, #tpu.memory_space<vmem>>, vector<1x16x128xbf16>
    %486 = vector.shape_cast %485 : vector<1x16x128xbf16> to vector<16x128xbf16>
    %c1_277 = arith.constant 1 : index
    %c0_278 = arith.constant 0 : index
    %c0_279 = arith.constant 0 : index
    %487 = vector.load %arg12[%c1_277, %c0_278, %c0_279] : memref<2x16x128xf32, #tpu.memory_space<vmem>>, vector<1x16x128xf32>
    %488 = vector.shape_cast %487 : vector<1x16x128xf32> to vector<16x128xf32>
    %489 = arith.index_cast %484 : i32 to index
    %c0_280 = arith.constant 0 : index
    %490 = vector.load %arg13[%489, %c0_280] : memref<128x512xf32, #tpu.memory_space<vmem>>, vector<16x512xf32>
    %cst_281 = arith.constant dense<0.000000e+00> : vector<16x512xf32>
    %491 = tpu.matmul %486, %290, %cst_281 {dimension_numbers = #tpu.dot_dimension_numbers<[1], [0], [0], [1], [0, 0, 1, 1], [], []>} : vector<16x128xbf16>, vector<128x512xbf16>, vector<16x512xf32> -> vector<16x512xf32>
    %492 = arith.addf %490, %491 : vector<16x512xf32>
    %493 = math.tanh %492 : vector<16x512xf32>
    %494 = vector.extract_strided_slice %493 {offsets = [0, 0], sizes = [16, 384], strides = [1, 1]} : vector<16x512xf32> to vector<16x384xf32>
    %cst_282 = arith.constant 5.000000e-01 : f32
    %495 = vector.broadcast %cst_282 : f32 to vector<16x384xf32>
    %496 = arith.mulf %494, %495 : vector<16x384xf32>
    %cst_283 = arith.constant 5.000000e-01 : f32
    %497 = vector.broadcast %cst_283 : f32 to vector<16x384xf32>
    %498 = arith.addf %496, %497 : vector<16x384xf32>
    %499 = vector.extract_strided_slice %498 {offsets = [0, 0], sizes = [16, 128], strides = [1, 1]} : vector<16x384xf32> to vector<16x128xf32>
    %500 = vector.extract_strided_slice %498 {offsets = [0, 128], sizes = [16, 128], strides = [1, 1]} : vector<16x384xf32> to vector<16x128xf32>
    %501 = vector.extract_strided_slice %498 {offsets = [0, 256], sizes = [16, 128], strides = [1, 1]} : vector<16x384xf32> to vector<16x128xf32>
    %502 = vector.extract_strided_slice %493 {offsets = [0, 384], sizes = [16, 128], strides = [1, 1]} : vector<16x512xf32> to vector<16x128xf32>
    %503 = arith.mulf %500, %488 : vector<16x128xf32>
    %504 = arith.mulf %499, %502 : vector<16x128xf32>
    %505 = arith.addf %503, %504 : vector<16x128xf32>
    %506 = math.tanh %505 : vector<16x128xf32>
    %507 = arith.mulf %501, %506 : vector<16x128xf32>
    %508 = arith.truncf %507 : vector<16x128xf32> to vector<16x128xbf16>
    %c1_284 = arith.constant 1 : index
    %c0_285 = arith.constant 0 : index
    %c0_286 = arith.constant 0 : index
    %509 = vector.load %arg12[%c1_284, %c0_285, %c0_286] : memref<2x16x128xf32, #tpu.memory_space<vmem>>, vector<1x16x128xf32>
    %510 = vector.shape_cast %509 : vector<1x16x128xf32> to vector<16x128xf32>
    %511 = vector.shape_cast %505 : vector<16x128xf32> to vector<1x16x128xf32>
    tpu.vector_store %arg12[%c1_284, %c0_285, %c0_286], %511 {strides = array<i32>} : memref<2x16x128xf32, #tpu.memory_space<vmem>>, vector<1x16x128xf32>,
    %c1_287 = arith.constant 1 : index
    %c0_288 = arith.constant 0 : index
    %c0_289 = arith.constant 0 : index
    %512 = vector.load %arg11[%c1_287, %c0_288, %c0_289] : memref<2x16x128xbf16, #tpu.memory_space<vmem>>, vector<1x16x128xbf16>
    %513 = vector.shape_cast %512 : vector<1x16x128xbf16> to vector<16x128xbf16>
    %514 = vector.shape_cast %508 : vector<16x128xbf16> to vector<1x16x128xbf16>
    tpu.vector_store %arg11[%c1_287, %c0_288, %c0_289], %514 {strides = array<i32>} : memref<2x16x128xbf16, #tpu.memory_space<vmem>>, vector<1x16x128xbf16>,
    %c7_i32_290 = arith.constant 7 : i32
    %c16_i32_291 = arith.constant 16 : i32
    %515 = arith.muli %c7_i32_290, %c16_i32_291 : i32
    %516 = tpu.assume_multiple %515, 16 : i32
    %c1_292 = arith.constant 1 : index
    %c0_293 = arith.constant 0 : index
    %c0_294 = arith.constant 0 : index
    %517 = vector.load %arg11[%c1_292, %c0_293, %c0_294] : memref<2x16x128xbf16, #tpu.memory_space<vmem>>, vector<1x16x128xbf16>
    %518 = vector.shape_cast %517 : vector<1x16x128xbf16> to vector<16x128xbf16>
    %c1_295 = arith.constant 1 : index
    %c0_296 = arith.constant 0 : index
    %c0_297 = arith.constant 0 : index
    %519 = vector.load %arg12[%c1_295, %c0_296, %c0_297] : memref<2x16x128xf32, #tpu.memory_space<vmem>>, vector<1x16x128xf32>
    %520 = vector.shape_cast %519 : vector<1x16x128xf32> to vector<16x128xf32>
    %521 = arith.index_cast %516 : i32 to index
    %c0_298 = arith.constant 0 : index
    %522 = vector.load %arg13[%521, %c0_298] : memref<128x512xf32, #tpu.memory_space<vmem>>, vector<16x512xf32>
    %cst_299 = arith.constant dense<0.000000e+00> : vector<16x512xf32>
    %523 = tpu.matmul %518, %290, %cst_299 {dimension_numbers = #tpu.dot_dimension_numbers<[1], [0], [0], [1], [0, 0, 1, 1], [], []>} : vector<16x128xbf16>, vector<128x512xbf16>, vector<16x512xf32> -> vector<16x512xf32>
    %524 = arith.addf %522, %523 : vector<16x512xf32>
    %525 = math.tanh %524 : vector<16x512xf32>
    %526 = vector.extract_strided_slice %525 {offsets = [0, 0], sizes = [16, 384], strides = [1, 1]} : vector<16x512xf32> to vector<16x384xf32>
    %cst_300 = arith.constant 5.000000e-01 : f32
    %527 = vector.broadcast %cst_300 : f32 to vector<16x384xf32>
    %528 = arith.mulf %526, %527 : vector<16x384xf32>
    %cst_301 = arith.constant 5.000000e-01 : f32
    %529 = vector.broadcast %cst_301 : f32 to vector<16x384xf32>
    %530 = arith.addf %528, %529 : vector<16x384xf32>
    %531 = vector.extract_strided_slice %530 {offsets = [0, 0], sizes = [16, 128], strides = [1, 1]} : vector<16x384xf32> to vector<16x128xf32>
    %532 = vector.extract_strided_slice %530 {offsets = [0, 128], sizes = [16, 128], strides = [1, 1]} : vector<16x384xf32> to vector<16x128xf32>
    %533 = vector.extract_strided_slice %530 {offsets = [0, 256], sizes = [16, 128], strides = [1, 1]} : vector<16x384xf32> to vector<16x128xf32>
    %534 = vector.extract_strided_slice %525 {offsets = [0, 384], sizes = [16, 128], strides = [1, 1]} : vector<16x512xf32> to vector<16x128xf32>
    %535 = arith.mulf %532, %520 : vector<16x128xf32>
    %536 = arith.mulf %531, %534 : vector<16x128xf32>
    %537 = arith.addf %535, %536 : vector<16x128xf32>
    %538 = math.tanh %537 : vector<16x128xf32>
    %539 = arith.mulf %533, %538 : vector<16x128xf32>
    %540 = arith.truncf %539 : vector<16x128xf32> to vector<16x128xbf16>
    %c1_302 = arith.constant 1 : index
    %c0_303 = arith.constant 0 : index
    %c0_304 = arith.constant 0 : index
    %541 = vector.load %arg12[%c1_302, %c0_303, %c0_304] : memref<2x16x128xf32, #tpu.memory_space<vmem>>, vector<1x16x128xf32>
    %542 = vector.shape_cast %541 : vector<1x16x128xf32> to vector<16x128xf32>
    %543 = vector.shape_cast %537 : vector<16x128xf32> to vector<1x16x128xf32>
    tpu.vector_store %arg12[%c1_302, %c0_303, %c0_304], %543 {strides = array<i32>} : memref<2x16x128xf32, #tpu.memory_space<vmem>>, vector<1x16x128xf32>,
    %c1_305 = arith.constant 1 : index
    %c0_306 = arith.constant 0 : index
    %c0_307 = arith.constant 0 : index
    %544 = vector.load %arg11[%c1_305, %c0_306, %c0_307] : memref<2x16x128xbf16, #tpu.memory_space<vmem>>, vector<1x16x128xbf16>
    %545 = vector.shape_cast %544 : vector<1x16x128xbf16> to vector<16x128xbf16>
    %546 = vector.shape_cast %540 : vector<16x128xbf16> to vector<1x16x128xbf16>
    tpu.vector_store %arg11[%c1_305, %c0_306, %c0_307], %546 {strides = array<i32>} : memref<2x16x128xbf16, #tpu.memory_space<vmem>>, vector<1x16x128xbf16>,
    %c8_i32_308 = arith.constant 8 : i32
    %c0_i32_309 = arith.constant 0 : i32
    %547 = arith.cmpi eq, %arg0, %c0_i32_309 : i32
    %548 = arith.extui %547 : i1 to i32
    %c0_i32_310 = arith.constant 0 : i32
    %549 = arith.cmpi ne, %548, %c0_i32_310 : i32
    scf.if %549 {
      %c1_311 = arith.constant 1 : index
      %c0_312 = arith.constant 0 : index
      %c0_313 = arith.constant 0 : index
      %550 = vector.load %arg11[%c1_311, %c0_312, %c0_313] : memref<2x16x128xbf16, #tpu.memory_space<vmem>>, vector<1x16x128xbf16>
      %551 = vector.shape_cast %550 : vector<1x16x128xbf16> to vector<16x128xbf16>
      %c0_314 = arith.constant 0 : index
      %c0_315 = arith.constant 0 : index
      %552 = vector.load %arg8[%c0_314, %c0_315] : memref<128x128xbf16, #tpu.memory_space<vmem>>, vector<128x128xbf16>
      %cst_316 = arith.constant dense<0.000000e+00> : vector<16x128xf32>
      %553 = tpu.matmul %551, %552, %cst_316 {dimension_numbers = #tpu.dot_dimension_numbers<[1], [0], [0], [1], [0, 0, 1, 1], [], []>} : vector<16x128xbf16>, vector<128x128xbf16>, vector<16x128xf32> -> vector<16x128xf32>
      %c0_317 = arith.constant 0 : index
      %c0_318 = arith.constant 0 : index
      %554 = vector.load %arg9[%c0_317, %c0_318] : memref<1x128xf32, #tpu.memory_space<vmem>>, vector<1x128xf32>
      %555 = vector.broadcast %554 : vector<1x128xf32> to vector<16x128xf32>
      %556 = arith.addf %553, %555 : vector<16x128xf32>
      %c0_319 = arith.constant 0 : index
      %c0_320 = arith.constant 0 : index
      %557 = vector.load %arg10[%c0_319, %c0_320] : memref<16x128xf32, #tpu.memory_space<vmem>>, vector<16x128xf32>
      tpu.vector_store %arg10[%c0_319, %c0_320], %556 {strides = array<i32>} : memref<16x128xf32, #tpu.memory_space<vmem>>, vector<16x128xf32>,
    } else {
    }
    return
  }
  func.func @transform_0(%arg0: i32) -> (i32, i32) {
    %c0_i32 = arith.constant 0 : i32
    %c0_i32_0 = arith.constant 0 : i32
    return %arg0, %c0_i32 : i32, i32
  }
  func.func @transform_1(%arg0: i32) -> (i32, i32) {
    %c0_i32 = arith.constant 0 : i32
    %c0_i32_0 = arith.constant 0 : i32
    %c0_i32_1 = arith.constant 0 : i32
    return %c0_i32, %c0_i32_0 : i32, i32
  }
  func.func @transform_2(%arg0: i32) -> (i32, i32) {
    %c0_i32 = arith.constant 0 : i32
    %c0_i32_0 = arith.constant 0 : i32
    %c0_i32_1 = arith.constant 0 : i32
    return %c0_i32, %c0_i32_0 : i32, i32
  }
  func.func @transform_3(%arg0: i32) -> (i32, i32) {
    %c0_i32 = arith.constant 0 : i32
    %c0_i32_0 = arith.constant 0 : i32
    %c0_i32_1 = arith.constant 0 : i32
    return %c0_i32, %c0_i32_0 : i32, i32
  }
  func.func @transform_4(%arg0: i32) -> (i32, i32) {
    %c0_i32 = arith.constant 0 : i32
    %c0_i32_0 = arith.constant 0 : i32
    %c0_i32_1 = arith.constant 0 : i32
    return %c0_i32, %c0_i32_0 : i32, i32
  }
  func.func @transform_5(%arg0: i32) -> (i32, i32) {
    %c0_i32 = arith.constant 0 : i32
    %c0_i32_0 = arith.constant 0 : i32
    %c0_i32_1 = arith.constant 0 : i32
    return %c0_i32, %c0_i32_0 : i32, i32
  }
  func.func @transform_6(%arg0: i32) -> (i32, i32) {
    %c0_i32 = arith.constant 0 : i32
    %c0_i32_0 = arith.constant 0 : i32
    %c0_i32_1 = arith.constant 0 : i32
    return %c0_i32, %c0_i32_0 : i32, i32
  }
  func.func @transform_7(%arg0: i32) -> (i32, i32) {
    %c0_i32 = arith.constant 0 : i32
    %c0_i32_0 = arith.constant 0 : i32
    %c0_i32_1 = arith.constant 0 : i32
    return %c0_i32, %c0_i32_0 : i32, i32
  }
  func.func @transform_8(%arg0: i32) -> (i32, i32) {
    %c0_i32 = arith.constant 0 : i32
    %c0_i32_0 = arith.constant 0 : i32
    %c0_i32_1 = arith.constant 0 : i32
    return %c0_i32, %c0_i32_0 : i32, i32
  }
  func.func @transform_9(%arg0: i32) -> (i32, i32) {
    %c0_i32 = arith.constant 0 : i32
    %c0_i32_0 = arith.constant 0 : i32
    %c0_i32_1 = arith.constant 0 : i32
    return %c0_i32, %c0_i32_0 : i32, i32
  }
}

module attributes {stable_mosaic.version = 11 : i64} {
  func.func @_fused_lstm_fc_kernel(%arg0: i32, %arg1: memref<128x128xbf16, #tpu.memory_space<vmem>>, %arg2: memref<128x512xbf16, #tpu.memory_space<vmem>>, %arg3: memref<128x512xbf16, #tpu.memory_space<vmem>>, %arg4: memref<1x512xf32, #tpu.memory_space<vmem>>, %arg5: memref<128x512xbf16, #tpu.memory_space<vmem>>, %arg6: memref<128x512xbf16, #tpu.memory_space<vmem>>, %arg7: memref<1x512xf32, #tpu.memory_space<vmem>>, %arg8: memref<128x128xbf16, #tpu.memory_space<vmem>>, %arg9: memref<1x128xf32, #tpu.memory_space<vmem>>, %arg10: memref<16x128xf32, #tpu.memory_space<vmem>>, %arg11: memref<2x16x128xbf16, #tpu.memory_space<vmem>>, %arg12: memref<2x16x128xf32, #tpu.memory_space<vmem>>, %arg13: memref<128x512xf32, #tpu.memory_space<vmem>>, %arg14: memref<128x128xbf16, #tpu.memory_space<vmem>>) attributes {dimension_semantics = [#tpu.dimension_semantics<arbitrary>], iteration_bounds = array<i64: 1>, scalar_prefetch = 0 : i64, scratch_operands = 4 : i64, tpu.core_type = #tpu.core_type<tc>, window_params = [{transform_indices = @transform_0, window_bounds = array<i64: 128, 128>}, {pipeline_mode = #tpu.pipeline_mode<synchronous>, transform_indices = @transform_1, window_bounds = array<i64: 128, 512>}, {pipeline_mode = #tpu.pipeline_mode<synchronous>, transform_indices = @transform_2, window_bounds = array<i64: 128, 512>}, {pipeline_mode = #tpu.pipeline_mode<synchronous>, transform_indices = @transform_3, window_bounds = array<i64: 1, 512>}, {pipeline_mode = #tpu.pipeline_mode<synchronous>, transform_indices = @transform_4, window_bounds = array<i64: 128, 512>}, {pipeline_mode = #tpu.pipeline_mode<synchronous>, transform_indices = @transform_5, window_bounds = array<i64: 128, 512>}, {pipeline_mode = #tpu.pipeline_mode<synchronous>, transform_indices = @transform_6, window_bounds = array<i64: 1, 512>}, {pipeline_mode = #tpu.pipeline_mode<synchronous>, transform_indices = @transform_7, window_bounds = array<i64: 128, 128>}, {pipeline_mode = #tpu.pipeline_mode<synchronous>, transform_indices = @transform_8, window_bounds = array<i64: 1, 128>}, {pipeline_mode = #tpu.pipeline_mode<synchronous>, transform_indices = @transform_9, window_bounds = array<i64: 16, 128>}]} {
    %c0_i32 = arith.constant 0 : i32
    %0 = arith.cmpi eq, %arg0, %c0_i32 : i32
    %1 = arith.extui %0 : i1 to i32
    %c0_i32_0 = arith.constant 0 : i32
    %2 = arith.cmpi ne, %1, %c0_i32_0 : i32
    scf.if %2 {
      %cst_311 = arith.constant 0.000000e+00 : bf16
      %550 = vector.broadcast %cst_311 : bf16 to vector<2x16x128xbf16>
      %c0_312 = arith.constant 0 : index
      %c0_313 = arith.constant 0 : index
      %c0_314 = arith.constant 0 : index
      %551 = vector.load %arg11[%c0_312, %c0_313, %c0_314] : memref<2x16x128xbf16, #tpu.memory_space<vmem>>, vector<2x16x128xbf16>
      tpu.vector_store %arg11[%c0_312, %c0_313, %c0_314], %550 {strides = array<i32>} : memref<2x16x128xbf16, #tpu.memory_space<vmem>>, vector<2x16x128xbf16>,
      %cst_315 = arith.constant 0.000000e+00 : f32
      %552 = vector.broadcast %cst_315 : f32 to vector<2x16x128xf32>
      %c0_316 = arith.constant 0 : index
      %c0_317 = arith.constant 0 : index
      %c0_318 = arith.constant 0 : index
      %553 = vector.load %arg12[%c0_316, %c0_317, %c0_318] : memref<2x16x128xf32, #tpu.memory_space<vmem>>, vector<2x16x128xf32>
      tpu.vector_store %arg12[%c0_316, %c0_317, %c0_318], %552 {strides = array<i32>} : memref<2x16x128xf32, #tpu.memory_space<vmem>>, vector<2x16x128xf32>,
    } else {
    }
    %c0 = arith.constant 0 : index
    %c0_1 = arith.constant 0 : index
    %3 = vector.load %arg1[%c0, %c0_1] : memref<128x128xbf16, #tpu.memory_space<vmem>>, vector<128x128xbf16>
    %c0_2 = arith.constant 0 : index
    %c0_3 = arith.constant 0 : index
    %4 = vector.load %arg2[%c0_2, %c0_3] : memref<128x512xbf16, #tpu.memory_space<vmem>>, vector<128x512xbf16>
    %cst = arith.constant dense<0.000000e+00> : vector<128x512xf32>
    %5 = tpu.matmul %3, %4, %cst {dimension_numbers = #tpu.dot_dimension_numbers<[1], [0], [0], [1], [0, 0, 1, 1], [], []>} : vector<128x128xbf16>, vector<128x512xbf16>, vector<128x512xf32> -> vector<128x512xf32>
    %c0_4 = arith.constant 0 : index
    %c0_5 = arith.constant 0 : index
    %6 = vector.load %arg4[%c0_4, %c0_5] : memref<1x512xf32, #tpu.memory_space<vmem>>, vector<1x512xf32>
    %7 = vector.broadcast %6 : vector<1x512xf32> to vector<128x512xf32>
    %8 = arith.addf %5, %7 : vector<128x512xf32>
    %c0_6 = arith.constant 0 : index
    %c0_7 = arith.constant 0 : index
    %9 = vector.load %arg13[%c0_6, %c0_7] : memref<128x512xf32, #tpu.memory_space<vmem>>, vector<128x512xf32>
    tpu.vector_store %arg13[%c0_6, %c0_7], %8 {strides = array<i32>} : memref<128x512xf32, #tpu.memory_space<vmem>>, vector<128x512xf32>,
    %c0_8 = arith.constant 0 : index
    %c0_9 = arith.constant 0 : index
    %10 = vector.load %arg3[%c0_8, %c0_9] : memref<128x512xbf16, #tpu.memory_space<vmem>>, vector<128x512xbf16>
    %c0_i32_10 = arith.constant 0 : i32
    %c16_i32 = arith.constant 16 : i32
    %11 = arith.muli %c0_i32_10, %c16_i32 : i32
    %12 = tpu.assume_multiple %11, 16 : i32
    %c0_11 = arith.constant 0 : index
    %c0_12 = arith.constant 0 : index
    %c0_13 = arith.constant 0 : index
    %13 = vector.load %arg11[%c0_11, %c0_12, %c0_13] : memref<2x16x128xbf16, #tpu.memory_space<vmem>>, vector<1x16x128xbf16>
    %14 = vector.shape_cast %13 : vector<1x16x128xbf16> to vector<16x128xbf16>
    %c0_14 = arith.constant 0 : index
    %c0_15 = arith.constant 0 : index
    %c0_16 = arith.constant 0 : index
    %15 = vector.load %arg12[%c0_14, %c0_15, %c0_16] : memref<2x16x128xf32, #tpu.memory_space<vmem>>, vector<1x16x128xf32>
    %16 = vector.shape_cast %15 : vector<1x16x128xf32> to vector<16x128xf32>
    %17 = arith.index_cast %12 : i32 to index
    %c0_17 = arith.constant 0 : index
    %18 = vector.load %arg13[%17, %c0_17] : memref<128x512xf32, #tpu.memory_space<vmem>>, vector<16x512xf32>
    %cst_18 = arith.constant dense<0.000000e+00> : vector<16x512xf32>
    %19 = tpu.matmul %14, %10, %cst_18 {dimension_numbers = #tpu.dot_dimension_numbers<[1], [0], [0], [1], [0, 0, 1, 1], [], []>} : vector<16x128xbf16>, vector<128x512xbf16>, vector<16x512xf32> -> vector<16x512xf32>
    %20 = arith.addf %18, %19 : vector<16x512xf32>
    %21 = math.tanh %20 : vector<16x512xf32>
    %22 = vector.extract_strided_slice %21 {offsets = [0, 0], sizes = [16, 384], strides = [1, 1]} : vector<16x512xf32> to vector<16x384xf32>
    %cst_19 = arith.constant 5.000000e-01 : f32
    %23 = vector.broadcast %cst_19 : f32 to vector<16x384xf32>
    %24 = arith.mulf %22, %23 : vector<16x384xf32>
    %cst_20 = arith.constant 5.000000e-01 : f32
    %25 = vector.broadcast %cst_20 : f32 to vector<16x384xf32>
    %26 = arith.addf %24, %25 : vector<16x384xf32>
    %27 = vector.extract_strided_slice %26 {offsets = [0, 0], sizes = [16, 128], strides = [1, 1]} : vector<16x384xf32> to vector<16x128xf32>
    %28 = vector.extract_strided_slice %26 {offsets = [0, 128], sizes = [16, 128], strides = [1, 1]} : vector<16x384xf32> to vector<16x128xf32>
    %29 = vector.extract_strided_slice %26 {offsets = [0, 256], sizes = [16, 128], strides = [1, 1]} : vector<16x384xf32> to vector<16x128xf32>
    %30 = vector.extract_strided_slice %21 {offsets = [0, 384], sizes = [16, 128], strides = [1, 1]} : vector<16x512xf32> to vector<16x128xf32>
    %31 = arith.mulf %28, %16 : vector<16x128xf32>
    %32 = arith.mulf %27, %30 : vector<16x128xf32>
    %33 = arith.addf %31, %32 : vector<16x128xf32>
    %34 = math.tanh %33 : vector<16x128xf32>
    %35 = arith.mulf %29, %34 : vector<16x128xf32>
    %36 = arith.truncf %35 : vector<16x128xf32> to vector<16x128xbf16>
    %c0_21 = arith.constant 0 : index
    %c0_22 = arith.constant 0 : index
    %c0_23 = arith.constant 0 : index
    %37 = vector.load %arg12[%c0_21, %c0_22, %c0_23] : memref<2x16x128xf32, #tpu.memory_space<vmem>>, vector<1x16x128xf32>
    %38 = vector.shape_cast %37 : vector<1x16x128xf32> to vector<16x128xf32>
    %39 = vector.shape_cast %33 : vector<16x128xf32> to vector<1x16x128xf32>
    tpu.vector_store %arg12[%c0_21, %c0_22, %c0_23], %39 {strides = array<i32>} : memref<2x16x128xf32, #tpu.memory_space<vmem>>, vector<1x16x128xf32>,
    %c0_24 = arith.constant 0 : index
    %c0_25 = arith.constant 0 : index
    %c0_26 = arith.constant 0 : index
    %40 = vector.load %arg11[%c0_24, %c0_25, %c0_26] : memref<2x16x128xbf16, #tpu.memory_space<vmem>>, vector<1x16x128xbf16>
    %41 = vector.shape_cast %40 : vector<1x16x128xbf16> to vector<16x128xbf16>
    %42 = vector.shape_cast %36 : vector<16x128xbf16> to vector<1x16x128xbf16>
    tpu.vector_store %arg11[%c0_24, %c0_25, %c0_26], %42 {strides = array<i32>} : memref<2x16x128xbf16, #tpu.memory_space<vmem>>, vector<1x16x128xbf16>,
    %43 = arith.index_cast %12 : i32 to index
    %c0_27 = arith.constant 0 : index
    %44 = vector.load %arg14[%43, %c0_27] : memref<128x128xbf16, #tpu.memory_space<vmem>>, vector<16x128xbf16>
    tpu.vector_store %arg14[%43, %c0_27], %36 {strides = array<i32>} : memref<128x128xbf16, #tpu.memory_space<vmem>>, vector<16x128xbf16>,
    %c1_i32 = arith.constant 1 : i32
    %c16_i32_28 = arith.constant 16 : i32
    %45 = arith.muli %c1_i32, %c16_i32_28 : i32
    %46 = tpu.assume_multiple %45, 16 : i32
    %c0_29 = arith.constant 0 : index
    %c0_30 = arith.constant 0 : index
    %c0_31 = arith.constant 0 : index
    %47 = vector.load %arg11[%c0_29, %c0_30, %c0_31] : memref<2x16x128xbf16, #tpu.memory_space<vmem>>, vector<1x16x128xbf16>
    %48 = vector.shape_cast %47 : vector<1x16x128xbf16> to vector<16x128xbf16>
    %c0_32 = arith.constant 0 : index
    %c0_33 = arith.constant 0 : index
    %c0_34 = arith.constant 0 : index
    %49 = vector.load %arg12[%c0_32, %c0_33, %c0_34] : memref<2x16x128xf32, #tpu.memory_space<vmem>>, vector<1x16x128xf32>
    %50 = vector.shape_cast %49 : vector<1x16x128xf32> to vector<16x128xf32>
    %51 = arith.index_cast %46 : i32 to index
    %c0_35 = arith.constant 0 : index
    %52 = vector.load %arg13[%51, %c0_35] : memref<128x512xf32, #tpu.memory_space<vmem>>, vector<16x512xf32>
    %cst_36 = arith.constant dense<0.000000e+00> : vector<16x512xf32>
    %53 = tpu.matmul %48, %10, %cst_36 {dimension_numbers = #tpu.dot_dimension_numbers<[1], [0], [0], [1], [0, 0, 1, 1], [], []>} : vector<16x128xbf16>, vector<128x512xbf16>, vector<16x512xf32> -> vector<16x512xf32>
    %54 = arith.addf %52, %53 : vector<16x512xf32>
    %55 = math.tanh %54 : vector<16x512xf32>
    %56 = vector.extract_strided_slice %55 {offsets = [0, 0], sizes = [16, 384], strides = [1, 1]} : vector<16x512xf32> to vector<16x384xf32>
    %cst_37 = arith.constant 5.000000e-01 : f32
    %57 = vector.broadcast %cst_37 : f32 to vector<16x384xf32>
    %58 = arith.mulf %56, %57 : vector<16x384xf32>
    %cst_38 = arith.constant 5.000000e-01 : f32
    %59 = vector.broadcast %cst_38 : f32 to vector<16x384xf32>
    %60 = arith.addf %58, %59 : vector<16x384xf32>
    %61 = vector.extract_strided_slice %60 {offsets = [0, 0], sizes = [16, 128], strides = [1, 1]} : vector<16x384xf32> to vector<16x128xf32>
    %62 = vector.extract_strided_slice %60 {offsets = [0, 128], sizes = [16, 128], strides = [1, 1]} : vector<16x384xf32> to vector<16x128xf32>
    %63 = vector.extract_strided_slice %60 {offsets = [0, 256], sizes = [16, 128], strides = [1, 1]} : vector<16x384xf32> to vector<16x128xf32>
    %64 = vector.extract_strided_slice %55 {offsets = [0, 384], sizes = [16, 128], strides = [1, 1]} : vector<16x512xf32> to vector<16x128xf32>
    %65 = arith.mulf %62, %50 : vector<16x128xf32>
    %66 = arith.mulf %61, %64 : vector<16x128xf32>
    %67 = arith.addf %65, %66 : vector<16x128xf32>
    %68 = math.tanh %67 : vector<16x128xf32>
    %69 = arith.mulf %63, %68 : vector<16x128xf32>
    %70 = arith.truncf %69 : vector<16x128xf32> to vector<16x128xbf16>
    %c0_39 = arith.constant 0 : index
    %c0_40 = arith.constant 0 : index
    %c0_41 = arith.constant 0 : index
    %71 = vector.load %arg12[%c0_39, %c0_40, %c0_41] : memref<2x16x128xf32, #tpu.memory_space<vmem>>, vector<1x16x128xf32>
    %72 = vector.shape_cast %71 : vector<1x16x128xf32> to vector<16x128xf32>
    %73 = vector.shape_cast %67 : vector<16x128xf32> to vector<1x16x128xf32>
    tpu.vector_store %arg12[%c0_39, %c0_40, %c0_41], %73 {strides = array<i32>} : memref<2x16x128xf32, #tpu.memory_space<vmem>>, vector<1x16x128xf32>,
    %c0_42 = arith.constant 0 : index
    %c0_43 = arith.constant 0 : index
    %c0_44 = arith.constant 0 : index
    %74 = vector.load %arg11[%c0_42, %c0_43, %c0_44] : memref<2x16x128xbf16, #tpu.memory_space<vmem>>, vector<1x16x128xbf16>
    %75 = vector.shape_cast %74 : vector<1x16x128xbf16> to vector<16x128xbf16>
    %76 = vector.shape_cast %70 : vector<16x128xbf16> to vector<1x16x128xbf16>
    tpu.vector_store %arg11[%c0_42, %c0_43, %c0_44], %76 {strides = array<i32>} : memref<2x16x128xbf16, #tpu.memory_space<vmem>>, vector<1x16x128xbf16>,
    %77 = arith.index_cast %46 : i32 to index
    %c0_45 = arith.constant 0 : index
    %78 = vector.load %arg14[%77, %c0_45] : memref<128x128xbf16, #tpu.memory_space<vmem>>, vector<16x128xbf16>
    tpu.vector_store %arg14[%77, %c0_45], %70 {strides = array<i32>} : memref<128x128xbf16, #tpu.memory_space<vmem>>, vector<16x128xbf16>,
    %c2_i32 = arith.constant 2 : i32
    %c16_i32_46 = arith.constant 16 : i32
    %79 = arith.muli %c2_i32, %c16_i32_46 : i32
    %80 = tpu.assume_multiple %79, 16 : i32
    %c0_47 = arith.constant 0 : index
    %c0_48 = arith.constant 0 : index
    %c0_49 = arith.constant 0 : index
    %81 = vector.load %arg11[%c0_47, %c0_48, %c0_49] : memref<2x16x128xbf16, #tpu.memory_space<vmem>>, vector<1x16x128xbf16>
    %82 = vector.shape_cast %81 : vector<1x16x128xbf16> to vector<16x128xbf16>
    %c0_50 = arith.constant 0 : index
    %c0_51 = arith.constant 0 : index
    %c0_52 = arith.constant 0 : index
    %83 = vector.load %arg12[%c0_50, %c0_51, %c0_52] : memref<2x16x128xf32, #tpu.memory_space<vmem>>, vector<1x16x128xf32>
    %84 = vector.shape_cast %83 : vector<1x16x128xf32> to vector<16x128xf32>
    %85 = arith.index_cast %80 : i32 to index
    %c0_53 = arith.constant 0 : index
    %86 = vector.load %arg13[%85, %c0_53] : memref<128x512xf32, #tpu.memory_space<vmem>>, vector<16x512xf32>
    %cst_54 = arith.constant dense<0.000000e+00> : vector<16x512xf32>
    %87 = tpu.matmul %82, %10, %cst_54 {dimension_numbers = #tpu.dot_dimension_numbers<[1], [0], [0], [1], [0, 0, 1, 1], [], []>} : vector<16x128xbf16>, vector<128x512xbf16>, vector<16x512xf32> -> vector<16x512xf32>
    %88 = arith.addf %86, %87 : vector<16x512xf32>
    %89 = math.tanh %88 : vector<16x512xf32>
    %90 = vector.extract_strided_slice %89 {offsets = [0, 0], sizes = [16, 384], strides = [1, 1]} : vector<16x512xf32> to vector<16x384xf32>
    %cst_55 = arith.constant 5.000000e-01 : f32
    %91 = vector.broadcast %cst_55 : f32 to vector<16x384xf32>
    %92 = arith.mulf %90, %91 : vector<16x384xf32>
    %cst_56 = arith.constant 5.000000e-01 : f32
    %93 = vector.broadcast %cst_56 : f32 to vector<16x384xf32>
    %94 = arith.addf %92, %93 : vector<16x384xf32>
    %95 = vector.extract_strided_slice %94 {offsets = [0, 0], sizes = [16, 128], strides = [1, 1]} : vector<16x384xf32> to vector<16x128xf32>
    %96 = vector.extract_strided_slice %94 {offsets = [0, 128], sizes = [16, 128], strides = [1, 1]} : vector<16x384xf32> to vector<16x128xf32>
    %97 = vector.extract_strided_slice %94 {offsets = [0, 256], sizes = [16, 128], strides = [1, 1]} : vector<16x384xf32> to vector<16x128xf32>
    %98 = vector.extract_strided_slice %89 {offsets = [0, 384], sizes = [16, 128], strides = [1, 1]} : vector<16x512xf32> to vector<16x128xf32>
    %99 = arith.mulf %96, %84 : vector<16x128xf32>
    %100 = arith.mulf %95, %98 : vector<16x128xf32>
    %101 = arith.addf %99, %100 : vector<16x128xf32>
    %102 = math.tanh %101 : vector<16x128xf32>
    %103 = arith.mulf %97, %102 : vector<16x128xf32>
    %104 = arith.truncf %103 : vector<16x128xf32> to vector<16x128xbf16>
    %c0_57 = arith.constant 0 : index
    %c0_58 = arith.constant 0 : index
    %c0_59 = arith.constant 0 : index
    %105 = vector.load %arg12[%c0_57, %c0_58, %c0_59] : memref<2x16x128xf32, #tpu.memory_space<vmem>>, vector<1x16x128xf32>
    %106 = vector.shape_cast %105 : vector<1x16x128xf32> to vector<16x128xf32>
    %107 = vector.shape_cast %101 : vector<16x128xf32> to vector<1x16x128xf32>
    tpu.vector_store %arg12[%c0_57, %c0_58, %c0_59], %107 {strides = array<i32>} : memref<2x16x128xf32, #tpu.memory_space<vmem>>, vector<1x16x128xf32>,
    %c0_60 = arith.constant 0 : index
    %c0_61 = arith.constant 0 : index
    %c0_62 = arith.constant 0 : index
    %108 = vector.load %arg11[%c0_60, %c0_61, %c0_62] : memref<2x16x128xbf16, #tpu.memory_space<vmem>>, vector<1x16x128xbf16>
    %109 = vector.shape_cast %108 : vector<1x16x128xbf16> to vector<16x128xbf16>
    %110 = vector.shape_cast %104 : vector<16x128xbf16> to vector<1x16x128xbf16>
    tpu.vector_store %arg11[%c0_60, %c0_61, %c0_62], %110 {strides = array<i32>} : memref<2x16x128xbf16, #tpu.memory_space<vmem>>, vector<1x16x128xbf16>,
    %111 = arith.index_cast %80 : i32 to index
    %c0_63 = arith.constant 0 : index
    %112 = vector.load %arg14[%111, %c0_63] : memref<128x128xbf16, #tpu.memory_space<vmem>>, vector<16x128xbf16>
    tpu.vector_store %arg14[%111, %c0_63], %104 {strides = array<i32>} : memref<128x128xbf16, #tpu.memory_space<vmem>>, vector<16x128xbf16>,
    %c3_i32 = arith.constant 3 : i32
    %c16_i32_64 = arith.constant 16 : i32
    %113 = arith.muli %c3_i32, %c16_i32_64 : i32
    %114 = tpu.assume_multiple %113, 16 : i32
    %c0_65 = arith.constant 0 : index
    %c0_66 = arith.constant 0 : index
    %c0_67 = arith.constant 0 : index
    %115 = vector.load %arg11[%c0_65, %c0_66, %c0_67] : memref<2x16x128xbf16, #tpu.memory_space<vmem>>, vector<1x16x128xbf16>
    %116 = vector.shape_cast %115 : vector<1x16x128xbf16> to vector<16x128xbf16>
    %c0_68 = arith.constant 0 : index
    %c0_69 = arith.constant 0 : index
    %c0_70 = arith.constant 0 : index
    %117 = vector.load %arg12[%c0_68, %c0_69, %c0_70] : memref<2x16x128xf32, #tpu.memory_space<vmem>>, vector<1x16x128xf32>
    %118 = vector.shape_cast %117 : vector<1x16x128xf32> to vector<16x128xf32>
    %119 = arith.index_cast %114 : i32 to index
    %c0_71 = arith.constant 0 : index
    %120 = vector.load %arg13[%119, %c0_71] : memref<128x512xf32, #tpu.memory_space<vmem>>, vector<16x512xf32>
    %cst_72 = arith.constant dense<0.000000e+00> : vector<16x512xf32>
    %121 = tpu.matmul %116, %10, %cst_72 {dimension_numbers = #tpu.dot_dimension_numbers<[1], [0], [0], [1], [0, 0, 1, 1], [], []>} : vector<16x128xbf16>, vector<128x512xbf16>, vector<16x512xf32> -> vector<16x512xf32>
    %122 = arith.addf %120, %121 : vector<16x512xf32>
    %123 = math.tanh %122 : vector<16x512xf32>
    %124 = vector.extract_strided_slice %123 {offsets = [0, 0], sizes = [16, 384], strides = [1, 1]} : vector<16x512xf32> to vector<16x384xf32>
    %cst_73 = arith.constant 5.000000e-01 : f32
    %125 = vector.broadcast %cst_73 : f32 to vector<16x384xf32>
    %126 = arith.mulf %124, %125 : vector<16x384xf32>
    %cst_74 = arith.constant 5.000000e-01 : f32
    %127 = vector.broadcast %cst_74 : f32 to vector<16x384xf32>
    %128 = arith.addf %126, %127 : vector<16x384xf32>
    %129 = vector.extract_strided_slice %128 {offsets = [0, 0], sizes = [16, 128], strides = [1, 1]} : vector<16x384xf32> to vector<16x128xf32>
    %130 = vector.extract_strided_slice %128 {offsets = [0, 128], sizes = [16, 128], strides = [1, 1]} : vector<16x384xf32> to vector<16x128xf32>
    %131 = vector.extract_strided_slice %128 {offsets = [0, 256], sizes = [16, 128], strides = [1, 1]} : vector<16x384xf32> to vector<16x128xf32>
    %132 = vector.extract_strided_slice %123 {offsets = [0, 384], sizes = [16, 128], strides = [1, 1]} : vector<16x512xf32> to vector<16x128xf32>
    %133 = arith.mulf %130, %118 : vector<16x128xf32>
    %134 = arith.mulf %129, %132 : vector<16x128xf32>
    %135 = arith.addf %133, %134 : vector<16x128xf32>
    %136 = math.tanh %135 : vector<16x128xf32>
    %137 = arith.mulf %131, %136 : vector<16x128xf32>
    %138 = arith.truncf %137 : vector<16x128xf32> to vector<16x128xbf16>
    %c0_75 = arith.constant 0 : index
    %c0_76 = arith.constant 0 : index
    %c0_77 = arith.constant 0 : index
    %139 = vector.load %arg12[%c0_75, %c0_76, %c0_77] : memref<2x16x128xf32, #tpu.memory_space<vmem>>, vector<1x16x128xf32>
    %140 = vector.shape_cast %139 : vector<1x16x128xf32> to vector<16x128xf32>
    %141 = vector.shape_cast %135 : vector<16x128xf32> to vector<1x16x128xf32>
    tpu.vector_store %arg12[%c0_75, %c0_76, %c0_77], %141 {strides = array<i32>} : memref<2x16x128xf32, #tpu.memory_space<vmem>>, vector<1x16x128xf32>,
    %c0_78 = arith.constant 0 : index
    %c0_79 = arith.constant 0 : index
    %c0_80 = arith.constant 0 : index
    %142 = vector.load %arg11[%c0_78, %c0_79, %c0_80] : memref<2x16x128xbf16, #tpu.memory_space<vmem>>, vector<1x16x128xbf16>
    %143 = vector.shape_cast %142 : vector<1x16x128xbf16> to vector<16x128xbf16>
    %144 = vector.shape_cast %138 : vector<16x128xbf16> to vector<1x16x128xbf16>
    tpu.vector_store %arg11[%c0_78, %c0_79, %c0_80], %144 {strides = array<i32>} : memref<2x16x128xbf16, #tpu.memory_space<vmem>>, vector<1x16x128xbf16>,
    %145 = arith.index_cast %114 : i32 to index
    %c0_81 = arith.constant 0 : index
    %146 = vector.load %arg14[%145, %c0_81] : memref<128x128xbf16, #tpu.memory_space<vmem>>, vector<16x128xbf16>
    tpu.vector_store %arg14[%145, %c0_81], %138 {strides = array<i32>} : memref<128x128xbf16, #tpu.memory_space<vmem>>, vector<16x128xbf16>,
    %c4_i32 = arith.constant 4 : i32
    %c16_i32_82 = arith.constant 16 : i32
    %147 = arith.muli %c4_i32, %c16_i32_82 : i32
    %148 = tpu.assume_multiple %147, 16 : i32
    %c0_83 = arith.constant 0 : index
    %c0_84 = arith.constant 0 : index
    %c0_85 = arith.constant 0 : index
    %149 = vector.load %arg11[%c0_83, %c0_84, %c0_85] : memref<2x16x128xbf16, #tpu.memory_space<vmem>>, vector<1x16x128xbf16>
    %150 = vector.shape_cast %149 : vector<1x16x128xbf16> to vector<16x128xbf16>
    %c0_86 = arith.constant 0 : index
    %c0_87 = arith.constant 0 : index
    %c0_88 = arith.constant 0 : index
    %151 = vector.load %arg12[%c0_86, %c0_87, %c0_88] : memref<2x16x128xf32, #tpu.memory_space<vmem>>, vector<1x16x128xf32>
    %152 = vector.shape_cast %151 : vector<1x16x128xf32> to vector<16x128xf32>
    %153 = arith.index_cast %148 : i32 to index
    %c0_89 = arith.constant 0 : index
    %154 = vector.load %arg13[%153, %c0_89] : memref<128x512xf32, #tpu.memory_space<vmem>>, vector<16x512xf32>
    %cst_90 = arith.constant dense<0.000000e+00> : vector<16x512xf32>
    %155 = tpu.matmul %150, %10, %cst_90 {dimension_numbers = #tpu.dot_dimension_numbers<[1], [0], [0], [1], [0, 0, 1, 1], [], []>} : vector<16x128xbf16>, vector<128x512xbf16>, vector<16x512xf32> -> vector<16x512xf32>
    %156 = arith.addf %154, %155 : vector<16x512xf32>
    %157 = math.tanh %156 : vector<16x512xf32>
    %158 = vector.extract_strided_slice %157 {offsets = [0, 0], sizes = [16, 384], strides = [1, 1]} : vector<16x512xf32> to vector<16x384xf32>
    %cst_91 = arith.constant 5.000000e-01 : f32
    %159 = vector.broadcast %cst_91 : f32 to vector<16x384xf32>
    %160 = arith.mulf %158, %159 : vector<16x384xf32>
    %cst_92 = arith.constant 5.000000e-01 : f32
    %161 = vector.broadcast %cst_92 : f32 to vector<16x384xf32>
    %162 = arith.addf %160, %161 : vector<16x384xf32>
    %163 = vector.extract_strided_slice %162 {offsets = [0, 0], sizes = [16, 128], strides = [1, 1]} : vector<16x384xf32> to vector<16x128xf32>
    %164 = vector.extract_strided_slice %162 {offsets = [0, 128], sizes = [16, 128], strides = [1, 1]} : vector<16x384xf32> to vector<16x128xf32>
    %165 = vector.extract_strided_slice %162 {offsets = [0, 256], sizes = [16, 128], strides = [1, 1]} : vector<16x384xf32> to vector<16x128xf32>
    %166 = vector.extract_strided_slice %157 {offsets = [0, 384], sizes = [16, 128], strides = [1, 1]} : vector<16x512xf32> to vector<16x128xf32>
    %167 = arith.mulf %164, %152 : vector<16x128xf32>
    %168 = arith.mulf %163, %166 : vector<16x128xf32>
    %169 = arith.addf %167, %168 : vector<16x128xf32>
    %170 = math.tanh %169 : vector<16x128xf32>
    %171 = arith.mulf %165, %170 : vector<16x128xf32>
    %172 = arith.truncf %171 : vector<16x128xf32> to vector<16x128xbf16>
    %c0_93 = arith.constant 0 : index
    %c0_94 = arith.constant 0 : index
    %c0_95 = arith.constant 0 : index
    %173 = vector.load %arg12[%c0_93, %c0_94, %c0_95] : memref<2x16x128xf32, #tpu.memory_space<vmem>>, vector<1x16x128xf32>
    %174 = vector.shape_cast %173 : vector<1x16x128xf32> to vector<16x128xf32>
    %175 = vector.shape_cast %169 : vector<16x128xf32> to vector<1x16x128xf32>
    tpu.vector_store %arg12[%c0_93, %c0_94, %c0_95], %175 {strides = array<i32>} : memref<2x16x128xf32, #tpu.memory_space<vmem>>, vector<1x16x128xf32>,
    %c0_96 = arith.constant 0 : index
    %c0_97 = arith.constant 0 : index
    %c0_98 = arith.constant 0 : index
    %176 = vector.load %arg11[%c0_96, %c0_97, %c0_98] : memref<2x16x128xbf16, #tpu.memory_space<vmem>>, vector<1x16x128xbf16>
    %177 = vector.shape_cast %176 : vector<1x16x128xbf16> to vector<16x128xbf16>
    %178 = vector.shape_cast %172 : vector<16x128xbf16> to vector<1x16x128xbf16>
    tpu.vector_store %arg11[%c0_96, %c0_97, %c0_98], %178 {strides = array<i32>} : memref<2x16x128xbf16, #tpu.memory_space<vmem>>, vector<1x16x128xbf16>,
    %179 = arith.index_cast %148 : i32 to index
    %c0_99 = arith.constant 0 : index
    %180 = vector.load %arg14[%179, %c0_99] : memref<128x128xbf16, #tpu.memory_space<vmem>>, vector<16x128xbf16>
    tpu.vector_store %arg14[%179, %c0_99], %172 {strides = array<i32>} : memref<128x128xbf16, #tpu.memory_space<vmem>>, vector<16x128xbf16>,
    %c5_i32 = arith.constant 5 : i32
    %c16_i32_100 = arith.constant 16 : i32
    %181 = arith.muli %c5_i32, %c16_i32_100 : i32
    %182 = tpu.assume_multiple %181, 16 : i32
    %c0_101 = arith.constant 0 : index
    %c0_102 = arith.constant 0 : index
    %c0_103 = arith.constant 0 : index
    %183 = vector.load %arg11[%c0_101, %c0_102, %c0_103] : memref<2x16x128xbf16, #tpu.memory_space<vmem>>, vector<1x16x128xbf16>
    %184 = vector.shape_cast %183 : vector<1x16x128xbf16> to vector<16x128xbf16>
    %c0_104 = arith.constant 0 : index
    %c0_105 = arith.constant 0 : index
    %c0_106 = arith.constant 0 : index
    %185 = vector.load %arg12[%c0_104, %c0_105, %c0_106] : memref<2x16x128xf32, #tpu.memory_space<vmem>>, vector<1x16x128xf32>
    %186 = vector.shape_cast %185 : vector<1x16x128xf32> to vector<16x128xf32>
    %187 = arith.index_cast %182 : i32 to index
    %c0_107 = arith.constant 0 : index
    %188 = vector.load %arg13[%187, %c0_107] : memref<128x512xf32, #tpu.memory_space<vmem>>, vector<16x512xf32>
    %cst_108 = arith.constant dense<0.000000e+00> : vector<16x512xf32>
    %189 = tpu.matmul %184, %10, %cst_108 {dimension_numbers = #tpu.dot_dimension_numbers<[1], [0], [0], [1], [0, 0, 1, 1], [], []>} : vector<16x128xbf16>, vector<128x512xbf16>, vector<16x512xf32> -> vector<16x512xf32>
    %190 = arith.addf %188, %189 : vector<16x512xf32>
    %191 = math.tanh %190 : vector<16x512xf32>
    %192 = vector.extract_strided_slice %191 {offsets = [0, 0], sizes = [16, 384], strides = [1, 1]} : vector<16x512xf32> to vector<16x384xf32>
    %cst_109 = arith.constant 5.000000e-01 : f32
    %193 = vector.broadcast %cst_109 : f32 to vector<16x384xf32>
    %194 = arith.mulf %192, %193 : vector<16x384xf32>
    %cst_110 = arith.constant 5.000000e-01 : f32
    %195 = vector.broadcast %cst_110 : f32 to vector<16x384xf32>
    %196 = arith.addf %194, %195 : vector<16x384xf32>
    %197 = vector.extract_strided_slice %196 {offsets = [0, 0], sizes = [16, 128], strides = [1, 1]} : vector<16x384xf32> to vector<16x128xf32>
    %198 = vector.extract_strided_slice %196 {offsets = [0, 128], sizes = [16, 128], strides = [1, 1]} : vector<16x384xf32> to vector<16x128xf32>
    %199 = vector.extract_strided_slice %196 {offsets = [0, 256], sizes = [16, 128], strides = [1, 1]} : vector<16x384xf32> to vector<16x128xf32>
    %200 = vector.extract_strided_slice %191 {offsets = [0, 384], sizes = [16, 128], strides = [1, 1]} : vector<16x512xf32> to vector<16x128xf32>
    %201 = arith.mulf %198, %186 : vector<16x128xf32>
    %202 = arith.mulf %197, %200 : vector<16x128xf32>
    %203 = arith.addf %201, %202 : vector<16x128xf32>
    %204 = math.tanh %203 : vector<16x128xf32>
    %205 = arith.mulf %199, %204 : vector<16x128xf32>
    %206 = arith.truncf %205 : vector<16x128xf32> to vector<16x128xbf16>
    %c0_111 = arith.constant 0 : index
    %c0_112 = arith.constant 0 : index
    %c0_113 = arith.constant 0 : index
    %207 = vector.load %arg12[%c0_111, %c0_112, %c0_113] : memref<2x16x128xf32, #tpu.memory_space<vmem>>, vector<1x16x128xf32>
    %208 = vector.shape_cast %207 : vector<1x16x128xf32> to vector<16x128xf32>
    %209 = vector.shape_cast %203 : vector<16x128xf32> to vector<1x16x128xf32>
    tpu.vector_store %arg12[%c0_111, %c0_112, %c0_113], %209 {strides = array<i32>} : memref<2x16x128xf32, #tpu.memory_space<vmem>>, vector<1x16x128xf32>,
    %c0_114 = arith.constant 0 : index
    %c0_115 = arith.constant 0 : index
    %c0_116 = arith.constant 0 : index
    %210 = vector.load %arg11[%c0_114, %c0_115, %c0_116] : memref<2x16x128xbf16, #tpu.memory_space<vmem>>, vector<1x16x128xbf16>
    %211 = vector.shape_cast %210 : vector<1x16x128xbf16> to vector<16x128xbf16>
    %212 = vector.shape_cast %206 : vector<16x128xbf16> to vector<1x16x128xbf16>
    tpu.vector_store %arg11[%c0_114, %c0_115, %c0_116], %212 {strides = array<i32>} : memref<2x16x128xbf16, #tpu.memory_space<vmem>>, vector<1x16x128xbf16>,
    %213 = arith.index_cast %182 : i32 to index
    %c0_117 = arith.constant 0 : index
    %214 = vector.load %arg14[%213, %c0_117] : memref<128x128xbf16, #tpu.memory_space<vmem>>, vector<16x128xbf16>
    tpu.vector_store %arg14[%213, %c0_117], %206 {strides = array<i32>} : memref<128x128xbf16, #tpu.memory_space<vmem>>, vector<16x128xbf16>,
    %c6_i32 = arith.constant 6 : i32
    %c16_i32_118 = arith.constant 16 : i32
    %215 = arith.muli %c6_i32, %c16_i32_118 : i32
    %216 = tpu.assume_multiple %215, 16 : i32
    %c0_119 = arith.constant 0 : index
    %c0_120 = arith.constant 0 : index
    %c0_121 = arith.constant 0 : index
    %217 = vector.load %arg11[%c0_119, %c0_120, %c0_121] : memref<2x16x128xbf16, #tpu.memory_space<vmem>>, vector<1x16x128xbf16>
    %218 = vector.shape_cast %217 : vector<1x16x128xbf16> to vector<16x128xbf16>
    %c0_122 = arith.constant 0 : index
    %c0_123 = arith.constant 0 : index
    %c0_124 = arith.constant 0 : index
    %219 = vector.load %arg12[%c0_122, %c0_123, %c0_124] : memref<2x16x128xf32, #tpu.memory_space<vmem>>, vector<1x16x128xf32>
    %220 = vector.shape_cast %219 : vector<1x16x128xf32> to vector<16x128xf32>
    %221 = arith.index_cast %216 : i32 to index
    %c0_125 = arith.constant 0 : index
    %222 = vector.load %arg13[%221, %c0_125] : memref<128x512xf32, #tpu.memory_space<vmem>>, vector<16x512xf32>
    %cst_126 = arith.constant dense<0.000000e+00> : vector<16x512xf32>
    %223 = tpu.matmul %218, %10, %cst_126 {dimension_numbers = #tpu.dot_dimension_numbers<[1], [0], [0], [1], [0, 0, 1, 1], [], []>} : vector<16x128xbf16>, vector<128x512xbf16>, vector<16x512xf32> -> vector<16x512xf32>
    %224 = arith.addf %222, %223 : vector<16x512xf32>
    %225 = math.tanh %224 : vector<16x512xf32>
    %226 = vector.extract_strided_slice %225 {offsets = [0, 0], sizes = [16, 384], strides = [1, 1]} : vector<16x512xf32> to vector<16x384xf32>
    %cst_127 = arith.constant 5.000000e-01 : f32
    %227 = vector.broadcast %cst_127 : f32 to vector<16x384xf32>
    %228 = arith.mulf %226, %227 : vector<16x384xf32>
    %cst_128 = arith.constant 5.000000e-01 : f32
    %229 = vector.broadcast %cst_128 : f32 to vector<16x384xf32>
    %230 = arith.addf %228, %229 : vector<16x384xf32>
    %231 = vector.extract_strided_slice %230 {offsets = [0, 0], sizes = [16, 128], strides = [1, 1]} : vector<16x384xf32> to vector<16x128xf32>
    %232 = vector.extract_strided_slice %230 {offsets = [0, 128], sizes = [16, 128], strides = [1, 1]} : vector<16x384xf32> to vector<16x128xf32>
    %233 = vector.extract_strided_slice %230 {offsets = [0, 256], sizes = [16, 128], strides = [1, 1]} : vector<16x384xf32> to vector<16x128xf32>
    %234 = vector.extract_strided_slice %225 {offsets = [0, 384], sizes = [16, 128], strides = [1, 1]} : vector<16x512xf32> to vector<16x128xf32>
    %235 = arith.mulf %232, %220 : vector<16x128xf32>
    %236 = arith.mulf %231, %234 : vector<16x128xf32>
    %237 = arith.addf %235, %236 : vector<16x128xf32>
    %238 = math.tanh %237 : vector<16x128xf32>
    %239 = arith.mulf %233, %238 : vector<16x128xf32>
    %240 = arith.truncf %239 : vector<16x128xf32> to vector<16x128xbf16>
    %c0_129 = arith.constant 0 : index
    %c0_130 = arith.constant 0 : index
    %c0_131 = arith.constant 0 : index
    %241 = vector.load %arg12[%c0_129, %c0_130, %c0_131] : memref<2x16x128xf32, #tpu.memory_space<vmem>>, vector<1x16x128xf32>
    %242 = vector.shape_cast %241 : vector<1x16x128xf32> to vector<16x128xf32>
    %243 = vector.shape_cast %237 : vector<16x128xf32> to vector<1x16x128xf32>
    tpu.vector_store %arg12[%c0_129, %c0_130, %c0_131], %243 {strides = array<i32>} : memref<2x16x128xf32, #tpu.memory_space<vmem>>, vector<1x16x128xf32>,
    %c0_132 = arith.constant 0 : index
    %c0_133 = arith.constant 0 : index
    %c0_134 = arith.constant 0 : index
    %244 = vector.load %arg11[%c0_132, %c0_133, %c0_134] : memref<2x16x128xbf16, #tpu.memory_space<vmem>>, vector<1x16x128xbf16>
    %245 = vector.shape_cast %244 : vector<1x16x128xbf16> to vector<16x128xbf16>
    %246 = vector.shape_cast %240 : vector<16x128xbf16> to vector<1x16x128xbf16>
    tpu.vector_store %arg11[%c0_132, %c0_133, %c0_134], %246 {strides = array<i32>} : memref<2x16x128xbf16, #tpu.memory_space<vmem>>, vector<1x16x128xbf16>,
    %247 = arith.index_cast %216 : i32 to index
    %c0_135 = arith.constant 0 : index
    %248 = vector.load %arg14[%247, %c0_135] : memref<128x128xbf16, #tpu.memory_space<vmem>>, vector<16x128xbf16>
    tpu.vector_store %arg14[%247, %c0_135], %240 {strides = array<i32>} : memref<128x128xbf16, #tpu.memory_space<vmem>>, vector<16x128xbf16>,
    %c7_i32 = arith.constant 7 : i32
    %c16_i32_136 = arith.constant 16 : i32
    %249 = arith.muli %c7_i32, %c16_i32_136 : i32
    %250 = tpu.assume_multiple %249, 16 : i32
    %c0_137 = arith.constant 0 : index
    %c0_138 = arith.constant 0 : index
    %c0_139 = arith.constant 0 : index
    %251 = vector.load %arg11[%c0_137, %c0_138, %c0_139] : memref<2x16x128xbf16, #tpu.memory_space<vmem>>, vector<1x16x128xbf16>
    %252 = vector.shape_cast %251 : vector<1x16x128xbf16> to vector<16x128xbf16>
    %c0_140 = arith.constant 0 : index
    %c0_141 = arith.constant 0 : index
    %c0_142 = arith.constant 0 : index
    %253 = vector.load %arg12[%c0_140, %c0_141, %c0_142] : memref<2x16x128xf32, #tpu.memory_space<vmem>>, vector<1x16x128xf32>
    %254 = vector.shape_cast %253 : vector<1x16x128xf32> to vector<16x128xf32>
    %255 = arith.index_cast %250 : i32 to index
    %c0_143 = arith.constant 0 : index
    %256 = vector.load %arg13[%255, %c0_143] : memref<128x512xf32, #tpu.memory_space<vmem>>, vector<16x512xf32>
    %cst_144 = arith.constant dense<0.000000e+00> : vector<16x512xf32>
    %257 = tpu.matmul %252, %10, %cst_144 {dimension_numbers = #tpu.dot_dimension_numbers<[1], [0], [0], [1], [0, 0, 1, 1], [], []>} : vector<16x128xbf16>, vector<128x512xbf16>, vector<16x512xf32> -> vector<16x512xf32>
    %258 = arith.addf %256, %257 : vector<16x512xf32>
    %259 = math.tanh %258 : vector<16x512xf32>
    %260 = vector.extract_strided_slice %259 {offsets = [0, 0], sizes = [16, 384], strides = [1, 1]} : vector<16x512xf32> to vector<16x384xf32>
    %cst_145 = arith.constant 5.000000e-01 : f32
    %261 = vector.broadcast %cst_145 : f32 to vector<16x384xf32>
    %262 = arith.mulf %260, %261 : vector<16x384xf32>
    %cst_146 = arith.constant 5.000000e-01 : f32
    %263 = vector.broadcast %cst_146 : f32 to vector<16x384xf32>
    %264 = arith.addf %262, %263 : vector<16x384xf32>
    %265 = vector.extract_strided_slice %264 {offsets = [0, 0], sizes = [16, 128], strides = [1, 1]} : vector<16x384xf32> to vector<16x128xf32>
    %266 = vector.extract_strided_slice %264 {offsets = [0, 128], sizes = [16, 128], strides = [1, 1]} : vector<16x384xf32> to vector<16x128xf32>
    %267 = vector.extract_strided_slice %264 {offsets = [0, 256], sizes = [16, 128], strides = [1, 1]} : vector<16x384xf32> to vector<16x128xf32>
    %268 = vector.extract_strided_slice %259 {offsets = [0, 384], sizes = [16, 128], strides = [1, 1]} : vector<16x512xf32> to vector<16x128xf32>
    %269 = arith.mulf %266, %254 : vector<16x128xf32>
    %270 = arith.mulf %265, %268 : vector<16x128xf32>
    %271 = arith.addf %269, %270 : vector<16x128xf32>
    %272 = math.tanh %271 : vector<16x128xf32>
    %273 = arith.mulf %267, %272 : vector<16x128xf32>
    %274 = arith.truncf %273 : vector<16x128xf32> to vector<16x128xbf16>
    %c0_147 = arith.constant 0 : index
    %c0_148 = arith.constant 0 : index
    %c0_149 = arith.constant 0 : index
    %275 = vector.load %arg12[%c0_147, %c0_148, %c0_149] : memref<2x16x128xf32, #tpu.memory_space<vmem>>, vector<1x16x128xf32>
    %276 = vector.shape_cast %275 : vector<1x16x128xf32> to vector<16x128xf32>
    %277 = vector.shape_cast %271 : vector<16x128xf32> to vector<1x16x128xf32>
    tpu.vector_store %arg12[%c0_147, %c0_148, %c0_149], %277 {strides = array<i32>} : memref<2x16x128xf32, #tpu.memory_space<vmem>>, vector<1x16x128xf32>,
    %c0_150 = arith.constant 0 : index
    %c0_151 = arith.constant 0 : index
    %c0_152 = arith.constant 0 : index
    %278 = vector.load %arg11[%c0_150, %c0_151, %c0_152] : memref<2x16x128xbf16, #tpu.memory_space<vmem>>, vector<1x16x128xbf16>
    %279 = vector.shape_cast %278 : vector<1x16x128xbf16> to vector<16x128xbf16>
    %280 = vector.shape_cast %274 : vector<16x128xbf16> to vector<1x16x128xbf16>
    tpu.vector_store %arg11[%c0_150, %c0_151, %c0_152], %280 {strides = array<i32>} : memref<2x16x128xbf16, #tpu.memory_space<vmem>>, vector<1x16x128xbf16>,
    %281 = arith.index_cast %250 : i32 to index
    %c0_153 = arith.constant 0 : index
    %282 = vector.load %arg14[%281, %c0_153] : memref<128x128xbf16, #tpu.memory_space<vmem>>, vector<16x128xbf16>
    tpu.vector_store %arg14[%281, %c0_153], %274 {strides = array<i32>} : memref<128x128xbf16, #tpu.memory_space<vmem>>, vector<16x128xbf16>,
    %c8_i32 = arith.constant 8 : i32
    %c0_154 = arith.constant 0 : index
    %c0_155 = arith.constant 0 : index
    %283 = vector.load %arg14[%c0_154, %c0_155] : memref<128x128xbf16, #tpu.memory_space<vmem>>, vector<128x128xbf16>
    %c0_156 = arith.constant 0 : index
    %c0_157 = arith.constant 0 : index
    %284 = vector.load %arg5[%c0_156, %c0_157] : memref<128x512xbf16, #tpu.memory_space<vmem>>, vector<128x512xbf16>
    %cst_158 = arith.constant dense<0.000000e+00> : vector<128x512xf32>
    %285 = tpu.matmul %283, %284, %cst_158 {dimension_numbers = #tpu.dot_dimension_numbers<[1], [0], [0], [1], [0, 0, 1, 1], [], []>} : vector<128x128xbf16>, vector<128x512xbf16>, vector<128x512xf32> -> vector<128x512xf32>
    %c0_159 = arith.constant 0 : index
    %c0_160 = arith.constant 0 : index
    %286 = vector.load %arg7[%c0_159, %c0_160] : memref<1x512xf32, #tpu.memory_space<vmem>>, vector<1x512xf32>
    %287 = vector.broadcast %286 : vector<1x512xf32> to vector<128x512xf32>
    %288 = arith.addf %285, %287 : vector<128x512xf32>
    %c0_161 = arith.constant 0 : index
    %c0_162 = arith.constant 0 : index
    %289 = vector.load %arg13[%c0_161, %c0_162] : memref<128x512xf32, #tpu.memory_space<vmem>>, vector<128x512xf32>
    tpu.vector_store %arg13[%c0_161, %c0_162], %288 {strides = array<i32>} : memref<128x512xf32, #tpu.memory_space<vmem>>, vector<128x512xf32>,
    %c0_163 = arith.constant 0 : index
    %c0_164 = arith.constant 0 : index
    %290 = vector.load %arg6[%c0_163, %c0_164] : memref<128x512xbf16, #tpu.memory_space<vmem>>, vector<128x512xbf16>
    %c0_i32_165 = arith.constant 0 : i32
    %c16_i32_166 = arith.constant 16 : i32
    %291 = arith.muli %c0_i32_165, %c16_i32_166 : i32
    %292 = tpu.assume_multiple %291, 16 : i32
    %c1 = arith.constant 1 : index
    %c0_167 = arith.constant 0 : index
    %c0_168 = arith.constant 0 : index
    %293 = vector.load %arg11[%c1, %c0_167, %c0_168] : memref<2x16x128xbf16, #tpu.memory_space<vmem>>, vector<1x16x128xbf16>
    %294 = vector.shape_cast %293 : vector<1x16x128xbf16> to vector<16x128xbf16>
    %c1_169 = arith.constant 1 : index
    %c0_170 = arith.constant 0 : index
    %c0_171 = arith.constant 0 : index
    %295 = vector.load %arg12[%c1_169, %c0_170, %c0_171] : memref<2x16x128xf32, #tpu.memory_space<vmem>>, vector<1x16x128xf32>
    %296 = vector.shape_cast %295 : vector<1x16x128xf32> to vector<16x128xf32>
    %297 = arith.index_cast %292 : i32 to index
    %c0_172 = arith.constant 0 : index
    %298 = vector.load %arg13[%297, %c0_172] : memref<128x512xf32, #tpu.memory_space<vmem>>, vector<16x512xf32>
    %cst_173 = arith.constant dense<0.000000e+00> : vector<16x512xf32>
    %299 = tpu.matmul %294, %290, %cst_173 {dimension_numbers = #tpu.dot_dimension_numbers<[1], [0], [0], [1], [0, 0, 1, 1], [], []>} : vector<16x128xbf16>, vector<128x512xbf16>, vector<16x512xf32> -> vector<16x512xf32>
    %300 = arith.addf %298, %299 : vector<16x512xf32>
    %301 = math.tanh %300 : vector<16x512xf32>
    %302 = vector.extract_strided_slice %301 {offsets = [0, 0], sizes = [16, 384], strides = [1, 1]} : vector<16x512xf32> to vector<16x384xf32>
    %cst_174 = arith.constant 5.000000e-01 : f32
    %303 = vector.broadcast %cst_174 : f32 to vector<16x384xf32>
    %304 = arith.mulf %302, %303 : vector<16x384xf32>
    %cst_175 = arith.constant 5.000000e-01 : f32
    %305 = vector.broadcast %cst_175 : f32 to vector<16x384xf32>
    %306 = arith.addf %304, %305 : vector<16x384xf32>
    %307 = vector.extract_strided_slice %306 {offsets = [0, 0], sizes = [16, 128], strides = [1, 1]} : vector<16x384xf32> to vector<16x128xf32>
    %308 = vector.extract_strided_slice %306 {offsets = [0, 128], sizes = [16, 128], strides = [1, 1]} : vector<16x384xf32> to vector<16x128xf32>
    %309 = vector.extract_strided_slice %306 {offsets = [0, 256], sizes = [16, 128], strides = [1, 1]} : vector<16x384xf32> to vector<16x128xf32>
    %310 = vector.extract_strided_slice %301 {offsets = [0, 384], sizes = [16, 128], strides = [1, 1]} : vector<16x512xf32> to vector<16x128xf32>
    %311 = arith.mulf %308, %296 : vector<16x128xf32>
    %312 = arith.mulf %307, %310 : vector<16x128xf32>
    %313 = arith.addf %311, %312 : vector<16x128xf32>
    %314 = math.tanh %313 : vector<16x128xf32>
    %315 = arith.mulf %309, %314 : vector<16x128xf32>
    %316 = arith.truncf %315 : vector<16x128xf32> to vector<16x128xbf16>
    %c1_176 = arith.constant 1 : index
    %c0_177 = arith.constant 0 : index
    %c0_178 = arith.constant 0 : index
    %317 = vector.load %arg12[%c1_176, %c0_177, %c0_178] : memref<2x16x128xf32, #tpu.memory_space<vmem>>, vector<1x16x128xf32>
    %318 = vector.shape_cast %317 : vector<1x16x128xf32> to vector<16x128xf32>
    %319 = vector.shape_cast %313 : vector<16x128xf32> to vector<1x16x128xf32>
    tpu.vector_store %arg12[%c1_176, %c0_177, %c0_178], %319 {strides = array<i32>} : memref<2x16x128xf32, #tpu.memory_space<vmem>>, vector<1x16x128xf32>,
    %c1_179 = arith.constant 1 : index
    %c0_180 = arith.constant 0 : index
    %c0_181 = arith.constant 0 : index
    %320 = vector.load %arg11[%c1_179, %c0_180, %c0_181] : memref<2x16x128xbf16, #tpu.memory_space<vmem>>, vector<1x16x128xbf16>
    %321 = vector.shape_cast %320 : vector<1x16x128xbf16> to vector<16x128xbf16>
    %322 = vector.shape_cast %316 : vector<16x128xbf16> to vector<1x16x128xbf16>
    tpu.vector_store %arg11[%c1_179, %c0_180, %c0_181], %322 {strides = array<i32>} : memref<2x16x128xbf16, #tpu.memory_space<vmem>>, vector<1x16x128xbf16>,
    %c1_i32_182 = arith.constant 1 : i32
    %c16_i32_183 = arith.constant 16 : i32
    %323 = arith.muli %c1_i32_182, %c16_i32_183 : i32
    %324 = tpu.assume_multiple %323, 16 : i32
    %c1_184 = arith.constant 1 : index
    %c0_185 = arith.constant 0 : index
    %c0_186 = arith.constant 0 : index
    %325 = vector.load %arg11[%c1_184, %c0_185, %c0_186] : memref<2x16x128xbf16, #tpu.memory_space<vmem>>, vector<1x16x128xbf16>
    %326 = vector.shape_cast %325 : vector<1x16x128xbf16> to vector<16x128xbf16>
    %c1_187 = arith.constant 1 : index
    %c0_188 = arith.constant 0 : index
    %c0_189 = arith.constant 0 : index
    %327 = vector.load %arg12[%c1_187, %c0_188, %c0_189] : memref<2x16x128xf32, #tpu.memory_space<vmem>>, vector<1x16x128xf32>
    %328 = vector.shape_cast %327 : vector<1x16x128xf32> to vector<16x128xf32>
    %329 = arith.index_cast %324 : i32 to index
    %c0_190 = arith.constant 0 : index
    %330 = vector.load %arg13[%329, %c0_190] : memref<128x512xf32, #tpu.memory_space<vmem>>, vector<16x512xf32>
    %cst_191 = arith.constant dense<0.000000e+00> : vector<16x512xf32>
    %331 = tpu.matmul %326, %290, %cst_191 {dimension_numbers = #tpu.dot_dimension_numbers<[1], [0], [0], [1], [0, 0, 1, 1], [], []>} : vector<16x128xbf16>, vector<128x512xbf16>, vector<16x512xf32> -> vector<16x512xf32>
    %332 = arith.addf %330, %331 : vector<16x512xf32>
    %333 = math.tanh %332 : vector<16x512xf32>
    %334 = vector.extract_strided_slice %333 {offsets = [0, 0], sizes = [16, 384], strides = [1, 1]} : vector<16x512xf32> to vector<16x384xf32>
    %cst_192 = arith.constant 5.000000e-01 : f32
    %335 = vector.broadcast %cst_192 : f32 to vector<16x384xf32>
    %336 = arith.mulf %334, %335 : vector<16x384xf32>
    %cst_193 = arith.constant 5.000000e-01 : f32
    %337 = vector.broadcast %cst_193 : f32 to vector<16x384xf32>
    %338 = arith.addf %336, %337 : vector<16x384xf32>
    %339 = vector.extract_strided_slice %338 {offsets = [0, 0], sizes = [16, 128], strides = [1, 1]} : vector<16x384xf32> to vector<16x128xf32>
    %340 = vector.extract_strided_slice %338 {offsets = [0, 128], sizes = [16, 128], strides = [1, 1]} : vector<16x384xf32> to vector<16x128xf32>
    %341 = vector.extract_strided_slice %338 {offsets = [0, 256], sizes = [16, 128], strides = [1, 1]} : vector<16x384xf32> to vector<16x128xf32>
    %342 = vector.extract_strided_slice %333 {offsets = [0, 384], sizes = [16, 128], strides = [1, 1]} : vector<16x512xf32> to vector<16x128xf32>
    %343 = arith.mulf %340, %328 : vector<16x128xf32>
    %344 = arith.mulf %339, %342 : vector<16x128xf32>
    %345 = arith.addf %343, %344 : vector<16x128xf32>
    %346 = math.tanh %345 : vector<16x128xf32>
    %347 = arith.mulf %341, %346 : vector<16x128xf32>
    %348 = arith.truncf %347 : vector<16x128xf32> to vector<16x128xbf16>
    %c1_194 = arith.constant 1 : index
    %c0_195 = arith.constant 0 : index
    %c0_196 = arith.constant 0 : index
    %349 = vector.load %arg12[%c1_194, %c0_195, %c0_196] : memref<2x16x128xf32, #tpu.memory_space<vmem>>, vector<1x16x128xf32>
    %350 = vector.shape_cast %349 : vector<1x16x128xf32> to vector<16x128xf32>
    %351 = vector.shape_cast %345 : vector<16x128xf32> to vector<1x16x128xf32>
    tpu.vector_store %arg12[%c1_194, %c0_195, %c0_196], %351 {strides = array<i32>} : memref<2x16x128xf32, #tpu.memory_space<vmem>>, vector<1x16x128xf32>,
    %c1_197 = arith.constant 1 : index
    %c0_198 = arith.constant 0 : index
    %c0_199 = arith.constant 0 : index
    %352 = vector.load %arg11[%c1_197, %c0_198, %c0_199] : memref<2x16x128xbf16, #tpu.memory_space<vmem>>, vector<1x16x128xbf16>
    %353 = vector.shape_cast %352 : vector<1x16x128xbf16> to vector<16x128xbf16>
    %354 = vector.shape_cast %348 : vector<16x128xbf16> to vector<1x16x128xbf16>
    tpu.vector_store %arg11[%c1_197, %c0_198, %c0_199], %354 {strides = array<i32>} : memref<2x16x128xbf16, #tpu.memory_space<vmem>>, vector<1x16x128xbf16>,
    %c2_i32_200 = arith.constant 2 : i32
    %c16_i32_201 = arith.constant 16 : i32
    %355 = arith.muli %c2_i32_200, %c16_i32_201 : i32
    %356 = tpu.assume_multiple %355, 16 : i32
    %c1_202 = arith.constant 1 : index
    %c0_203 = arith.constant 0 : index
    %c0_204 = arith.constant 0 : index
    %357 = vector.load %arg11[%c1_202, %c0_203, %c0_204] : memref<2x16x128xbf16, #tpu.memory_space<vmem>>, vector<1x16x128xbf16>
    %358 = vector.shape_cast %357 : vector<1x16x128xbf16> to vector<16x128xbf16>
    %c1_205 = arith.constant 1 : index
    %c0_206 = arith.constant 0 : index
    %c0_207 = arith.constant 0 : index
    %359 = vector.load %arg12[%c1_205, %c0_206, %c0_207] : memref<2x16x128xf32, #tpu.memory_space<vmem>>, vector<1x16x128xf32>
    %360 = vector.shape_cast %359 : vector<1x16x128xf32> to vector<16x128xf32>
    %361 = arith.index_cast %356 : i32 to index
    %c0_208 = arith.constant 0 : index
    %362 = vector.load %arg13[%361, %c0_208] : memref<128x512xf32, #tpu.memory_space<vmem>>, vector<16x512xf32>
    %cst_209 = arith.constant dense<0.000000e+00> : vector<16x512xf32>
    %363 = tpu.matmul %358, %290, %cst_209 {dimension_numbers = #tpu.dot_dimension_numbers<[1], [0], [0], [1], [0, 0, 1, 1], [], []>} : vector<16x128xbf16>, vector<128x512xbf16>, vector<16x512xf32> -> vector<16x512xf32>
    %364 = arith.addf %362, %363 : vector<16x512xf32>
    %365 = math.tanh %364 : vector<16x512xf32>
    %366 = vector.extract_strided_slice %365 {offsets = [0, 0], sizes = [16, 384], strides = [1, 1]} : vector<16x512xf32> to vector<16x384xf32>
    %cst_210 = arith.constant 5.000000e-01 : f32
    %367 = vector.broadcast %cst_210 : f32 to vector<16x384xf32>
    %368 = arith.mulf %366, %367 : vector<16x384xf32>
    %cst_211 = arith.constant 5.000000e-01 : f32
    %369 = vector.broadcast %cst_211 : f32 to vector<16x384xf32>
    %370 = arith.addf %368, %369 : vector<16x384xf32>
    %371 = vector.extract_strided_slice %370 {offsets = [0, 0], sizes = [16, 128], strides = [1, 1]} : vector<16x384xf32> to vector<16x128xf32>
    %372 = vector.extract_strided_slice %370 {offsets = [0, 128], sizes = [16, 128], strides = [1, 1]} : vector<16x384xf32> to vector<16x128xf32>
    %373 = vector.extract_strided_slice %370 {offsets = [0, 256], sizes = [16, 128], strides = [1, 1]} : vector<16x384xf32> to vector<16x128xf32>
    %374 = vector.extract_strided_slice %365 {offsets = [0, 384], sizes = [16, 128], strides = [1, 1]} : vector<16x512xf32> to vector<16x128xf32>
    %375 = arith.mulf %372, %360 : vector<16x128xf32>
    %376 = arith.mulf %371, %374 : vector<16x128xf32>
    %377 = arith.addf %375, %376 : vector<16x128xf32>
    %378 = math.tanh %377 : vector<16x128xf32>
    %379 = arith.mulf %373, %378 : vector<16x128xf32>
    %380 = arith.truncf %379 : vector<16x128xf32> to vector<16x128xbf16>
    %c1_212 = arith.constant 1 : index
    %c0_213 = arith.constant 0 : index
    %c0_214 = arith.constant 0 : index
    %381 = vector.load %arg12[%c1_212, %c0_213, %c0_214] : memref<2x16x128xf32, #tpu.memory_space<vmem>>, vector<1x16x128xf32>
    %382 = vector.shape_cast %381 : vector<1x16x128xf32> to vector<16x128xf32>
    %383 = vector.shape_cast %377 : vector<16x128xf32> to vector<1x16x128xf32>
    tpu.vector_store %arg12[%c1_212, %c0_213, %c0_214], %383 {strides = array<i32>} : memref<2x16x128xf32, #tpu.memory_space<vmem>>, vector<1x16x128xf32>,
    %c1_215 = arith.constant 1 : index
    %c0_216 = arith.constant 0 : index
    %c0_217 = arith.constant 0 : index
    %384 = vector.load %arg11[%c1_215, %c0_216, %c0_217] : memref<2x16x128xbf16, #tpu.memory_space<vmem>>, vector<1x16x128xbf16>
    %385 = vector.shape_cast %384 : vector<1x16x128xbf16> to vector<16x128xbf16>
    %386 = vector.shape_cast %380 : vector<16x128xbf16> to vector<1x16x128xbf16>
    tpu.vector_store %arg11[%c1_215, %c0_216, %c0_217], %386 {strides = array<i32>} : memref<2x16x128xbf16, #tpu.memory_space<vmem>>, vector<1x16x128xbf16>,
    %c3_i32_218 = arith.constant 3 : i32
    %c16_i32_219 = arith.constant 16 : i32
    %387 = arith.muli %c3_i32_218, %c16_i32_219 : i32
    %388 = tpu.assume_multiple %387, 16 : i32
    %c1_220 = arith.constant 1 : index
    %c0_221 = arith.constant 0 : index
    %c0_222 = arith.constant 0 : index
    %389 = vector.load %arg11[%c1_220, %c0_221, %c0_222] : memref<2x16x128xbf16, #tpu.memory_space<vmem>>, vector<1x16x128xbf16>
    %390 = vector.shape_cast %389 : vector<1x16x128xbf16> to vector<16x128xbf16>
    %c1_223 = arith.constant 1 : index
    %c0_224 = arith.constant 0 : index
    %c0_225 = arith.constant 0 : index
    %391 = vector.load %arg12[%c1_223, %c0_224, %c0_225] : memref<2x16x128xf32, #tpu.memory_space<vmem>>, vector<1x16x128xf32>
    %392 = vector.shape_cast %391 : vector<1x16x128xf32> to vector<16x128xf32>
    %393 = arith.index_cast %388 : i32 to index
    %c0_226 = arith.constant 0 : index
    %394 = vector.load %arg13[%393, %c0_226] : memref<128x512xf32, #tpu.memory_space<vmem>>, vector<16x512xf32>
    %cst_227 = arith.constant dense<0.000000e+00> : vector<16x512xf32>
    %395 = tpu.matmul %390, %290, %cst_227 {dimension_numbers = #tpu.dot_dimension_numbers<[1], [0], [0], [1], [0, 0, 1, 1], [], []>} : vector<16x128xbf16>, vector<128x512xbf16>, vector<16x512xf32> -> vector<16x512xf32>
    %396 = arith.addf %394, %395 : vector<16x512xf32>
    %397 = math.tanh %396 : vector<16x512xf32>
    %398 = vector.extract_strided_slice %397 {offsets = [0, 0], sizes = [16, 384], strides = [1, 1]} : vector<16x512xf32> to vector<16x384xf32>
    %cst_228 = arith.constant 5.000000e-01 : f32
    %399 = vector.broadcast %cst_228 : f32 to vector<16x384xf32>
    %400 = arith.mulf %398, %399 : vector<16x384xf32>
    %cst_229 = arith.constant 5.000000e-01 : f32
    %401 = vector.broadcast %cst_229 : f32 to vector<16x384xf32>
    %402 = arith.addf %400, %401 : vector<16x384xf32>
    %403 = vector.extract_strided_slice %402 {offsets = [0, 0], sizes = [16, 128], strides = [1, 1]} : vector<16x384xf32> to vector<16x128xf32>
    %404 = vector.extract_strided_slice %402 {offsets = [0, 128], sizes = [16, 128], strides = [1, 1]} : vector<16x384xf32> to vector<16x128xf32>
    %405 = vector.extract_strided_slice %402 {offsets = [0, 256], sizes = [16, 128], strides = [1, 1]} : vector<16x384xf32> to vector<16x128xf32>
    %406 = vector.extract_strided_slice %397 {offsets = [0, 384], sizes = [16, 128], strides = [1, 1]} : vector<16x512xf32> to vector<16x128xf32>
    %407 = arith.mulf %404, %392 : vector<16x128xf32>
    %408 = arith.mulf %403, %406 : vector<16x128xf32>
    %409 = arith.addf %407, %408 : vector<16x128xf32>
    %410 = math.tanh %409 : vector<16x128xf32>
    %411 = arith.mulf %405, %410 : vector<16x128xf32>
    %412 = arith.truncf %411 : vector<16x128xf32> to vector<16x128xbf16>
    %c1_230 = arith.constant 1 : index
    %c0_231 = arith.constant 0 : index
    %c0_232 = arith.constant 0 : index
    %413 = vector.load %arg12[%c1_230, %c0_231, %c0_232] : memref<2x16x128xf32, #tpu.memory_space<vmem>>, vector<1x16x128xf32>
    %414 = vector.shape_cast %413 : vector<1x16x128xf32> to vector<16x128xf32>
    %415 = vector.shape_cast %409 : vector<16x128xf32> to vector<1x16x128xf32>
    tpu.vector_store %arg12[%c1_230, %c0_231, %c0_232], %415 {strides = array<i32>} : memref<2x16x128xf32, #tpu.memory_space<vmem>>, vector<1x16x128xf32>,
    %c1_233 = arith.constant 1 : index
    %c0_234 = arith.constant 0 : index
    %c0_235 = arith.constant 0 : index
    %416 = vector.load %arg11[%c1_233, %c0_234, %c0_235] : memref<2x16x128xbf16, #tpu.memory_space<vmem>>, vector<1x16x128xbf16>
    %417 = vector.shape_cast %416 : vector<1x16x128xbf16> to vector<16x128xbf16>
    %418 = vector.shape_cast %412 : vector<16x128xbf16> to vector<1x16x128xbf16>
    tpu.vector_store %arg11[%c1_233, %c0_234, %c0_235], %418 {strides = array<i32>} : memref<2x16x128xbf16, #tpu.memory_space<vmem>>, vector<1x16x128xbf16>,
    %c4_i32_236 = arith.constant 4 : i32
    %c16_i32_237 = arith.constant 16 : i32
    %419 = arith.muli %c4_i32_236, %c16_i32_237 : i32
    %420 = tpu.assume_multiple %419, 16 : i32
    %c1_238 = arith.constant 1 : index
    %c0_239 = arith.constant 0 : index
    %c0_240 = arith.constant 0 : index
    %421 = vector.load %arg11[%c1_238, %c0_239, %c0_240] : memref<2x16x128xbf16, #tpu.memory_space<vmem>>, vector<1x16x128xbf16>
    %422 = vector.shape_cast %421 : vector<1x16x128xbf16> to vector<16x128xbf16>
    %c1_241 = arith.constant 1 : index
    %c0_242 = arith.constant 0 : index
    %c0_243 = arith.constant 0 : index
    %423 = vector.load %arg12[%c1_241, %c0_242, %c0_243] : memref<2x16x128xf32, #tpu.memory_space<vmem>>, vector<1x16x128xf32>
    %424 = vector.shape_cast %423 : vector<1x16x128xf32> to vector<16x128xf32>
    %425 = arith.index_cast %420 : i32 to index
    %c0_244 = arith.constant 0 : index
    %426 = vector.load %arg13[%425, %c0_244] : memref<128x512xf32, #tpu.memory_space<vmem>>, vector<16x512xf32>
    %cst_245 = arith.constant dense<0.000000e+00> : vector<16x512xf32>
    %427 = tpu.matmul %422, %290, %cst_245 {dimension_numbers = #tpu.dot_dimension_numbers<[1], [0], [0], [1], [0, 0, 1, 1], [], []>} : vector<16x128xbf16>, vector<128x512xbf16>, vector<16x512xf32> -> vector<16x512xf32>
    %428 = arith.addf %426, %427 : vector<16x512xf32>
    %429 = math.tanh %428 : vector<16x512xf32>
    %430 = vector.extract_strided_slice %429 {offsets = [0, 0], sizes = [16, 384], strides = [1, 1]} : vector<16x512xf32> to vector<16x384xf32>
    %cst_246 = arith.constant 5.000000e-01 : f32
    %431 = vector.broadcast %cst_246 : f32 to vector<16x384xf32>
    %432 = arith.mulf %430, %431 : vector<16x384xf32>
    %cst_247 = arith.constant 5.000000e-01 : f32
    %433 = vector.broadcast %cst_247 : f32 to vector<16x384xf32>
    %434 = arith.addf %432, %433 : vector<16x384xf32>
    %435 = vector.extract_strided_slice %434 {offsets = [0, 0], sizes = [16, 128], strides = [1, 1]} : vector<16x384xf32> to vector<16x128xf32>
    %436 = vector.extract_strided_slice %434 {offsets = [0, 128], sizes = [16, 128], strides = [1, 1]} : vector<16x384xf32> to vector<16x128xf32>
    %437 = vector.extract_strided_slice %434 {offsets = [0, 256], sizes = [16, 128], strides = [1, 1]} : vector<16x384xf32> to vector<16x128xf32>
    %438 = vector.extract_strided_slice %429 {offsets = [0, 384], sizes = [16, 128], strides = [1, 1]} : vector<16x512xf32> to vector<16x128xf32>
    %439 = arith.mulf %436, %424 : vector<16x128xf32>
    %440 = arith.mulf %435, %438 : vector<16x128xf32>
    %441 = arith.addf %439, %440 : vector<16x128xf32>
    %442 = math.tanh %441 : vector<16x128xf32>
    %443 = arith.mulf %437, %442 : vector<16x128xf32>
    %444 = arith.truncf %443 : vector<16x128xf32> to vector<16x128xbf16>
    %c1_248 = arith.constant 1 : index
    %c0_249 = arith.constant 0 : index
    %c0_250 = arith.constant 0 : index
    %445 = vector.load %arg12[%c1_248, %c0_249, %c0_250] : memref<2x16x128xf32, #tpu.memory_space<vmem>>, vector<1x16x128xf32>
    %446 = vector.shape_cast %445 : vector<1x16x128xf32> to vector<16x128xf32>
    %447 = vector.shape_cast %441 : vector<16x128xf32> to vector<1x16x128xf32>
    tpu.vector_store %arg12[%c1_248, %c0_249, %c0_250], %447 {strides = array<i32>} : memref<2x16x128xf32, #tpu.memory_space<vmem>>, vector<1x16x128xf32>,
    %c1_251 = arith.constant 1 : index
    %c0_252 = arith.constant 0 : index
    %c0_253 = arith.constant 0 : index
    %448 = vector.load %arg11[%c1_251, %c0_252, %c0_253] : memref<2x16x128xbf16, #tpu.memory_space<vmem>>, vector<1x16x128xbf16>
    %449 = vector.shape_cast %448 : vector<1x16x128xbf16> to vector<16x128xbf16>
    %450 = vector.shape_cast %444 : vector<16x128xbf16> to vector<1x16x128xbf16>
    tpu.vector_store %arg11[%c1_251, %c0_252, %c0_253], %450 {strides = array<i32>} : memref<2x16x128xbf16, #tpu.memory_space<vmem>>, vector<1x16x128xbf16>,
    %c5_i32_254 = arith.constant 5 : i32
    %c16_i32_255 = arith.constant 16 : i32
    %451 = arith.muli %c5_i32_254, %c16_i32_255 : i32
    %452 = tpu.assume_multiple %451, 16 : i32
    %c1_256 = arith.constant 1 : index
    %c0_257 = arith.constant 0 : index
    %c0_258 = arith.constant 0 : index
    %453 = vector.load %arg11[%c1_256, %c0_257, %c0_258] : memref<2x16x128xbf16, #tpu.memory_space<vmem>>, vector<1x16x128xbf16>
    %454 = vector.shape_cast %453 : vector<1x16x128xbf16> to vector<16x128xbf16>
    %c1_259 = arith.constant 1 : index
    %c0_260 = arith.constant 0 : index
    %c0_261 = arith.constant 0 : index
    %455 = vector.load %arg12[%c1_259, %c0_260, %c0_261] : memref<2x16x128xf32, #tpu.memory_space<vmem>>, vector<1x16x128xf32>
    %456 = vector.shape_cast %455 : vector<1x16x128xf32> to vector<16x128xf32>
    %457 = arith.index_cast %452 : i32 to index
    %c0_262 = arith.constant 0 : index
    %458 = vector.load %arg13[%457, %c0_262] : memref<128x512xf32, #tpu.memory_space<vmem>>, vector<16x512xf32>
    %cst_263 = arith.constant dense<0.000000e+00> : vector<16x512xf32>
    %459 = tpu.matmul %454, %290, %cst_263 {dimension_numbers = #tpu.dot_dimension_numbers<[1], [0], [0], [1], [0, 0, 1, 1], [], []>} : vector<16x128xbf16>, vector<128x512xbf16>, vector<16x512xf32> -> vector<16x512xf32>
    %460 = arith.addf %458, %459 : vector<16x512xf32>
    %461 = math.tanh %460 : vector<16x512xf32>
    %462 = vector.extract_strided_slice %461 {offsets = [0, 0], sizes = [16, 384], strides = [1, 1]} : vector<16x512xf32> to vector<16x384xf32>
    %cst_264 = arith.constant 5.000000e-01 : f32
    %463 = vector.broadcast %cst_264 : f32 to vector<16x384xf32>
    %464 = arith.mulf %462, %463 : vector<16x384xf32>
    %cst_265 = arith.constant 5.000000e-01 : f32
    %465 = vector.broadcast %cst_265 : f32 to vector<16x384xf32>
    %466 = arith.addf %464, %465 : vector<16x384xf32>
    %467 = vector.extract_strided_slice %466 {offsets = [0, 0], sizes = [16, 128], strides = [1, 1]} : vector<16x384xf32> to vector<16x128xf32>
    %468 = vector.extract_strided_slice %466 {offsets = [0, 128], sizes = [16, 128], strides = [1, 1]} : vector<16x384xf32> to vector<16x128xf32>
    %469 = vector.extract_strided_slice %466 {offsets = [0, 256], sizes = [16, 128], strides = [1, 1]} : vector<16x384xf32> to vector<16x128xf32>
    %470 = vector.extract_strided_slice %461 {offsets = [0, 384], sizes = [16, 128], strides = [1, 1]} : vector<16x512xf32> to vector<16x128xf32>
    %471 = arith.mulf %468, %456 : vector<16x128xf32>
    %472 = arith.mulf %467, %470 : vector<16x128xf32>
    %473 = arith.addf %471, %472 : vector<16x128xf32>
    %474 = math.tanh %473 : vector<16x128xf32>
    %475 = arith.mulf %469, %474 : vector<16x128xf32>
    %476 = arith.truncf %475 : vector<16x128xf32> to vector<16x128xbf16>
    %c1_266 = arith.constant 1 : index
    %c0_267 = arith.constant 0 : index
    %c0_268 = arith.constant 0 : index
    %477 = vector.load %arg12[%c1_266, %c0_267, %c0_268] : memref<2x16x128xf32, #tpu.memory_space<vmem>>, vector<1x16x128xf32>
    %478 = vector.shape_cast %477 : vector<1x16x128xf32> to vector<16x128xf32>
    %479 = vector.shape_cast %473 : vector<16x128xf32> to vector<1x16x128xf32>
    tpu.vector_store %arg12[%c1_266, %c0_267, %c0_268], %479 {strides = array<i32>} : memref<2x16x128xf32, #tpu.memory_space<vmem>>, vector<1x16x128xf32>,
    %c1_269 = arith.constant 1 : index
    %c0_270 = arith.constant 0 : index
    %c0_271 = arith.constant 0 : index
    %480 = vector.load %arg11[%c1_269, %c0_270, %c0_271] : memref<2x16x128xbf16, #tpu.memory_space<vmem>>, vector<1x16x128xbf16>
    %481 = vector.shape_cast %480 : vector<1x16x128xbf16> to vector<16x128xbf16>
    %482 = vector.shape_cast %476 : vector<16x128xbf16> to vector<1x16x128xbf16>
    tpu.vector_store %arg11[%c1_269, %c0_270, %c0_271], %482 {strides = array<i32>} : memref<2x16x128xbf16, #tpu.memory_space<vmem>>, vector<1x16x128xbf16>,
    %c6_i32_272 = arith.constant 6 : i32
    %c16_i32_273 = arith.constant 16 : i32
    %483 = arith.muli %c6_i32_272, %c16_i32_273 : i32
    %484 = tpu.assume_multiple %483, 16 : i32
    %c1_274 = arith.constant 1 : index
    %c0_275 = arith.constant 0 : index
    %c0_276 = arith.constant 0 : index
    %485 = vector.load %arg11[%c1_274, %c0_275, %c0_276] : memref<2x16x128xbf16, #tpu.memory_space<vmem>>, vector<1x16x128xbf16>
    %486 = vector.shape_cast %485 : vector<1x16x128xbf16> to vector<16x128xbf16>
    %c1_277 = arith.constant 1 : index
    %c0_278 = arith.constant 0 : index
    %c0_279 = arith.constant 0 : index
    %487 = vector.load %arg12[%c1_277, %c0_278, %c0_279] : memref<2x16x128xf32, #tpu.memory_space<vmem>>, vector<1x16x128xf32>
    %488 = vector.shape_cast %487 : vector<1x16x128xf32> to vector<16x128xf32>
    %489 = arith.index_cast %484 : i32 to index
    %c0_280 = arith.constant 0 : index
    %490 = vector.load %arg13[%489, %c0_280] : memref<128x512xf32, #tpu.memory_space<vmem>>, vector<16x512xf32>
    %cst_281 = arith.constant dense<0.000000e+00> : vector<16x512xf32>
    %491 = tpu.matmul %486, %290, %cst_281 {dimension_numbers = #tpu.dot_dimension_numbers<[1], [0], [0], [1], [0, 0, 1, 1], [], []>} : vector<16x128xbf16>, vector<128x512xbf16>, vector<16x512xf32> -> vector<16x512xf32>
    %492 = arith.addf %490, %491 : vector<16x512xf32>
    %493 = math.tanh %492 : vector<16x512xf32>
    %494 = vector.extract_strided_slice %493 {offsets = [0, 0], sizes = [16, 384], strides = [1, 1]} : vector<16x512xf32> to vector<16x384xf32>
    %cst_282 = arith.constant 5.000000e-01 : f32
    %495 = vector.broadcast %cst_282 : f32 to vector<16x384xf32>
    %496 = arith.mulf %494, %495 : vector<16x384xf32>
    %cst_283 = arith.constant 5.000000e-01 : f32
    %497 = vector.broadcast %cst_283 : f32 to vector<16x384xf32>
    %498 = arith.addf %496, %497 : vector<16x384xf32>
    %499 = vector.extract_strided_slice %498 {offsets = [0, 0], sizes = [16, 128], strides = [1, 1]} : vector<16x384xf32> to vector<16x128xf32>
    %500 = vector.extract_strided_slice %498 {offsets = [0, 128], sizes = [16, 128], strides = [1, 1]} : vector<16x384xf32> to vector<16x128xf32>
    %501 = vector.extract_strided_slice %498 {offsets = [0, 256], sizes = [16, 128], strides = [1, 1]} : vector<16x384xf32> to vector<16x128xf32>
    %502 = vector.extract_strided_slice %493 {offsets = [0, 384], sizes = [16, 128], strides = [1, 1]} : vector<16x512xf32> to vector<16x128xf32>
    %503 = arith.mulf %500, %488 : vector<16x128xf32>
    %504 = arith.mulf %499, %502 : vector<16x128xf32>
    %505 = arith.addf %503, %504 : vector<16x128xf32>
    %506 = math.tanh %505 : vector<16x128xf32>
    %507 = arith.mulf %501, %506 : vector<16x128xf32>
    %508 = arith.truncf %507 : vector<16x128xf32> to vector<16x128xbf16>
    %c1_284 = arith.constant 1 : index
    %c0_285 = arith.constant 0 : index
    %c0_286 = arith.constant 0 : index
    %509 = vector.load %arg12[%c1_284, %c0_285, %c0_286] : memref<2x16x128xf32, #tpu.memory_space<vmem>>, vector<1x16x128xf32>
    %510 = vector.shape_cast %509 : vector<1x16x128xf32> to vector<16x128xf32>
    %511 = vector.shape_cast %505 : vector<16x128xf32> to vector<1x16x128xf32>
    tpu.vector_store %arg12[%c1_284, %c0_285, %c0_286], %511 {strides = array<i32>} : memref<2x16x128xf32, #tpu.memory_space<vmem>>, vector<1x16x128xf32>,
    %c1_287 = arith.constant 1 : index
    %c0_288 = arith.constant 0 : index
    %c0_289 = arith.constant 0 : index
    %512 = vector.load %arg11[%c1_287, %c0_288, %c0_289] : memref<2x16x128xbf16, #tpu.memory_space<vmem>>, vector<1x16x128xbf16>
    %513 = vector.shape_cast %512 : vector<1x16x128xbf16> to vector<16x128xbf16>
    %514 = vector.shape_cast %508 : vector<16x128xbf16> to vector<1x16x128xbf16>
    tpu.vector_store %arg11[%c1_287, %c0_288, %c0_289], %514 {strides = array<i32>} : memref<2x16x128xbf16, #tpu.memory_space<vmem>>, vector<1x16x128xbf16>,
    %c7_i32_290 = arith.constant 7 : i32
    %c16_i32_291 = arith.constant 16 : i32
    %515 = arith.muli %c7_i32_290, %c16_i32_291 : i32
    %516 = tpu.assume_multiple %515, 16 : i32
    %c1_292 = arith.constant 1 : index
    %c0_293 = arith.constant 0 : index
    %c0_294 = arith.constant 0 : index
    %517 = vector.load %arg11[%c1_292, %c0_293, %c0_294] : memref<2x16x128xbf16, #tpu.memory_space<vmem>>, vector<1x16x128xbf16>
    %518 = vector.shape_cast %517 : vector<1x16x128xbf16> to vector<16x128xbf16>
    %c1_295 = arith.constant 1 : index
    %c0_296 = arith.constant 0 : index
    %c0_297 = arith.constant 0 : index
    %519 = vector.load %arg12[%c1_295, %c0_296, %c0_297] : memref<2x16x128xf32, #tpu.memory_space<vmem>>, vector<1x16x128xf32>
    %520 = vector.shape_cast %519 : vector<1x16x128xf32> to vector<16x128xf32>
    %521 = arith.index_cast %516 : i32 to index
    %c0_298 = arith.constant 0 : index
    %522 = vector.load %arg13[%521, %c0_298] : memref<128x512xf32, #tpu.memory_space<vmem>>, vector<16x512xf32>
    %cst_299 = arith.constant dense<0.000000e+00> : vector<16x512xf32>
    %523 = tpu.matmul %518, %290, %cst_299 {dimension_numbers = #tpu.dot_dimension_numbers<[1], [0], [0], [1], [0, 0, 1, 1], [], []>} : vector<16x128xbf16>, vector<128x512xbf16>, vector<16x512xf32> -> vector<16x512xf32>
    %524 = arith.addf %522, %523 : vector<16x512xf32>
    %525 = math.tanh %524 : vector<16x512xf32>
    %526 = vector.extract_strided_slice %525 {offsets = [0, 0], sizes = [16, 384], strides = [1, 1]} : vector<16x512xf32> to vector<16x384xf32>
    %cst_300 = arith.constant 5.000000e-01 : f32
    %527 = vector.broadcast %cst_300 : f32 to vector<16x384xf32>
    %528 = arith.mulf %526, %527 : vector<16x384xf32>
    %cst_301 = arith.constant 5.000000e-01 : f32
    %529 = vector.broadcast %cst_301 : f32 to vector<16x384xf32>
    %530 = arith.addf %528, %529 : vector<16x384xf32>
    %531 = vector.extract_strided_slice %530 {offsets = [0, 0], sizes = [16, 128], strides = [1, 1]} : vector<16x384xf32> to vector<16x128xf32>
    %532 = vector.extract_strided_slice %530 {offsets = [0, 128], sizes = [16, 128], strides = [1, 1]} : vector<16x384xf32> to vector<16x128xf32>
    %533 = vector.extract_strided_slice %530 {offsets = [0, 256], sizes = [16, 128], strides = [1, 1]} : vector<16x384xf32> to vector<16x128xf32>
    %534 = vector.extract_strided_slice %525 {offsets = [0, 384], sizes = [16, 128], strides = [1, 1]} : vector<16x512xf32> to vector<16x128xf32>
    %535 = arith.mulf %532, %520 : vector<16x128xf32>
    %536 = arith.mulf %531, %534 : vector<16x128xf32>
    %537 = arith.addf %535, %536 : vector<16x128xf32>
    %538 = math.tanh %537 : vector<16x128xf32>
    %539 = arith.mulf %533, %538 : vector<16x128xf32>
    %540 = arith.truncf %539 : vector<16x128xf32> to vector<16x128xbf16>
    %c1_302 = arith.constant 1 : index
    %c0_303 = arith.constant 0 : index
    %c0_304 = arith.constant 0 : index
    %541 = vector.load %arg12[%c1_302, %c0_303, %c0_304] : memref<2x16x128xf32, #tpu.memory_space<vmem>>, vector<1x16x128xf32>
    %542 = vector.shape_cast %541 : vector<1x16x128xf32> to vector<16x128xf32>
    %543 = vector.shape_cast %537 : vector<16x128xf32> to vector<1x16x128xf32>
    tpu.vector_store %arg12[%c1_302, %c0_303, %c0_304], %543 {strides = array<i32>} : memref<2x16x128xf32, #tpu.memory_space<vmem>>, vector<1x16x128xf32>,
    %c1_305 = arith.constant 1 : index
    %c0_306 = arith.constant 0 : index
    %c0_307 = arith.constant 0 : index
    %544 = vector.load %arg11[%c1_305, %c0_306, %c0_307] : memref<2x16x128xbf16, #tpu.memory_space<vmem>>, vector<1x16x128xbf16>
    %545 = vector.shape_cast %544 : vector<1x16x128xbf16> to vector<16x128xbf16>
    %546 = vector.shape_cast %540 : vector<16x128xbf16> to vector<1x16x128xbf16>
    tpu.vector_store %arg11[%c1_305, %c0_306, %c0_307], %546 {strides = array<i32>} : memref<2x16x128xbf16, #tpu.memory_space<vmem>>, vector<1x16x128xbf16>,
    %c8_i32_308 = arith.constant 8 : i32
    %c0_i32_309 = arith.constant 0 : i32
    %547 = arith.cmpi eq, %arg0, %c0_i32_309 : i32
    %548 = arith.extui %547 : i1 to i32
    %c0_i32_310 = arith.constant 0 : i32
    %549 = arith.cmpi ne, %548, %c0_i32_310 : i32
    scf.if %549 {
      %c1_311 = arith.constant 1 : index
      %c0_312 = arith.constant 0 : index
      %c0_313 = arith.constant 0 : index
      %550 = vector.load %arg11[%c1_311, %c0_312, %c0_313] : memref<2x16x128xbf16, #tpu.memory_space<vmem>>, vector<1x16x128xbf16>
      %551 = vector.shape_cast %550 : vector<1x16x128xbf16> to vector<16x128xbf16>
      %c0_314 = arith.constant 0 : index
      %c0_315 = arith.constant 0 : index
      %552 = vector.load %arg8[%c0_314, %c0_315] : memref<128x128xbf16, #tpu.memory_space<vmem>>, vector<128x128xbf16>
      %cst_316 = arith.constant dense<0.000000e+00> : vector<16x128xf32>
      %553 = tpu.matmul %551, %552, %cst_316 {dimension_numbers = #tpu.dot_dimension_numbers<[1], [0], [0], [1], [0, 0, 1, 1], [], []>} : vector<16x128xbf16>, vector<128x128xbf16>, vector<16x128xf32> -> vector<16x128xf32>
      %c0_317 = arith.constant 0 : index
      %c0_318 = arith.constant 0 : index
      %554 = vector.load %arg9[%c0_317, %c0_318] : memref<1x128xf32, #tpu.memory_space<vmem>>, vector<1x128xf32>
      %555 = vector.broadcast %554 : vector<1x128xf32> to vector<16x128xf32>
      %556 = arith.addf %553, %555 : vector<16x128xf32>
      %c0_319 = arith.constant 0 : index
      %c0_320 = arith.constant 0 : index
      %557 = vector.load %arg10[%c0_319, %c0_320] : memref<16x128xf32, #tpu.memory_space<vmem>>, vector<16x128xf32>
      tpu.vector_store %arg10[%c0_319, %c0_320], %556 {strides = array<i32>} : memref<16x128xf32, #tpu.memory_space<vmem>>, vector<16x128xf32>,
    } else {
    }
    return
  }
  func.func @transform_0(%arg0: i32) -> (i32, i32) {
    %c0_i32 = arith.constant 0 : i32
    %c0_i32_0 = arith.constant 0 : i32
    return %arg0, %c0_i32 : i32, i32
  }
  func.func @transform_1(%arg0: i32) -> (i32, i32) {
    %c0_i32 = arith.constant 0 : i32
    %c0_i32_0 = arith.constant 0 : i32
    %c0_i32_1 = arith.constant 0 : i32
    return %c0_i32, %c0_i32_0 : i32, i32
  }
  func.func @transform_2(%arg0: i32) -> (i32, i32) {
    %c0_i32 = arith.constant 0 : i32
    %c0_i32_0 = arith.constant 0 : i32
    %c0_i32_1 = arith.constant 0 : i32
    return %c0_i32, %c0_i32_0 : i32, i32
  }
  func.func @transform_3(%arg0: i32) -> (i32, i32) {
    %c0_i32 = arith.constant 0 : i32
    %c0_i32_0 = arith.constant 0 : i32
    %c0_i32_1 = arith.constant 0 : i32
    return %c0_i32, %c0_i32_0 : i32, i32
  }
  func.func @transform_4(%arg0: i32) -> (i32, i32) {
    %c0_i32 = arith.constant 0 : i32
    %c0_i32_0 = arith.constant 0 : i32
    %c0_i32_1 = arith.constant 0 : i32
    return %c0_i32, %c0_i32_0 : i32, i32
  }
  func.func @transform_5(%arg0: i32) -> (i32, i32) {
    %c0_i32 = arith.constant 0 : i32
    %c0_i32_0 = arith.constant 0 : i32
    %c0_i32_1 = arith.constant 0 : i32
    return %c0_i32, %c0_i32_0 : i32, i32
  }
  func.func @transform_6(%arg0: i32) -> (i32, i32) {
    %c0_i32 = arith.constant 0 : i32
    %c0_i32_0 = arith.constant 0 : i32
    %c0_i32_1 = arith.constant 0 : i32
    return %c0_i32, %c0_i32_0 : i32, i32
  }
  func.func @transform_7(%arg0: i32) -> (i32, i32) {
    %c0_i32 = arith.constant 0 : i32
    %c0_i32_0 = arith.constant 0 : i32
    %c0_i32_1 = arith.constant 0 : i32
    return %c0_i32, %c0_i32_0 : i32, i32
  }
  func.func @transform_8(%arg0: i32) -> (i32, i32) {
    %c0_i32 = arith.constant 0 : i32
    %c0_i32_0 = arith.constant 0 : i32
    %c0_i32_1 = arith.constant 0 : i32
    return %c0_i32, %c0_i32_0 : i32, i32
  }
  func.func @transform_9(%arg0: i32) -> (i32, i32) {
    %c0_i32 = arith.constant 0 : i32
    %c0_i32_0 = arith.constant 0 : i32
    %c0_i32_1 = arith.constant 0 : i32
    return %c0_i32, %c0_i32_0 : i32, i32
  }
}

</mosaic_0001>

<bundles_post_ra>
// kernel: forward.1
= control target key start
LH: loop header
LB: loop body
LE: loop exit
PB: predicated region body
PF: predicated region fallthrough
CT: control target
= control target key end

     0   :  { %14 = vsyncpa [#allocation7], 0  ;;  %s7011_s0 = inlined_call_operand.vmem [shape: bf16[128,128], index: 0, kind: input, shape index: {}]   ;;  %s7012_s1 = inlined_call_operand.hbm [shape: bf16[128,512], index: 1, kind: input, shape index: {}]   ;;  %s7013_s2 = inlined_call_operand.hbm [shape: bf16[128,512], index: 2, kind: input, shape index: {}]   ;;  %s7014_s3 = inlined_call_operand.vmem [shape: f32[1,512], index: 3, kind: input, shape index: {}]   ;;  %s7015_s4 = inlined_call_operand.hbm [shape: bf16[128,512], index: 4, kind: input, shape index: {}]   ;;  %s7016_s5 = inlined_call_operand.hbm [shape: bf16[128,512], index: 5, kind: input, shape index: {}]   ;;  %s7017_s6 = inlined_call_operand.vmem [shape: f32[1,512], index: 6, kind: input, shape index: {}]   ;;  %s7018_s7 = inlined_call_operand.vmem [shape: bf16[128,128], index: 7, kind: input, shape index: {}]   ;;  %s7019_s8 = inlined_call_operand.vmem [shape: f32[1,128], index: 8, kind: input, shape index: {}]   ;;  %s7020_s9 = inlined_call_operand.vmem [shape: f32[16,128], index: 9, kind: output, shape index: {}]  }
   0x1   :  { %15 = vsyncpa [#allocation9], 0 }
   0x2   :  { %16 = vsyncpa [#allocation12], 0  ;;  %s5367_s30 = smov [#allocation8]   ;;  %s5368_s11 = smov [#allocation6]  }
   0x3   :  { %s36_s10 = sshll.u32 %s5367_s30, 4  ;;  %s24_s12 = sshll.u32 %s5368_s11, 4  ;;  %s37_s10 = int_to_ptr.vmem [resolvable:$true] %s36_s10  ;;  %s25_s12 = int_to_ptr.vmem [resolvable:$true] %s24_s12 }
   0x4   :  { %s5289_s13 = scalar_lea.vmem %s37_s10, 4096  ;;  %p5294_p1 = scmp.lt.s32.totalorder %s37_s10, %s37_s10 }
   0x5   :  { %p5290_p0 = scmp.ne.s32.totalorder %s37_s10, %s5289_s13  ;;  %p5295_p2 = scmp.lt.s32.totalorder %s5289_s13, %s5289_s13 }
   0x7   :  { %p5296_p3 = por %p5295_p2, %p5294_p1 }
   0x9   :  { %p5297_p4 = pnand %p5296_p3, %p5290_p0 }
   0xb   :  { %5300 = shalt.err (!%p5297_p4)
}
   0xc   :  { %s5369_s14 = smov 256   ;;  %s5370_s15 = smov 16  }
   0xd   :  { %42 = dma.hbm_to_vmem [thread:$0]  %s7013_s2, 4096, %s37_s10, [#allocation9], %s5369_s14, %s5369_s14, %s5370_s15  }
   0xe   :  { %s5309_s18 = scalar_lea.vmem %s25_s12, 4096  ;;  %p5314_p6 = scmp.lt.s32.totalorder %s25_s12, %s25_s12 }
   0xf   :  { %p5310_p5 = scmp.ne.s32.totalorder %s25_s12, %s5309_s18  ;;  %p5315_p7 = scmp.lt.s32.totalorder %s5309_s18, %s5309_s18 }
  0x11   :  { %p5316_p8 = por %p5315_p7, %p5314_p6 }
  0x13   :  { %p5317_p9 = pnand %p5316_p8, %p5310_p5 }
  0x15   :  { %5320 = shalt.err (!%p5317_p9)
}
  0x16   :  { %30 = dma.hbm_to_vmem [thread:$0]  %s7012_s1, 4096, %s25_s12, [#allocation7], %s5369_s14, %s5369_s14, %s5370_s15  }
  0x17   :  { %s5371_s21 = smov [#allocation10]   ;;  %s5372_s23 = smov [#allocation11]  }
  0x18   :  { %s50_s22 = sshll.u32 %s5371_s21, 4  ;;  %s62_s24 = sshll.u32 %s5372_s23, 4  ;;  %s51_s22 = int_to_ptr.vmem [resolvable:$true] %s50_s22  ;;  %s63_s24 = int_to_ptr.vmem [resolvable:$true] %s62_s24 }
  0x19   :  { %s5329_s2 = scalar_lea.vmem %s51_s22, 4096  ;;  %p5334_p11 = scmp.lt.s32.totalorder %s51_s22, %s51_s22 }
  0x1a   :  { %p5330_p10 = scmp.ne.s32.totalorder %s51_s22, %s5329_s2  ;;  %p5335_p12 = scmp.lt.s32.totalorder %s5329_s2, %s5329_s2 }
  0x1c   :  { %p5336_p13 = por %p5335_p12, %p5334_p11 }
  0x1e   :  { %p5337_p0 = pnand %p5336_p13, %p5330_p10 }
  0x20   :  { %5340 = shalt.err (!%p5337_p0)
}
  0x21   :  { %56 = dma.hbm_to_vmem [thread:$0]  %s7015_s4, 4096, %s51_s22, [#allocation9], %s5369_s14, %s5369_s14, %s5370_s15  }
  0x22   :  { %s5349_s1 = scalar_lea.vmem %s63_s24, 4096  ;;  %p5354_p2 = scmp.lt.s32.totalorder %s63_s24, %s63_s24 }
  0x23   :  { %p5350_p1 = scmp.ne.s32.totalorder %s63_s24, %s5349_s1  ;;  %p5355_p3 = scmp.lt.s32.totalorder %s5349_s1, %s5349_s1 }
  0x25   :  { %p5356_p4 = por %p5355_p3, %p5354_p2 }
  0x27   :  { %p5357_p5 = pnand %p5356_p4, %p5350_p1 }
  0x29   :  { %5360 = shalt.err (!%p5357_p5)
}
  0x2a   :  { %68 = dma.hbm_to_vmem [thread:$0]  %s7016_s5, 4096, %s63_s24, [#allocation12], %s5369_s14, %s5369_s14, %s5370_s15  }
  0x2b   :  { %5361 = dma.done.wait [#allocation7], 4096  }
  0x2c   :  { %5362 = vsyncadd [#allocation7], 4294963200 }
  0x2d   :  { %5363 = dma.done.wait [#allocation9], 8192  }
  0x2e   :  { %5364 = vsyncadd [#allocation9], 4294959104 }
  0x2f   :  { %5365 = dma.done.wait [#allocation12], 4096  }
  0x30   :  { %5366 = vsyncadd [#allocation12], 4294963200  ;;  %v7025_v0 = vmov 0   ;;  %v4664_v1 = vld [vmem:[#allocation6 + $0xe4] ss:$16 sps:$4 sm:$0xff]   ;;  %v4719_v44 = vld [vmem:[%s7011_s0 + $0x8] sm:$0xff]  }
  0x31   :  { %410 = vmatprep.mubr.bf16.mxu0 %v7025_v0  ;;  %92 = vst [vmem:[#allocation2] sm:$0xf] %v7025_v0  ;;  %93 = vst [vmem:[#allocation2 + $0x4] sm:$0xf] %v7025_v0  ;;  %523 = vmatprep.mubr.bf16.mxu1 %v7025_v0  ;;  %v4666_v2 = vld [vmem:[#allocation6 + $0xec] ss:$16 sps:$4 sm:$0xff]  }
  0x32   :  { %94 = vst [vmem:[#allocation2 + $0x8] sm:$0xf] %v7025_v0  ;;  %95 = vst [vmem:[#allocation2 + $0xc] sm:$0xf] %v7025_v0  ;;  %378 = vmatprep.subr.bf16.mxu0 %v4664_v1  ;;  %v4668_v3 = vld [vmem:[#allocation6 + $0xe0] ss:$16 sps:$4 sm:$0xff]   ;;  %491 = vmatprep.subr.bf16.mxu1 %v4666_v2 }
  0x33   :  { %v4669_v4 = vld [vmem:[#allocation6 + $0xe8] ss:$16 sps:$4 sm:$0xff]   ;;  %v4670_v5 = vld [vmem:[#allocation6 + $0xc4] ss:$16 sps:$4 sm:$0xff]   ;;  %379 = vmatpush1.bf16.msra.mxu0 %v4668_v3  ;;  %v4672_v6 = vld [vmem:[#allocation6 + $0xcc] ss:$16 sps:$4 sm:$0xff]  }
  0x34   :  { %492 = vmatpush1.bf16.msra.mxu1 %v4669_v4  ;;  %v4674_v7 = vld [vmem:[#allocation6 + $0xc0] ss:$16 sps:$4 sm:$0xff]   ;;  %380 = vmatprep.subr.bf16.mxu0 %v4670_v5  ;;  %v4675_v8 = vld [vmem:[#allocation6 + $0xc8] ss:$16 sps:$4 sm:$0xff]   ;;  %v4676_v9 = vld [vmem:[#allocation6 + $0xa4] ss:$16 sps:$4 sm:$0xff]  }
  0x35   :  { %493 = vmatprep.subr.bf16.mxu1 %v4672_v6  ;;  %v4678_v10 = vld [vmem:[#allocation6 + $0xac] ss:$16 sps:$4 sm:$0xff]   ;;  %v4680_v11 = vld [vmem:[#allocation6 + $0xa0] ss:$16 sps:$4 sm:$0xff]   ;;  %v4681_v12 = vld [vmem:[#allocation6 + $0xa8] ss:$16 sps:$4 sm:$0xff]  }
  0x36   :  { %v4682_v13 = vld [vmem:[#allocation6 + $0x84] ss:$16 sps:$4 sm:$0xff]   ;;  %v4684_v14 = vld [vmem:[#allocation6 + $0x8c] ss:$16 sps:$4 sm:$0xff]   ;;  %v4686_v15 = vld [vmem:[#allocation6 + $0x80] ss:$16 sps:$4 sm:$0xff]  }
  0x37   :  { %381 = vmatpush1.bf16.msra.mxu0 %v4674_v7  ;;  %v4687_v16 = vld [vmem:[#allocation6 + $0x88] ss:$16 sps:$4 sm:$0xff]   ;;  %v4688_v17 = vld [vmem:[#allocation6 + $0x64] ss:$16 sps:$4 sm:$0xff]   ;;  %v4690_v18 = vld [vmem:[#allocation6 + $0x6c] ss:$16 sps:$4 sm:$0xff]  }
  0x38   :  { %494 = vmatpush1.bf16.msra.mxu1 %v4675_v8  ;;  %382 = vmatprep.subr.bf16.mxu0 %v4676_v9  ;;  %v4692_v19 = vld [vmem:[#allocation6 + $0x60] ss:$16 sps:$4 sm:$0xff]   ;;  %v4693_v20 = vld [vmem:[#allocation6 + $0x68] ss:$16 sps:$4 sm:$0xff]   ;;  %v4694_v21 = vld [vmem:[#allocation6 + $0x44] ss:$16 sps:$4 sm:$0xff]  }
  0x39   :  { %495 = vmatprep.subr.bf16.mxu1 %v4678_v10  ;;  %v4696_v22 = vld [vmem:[#allocation6 + $0x4c] ss:$16 sps:$4 sm:$0xff]   ;;  %v4698_v23 = vld [vmem:[#allocation6 + $0x40] ss:$16 sps:$4 sm:$0xff]   ;;  %v4699_v24 = vld [vmem:[#allocation6 + $0x48] ss:$16 sps:$4 sm:$0xff]  }
  0x3a   :  { %v4700_v25 = vld [vmem:[#allocation6 + $0x24] ss:$16 sps:$4 sm:$0xff]   ;;  %v4702_v26 = vld [vmem:[#allocation6 + $0x2c] ss:$16 sps:$4 sm:$0xff]   ;;  %v4704_v27 = vld [vmem:[#allocation6 + $0x20] ss:$16 sps:$4 sm:$0xff]  }
  0x3b   :  { %383 = vmatpush1.bf16.msra.mxu0 %v4680_v11  ;;  %v4705_v28 = vld [vmem:[#allocation6 + $0x28] ss:$16 sps:$4 sm:$0xff]   ;;  %v4706_v29 = vld [vmem:[#allocation6 + $0x4] ss:$16 sps:$4 sm:$0xff]   ;;  %v4708_v30 = vld [vmem:[#allocation6 + $0xc] ss:$16 sps:$4 sm:$0xff]   ;;  %v150_v11 = vlaneseq }
  0x3c   :  { %496 = vmatpush1.bf16.msra.mxu1 %v4681_v12  ;;  %384 = vmatprep.subr.bf16.mxu0 %v4682_v13  ;;  %v4710_v31 = vld [vmem:[#allocation6] ss:$16 sps:$4 sm:$0xff]   ;;  %v4711_v32 = vld [vmem:[#allocation6 + $0x8] ss:$16 sps:$4 sm:$0xff]   ;;  %v5456_v33 = vld [vmem:[#allocation8 + $0xe4] ss:$16 sps:$4 sm:$0xff]  }
  0x3d   :  { %497 = vmatprep.subr.bf16.mxu1 %v4684_v14  ;;  %v5458_v34 = vld [vmem:[#allocation8 + $0xec] ss:$16 sps:$4 sm:$0xff]   ;;  %v4712_v35 = vld [vmem:[%s7011_s0] sm:$0xff]   ;;  %v5465_v37 = vld [vmem:[#allocation8 + $0xe8] ss:$16 sps:$4 sm:$0xff]   ;;  %v5628_v12 = vshrl.u32 %v150_v11, 7 }
  0x3e   :  { %v5463_v36 = vld [vmem:[#allocation8 + $0xe0] ss:$16 sps:$4 sm:$0xff]   ;;  %v5469_v38 = vld [vmem:[#allocation8 + $0xc4] ss:$16 sps:$4 sm:$0xff]   ;;  %v5471_v39 = vld [vmem:[#allocation8 + $0xcc] ss:$16 sps:$4 sm:$0xff]  }
  0x3f   :  { %385 = vmatpush1.bf16.msra.mxu0 %v4686_v15  ;;  %v5473_v40 = vld [vmem:[#allocation8 + $0xc0] ss:$16 sps:$4 sm:$0xff]   ;;  %v5475_v41 = vld [vmem:[#allocation8 + $0xc8] ss:$16 sps:$4 sm:$0xff]   ;;  %v5479_v42 = vld [vmem:[#allocation8 + $0xa4] ss:$16 sps:$4 sm:$0xff]  }
  0x40   :  { %498 = vmatpush1.bf16.msra.mxu1 %v4687_v16  ;;  %386 = vmatprep.subr.bf16.mxu0 %v4688_v17  ;;  %v5483_v43 = vld [vmem:[#allocation8 + $0xac] ss:$16 sps:$4 sm:$0xff]   ;;  %v5492_v45 = vld [vmem:[#allocation8 + $0xa0] ss:$16 sps:$4 sm:$0xff]   ;;  %v5496_v46 = vld [vmem:[#allocation8 + $0xa8] ss:$16 sps:$4 sm:$0xff]  }
  0x41   :  { %499 = vmatprep.subr.bf16.mxu1 %v4690_v18  ;;  %v5498_v47 = vld [vmem:[#allocation8 + $0x84] ss:$16 sps:$4 sm:$0xff]   ;;  %v5500_v48 = vld [vmem:[#allocation8 + $0x8c] ss:$16 sps:$4 sm:$0xff]   ;;  %v5506_v49 = vld [vmem:[#allocation8 + $0x80] ss:$16 sps:$4 sm:$0xff]  }
  0x42   :  { %v5508_v50 = vld [vmem:[#allocation8 + $0x88] ss:$16 sps:$4 sm:$0xff]   ;;  %v5512_v51 = vld [vmem:[#allocation8 + $0x64] ss:$16 sps:$4 sm:$0xff]   ;;  %v5514_v52 = vld [vmem:[#allocation8 + $0x6c] ss:$16 sps:$4 sm:$0xff]  }
  0x43   :  { %387 = vmatpush1.bf16.msra.mxu0 %v4692_v19  ;;  %v4726_v53 = vld [vmem:[%s7011_s0 + $0x10] sm:$0xff]   ;;  %v5523_v55 = vld [vmem:[#allocation8 + $0x68] ss:$16 sps:$4 sm:$0xff]   ;;  %v5529_v57 = vld [vmem:[#allocation8 + $0x4c] ss:$16 sps:$4 sm:$0xff]   ;;  %7029 = vst [vmem:[#allocation16_spill] sm:$0xff] %v5628_v12 }
  0x44   :  { %500 = vmatpush1.bf16.msra.mxu1 %v4693_v20  ;;  %388 = vmatprep.subr.bf16.mxu0 %v4694_v21  ;;  %v5519_v54 = vld [vmem:[#allocation8 + $0x60] ss:$16 sps:$4 sm:$0xff]   ;;  %v5527_v56 = vld [vmem:[#allocation8 + $0x44] ss:$16 sps:$4 sm:$0xff]   ;;  %v5533_v59 = vld [vmem:[#allocation8 + $0x48] ss:$16 sps:$4 sm:$0xff]  }
  0x45   :  { %501 = vmatprep.subr.bf16.mxu1 %v4696_v22  ;;  %v5531_v58 = vld [vmem:[#allocation8 + $0x40] ss:$16 sps:$4 sm:$0xff]   ;;  %v5537_v60 = vld [vmem:[#allocation8 + $0x24] ss:$16 sps:$4 sm:$0xff]   ;;  %v5539_v61 = vld [vmem:[#allocation8 + $0x2c] ss:$16 sps:$4 sm:$0xff]  }
  0x46   :  { %v4733_v62 = vld [vmem:[%s7011_s0 + $0x18] sm:$0xff]   ;;  %v5548_v63 = vld [vmem:[#allocation8 + $0x20] ss:$16 sps:$4 sm:$0xff]   ;;  %v5552_v2 = vld [vmem:[#allocation8 + $0x4] ss:$16 sps:$4 sm:$0xff]   ;;  %v7024_v17 = vsub.s32 0, %v5628_v12 }
  0x47   :  { %389 = vmatpush1.bf16.msra.mxu0 %v4698_v23  ;;  %v5550_v1 = vld [vmem:[#allocation8 + $0x28] ss:$16 sps:$4 sm:$0xff]   ;;  %v5554_v3 = vld [vmem:[#allocation8 + $0xc] ss:$16 sps:$4 sm:$0xff]   ;;  %v5560_v4 = vld [vmem:[#allocation8] ss:$16 sps:$4 sm:$0xff]  }
  0x48   :  { %502 = vmatpush1.bf16.msra.mxu1 %v4699_v24  ;;  %390 = vmatprep.subr.bf16.mxu0 %v4700_v25  ;;  %v5562_v5 = vld [vmem:[#allocation8 + $0x8] ss:$16 sps:$4 sm:$0xff]   ;;  %v4740_v6 = vld [vmem:[%s7011_s0 + $0x20] sm:$0xff]   ;;  %v4754_v8 = vld [vmem:[%s7011_s0 + $0x30] sm:$0xff]   ;;  %v7021_v18 = vsub.s32 2, %v5628_v12  ;;  %v7023_v22 = vsub.s32 1, %v5628_v12 }
  0x49   :  { %503 = vmatprep.subr.bf16.mxu1 %v4702_v26  ;;  %v4747_v7 = vld [vmem:[%s7011_s0 + $0x28] sm:$0xff]   ;;  %v4761_v9 = vld [vmem:[%s7011_s0 + $0x38] sm:$0xff]   ;;  %v4768_v10 = vld [vmem:[#allocation2] sm:$0xff]   ;;  %v7022_v23 = vsub.s32 3, %v5628_v12  ;;  %vm5375_vm0 = vmmov 0  }
  0x4a   :  { %v148_v19 = vld [vmem:[%s7014_s3] sm:$0xf] }
  0x4b   :  { %391 = vmatpush1.bf16.msra.mxu0 %v4704_v27  ;;  %v5655_v26 = vrot.slane %v148_v19, %v7024_v17  ;;  %v5659_v27 = vrot.slane %v148_v19, %v7021_v18 }
  0x4c   :  { %504 = vmatpush1.bf16.msra.mxu1 %v4705_v28  ;;  %392 = vmatprep.subr.bf16.mxu0 %v4706_v29 }
  0x4d   :  { %505 = vmatprep.subr.bf16.mxu1 %v4708_v30  ;;  %v5663_v30 = vrot.slane %v148_v19, %v7023_v22 }
  0x4f   :  { %393 = vmatpush1.bf16.msra.mxu0 %v4710_v31  ;;  %v5667_v31 = vrot.slane %v148_v19, %v7022_v23 }
  0x50   :  { %506 = vmatpush1.bf16.msra.mxu1 %v4711_v32  ;;  %881 = vmatprep.subr.bf16.mxu0 %v5456_v33 }
  0x51   :  { %924 = vmatprep.subr.bf16.mxu1 %v5458_v34 }
  0x52   :  { %411 = vmatmul.mubr.bf16.vlgmr.msra.gmra.mxu0 %v4712_v35 }
  0x53   :  { %524 = vmatmul.mubr.bf16.vlgmr.msra.gmra.mxu1 %v4712_v35  ;;  %882 = vmatpush1.bf16.msra.mxu0 %v5463_v36 }
  0x54   :  { %925 = vmatpush1.bf16.msra.mxu1 %v5465_v37  ;;  %420 = vmatprep.mubr.bf16.mxu0 %v7025_v0 }
  0x55   :  { %533 = vmatprep.mubr.bf16.mxu1 %v7025_v0  ;;  %883 = vmatprep.subr.bf16.mxu0 %v5469_v38 }
  0x56   :  { %926 = vmatprep.subr.bf16.mxu1 %v5471_v39 }
  0x57   :  { %884 = vmatpush1.bf16.msra.mxu0 %v5473_v40 }
  0x58   :  { %927 = vmatpush1.bf16.msra.mxu1 %v5475_v41  ;;  %885 = vmatprep.subr.bf16.mxu0 %v5479_v42 }
  0x59   :  { %928 = vmatprep.subr.bf16.mxu1 %v5483_v43 }
  0x5a   :  { %421 = vmatmul.mubr.bf16.gmra.mxu0 %v4719_v44 }
  0x5b   :  { %534 = vmatmul.mubr.bf16.gmra.mxu1 %v4719_v44  ;;  %430 = vmatprep.mubr.bf16.mxu0 %v7025_v0 }
  0x5c   :  { %543 = vmatprep.mubr.bf16.mxu1 %v7025_v0  ;;  %886 = vmatpush1.bf16.msra.mxu0 %v5492_v45 }
  0x5d   :  { %929 = vmatpush1.bf16.msra.mxu1 %v5496_v46  ;;  %887 = vmatprep.subr.bf16.mxu0 %v5498_v47 }
  0x5e   :  { %930 = vmatprep.subr.bf16.mxu1 %v5500_v48 }
  0x60   :  { %888 = vmatpush1.bf16.msra.mxu0 %v5506_v49 }
  0x61   :  { %931 = vmatpush1.bf16.msra.mxu1 %v5508_v50  ;;  %889 = vmatprep.subr.bf16.mxu0 %v5512_v51 }
  0x62   :  { %932 = vmatprep.subr.bf16.mxu1 %v5514_v52  ;;  %431 = vmatmul.mubr.bf16.gmra.mxu0 %v4726_v53 }
  0x63   :  { %544 = vmatmul.mubr.bf16.gmra.mxu1 %v4726_v53  ;;  %440 = vmatprep.mubr.bf16.mxu0 %v7025_v0 }
  0x64   :  { %553 = vmatprep.mubr.bf16.mxu1 %v7025_v0  ;;  %890 = vmatpush1.bf16.msra.mxu0 %v5519_v54 }
  0x65   :  { %933 = vmatpush1.bf16.msra.mxu1 %v5523_v55  ;;  %891 = vmatprep.subr.bf16.mxu0 %v5527_v56 }
  0x66   :  { %934 = vmatprep.subr.bf16.mxu1 %v5529_v57 }
  0x68   :  { %892 = vmatpush1.bf16.msra.mxu0 %v5531_v58 }
  0x69   :  { %935 = vmatpush1.bf16.msra.mxu1 %v5533_v59  ;;  %893 = vmatprep.subr.bf16.mxu0 %v5537_v60 }
  0x6a   :  { %936 = vmatprep.subr.bf16.mxu1 %v5539_v61  ;;  %441 = vmatmul.mubr.bf16.gmra.mxu0 %v4733_v62 }
  0x6b   :  { %554 = vmatmul.mubr.bf16.gmra.mxu1 %v4733_v62  ;;  %450 = vmatprep.mubr.bf16.mxu0 %v7025_v0 }
  0x6c   :  { %563 = vmatprep.mubr.bf16.mxu1 %v7025_v0  ;;  %894 = vmatpush1.bf16.msra.mxu0 %v5548_v63 }
  0x6d   :  { %937 = vmatpush1.bf16.msra.mxu1 %v5550_v1  ;;  %895 = vmatprep.subr.bf16.mxu0 %v5552_v2 }
  0x6e   :  { %938 = vmatprep.subr.bf16.mxu1 %v5554_v3 }
  0x70   :  { %896 = vmatpush1.bf16.msra.mxu0 %v5560_v4 }
  0x71   :  { %939 = vmatpush1.bf16.msra.mxu1 %v5562_v5  ;;  %1040 = vmatprep.subr.bf16.mxu0 %v5456_v33 }
  0x72   :  { %1083 = vmatprep.subr.bf16.mxu1 %v5458_v34  ;;  %451 = vmatmul.mubr.bf16.gmra.mxu0 %v4740_v6 }
  0x73   :  { %564 = vmatmul.mubr.bf16.gmra.mxu1 %v4740_v6  ;;  %460 = vmatprep.mubr.bf16.mxu0 %v7025_v0 }
  0x74   :  { %573 = vmatprep.mubr.bf16.mxu1 %v7025_v0 }
  0x7a   :  { %461 = vmatmul.mubr.bf16.gmra.mxu0 %v4747_v7 }
  0x7b   :  { %574 = vmatmul.mubr.bf16.gmra.mxu1 %v4747_v7  ;;  %470 = vmatprep.mubr.bf16.mxu0 %v7025_v0 }
  0x7c   :  { %583 = vmatprep.mubr.bf16.mxu1 %v7025_v0 }
  0x82   :  { %471 = vmatmul.mubr.bf16.gmra.mxu0 %v4754_v8 }
  0x83   :  { %584 = vmatmul.mubr.bf16.gmra.mxu1 %v4754_v8  ;;  %480 = vmatprep.mubr.bf16.mxu0 %v7025_v0 }
  0x84   :  { %593 = vmatprep.mubr.bf16.mxu1 %v7025_v0 }
  0x8a   :  { %481 = vmatmul.mubr.bf16.gmra.mxu0 %v4761_v9 }
  0x8b   :  { %594 = vmatmul.mubr.bf16.gmra.mxu1 %v4761_v9  ;;  %913 = vmatprep.mubr.bf16.mxu0 %v7025_v0 }
  0x8c   :  { %956 = vmatprep.mubr.bf16.mxu1 %v7025_v0 }
  0x92   :  { %914 = vmatmul.mubr.bf16.vlgmr.msra.gmra.mxu0 %v4768_v10 }
  0x93   :  { %957 = vmatmul.mubr.bf16.vlgmr.msra.gmra.mxu1 %v4768_v10  ;;  %1041 = vmatpush1.bf16.msra.mxu0 %v5463_v36 }
  0x94   :  { %1084 = vmatpush1.bf16.msra.mxu1 %v5465_v37  ;;  %1042 = vmatprep.subr.bf16.mxu0 %v5469_v38 }
  0x95   :  { %1085 = vmatprep.subr.bf16.mxu1 %v5471_v39  ;;  %1072 = vmatprep.mubr.bf16.mxu0 %v7025_v0 }
  0x96   :  { %1115 = vmatprep.mubr.bf16.mxu1 %v7025_v0 }
  0x97   :  { %1043 = vmatpush1.bf16.msra.mxu0 %v5473_v40 }
  0x98   :  { %1086 = vmatpush1.bf16.msra.mxu1 %v5475_v41  ;;  %1044 = vmatprep.subr.bf16.mxu0 %v5479_v42 }
  0x99   :  { %1087 = vmatprep.subr.bf16.mxu1 %v5483_v43 }
  0x9b   :  { %1045 = vmatpush1.bf16.msra.mxu0 %v5492_v45 }
  0x9c   :  { %1088 = vmatpush1.bf16.msra.mxu1 %v5496_v46  ;;  %1046 = vmatprep.subr.bf16.mxu0 %v5498_v47 }
  0x9d   :  { %1089 = vmatprep.subr.bf16.mxu1 %v5500_v48 }
  0x9f   :  { %1047 = vmatpush1.bf16.msra.mxu0 %v5506_v49 }
  0xa0   :  { %1090 = vmatpush1.bf16.msra.mxu1 %v5508_v50  ;;  %1048 = vmatprep.subr.bf16.mxu0 %v5512_v51 }
  0xa1   :  { %1091 = vmatprep.subr.bf16.mxu1 %v5514_v52 }
  0xa3   :  { %1049 = vmatpush1.bf16.msra.mxu0 %v5519_v54 }
  0xa4   :  { %1092 = vmatpush1.bf16.msra.mxu1 %v5523_v55  ;;  %1050 = vmatprep.subr.bf16.mxu0 %v5527_v56 }
  0xa5   :  { %1093 = vmatprep.subr.bf16.mxu1 %v5529_v57 }
  0xa7   :  { %1051 = vmatpush1.bf16.msra.mxu0 %v5531_v58 }
  0xa8   :  { %1094 = vmatpush1.bf16.msra.mxu1 %v5533_v59  ;;  %1052 = vmatprep.subr.bf16.mxu0 %v5537_v60 }
  0xa9   :  { %1095 = vmatprep.subr.bf16.mxu1 %v5539_v61 }
  0xab   :  { %1053 = vmatpush1.bf16.msra.mxu0 %v5548_v63 }
  0xac   :  { %1096 = vmatpush1.bf16.msra.mxu1 %v5550_v1  ;;  %1054 = vmatprep.subr.bf16.mxu0 %v5552_v2 }
  0xad   :  { %1097 = vmatprep.subr.bf16.mxu1 %v5554_v3 }
  0xaf   :  { %1055 = vmatpush1.bf16.msra.mxu0 %v5560_v4 }
  0xb0   :  { %1098 = vmatpush1.bf16.msra.mxu1 %v5562_v5  ;;  %1200 = vmatprep.subr.bf16.mxu0 %v5456_v33 }
  0xb1   :  { %1243 = vmatprep.subr.bf16.mxu1 %v5458_v34 }
 0x112   :  { %v5630_v13 = vpop.f32.mrf.mxu0 }
 0x113   :  { %v5632_v14 = vpop.f32.mrf.mxu1 }
 0x114   :  { %v5634_v15 = vpop.f32.mrf.mxu0 }
 0x115   :  { %v5636_v16 = vpop.f32.mrf.mxu1 }
 0x116   :  { %v5643_v20 = vpop.f32.mrf.mxu0 }
 0x117   :  { %v5645_v21 = vpop.f32.mrf.mxu1 }
 0x118   :  { %v5649_v24 = vpop.f32.mrf.mxu0 }
 0x119   :  { %v5651_v25 = vpop.f32.mrf.mxu1 }
 0x11a   :  { %v422_v28 = vpop.f32.mrf.mxu0 }
 0x11b   :  { %v535_v29 = vpop.f32.mrf.mxu1  ;;  %v5670_v32 = vadd.f32 %v422_v28, %v5655_v26 }
 0x11c   :  { %v5673_v35 = vadd.f32 %v535_v29, %v5659_v27  ;;  %v424_v44 = vpop.f32.mrf.mxu0 }
 0x11d   :  { %v537_v53 = vpop.f32.mrf.mxu1  ;;  %v5676_v62 = vadd.f32 %v424_v44, %v5663_v30 }
 0x11e   :  { %7030 = vst [vmem:[#allocation17_spill] sm:$0xff] %v5673_v35  ;;  %v5679_v6 = vadd.f32 %v537_v53, %v5667_v31  ;;  %v426_v7 = vpop.f32.mrf.mxu0 }
 0x11f   :  { %v539_v8 = vpop.f32.mrf.mxu1  ;;  %v5682_v9 = vadd.f32 %v426_v7, %v5655_v26 }
 0x120   :  { %v5685_v10 = vadd.f32 %v539_v8, %v5659_v27  ;;  %v5687_v11 = vpop.f32.mrf.mxu0 }
 0x121   :  { %7031 = vst [vmem:[#allocation18_spill] sm:$0xff] %v5682_v9  ;;  %v5689_v19 = vpop.f32.mrf.mxu1 }
 0x122   :  { %7032 = vst [vmem:[#allocation19_spill] sm:$0xff] %v5685_v10  ;;  %v432_v28 = vpop.f32.mrf.mxu0 }
 0x123   :  { %v545_v29 = vpop.f32.mrf.mxu1  ;;  %v5692_v44 = vadd.f32 %v432_v28, %v5655_v26 }
 0x124   :  { %v5695_v53 = vadd.f32 %v545_v29, %v5659_v27  ;;  %v434_v18 = vpop.f32.mrf.mxu0 }
 0x125   :  { %7033 = vst [vmem:[#allocation20_spill] sm:$0xff] %v5692_v44  ;;  %v547_v23 = vpop.f32.mrf.mxu1  ;;  %v5698_v7 = vadd.f32 %v434_v18, %v5663_v30 }
 0x126   :  { %7034 = vst [vmem:[#allocation21_spill] sm:$0xff] %v5695_v53  ;;  %v5701_v8 = vadd.f32 %v547_v23, %v5667_v31  ;;  %v436_v22 = vpop.f32.mrf.mxu0 }
 0x127   :  { %7035 = vst [vmem:[#allocation22_spill] sm:$0xff] %v5698_v7  ;;  %v549_v17 = vpop.f32.mrf.mxu1  ;;  %v5704_v0 = vadd.f32 %v436_v22, %v5655_v26 }
 0x128   :  { %7036 = vst [vmem:[#allocation23_spill] sm:$0xff] %v5701_v8  ;;  %v5707_v12 = vadd.f32 %v549_v17, %v5659_v27  ;;  %v5709_v28 = vpop.f32.mrf.mxu0 }
 0x129   :  { %7037 = vst [vmem:[#allocation24_spill] sm:$0xff] %v5704_v0  ;;  %7039 = vst [vmem:[#allocation26_spill] sm:$0xff] %v5709_v28  ;;  %v5711_v29 = vpop.f32.mrf.mxu1 }
 0x12a   :  { %7038 = vst [vmem:[#allocation25_spill] sm:$0xff] %v5707_v12  ;;  %7040 = vst [vmem:[#allocation27_spill] sm:$0xff] %v5711_v29  ;;  %v442_v53 = vpop.f32.mrf.mxu0 }
 0x12b   :  { %v555_v44 = vpop.f32.mrf.mxu1  ;;  %v5714_v18 = vadd.f32 %v442_v53, %v5655_v26 }
 0x12c   :  { %v5717_v23 = vadd.f32 %v555_v44, %v5659_v27  ;;  %v444_v8 = vpop.f32.mrf.mxu0 }
 0x12d   :  { %7041 = vst [vmem:[#allocation28_spill] sm:$0xff] %v5714_v18  ;;  %v557_v7 = vpop.f32.mrf.mxu1  ;;  %v5720_v22 = vadd.f32 %v444_v8, %v5663_v30 }
 0x12e   :  { %7042 = vst [vmem:[#allocation29_spill] sm:$0xff] %v5717_v23  ;;  %v5723_v17 = vadd.f32 %v557_v7, %v5667_v31  ;;  %v446_v12 = vpop.f32.mrf.mxu0 }
 0x12f   :  { %7043 = vst [vmem:[#allocation30_spill] sm:$0xff] %v5720_v22  ;;  %v559_v0 = vpop.f32.mrf.mxu1  ;;  %v5726_v29 = vadd.f32 %v446_v12, %v5655_v26 }
 0x130   :  { %7044 = vst [vmem:[#allocation31_spill] sm:$0xff] %v5723_v17  ;;  %v5729_v28 = vadd.f32 %v559_v0, %v5659_v27  ;;  %v5731_v53 = vpop.f32.mrf.mxu0 }
 0x131   :  { %7045 = vst [vmem:[#allocation32_spill] sm:$0xff] %v5726_v29  ;;  %7047 = vst [vmem:[#allocation34_spill] sm:$0xff] %v5731_v53  ;;  %v5733_v44 = vpop.f32.mrf.mxu1 }
 0x132   :  { %7046 = vst [vmem:[#allocation33_spill] sm:$0xff] %v5729_v28  ;;  %7048 = vst [vmem:[#allocation35_spill] sm:$0xff] %v5733_v44  ;;  %v452_v23 = vpop.f32.mrf.mxu0 }
 0x133   :  { %v565_v18 = vpop.f32.mrf.mxu1  ;;  %v5736_v8 = vadd.f32 %v452_v23, %v5655_v26 }
 0x134   :  { %v5739_v7 = vadd.f32 %v565_v18, %v5659_v27  ;;  %v454_v17 = vpop.f32.mrf.mxu0 }
 0x135   :  { %7049 = vst [vmem:[#allocation36_spill] sm:$0xff] %v5736_v8  ;;  %v567_v22 = vpop.f32.mrf.mxu1  ;;  %v5742_v12 = vadd.f32 %v454_v17, %v5663_v30 }
 0x136   :  { %7050 = vst [vmem:[#allocation37_spill] sm:$0xff] %v5739_v7  ;;  %v5745_v0 = vadd.f32 %v567_v22, %v5667_v31  ;;  %v456_v28 = vpop.f32.mrf.mxu0 }
 0x137   :  { %7051 = vst [vmem:[#allocation38_spill] sm:$0xff] %v5742_v12  ;;  %v569_v29 = vpop.f32.mrf.mxu1  ;;  %v5748_v44 = vadd.f32 %v456_v28, %v5655_v26 }
 0x138   :  { %7052 = vst [vmem:[#allocation39_spill] sm:$0xff] %v5745_v0  ;;  %v5751_v53 = vadd.f32 %v569_v29, %v5659_v27  ;;  %v5753_v23 = vpop.f32.mrf.mxu0 }
 0x139   :  { %7053 = vst [vmem:[#allocation40_spill] sm:$0xff] %v5748_v44  ;;  %7055 = vst [vmem:[#allocation42_spill] sm:$0xff] %v5753_v23  ;;  %v571_v18 = vpop.f32.mrf.mxu1 }
 0x13a   :  { %7054 = vst [vmem:[#allocation41_spill] sm:$0xff] %v5751_v53  ;;  %v5756_v7 = vadd.f32 %v571_v18, %v5667_v31  ;;  %v462_v8 = vpop.f32.mrf.mxu0 }
 0x13b   :  { %v575_v17 = vpop.f32.mrf.mxu1  ;;  %v5759_v12 = vadd.f32 %v462_v8, %v5655_v26 }
 0x13c   :  { %7056 = vst [vmem:[#allocation43_spill] sm:$0xff] %v5756_v7  ;;  %v5762_v22 = vadd.f32 %v575_v17, %v5659_v27  ;;  %v464_v0 = vpop.f32.mrf.mxu0 }
 0x13d   :  { %7057 = vst [vmem:[#allocation44_spill] sm:$0xff] %v5759_v12  ;;  %v577_v28 = vpop.f32.mrf.mxu1  ;;  %v5765_v44 = vadd.f32 %v464_v0, %v5663_v30 }
 0x13e   :  { %7058 = vst [vmem:[#allocation45_spill] sm:$0xff] %v5762_v22  ;;  %v5768_v29 = vadd.f32 %v577_v28, %v5667_v31  ;;  %v466_v53 = vpop.f32.mrf.mxu0 }
 0x13f   :  { %7059 = vst [vmem:[#allocation46_spill] sm:$0xff] %v5765_v44  ;;  %v579_v23 = vpop.f32.mrf.mxu1  ;;  %v5771_v18 = vadd.f32 %v466_v53, %v5655_v26 }
 0x140   :  { %7060 = vst [vmem:[#allocation47_spill] sm:$0xff] %v5768_v29  ;;  %v5774_v7 = vadd.f32 %v579_v23, %v5659_v27  ;;  %v468_v8 = vpop.f32.mrf.mxu0 }
 0x141   :  { %7061 = vst [vmem:[#allocation48_spill] sm:$0xff] %v5771_v18  ;;  %v581_v12 = vpop.f32.mrf.mxu1  ;;  %v5777_v17 = vadd.f32 %v468_v8, %v5663_v30 }
 0x142   :  { %7062 = vst [vmem:[#allocation49_spill] sm:$0xff] %v5774_v7  ;;  %v5780_v22 = vadd.f32 %v581_v12, %v5667_v31  ;;  %v472_v0 = vpop.f32.mrf.mxu0 }
 0x143   :  { %7063 = vst [vmem:[#allocation50_spill] sm:$0xff] %v5777_v17  ;;  %v585_v44 = vpop.f32.mrf.mxu1  ;;  %v5783_v28 = vadd.f32 %v472_v0, %v5655_v26 }
 0x144   :  { %7064 = vst [vmem:[#allocation51_spill] sm:$0xff] %v5780_v22  ;;  %v5786_v29 = vadd.f32 %v585_v44, %v5659_v27  ;;  %v474_v53 = vpop.f32.mrf.mxu0 }
 0x145   :  { %7065 = vst [vmem:[#allocation52_spill] sm:$0xff] %v5783_v28  ;;  %v587_v18 = vpop.f32.mrf.mxu1  ;;  %v5789_v23 = vadd.f32 %v474_v53, %v5663_v30 }
 0x146   :  { %7066 = vst [vmem:[#allocation53_spill] sm:$0xff] %v5786_v29  ;;  %v5792_v7 = vadd.f32 %v587_v18, %v5667_v31  ;;  %v476_v8 = vpop.f32.mrf.mxu0 }
 0x147   :  { %7067 = vst [vmem:[#allocation54_spill] sm:$0xff] %v5789_v23  ;;  %v589_v17 = vpop.f32.mrf.mxu1  ;;  %v5795_v12 = vadd.f32 %v476_v8, %v5655_v26 }
 0x148   :  { %7068 = vst [vmem:[#allocation55_spill] sm:$0xff] %v5792_v7  ;;  %v5798_v22 = vadd.f32 %v589_v17, %v5659_v27  ;;  %v478_v0 = vpop.f32.mrf.mxu0 }
 0x149   :  { %7069 = vst [vmem:[#allocation56_spill] sm:$0xff] %v5795_v12  ;;  %v591_v28 = vpop.f32.mrf.mxu1  ;;  %v5801_v44 = vadd.f32 %v478_v0, %v5663_v30 }
 0x14a   :  { %7070 = vst [vmem:[#allocation57_spill] sm:$0xff] %v5798_v22  ;;  %v5804_v29 = vadd.f32 %v591_v28, %v5667_v31  ;;  %v482_v53 = vpop.f32.mrf.mxu0 }
 0x14b   :  { %7071 = vst [vmem:[#allocation58_spill] sm:$0xff] %v5801_v44  ;;  %v595_v23 = vpop.f32.mrf.mxu1  ;;  %v5807_v18 = vadd.f32 %v482_v53, %v5655_v26 }
 0x14c   :  { %7072 = vst [vmem:[#allocation59_spill] sm:$0xff] %v5804_v29  ;;  %v5810_v7 = vadd.f32 %v595_v23, %v5659_v27  ;;  %v484_v8 = vpop.f32.mrf.mxu0  ;;  %v413_v23 = vadd.f32 %v5630_v13, %v5655_v26  ;;  %v417_v13 = vadd.f32 %v5643_v20, %v5655_v26 }
 0x14d   :  { %7073 = vst [vmem:[#allocation60_spill] sm:$0xff] %v5807_v18  ;;  %v597_v12 = vpop.f32.mrf.mxu1  ;;  %v5813_v17 = vadd.f32 %v484_v8, %v5663_v30 }
 0x14e   :  { %7074 = vst [vmem:[#allocation61_spill] sm:$0xff] %v5810_v7  ;;  %v5816_v22 = vadd.f32 %v597_v12, %v5667_v31  ;;  %v486_v0 = vpop.f32.mrf.mxu0 }
 0x14f   :  { %7075 = vst [vmem:[#allocation62_spill] sm:$0xff] %v5813_v17  ;;  %v599_v44 = vpop.f32.mrf.mxu1  ;;  %v5819_v28 = vadd.f32 %v486_v0, %v5655_v26  ;;  %v415_v0 = vadd.f32 %v5634_v15, %v5663_v30 }
 0x150   :  { %7076 = vst [vmem:[#allocation63_spill] sm:$0xff] %v5816_v22  ;;  %v5822_v29 = vadd.f32 %v599_v44, %v5659_v27  ;;  %v488_v53 = vpop.f32.mrf.mxu0  ;;  %v528_v44 = vadd.f32 %v5636_v16, %v5667_v31  ;;  %v532_v16 = vadd.f32 %v5651_v25, %v5667_v31 }
 0x151   :  { %7077 = vst [vmem:[#allocation64_spill] sm:$0xff] %v5819_v28  ;;  %v601_v18 = vpop.f32.mrf.mxu1  ;;  %v5827_v7 = vadd.f32 %v488_v53, %v5663_v30 }
 0x152   :  { %7078 = vst [vmem:[#allocation65_spill] sm:$0xff] %v5822_v29  ;;  %v5830_v8 = vadd.f32 %v601_v18, %v5667_v31  ;;  %v915_v12 = vpop.f32.mrf.mxu0 }
 0x153   :  { %7079 = vst [vmem:[#allocation66_spill] sm:$0xff] %v5827_v7  ;;  %v958_v22 = vpop.f32.mrf.mxu1  ;;  %v967_v29 = vadd.f32 %v915_v12, %v413_v23 }
 0x154   :  { %7080 = vst [vmem:[#allocation67_spill] sm:$0xff] %v5830_v8  ;;  %v917_v28 = vpop.f32.mrf.mxu0  ;;  %v419_v8 = vadd.f32 %v5649_v24, %v5663_v30  ;;  %v530_v24 = vadd.f32 %v5645_v21, %v5659_v27 }
 0x155   :  { %v960_v17 = vpop.f32.mrf.mxu1  ;;  %4897 = vtanh.f32 %v967_v29  ;;  %v968_v53 = vadd.f32 %v917_v28, %v415_v0  ;;  %v526_v29 = vadd.f32 %v5632_v14, %v5659_v27 }
 0x156   :  { %v970_v7 = vadd.f32 %v960_v17, %v528_v44  ;;  %v919_v10 = vpop.f32.mrf.mxu0 }
 0x157   :  { %v962_v18 = vpop.f32.mrf.mxu1  ;;  %4899 = vtanh.f32 %v968_v53  ;;  %v971_v35 = vadd.f32 %v919_v10, %v417_v13 }
 0x158   :  { %4901 = vtanh.f32 %v970_v7  ;;  %v921_v15 = vpop.f32.mrf.mxu0  ;;  %v969_v7 = vadd.f32 %v958_v22, %v526_v29  ;;  %v973_v44 = vadd.f32 %v962_v18, %v530_v24 }
 0x159   :  { %v964_v9 = vpop.f32.mrf.mxu1  ;;  %4903 = vtanh.f32 %v971_v35  ;;  %v972_v23 = vadd.f32 %v921_v15, %v419_v8 }
 0x15a   :  { %v974_v20 = vadd.f32 %v964_v9, %v532_v16 }
 0x15b   :  { %4905 = vtanh.f32 %v972_v23 }
 0x15c   :  { %4907 = vtanh.f32 %v974_v20 }
 0x15d   :  { %4909 = vtanh.f32 %v969_v7 }
 0x15e   :  { %4911 = vtanh.f32 %v973_v44 }
 0x162   :  { %v4898_v26 = vpop.eup %4897 }
 0x163   :  { %v983_v17 = vmul.f32 0.5, %v4898_v26 }
 0x164   :  { %v4900_v10 = vpop.eup %4899 }
 0x165   :  { %v4902_v28 = vpop.eup %4901  ;;  %v989_v12 = vadd.f32 0.5, %v983_v17  ;;  %v984_v0 = vmul.f32 0.5, %v4900_v10 }
 0x166   :  { %v4904_v25 = vpop.eup %4903 }
 0x167   :  { %v990_v35 = vadd.f32 0.5, %v984_v0  ;;  %v997_v8 = vmul.f32 %v4902_v28, %v989_v12  ;;  %v986_v13 = vmul.f32 0.5, %v4904_v25 }
 0x168   :  { %v4906_v9 = vpop.eup %4905 }
 0x169   :  { %v995_v53 = vmul.f32 0.0, %v990_v35  ;;  %v992_v15 = vadd.f32 0.5, %v986_v13  ;;  %v987_v14 = vmul.f32 0.5, %v4906_v9  ;;  %v4908_v27 = vpop.eup %4907  ;;  %v7081_v35 = vmov 0   ;;  %v7083_v13 = vld [vmem:[#allocation17_spill] sm:$0xff] }
 0x16a   :  { %v4910_v18 = vpop.eup %4909 }
 0x16b   :  { %v5846_v16 = vadd.f32 %v997_v8, %v995_v53  ;;  %v993_v21 = vadd.f32 0.5, %v987_v14  ;;  %v998_v22 = vmul.f32 %v4908_v27, %v992_v15  ;;  %v4912_v26 = vpop.eup %4911  ;;  %v985_v29 = vmul.f32 0.5, %v4910_v18 }
 0x16c   :  { %v988_v24 = vmul.f32 0.5, %v4912_v26 }
 0x16d   :  { %v996_v23 = vmul.f32 0.0, %v993_v21  ;;  %4913 = vtanh.f32 %v5846_v16  ;;  %v991_v10 = vadd.f32 0.5, %v985_v29 }
 0x16e   :  { %v994_v7 = vadd.f32 0.5, %v988_v24 }
 0x16f   :  { %v5849_v20 = vadd.f32 %v998_v22, %v996_v23 }
 0x171   :  { %4915 = vtanh.f32 %v5849_v20 }
 0x17a   :  { %v4914_v17 = vpop.eup %4913 }
 0x17b   :  { %v1003_v12 = vmul.f32 %v4914_v17, %v991_v10 }
 0x17e   :  { %v4916_v28 = vpop.eup %4915 }
 0x17f   :  { %v1004_v0 = vmul.f32 %v4916_v28, %v994_v7 }
 0x181   :  { %v4509_v44 = vpack.c.bf16 %v1004_v0, %v1003_v12 }
 0x183   :  { %4515 = vst [vmem:[#allocation5] sm:$0xff] %v4509_v44   ;;  %4510 = vst [vmem:[#allocation2] sm:$0xff] %v4509_v44  }
 0x18a   :  { %v4769_v25 = vld [vmem:[#allocation2] sm:$0xff]  }
 0x18b   :  { %1073 = vmatmul.mubr.bf16.vlgmr.msra.gmra.mxu0 %v4769_v25  ;;  %1116 = vmatmul.mubr.bf16.vlgmr.msra.gmra.mxu1 %v4769_v25 }
 0x18c   :  { %1201 = vmatpush1.bf16.msra.mxu0 %v5463_v36  ;;  %1244 = vmatpush1.bf16.msra.mxu1 %v5465_v37 }
 0x18d   :  { %1202 = vmatprep.subr.bf16.mxu0 %v5469_v38  ;;  %1245 = vmatprep.subr.bf16.mxu1 %v5471_v39 }
 0x18e   :  { %1232 = vmatprep.mubr.bf16.mxu0 %v7081_v35  ;;  %1275 = vmatprep.mubr.bf16.mxu1 %v7081_v35 }
 0x190   :  { %1203 = vmatpush1.bf16.msra.mxu0 %v5473_v40  ;;  %1246 = vmatpush1.bf16.msra.mxu1 %v5475_v41 }
 0x191   :  { %1204 = vmatprep.subr.bf16.mxu0 %v5479_v42  ;;  %1247 = vmatprep.subr.bf16.mxu1 %v5483_v43 }
 0x194   :  { %1205 = vmatpush1.bf16.msra.mxu0 %v5492_v45  ;;  %1248 = vmatpush1.bf16.msra.mxu1 %v5496_v46  ;;  %v429_v46 = vadd.f32 %v5687_v11, %v5663_v30 }
 0x195   :  { %1206 = vmatprep.subr.bf16.mxu0 %v5498_v47  ;;  %1249 = vmatprep.subr.bf16.mxu1 %v5500_v48 }
 0x198   :  { %1207 = vmatpush1.bf16.msra.mxu0 %v5506_v49  ;;  %1250 = vmatpush1.bf16.msra.mxu1 %v5508_v50 }
 0x199   :  { %1208 = vmatprep.subr.bf16.mxu0 %v5512_v51  ;;  %1251 = vmatprep.subr.bf16.mxu1 %v5514_v52 }
 0x19c   :  { %1209 = vmatpush1.bf16.msra.mxu0 %v5519_v54  ;;  %1252 = vmatpush1.bf16.msra.mxu1 %v5523_v55 }
 0x19d   :  { %1210 = vmatprep.subr.bf16.mxu0 %v5527_v56  ;;  %1253 = vmatprep.subr.bf16.mxu1 %v5529_v57 }
 0x1a0   :  { %1211 = vmatpush1.bf16.msra.mxu0 %v5531_v58  ;;  %1254 = vmatpush1.bf16.msra.mxu1 %v5533_v59 }
 0x1a1   :  { %1212 = vmatprep.subr.bf16.mxu0 %v5537_v60  ;;  %1255 = vmatprep.subr.bf16.mxu1 %v5539_v61 }
 0x1a4   :  { %1213 = vmatpush1.bf16.msra.mxu0 %v5548_v63  ;;  %1256 = vmatpush1.bf16.msra.mxu1 %v5550_v1 }
 0x1a5   :  { %1214 = vmatprep.subr.bf16.mxu0 %v5552_v2  ;;  %1257 = vmatprep.subr.bf16.mxu1 %v5554_v3 }
 0x1a8   :  { %1215 = vmatpush1.bf16.msra.mxu0 %v5560_v4  ;;  %1258 = vmatpush1.bf16.msra.mxu1 %v5562_v5 }
 0x1a9   :  { %1360 = vmatprep.subr.bf16.mxu0 %v5456_v33  ;;  %1403 = vmatprep.subr.bf16.mxu1 %v5458_v34  ;;  %v542_v33 = vadd.f32 %v5689_v19, %v5667_v31  ;;  %v7082_v34 = vld [vmem:[#allocation18_spill] sm:$0xff]  ;;  %v7084_v19 = vld [vmem:[#allocation19_spill] sm:$0xff] }
 0x24b   :  { %v1074_v36 = vpop.f32.mrf.mxu0  ;;  %v1117_v37 = vpop.f32.mrf.mxu1 }
 0x24c   :  { %v1126_v38 = vadd.f32 %v1074_v36, %v5670_v32  ;;  %v1128_v9 = vadd.f32 %v1117_v37, %v7083_v13  ;;  %v5942_v13 = vld [vmem:[#allocation8 + $0x80] ss:$16 sps:$4 sm:$0xff]  }
 0x24d   :  { %v1076_v39 = vpop.f32.mrf.mxu0  ;;  %v1119_v40 = vpop.f32.mrf.mxu1 }
 0x24e   :  { %4917 = vtanh.f32 %v1126_v38  ;;  %v1127_v41 = vadd.f32 %v1076_v39, %v5676_v62  ;;  %v1129_v42 = vadd.f32 %v1119_v40, %v5679_v6 }
 0x24f   :  { %v1078_v43 = vpop.f32.mrf.mxu0  ;;  %v1121_v45 = vpop.f32.mrf.mxu1 }
 0x250   :  { %4919 = vtanh.f32 %v1127_v41  ;;  %v1130_v47 = vadd.f32 %v1078_v43, %v7082_v34  ;;  %v1132_v14 = vadd.f32 %v1121_v45, %v7084_v19  ;;  %v5904_v45 = vld [vmem:[#allocation8 + $0xe0] ss:$16 sps:$4 sm:$0xff]   ;;  %v5913_v34 = vld [vmem:[#allocation8 + $0xcc] ss:$16 sps:$4 sm:$0xff]  }
 0x251   :  { %4921 = vtanh.f32 %v1129_v42  ;;  %v1080_v48 = vpop.f32.mrf.mxu0  ;;  %v1123_v49 = vpop.f32.mrf.mxu1 }
 0x252   :  { %4923 = vtanh.f32 %v1130_v47  ;;  %v1131_v50 = vadd.f32 %v1080_v48, %v429_v46  ;;  %v1133_v32 = vadd.f32 %v1123_v49, %v542_v33  ;;  %v5907_v46 = vld [vmem:[#allocation8 + $0xe8] ss:$16 sps:$4 sm:$0xff]   ;;  %v5910_v33 = vld [vmem:[#allocation8 + $0xc4] ss:$16 sps:$4 sm:$0xff]   ;;  %v5918_v47 = vld [vmem:[#allocation8 + $0xc0] ss:$16 sps:$4 sm:$0xff]  }
 0x253   :  { %v5921_v48 = vld [vmem:[#allocation8 + $0xc8] ss:$16 sps:$4 sm:$0xff]   ;;  %v5924_v49 = vld [vmem:[#allocation8 + $0xa4] ss:$16 sps:$4 sm:$0xff]  }
 0x254   :  { %4925 = vtanh.f32 %v1131_v50  ;;  %v5927_v50 = vld [vmem:[#allocation8 + $0xac] ss:$16 sps:$4 sm:$0xff]  }
 0x255   :  { %4927 = vtanh.f32 %v1133_v32  ;;  %v5930_v32 = vld [vmem:[#allocation8 + $0xa0] ss:$16 sps:$4 sm:$0xff]  }
 0x256   :  { %4929 = vtanh.f32 %v1128_v9  ;;  %v5945_v9 = vld [vmem:[#allocation8 + $0x88] ss:$16 sps:$4 sm:$0xff]  }
 0x257   :  { %4931 = vtanh.f32 %v1132_v14 }
 0x25b   :  { %v4918_v62 = vpop.eup %4917 }
 0x25c   :  { %v1142_v6 = vmul.f32 0.5, %v4918_v62  ;;  %v5933_v62 = vld [vmem:[#allocation8 + $0xa8] ss:$16 sps:$4 sm:$0xff]  }
 0x25d   :  { %v4920_v8 = vpop.eup %4919 }
 0x25e   :  { %v4922_v11 = vpop.eup %4921  ;;  %v1148_v53 = vadd.f32 0.5, %v1142_v6  ;;  %v1143_v15 = vmul.f32 0.5, %v4920_v8  ;;  %v5936_v6 = vld [vmem:[#allocation8 + $0x84] ss:$16 sps:$4 sm:$0xff]   ;;  %v5939_v8 = vld [vmem:[#allocation8 + $0x8c] ss:$16 sps:$4 sm:$0xff]  }
 0x25f   :  { %v4924_v21 = vpop.eup %4923 }
 0x260   :  { %v1149_v27 = vadd.f32 0.5, %v1143_v15  ;;  %v1156_v23 = vmul.f32 %v4922_v11, %v1148_v53  ;;  %v1145_v22 = vmul.f32 0.5, %v4924_v21  ;;  %v7089_v11 = vld [vmem:[#allocation27_spill] sm:$0xff]  ;;  %v7090_v15 = vld [vmem:[#allocation24_spill] sm:$0xff] }
 0x261   :  { %v4926_v18 = vpop.eup %4925  ;;  %v552_v53 = vadd.f32 %v7089_v11, %v5667_v31  ;;  %v6007_v11 = vld [vmem:[#allocation8 + $0x6c] ss:$16 sps:$4 sm:$0xff]  }
 0x262   :  { %v1154_v26 = vmul.f32 %v1149_v27, %v5846_v16  ;;  %v1151_v29 = vadd.f32 0.5, %v1145_v22  ;;  %v1146_v24 = vmul.f32 0.5, %v4926_v18  ;;  %v4928_v17 = vpop.eup %4927 }
 0x263   :  { %v4930_v44 = vpop.eup %4929 }
 0x264   :  { %v5897_v10 = vadd.f32 %v1156_v23, %v1154_v26  ;;  %v1152_v7 = vadd.f32 0.5, %v1146_v24  ;;  %v1157_v28 = vmul.f32 %v4928_v17, %v1151_v29  ;;  %v4932_v25 = vpop.eup %4931  ;;  %v1144_v36 = vmul.f32 0.5, %v4930_v44  ;;  %v7091_v29 = vld [vmem:[#allocation21_spill] sm:$0xff] }
 0x265   :  { %v1147_v16 = vmul.f32 0.5, %v4932_v25 }
 0x266   :  { %v1155_v12 = vmul.f32 %v1152_v7, %v5849_v20  ;;  %4933 = vtanh.f32 %v5897_v10  ;;  %v1150_v38 = vadd.f32 0.5, %v1144_v36 }
 0x267   :  { %v1153_v39 = vadd.f32 0.5, %v1147_v16 }
 0x268   :  { %v5901_v0 = vadd.f32 %v1157_v28, %v1155_v12  ;;  %v7092_v12 = vld [vmem:[#allocation25_spill] sm:$0xff] }
 0x26a   :  { %4935 = vtanh.f32 %v5901_v0 }
 0x273   :  { %v4934_v37 = vpop.eup %4933 }
 0x274   :  { %v1162_v41 = vmul.f32 %v4934_v37, %v1150_v38 }
 0x277   :  { %v4936_v40 = vpop.eup %4935 }
 0x278   :  { %v1163_v42 = vmul.f32 %v4936_v40, %v1153_v39 }
 0x27a   :  { %v4519_v43 = vpack.c.bf16 %v1163_v42, %v1162_v41 }
 0x27c   :  { %4520 = vst [vmem:[#allocation2] sm:$0xff] %v4519_v43   ;;  %4525 = vst [vmem:[#allocation5 + $0x8] sm:$0xff] %v4519_v43  }
 0x283   :  { %v4770_v20 = vld [vmem:[#allocation2] sm:$0xff]  }
 0x284   :  { %1233 = vmatmul.mubr.bf16.vlgmr.msra.gmra.mxu0 %v4770_v20  ;;  %1276 = vmatmul.mubr.bf16.vlgmr.msra.gmra.mxu1 %v4770_v20 }
 0x285   :  { %1361 = vmatpush1.bf16.msra.mxu0 %v5904_v45  ;;  %1404 = vmatpush1.bf16.msra.mxu1 %v5907_v46 }
 0x286   :  { %1362 = vmatprep.subr.bf16.mxu0 %v5910_v33  ;;  %1405 = vmatprep.subr.bf16.mxu1 %v5913_v34 }
 0x287   :  { %1392 = vmatprep.mubr.bf16.mxu0 %v7081_v35  ;;  %1435 = vmatprep.mubr.bf16.mxu1 %v7081_v35 }
 0x289   :  { %1363 = vmatpush1.bf16.msra.mxu0 %v5918_v47  ;;  %1406 = vmatpush1.bf16.msra.mxu1 %v5921_v48 }
 0x28a   :  { %1364 = vmatprep.subr.bf16.mxu0 %v5924_v49  ;;  %1407 = vmatprep.subr.bf16.mxu1 %v5927_v50 }
 0x28d   :  { %1365 = vmatpush1.bf16.msra.mxu0 %v5930_v32  ;;  %1408 = vmatpush1.bf16.msra.mxu1 %v5933_v62 }
 0x28e   :  { %1366 = vmatprep.subr.bf16.mxu0 %v5936_v6  ;;  %1409 = vmatprep.subr.bf16.mxu1 %v5939_v8 }
 0x291   :  { %1367 = vmatpush1.bf16.msra.mxu0 %v5942_v13  ;;  %1410 = vmatpush1.bf16.msra.mxu1 %v5945_v9 }
 0x292   :  { %1368 = vmatprep.subr.bf16.mxu0 %v5512_v51  ;;  %1411 = vmatprep.subr.bf16.mxu1 %v5514_v52  ;;  %v5964_v51 = vld [vmem:[#allocation8 + $0xe4] ss:$16 sps:$4 sm:$0xff]   ;;  %v5967_v52 = vld [vmem:[#allocation8 + $0xec] ss:$16 sps:$4 sm:$0xff]  }
 0x295   :  { %1369 = vmatpush1.bf16.msra.mxu0 %v5519_v54  ;;  %1412 = vmatpush1.bf16.msra.mxu1 %v5523_v55 }
 0x296   :  { %1370 = vmatprep.subr.bf16.mxu0 %v5527_v56  ;;  %1413 = vmatprep.subr.bf16.mxu1 %v5529_v57  ;;  %v7085_v56 = vld [vmem:[#allocation20_spill] sm:$0xff] }
 0x299   :  { %1371 = vmatpush1.bf16.msra.mxu0 %v5531_v58  ;;  %1414 = vmatpush1.bf16.msra.mxu1 %v5533_v59 }
 0x29a   :  { %1372 = vmatprep.subr.bf16.mxu0 %v5537_v60  ;;  %1415 = vmatprep.subr.bf16.mxu1 %v5539_v61  ;;  %v7086_v60 = vld [vmem:[#allocation22_spill] sm:$0xff] }
 0x29d   :  { %1373 = vmatpush1.bf16.msra.mxu0 %v5548_v63  ;;  %1416 = vmatpush1.bf16.msra.mxu1 %v5550_v1  ;;  %v7087_v63 = vld [vmem:[#allocation23_spill] sm:$0xff] }
 0x29e   :  { %1374 = vmatprep.subr.bf16.mxu0 %v5552_v2  ;;  %1417 = vmatprep.subr.bf16.mxu1 %v5554_v3 }
 0x2a1   :  { %1375 = vmatpush1.bf16.msra.mxu0 %v5560_v4  ;;  %1418 = vmatpush1.bf16.msra.mxu1 %v5562_v5  ;;  %v7088_v4 = vld [vmem:[#allocation26_spill] sm:$0xff] }
 0x2a2   :  { %1520 = vmatprep.subr.bf16.mxu0 %v5964_v51  ;;  %1563 = vmatprep.subr.bf16.mxu1 %v5967_v52  ;;  %v439_v5 = vadd.f32 %v7088_v4, %v5663_v30 }
 0x344   :  { %v1234_v54 = vpop.f32.mrf.mxu0  ;;  %v1277_v55 = vpop.f32.mrf.mxu1 }
 0x345   :  { %v1286_v57 = vadd.f32 %v1234_v54, %v7085_v56  ;;  %v1288_v24 = vadd.f32 %v1277_v55, %v7091_v29  ;;  %v6040_v29 = vld [vmem:[#allocation8 + $0x4] ss:$16 sps:$4 sm:$0xff]  }
 0x346   :  { %v1236_v58 = vpop.f32.mrf.mxu0  ;;  %v1279_v59 = vpop.f32.mrf.mxu1 }
 0x347   :  { %4937 = vtanh.f32 %v1286_v57  ;;  %v1287_v61 = vadd.f32 %v1236_v58, %v7086_v60  ;;  %v1289_v1 = vadd.f32 %v1279_v59, %v7087_v63 }
 0x348   :  { %v1238_v2 = vpop.f32.mrf.mxu0  ;;  %v1281_v3 = vpop.f32.mrf.mxu1 }
 0x349   :  { %4939 = vtanh.f32 %v1287_v61  ;;  %v1290_v19 = vadd.f32 %v1238_v2, %v7090_v15  ;;  %v1292_v44 = vadd.f32 %v1281_v3, %v7092_v12  ;;  %v6013_v15 = vld [vmem:[#allocation8 + $0x68] ss:$16 sps:$4 sm:$0xff]  }
 0x34a   :  { %4941 = vtanh.f32 %v1289_v1  ;;  %v1240_v14 = vpop.f32.mrf.mxu0  ;;  %v1283_v21 = vpop.f32.mrf.mxu1 }
 0x34b   :  { %4943 = vtanh.f32 %v1290_v19  ;;  %v1291_v27 = vadd.f32 %v1240_v14, %v439_v5  ;;  %v1293_v23 = vadd.f32 %v1283_v21, %v552_v53  ;;  %v6004_v5 = vld [vmem:[#allocation8 + $0x64] ss:$16 sps:$4 sm:$0xff]   ;;  %v6010_v53 = vld [vmem:[#allocation8 + $0x60] ss:$16 sps:$4 sm:$0xff]   ;;  %v6019_v14 = vld [vmem:[#allocation8 + $0x4c] ss:$16 sps:$4 sm:$0xff]  }
 0x34c   :  { %v6016_v19 = vld [vmem:[#allocation8 + $0x44] ss:$16 sps:$4 sm:$0xff]   ;;  %v6022_v21 = vld [vmem:[#allocation8 + $0x40] ss:$16 sps:$4 sm:$0xff]  }
 0x34d   :  { %4945 = vtanh.f32 %v1291_v27  ;;  %v6025_v27 = vld [vmem:[#allocation8 + $0x48] ss:$16 sps:$4 sm:$0xff]  }
 0x34e   :  { %4947 = vtanh.f32 %v1293_v23  ;;  %v6028_v23 = vld [vmem:[#allocation8 + $0x24] ss:$16 sps:$4 sm:$0xff]  }
 0x34f   :  { %4949 = vtanh.f32 %v1288_v24  ;;  %v6043_v24 = vld [vmem:[#allocation8 + $0xc] ss:$16 sps:$4 sm:$0xff]  }
 0x350   :  { %4951 = vtanh.f32 %v1292_v44  ;;  %v7093_v44 = vld [vmem:[#allocation28_spill] sm:$0xff] }
 0x354   :  { %v4938_v22 = vpop.eup %4937 }
 0x355   :  { %v1302_v18 = vmul.f32 0.5, %v4938_v22  ;;  %v6031_v22 = vld [vmem:[#allocation8 + $0x2c] ss:$16 sps:$4 sm:$0xff]  }
 0x356   :  { %v4940_v26 = vpop.eup %4939 }
 0x357   :  { %v4942_v17 = vpop.eup %4941  ;;  %v1308_v7 = vadd.f32 0.5, %v1302_v18  ;;  %v1303_v28 = vmul.f32 0.5, %v4940_v26  ;;  %v6034_v18 = vld [vmem:[#allocation8 + $0x20] ss:$16 sps:$4 sm:$0xff]   ;;  %v6037_v26 = vld [vmem:[#allocation8 + $0x28] ss:$16 sps:$4 sm:$0xff]  }
 0x358   :  { %v4944_v25 = vpop.eup %4943 }
 0x359   :  { %v1309_v36 = vadd.f32 0.5, %v1303_v28  ;;  %v1316_v16 = vmul.f32 %v4942_v17, %v1308_v7  ;;  %v1305_v37 = vmul.f32 0.5, %v4944_v25  ;;  %v6046_v17 = vld [vmem:[#allocation8] ss:$16 sps:$4 sm:$0xff]   ;;  %v6049_v7 = vld [vmem:[#allocation8 + $0x8] ss:$16 sps:$4 sm:$0xff]  }
 0x35a   :  { %v4946_v38 = vpop.eup %4945 }
 0x35b   :  { %v1314_v39 = vmul.f32 %v1309_v36, %v5897_v10  ;;  %v1311_v40 = vadd.f32 0.5, %v1305_v37  ;;  %v1306_v41 = vmul.f32 0.5, %v4946_v38  ;;  %v4948_v42 = vpop.eup %4947  ;;  %v7094_v37 = vld [vmem:[#allocation30_spill] sm:$0xff] }
 0x35c   :  { %v4950_v57 = vpop.eup %4949 }
 0x35d   :  { %v5981_v43 = vadd.f32 %v1316_v16, %v1314_v39  ;;  %v1312_v20 = vadd.f32 0.5, %v1306_v41  ;;  %v1317_v54 = vmul.f32 %v4948_v42, %v1311_v40  ;;  %v4952_v58 = vpop.eup %4951  ;;  %v1304_v59 = vmul.f32 0.5, %v4950_v57  ;;  %v7095_v39 = vld [vmem:[#allocation31_spill] sm:$0xff] }
 0x35e   :  { %v1307_v10 = vmul.f32 0.5, %v4952_v58  ;;  %v7098_v58 = vld [vmem:[#allocation32_spill] sm:$0xff] }
 0x35f   :  { %v1315_v55 = vmul.f32 %v1312_v20, %v5901_v0  ;;  %4953 = vtanh.f32 %v5981_v43  ;;  %v1310_v61 = vadd.f32 0.5, %v1304_v59  ;;  %v7096_v20 = vld [vmem:[#allocation34_spill] sm:$0xff] }
 0x360   :  { %v1313_v63 = vadd.f32 0.5, %v1307_v10 }
 0x361   :  { %v5985_v56 = vadd.f32 %v1317_v54, %v1315_v55  ;;  %v449_v54 = vadd.f32 %v7096_v20, %v5663_v30  ;;  %v7097_v55 = vld [vmem:[#allocation35_spill] sm:$0xff] }
 0x362   :  { %v562_v57 = vadd.f32 %v7097_v55, %v5667_v31  ;;  %v7100_v31 = vld [vmem:[#allocation33_spill] sm:$0xff] }
 0x363   :  { %4955 = vtanh.f32 %v5985_v56 }
 0x36c   :  { %v4954_v60 = vpop.eup %4953 }
 0x36d   :  { %v1322_v2 = vmul.f32 %v4954_v60, %v1310_v61 }
 0x370   :  { %v4956_v1 = vpop.eup %4955 }
 0x371   :  { %v1323_v3 = vmul.f32 %v4956_v1, %v1313_v63 }
 0x373   :  { %v4529_v4 = vpack.c.bf16 %v1323_v3, %v1322_v2 }
 0x375   :  { %4530 = vst [vmem:[#allocation2] sm:$0xff] %v4529_v4   ;;  %4535 = vst [vmem:[#allocation5 + $0x10] sm:$0xff] %v4529_v4   ;;  %v7099_v4 = vld [vmem:[#allocation29_spill] sm:$0xff] }
 0x37c   :  { %v4771_v0 = vld [vmem:[#allocation2] sm:$0xff]  }
 0x37d   :  { %1393 = vmatmul.mubr.bf16.vlgmr.msra.gmra.mxu0 %v4771_v0  ;;  %1436 = vmatmul.mubr.bf16.vlgmr.msra.gmra.mxu1 %v4771_v0 }
 0x37e   :  { %1521 = vmatpush1.bf16.msra.mxu0 %v5904_v45  ;;  %1564 = vmatpush1.bf16.msra.mxu1 %v5907_v46 }
 0x37f   :  { %1522 = vmatprep.subr.bf16.mxu0 %v5910_v33  ;;  %1565 = vmatprep.subr.bf16.mxu1 %v5913_v34 }
 0x380   :  { %1552 = vmatprep.mubr.bf16.mxu0 %v7081_v35  ;;  %1595 = vmatprep.mubr.bf16.mxu1 %v7081_v35 }
 0x382   :  { %1523 = vmatpush1.bf16.msra.mxu0 %v5918_v47  ;;  %1566 = vmatpush1.bf16.msra.mxu1 %v5921_v48 }
 0x383   :  { %1524 = vmatprep.subr.bf16.mxu0 %v5924_v49  ;;  %1567 = vmatprep.subr.bf16.mxu1 %v5927_v50 }
 0x386   :  { %1525 = vmatpush1.bf16.msra.mxu0 %v5930_v32  ;;  %1568 = vmatpush1.bf16.msra.mxu1 %v5933_v62 }
 0x387   :  { %1526 = vmatprep.subr.bf16.mxu0 %v5936_v6  ;;  %1569 = vmatprep.subr.bf16.mxu1 %v5939_v8 }
 0x38a   :  { %1527 = vmatpush1.bf16.msra.mxu0 %v5942_v13  ;;  %1570 = vmatpush1.bf16.msra.mxu1 %v5945_v9 }
 0x38b   :  { %1528 = vmatprep.subr.bf16.mxu0 %v6004_v5  ;;  %1571 = vmatprep.subr.bf16.mxu1 %v6007_v11 }
 0x38e   :  { %1529 = vmatpush1.bf16.msra.mxu0 %v6010_v53  ;;  %1572 = vmatpush1.bf16.msra.mxu1 %v6013_v15 }
 0x38f   :  { %1530 = vmatprep.subr.bf16.mxu0 %v6016_v19  ;;  %1573 = vmatprep.subr.bf16.mxu1 %v6019_v14 }
 0x392   :  { %1531 = vmatpush1.bf16.msra.mxu0 %v6022_v21  ;;  %1574 = vmatpush1.bf16.msra.mxu1 %v6025_v27 }
 0x393   :  { %1532 = vmatprep.subr.bf16.mxu0 %v6028_v23  ;;  %1575 = vmatprep.subr.bf16.mxu1 %v6031_v22 }
 0x396   :  { %1533 = vmatpush1.bf16.msra.mxu0 %v6034_v18  ;;  %1576 = vmatpush1.bf16.msra.mxu1 %v6037_v26 }
 0x397   :  { %1534 = vmatprep.subr.bf16.mxu0 %v6040_v29  ;;  %1577 = vmatprep.subr.bf16.mxu1 %v6043_v24 }
 0x39a   :  { %1535 = vmatpush1.bf16.msra.mxu0 %v6046_v17  ;;  %1578 = vmatpush1.bf16.msra.mxu1 %v6049_v7 }
 0x39b   :  { %1680 = vmatprep.subr.bf16.mxu0 %v5964_v51  ;;  %1723 = vmatprep.subr.bf16.mxu1 %v5967_v52 }
 0x43d   :  { %v1394_v28 = vpop.f32.mrf.mxu0  ;;  %v1437_v12 = vpop.f32.mrf.mxu1 }
 0x43e   :  { %v1446_v25 = vadd.f32 %v1394_v28, %v7093_v44  ;;  %v1448_v0 = vadd.f32 %v1437_v12, %v7099_v4 }
 0x43f   :  { %v1396_v36 = vpop.f32.mrf.mxu0  ;;  %v1439_v16 = vpop.f32.mrf.mxu1 }
 0x440   :  { %4957 = vtanh.f32 %v1446_v25  ;;  %v1447_v38 = vadd.f32 %v1396_v36, %v7094_v37  ;;  %v1449_v40 = vadd.f32 %v1439_v16, %v7095_v39 }
 0x441   :  { %v1398_v41 = vpop.f32.mrf.mxu0  ;;  %v1441_v42 = vpop.f32.mrf.mxu1 }
 0x442   :  { %4959 = vtanh.f32 %v1447_v38  ;;  %v1450_v59 = vadd.f32 %v1398_v41, %v7098_v58  ;;  %v1452_v36 = vadd.f32 %v1441_v42, %v7100_v31  ;;  %v7101_v31 = vld [vmem:[#allocation36_spill] sm:$0xff] }
 0x443   :  { %4961 = vtanh.f32 %v1449_v40  ;;  %v1400_v10 = vpop.f32.mrf.mxu0  ;;  %v1443_v60 = vpop.f32.mrf.mxu1 }
 0x444   :  { %4963 = vtanh.f32 %v1450_v59  ;;  %v1451_v61 = vadd.f32 %v1400_v10, %v449_v54  ;;  %v1453_v63 = vadd.f32 %v1443_v60, %v562_v57 }
 0x446   :  { %4965 = vtanh.f32 %v1451_v61 }
 0x447   :  { %4967 = vtanh.f32 %v1453_v63 }
 0x448   :  { %4969 = vtanh.f32 %v1448_v0 }
 0x449   :  { %4971 = vtanh.f32 %v1452_v36 }
 0x44d   :  { %v4958_v1 = vpop.eup %4957 }
 0x44e   :  { %v1462_v2 = vmul.f32 0.5, %v4958_v1 }
 0x44f   :  { %v4960_v3 = vpop.eup %4959 }
 0x450   :  { %v4962_v28 = vpop.eup %4961  ;;  %v1468_v44 = vadd.f32 0.5, %v1462_v2  ;;  %v1463_v25 = vmul.f32 0.5, %v4960_v3 }
 0x451   :  { %v4964_v16 = vpop.eup %4963 }
 0x452   :  { %v1469_v37 = vadd.f32 0.5, %v1463_v25  ;;  %v1476_v38 = vmul.f32 %v4962_v28, %v1468_v44  ;;  %v1465_v39 = vmul.f32 0.5, %v4964_v16 }
 0x453   :  { %v4966_v40 = vpop.eup %4965 }
 0x454   :  { %v1474_v41 = vmul.f32 %v1469_v37, %v5981_v43  ;;  %v1471_v20 = vadd.f32 0.5, %v1465_v39  ;;  %v1466_v54 = vmul.f32 0.5, %v4966_v40  ;;  %v4968_v55 = vpop.eup %4967  ;;  %v7103_v40 = vld [vmem:[#allocation39_spill] sm:$0xff] }
 0x455   :  { %v4970_v10 = vpop.eup %4969 }
 0x456   :  { %v6065_v57 = vadd.f32 %v1476_v38, %v1474_v41  ;;  %v1472_v12 = vadd.f32 0.5, %v1466_v54  ;;  %v1477_v58 = vmul.f32 %v4968_v55, %v1471_v20  ;;  %v4972_v60 = vpop.eup %4971  ;;  %v1464_v61 = vmul.f32 0.5, %v4970_v10  ;;  %v7102_v38 = vld [vmem:[#allocation38_spill] sm:$0xff] }
 0x457   :  { %v1467_v43 = vmul.f32 0.5, %v4972_v60  ;;  %v7104_v55 = vld [vmem:[#allocation42_spill] sm:$0xff] }
 0x458   :  { %v1475_v59 = vmul.f32 %v1472_v12, %v5985_v56  ;;  %4973 = vtanh.f32 %v6065_v57  ;;  %v1470_v1 = vadd.f32 0.5, %v1464_v61  ;;  %v459_v12 = vadd.f32 %v7104_v55, %v5663_v30 }
 0x459   :  { %v1473_v2 = vadd.f32 0.5, %v1467_v43  ;;  %v7106_v43 = vld [vmem:[#allocation43_spill] sm:$0xff] }
 0x45a   :  { %v6069_v42 = vadd.f32 %v1477_v58, %v1475_v59  ;;  %v7105_v58 = vld [vmem:[#allocation40_spill] sm:$0xff] }
 0x45c   :  { %4975 = vtanh.f32 %v6069_v42 }
 0x465   :  { %v4974_v63 = vpop.eup %4973 }
 0x466   :  { %v1482_v4 = vmul.f32 %v4974_v63, %v1470_v1 }
 0x469   :  { %v4976_v3 = vpop.eup %4975 }
 0x46a   :  { %v1483_v0 = vmul.f32 %v4976_v3, %v1473_v2 }
 0x46c   :  { %v4539_v28 = vpack.c.bf16 %v1483_v0, %v1482_v4  ;;  %v7107_v4 = vld [vmem:[#allocation37_spill] sm:$0xff] }
 0x46e   :  { %4540 = vst [vmem:[#allocation2] sm:$0xff] %v4539_v28   ;;  %4545 = vst [vmem:[#allocation5 + $0x18] sm:$0xff] %v4539_v28  }
 0x475   :  { %v4772_v56 = vld [vmem:[#allocation2] sm:$0xff]  }
 0x476   :  { %1553 = vmatmul.mubr.bf16.vlgmr.msra.gmra.mxu0 %v4772_v56  ;;  %1596 = vmatmul.mubr.bf16.vlgmr.msra.gmra.mxu1 %v4772_v56 }
 0x477   :  { %1681 = vmatpush1.bf16.msra.mxu0 %v5904_v45  ;;  %1724 = vmatpush1.bf16.msra.mxu1 %v5907_v46 }
 0x478   :  { %1682 = vmatprep.subr.bf16.mxu0 %v5910_v33  ;;  %1725 = vmatprep.subr.bf16.mxu1 %v5913_v34 }
 0x479   :  { %1712 = vmatprep.mubr.bf16.mxu0 %v7081_v35  ;;  %1755 = vmatprep.mubr.bf16.mxu1 %v7081_v35 }
 0x47b   :  { %1683 = vmatpush1.bf16.msra.mxu0 %v5918_v47  ;;  %1726 = vmatpush1.bf16.msra.mxu1 %v5921_v48 }
 0x47c   :  { %1684 = vmatprep.subr.bf16.mxu0 %v5924_v49  ;;  %1727 = vmatprep.subr.bf16.mxu1 %v5927_v50 }
 0x47f   :  { %1685 = vmatpush1.bf16.msra.mxu0 %v5930_v32  ;;  %1728 = vmatpush1.bf16.msra.mxu1 %v5933_v62 }
 0x480   :  { %1686 = vmatprep.subr.bf16.mxu0 %v5936_v6  ;;  %1729 = vmatprep.subr.bf16.mxu1 %v5939_v8 }
 0x483   :  { %1687 = vmatpush1.bf16.msra.mxu0 %v5942_v13  ;;  %1730 = vmatpush1.bf16.msra.mxu1 %v5945_v9 }
 0x484   :  { %1688 = vmatprep.subr.bf16.mxu0 %v6004_v5  ;;  %1731 = vmatprep.subr.bf16.mxu1 %v6007_v11 }
 0x487   :  { %1689 = vmatpush1.bf16.msra.mxu0 %v6010_v53  ;;  %1732 = vmatpush1.bf16.msra.mxu1 %v6013_v15 }
 0x488   :  { %1690 = vmatprep.subr.bf16.mxu0 %v6016_v19  ;;  %1733 = vmatprep.subr.bf16.mxu1 %v6019_v14 }
 0x48b   :  { %1691 = vmatpush1.bf16.msra.mxu0 %v6022_v21  ;;  %1734 = vmatpush1.bf16.msra.mxu1 %v6025_v27 }
 0x48c   :  { %1692 = vmatprep.subr.bf16.mxu0 %v6028_v23  ;;  %1735 = vmatprep.subr.bf16.mxu1 %v6031_v22 }
 0x48f   :  { %1693 = vmatpush1.bf16.msra.mxu0 %v6034_v18  ;;  %1736 = vmatpush1.bf16.msra.mxu1 %v6037_v26 }
 0x490   :  { %1694 = vmatprep.subr.bf16.mxu0 %v6040_v29  ;;  %1737 = vmatprep.subr.bf16.mxu1 %v6043_v24 }
 0x493   :  { %1695 = vmatpush1.bf16.msra.mxu0 %v6046_v17  ;;  %1738 = vmatpush1.bf16.msra.mxu1 %v6049_v7 }
 0x494   :  { %1840 = vmatprep.subr.bf16.mxu0 %v5964_v51  ;;  %1883 = vmatprep.subr.bf16.mxu1 %v5967_v52 }
 0x536   :  { %v1554_v44 = vpop.f32.mrf.mxu0  ;;  %v1597_v25 = vpop.f32.mrf.mxu1 }
 0x537   :  { %v1606_v36 = vadd.f32 %v1554_v44, %v7101_v31  ;;  %v1608_v0 = vadd.f32 %v1597_v25, %v7107_v4  ;;  %v7108_v44 = vld [vmem:[#allocation41_spill] sm:$0xff] }
 0x538   :  { %v1556_v16 = vpop.f32.mrf.mxu0  ;;  %v1599_v37 = vpop.f32.mrf.mxu1 }
 0x539   :  { %4977 = vtanh.f32 %v1606_v36  ;;  %v1607_v39 = vadd.f32 %v1556_v16, %v7102_v38  ;;  %v1609_v41 = vadd.f32 %v1599_v37, %v7103_v40 }
 0x53a   :  { %v1558_v20 = vpop.f32.mrf.mxu0  ;;  %v1601_v54 = vpop.f32.mrf.mxu1 }
 0x53b   :  { %4979 = vtanh.f32 %v1607_v39  ;;  %v1610_v59 = vadd.f32 %v1558_v20, %v7105_v58  ;;  %v1612_v31 = vadd.f32 %v1601_v54, %v7108_v44 }
 0x53c   :  { %4981 = vtanh.f32 %v1609_v41  ;;  %v1560_v10 = vpop.f32.mrf.mxu0  ;;  %v1603_v60 = vpop.f32.mrf.mxu1 }
 0x53d   :  { %4983 = vtanh.f32 %v1610_v59  ;;  %v1611_v61 = vadd.f32 %v1560_v10, %v459_v12  ;;  %v1613_v63 = vadd.f32 %v1603_v60, %v7106_v43 }
 0x53f   :  { %4985 = vtanh.f32 %v1611_v61 }
 0x540   :  { %4987 = vtanh.f32 %v1613_v63 }
 0x541   :  { %4989 = vtanh.f32 %v1608_v0 }
 0x542   :  { %4991 = vtanh.f32 %v1612_v31 }
 0x546   :  { %v4978_v1 = vpop.eup %4977 }
 0x547   :  { %v1622_v2 = vmul.f32 0.5, %v4978_v1 }
 0x548   :  { %v4980_v3 = vpop.eup %4979 }
 0x549   :  { %v4982_v28 = vpop.eup %4981  ;;  %v1628_v56 = vadd.f32 0.5, %v1622_v2  ;;  %v1623_v30 = vmul.f32 0.5, %v4980_v3 }
 0x54a   :  { %v4984_v36 = vpop.eup %4983 }
 0x54b   :  { %v1629_v16 = vadd.f32 0.5, %v1623_v30  ;;  %v1636_v37 = vmul.f32 %v4982_v28, %v1628_v56  ;;  %v1625_v38 = vmul.f32 0.5, %v4984_v36  ;;  %v7109_v30 = vld [vmem:[#allocation44_spill] sm:$0xff] }
 0x54c   :  { %v4986_v39 = vpop.eup %4985 }
 0x54d   :  { %v1634_v40 = vmul.f32 %v1629_v16, %v6065_v57  ;;  %v1631_v41 = vadd.f32 0.5, %v1625_v38  ;;  %v1626_v20 = vmul.f32 0.5, %v4986_v39  ;;  %v4988_v55 = vpop.eup %4987  ;;  %v7110_v16 = vld [vmem:[#allocation46_spill] sm:$0xff]  ;;  %v7111_v38 = vld [vmem:[#allocation47_spill] sm:$0xff] }
 0x54e   :  { %v4990_v10 = vpop.eup %4989 }
 0x54f   :  { %v6116_v12 = vadd.f32 %v1636_v37, %v1634_v40  ;;  %v1632_v25 = vadd.f32 0.5, %v1626_v20  ;;  %v1637_v58 = vmul.f32 %v4988_v55, %v1631_v41  ;;  %v4992_v60 = vpop.eup %4991  ;;  %v1624_v61 = vmul.f32 0.5, %v4990_v10  ;;  %v7112_v20 = vld [vmem:[#allocation48_spill] sm:$0xff] }
 0x550   :  { %v1627_v57 = vmul.f32 0.5, %v4992_v60 }
 0x551   :  { %v1635_v59 = vmul.f32 %v1632_v25, %v6069_v42  ;;  %4993 = vtanh.f32 %v6116_v12  ;;  %v1630_v63 = vadd.f32 0.5, %v1624_v61 }
 0x552   :  { %v1633_v1 = vadd.f32 0.5, %v1627_v57 }
 0x553   :  { %v6120_v54 = vadd.f32 %v1637_v58, %v1635_v59  ;;  %v7114_v59 = vld [vmem:[#allocation51_spill] sm:$0xff] }
 0x555   :  { %4995 = vtanh.f32 %v6120_v54 }
 0x55e   :  { %v4994_v43 = vpop.eup %4993 }
 0x55f   :  { %v1642_v3 = vmul.f32 %v4994_v43, %v1630_v63  ;;  %v7115_v43 = vld [vmem:[#allocation45_spill] sm:$0xff] }
 0x562   :  { %v4996_v2 = vpop.eup %4995 }
 0x563   :  { %v1643_v4 = vmul.f32 %v4996_v2, %v1633_v1 }
 0x565   :  { %v4549_v0 = vpack.c.bf16 %v1643_v4, %v1642_v3  ;;  %v7116_v4 = vld [vmem:[#allocation49_spill] sm:$0xff] }
 0x567   :  { %4550 = vst [vmem:[#allocation2] sm:$0xff] %v4549_v0   ;;  %4555 = vst [vmem:[#allocation5 + $0x20] sm:$0xff] %v4549_v0  }
 0x56e   :  { %v4773_v42 = vld [vmem:[#allocation2] sm:$0xff]  }
 0x56f   :  { %1713 = vmatmul.mubr.bf16.vlgmr.msra.gmra.mxu0 %v4773_v42  ;;  %1756 = vmatmul.mubr.bf16.vlgmr.msra.gmra.mxu1 %v4773_v42 }
 0x570   :  { %1841 = vmatpush1.bf16.msra.mxu0 %v5904_v45  ;;  %1884 = vmatpush1.bf16.msra.mxu1 %v5907_v46 }
 0x571   :  { %1842 = vmatprep.subr.bf16.mxu0 %v5910_v33  ;;  %1885 = vmatprep.subr.bf16.mxu1 %v5913_v34 }
 0x572   :  { %1872 = vmatprep.mubr.bf16.mxu0 %v7081_v35  ;;  %1915 = vmatprep.mubr.bf16.mxu1 %v7081_v35 }
 0x574   :  { %1843 = vmatpush1.bf16.msra.mxu0 %v5918_v47  ;;  %1886 = vmatpush1.bf16.msra.mxu1 %v5921_v48 }
 0x575   :  { %1844 = vmatprep.subr.bf16.mxu0 %v5924_v49  ;;  %1887 = vmatprep.subr.bf16.mxu1 %v5927_v50 }
 0x578   :  { %1845 = vmatpush1.bf16.msra.mxu0 %v5930_v32  ;;  %1888 = vmatpush1.bf16.msra.mxu1 %v5933_v62 }
 0x579   :  { %1846 = vmatprep.subr.bf16.mxu0 %v5936_v6  ;;  %1889 = vmatprep.subr.bf16.mxu1 %v5939_v8 }
 0x57c   :  { %1847 = vmatpush1.bf16.msra.mxu0 %v5942_v13  ;;  %1890 = vmatpush1.bf16.msra.mxu1 %v5945_v9 }
 0x57d   :  { %1848 = vmatprep.subr.bf16.mxu0 %v6004_v5  ;;  %1891 = vmatprep.subr.bf16.mxu1 %v6007_v11 }
 0x580   :  { %1849 = vmatpush1.bf16.msra.mxu0 %v6010_v53  ;;  %1892 = vmatpush1.bf16.msra.mxu1 %v6013_v15 }
 0x581   :  { %1850 = vmatprep.subr.bf16.mxu0 %v6016_v19  ;;  %1893 = vmatprep.subr.bf16.mxu1 %v6019_v14 }
 0x584   :  { %1851 = vmatpush1.bf16.msra.mxu0 %v6022_v21  ;;  %1894 = vmatpush1.bf16.msra.mxu1 %v6025_v27 }
 0x585   :  { %1852 = vmatprep.subr.bf16.mxu0 %v6028_v23  ;;  %1895 = vmatprep.subr.bf16.mxu1 %v6031_v22 }
 0x588   :  { %1853 = vmatpush1.bf16.msra.mxu0 %v6034_v18  ;;  %1896 = vmatpush1.bf16.msra.mxu1 %v6037_v26 }
 0x589   :  { %1854 = vmatprep.subr.bf16.mxu0 %v6040_v29  ;;  %1897 = vmatprep.subr.bf16.mxu1 %v6043_v24 }
 0x58c   :  { %1855 = vmatpush1.bf16.msra.mxu0 %v6046_v17  ;;  %1898 = vmatpush1.bf16.msra.mxu1 %v6049_v7 }
 0x58d   :  { %2000 = vmatprep.subr.bf16.mxu0 %v5964_v51  ;;  %2043 = vmatprep.subr.bf16.mxu1 %v5967_v52  ;;  %v7113_v52 = vld [vmem:[#allocation50_spill] sm:$0xff] }
 0x62f   :  { %v1714_v28 = vpop.f32.mrf.mxu0  ;;  %v1757_v56 = vpop.f32.mrf.mxu1 }
 0x630   :  { %v1766_v44 = vadd.f32 %v1714_v28, %v7109_v30  ;;  %v1768_v63 = vadd.f32 %v1757_v56, %v7115_v43  ;;  %v7124_v43 = vld [vmem:[#allocation57_spill] sm:$0xff] }
 0x631   :  { %v1716_v31 = vpop.f32.mrf.mxu0  ;;  %v1759_v36 = vpop.f32.mrf.mxu1 }
 0x632   :  { %4997 = vtanh.f32 %v1766_v44  ;;  %v1767_v37 = vadd.f32 %v1716_v31, %v7110_v16  ;;  %v1769_v39 = vadd.f32 %v1759_v36, %v7111_v38 }
 0x633   :  { %v1718_v40 = vpop.f32.mrf.mxu0  ;;  %v1761_v41 = vpop.f32.mrf.mxu1 }
 0x634   :  { %4999 = vtanh.f32 %v1767_v37  ;;  %v1770_v55 = vadd.f32 %v1718_v40, %v7112_v20  ;;  %v1772_v0 = vadd.f32 %v1761_v41, %v7116_v4 }
 0x635   :  { %5001 = vtanh.f32 %v1769_v39  ;;  %v1720_v51 = vpop.f32.mrf.mxu0  ;;  %v1763_v25 = vpop.f32.mrf.mxu1 }
 0x636   :  { %5003 = vtanh.f32 %v1770_v55  ;;  %v1771_v58 = vadd.f32 %v1720_v51, %v7113_v52  ;;  %v1773_v10 = vadd.f32 %v1763_v25, %v7114_v59 }
 0x638   :  { %5005 = vtanh.f32 %v1771_v58 }
 0x639   :  { %5007 = vtanh.f32 %v1773_v10 }
 0x63a   :  { %5009 = vtanh.f32 %v1768_v63 }
 0x63b   :  { %5011 = vtanh.f32 %v1772_v0 }
 0x63f   :  { %v4998_v60 = vpop.eup %4997 }
 0x640   :  { %v1782_v61 = vmul.f32 0.5, %v4998_v60 }
 0x641   :  { %v5000_v57 = vpop.eup %4999 }
 0x642   :  { %v5002_v1 = vpop.eup %5001  ;;  %v1788_v2 = vadd.f32 0.5, %v1782_v61  ;;  %v1783_v3 = vmul.f32 0.5, %v5000_v57 }
 0x643   :  { %v5004_v42 = vpop.eup %5003 }
 0x644   :  { %v1789_v28 = vadd.f32 0.5, %v1783_v3  ;;  %v1796_v30 = vmul.f32 %v5002_v1, %v1788_v2  ;;  %v1785_v44 = vmul.f32 0.5, %v5004_v42 }
 0x645   :  { %v5006_v31 = vpop.eup %5005 }
 0x646   :  { %v1794_v36 = vmul.f32 %v1789_v28, %v6116_v12  ;;  %v1791_v16 = vadd.f32 0.5, %v1785_v44  ;;  %v1786_v37 = vmul.f32 0.5, %v5006_v31  ;;  %v5008_v38 = vpop.eup %5007 }
 0x647   :  { %v5010_v55 = vpop.eup %5009 }
 0x648   :  { %v6166_v39 = vadd.f32 %v1796_v30, %v1794_v36  ;;  %v1792_v56 = vadd.f32 0.5, %v1786_v37  ;;  %v1797_v40 = vmul.f32 %v5008_v38, %v1791_v16  ;;  %v5012_v51 = vpop.eup %5011  ;;  %v1784_v25 = vmul.f32 0.5, %v5010_v55 }
 0x649   :  { %v1787_v12 = vmul.f32 0.5, %v5012_v51 }
 0x64a   :  { %v1795_v20 = vmul.f32 %v1792_v56, %v6120_v54  ;;  %5013 = vtanh.f32 %v6166_v39  ;;  %v1790_v58 = vadd.f32 0.5, %v1784_v25 }
 0x64b   :  { %v1793_v59 = vadd.f32 0.5, %v1787_v12 }
 0x64c   :  { %v6170_v41 = vadd.f32 %v1797_v40, %v1795_v20 }
 0x64e   :  { %5015 = vtanh.f32 %v6170_v41 }
 0x657   :  { %v5014_v52 = vpop.eup %5013 }
 0x658   :  { %v1802_v60 = vmul.f32 %v5014_v52, %v1790_v58 }
 0x65b   :  { %v5016_v10 = vpop.eup %5015 }
 0x65c   :  { %v1803_v61 = vmul.f32 %v5016_v10, %v1793_v59  ;;  %v4778_v10 = vld [vmem:[#allocation10 + $0xe8] ss:$16 sps:$4 sm:$0xff]  }
 0x65e   :  { %v4559_v57 = vpack.c.bf16 %v1803_v61, %v1802_v60  ;;  %v4784_v60 = vld [vmem:[#allocation10 + $0xc4] ss:$16 sps:$4 sm:$0xff]   ;;  %v4787_v61 = vld [vmem:[#allocation10 + $0xcc] ss:$16 sps:$4 sm:$0xff]  }
 0x660   :  { %4560 = vst [vmem:[#allocation2] sm:$0xff] %v4559_v57   ;;  %4565 = vst [vmem:[#allocation5 + $0x28] sm:$0xff] %v4559_v57  }
 0x667   :  { %v4774_v54 = vld [vmem:[#allocation2] sm:$0xff]  }
 0x668   :  { %1873 = vmatmul.mubr.bf16.vlgmr.msra.gmra.mxu0 %v4774_v54  ;;  %1916 = vmatmul.mubr.bf16.vlgmr.msra.gmra.mxu1 %v4774_v54  ;;  %v4782_v54 = vld [vmem:[#allocation10 + $0xc0] ss:$16 sps:$4 sm:$0xff]  }
 0x669   :  { %2001 = vmatpush1.bf16.msra.mxu0 %v5904_v45  ;;  %2044 = vmatpush1.bf16.msra.mxu1 %v5907_v46  ;;  %v4777_v45 = vld [vmem:[#allocation10 + $0xe4] ss:$16 sps:$4 sm:$0xff]   ;;  %v4780_v46 = vld [vmem:[#allocation10 + $0xec] ss:$16 sps:$4 sm:$0xff]  }
 0x66a   :  { %2002 = vmatprep.subr.bf16.mxu0 %v5910_v33  ;;  %2045 = vmatprep.subr.bf16.mxu1 %v5913_v34 }
 0x66b   :  { %2032 = vmatprep.mubr.bf16.mxu0 %v7081_v35  ;;  %2075 = vmatprep.mubr.bf16.mxu1 %v7081_v35 }
 0x66d   :  { %2003 = vmatpush1.bf16.msra.mxu0 %v5918_v47  ;;  %2046 = vmatpush1.bf16.msra.mxu1 %v5921_v48  ;;  %v7117_v47 = vld [vmem:[#allocation52_spill] sm:$0xff] }
 0x66e   :  { %2004 = vmatprep.subr.bf16.mxu0 %v5924_v49  ;;  %2047 = vmatprep.subr.bf16.mxu1 %v5927_v50 }
 0x671   :  { %2005 = vmatpush1.bf16.msra.mxu0 %v5930_v32  ;;  %2048 = vmatpush1.bf16.msra.mxu1 %v5933_v62  ;;  %v7118_v32 = vld [vmem:[#allocation54_spill] sm:$0xff] }
 0x672   :  { %2006 = vmatprep.subr.bf16.mxu0 %v5936_v6  ;;  %2049 = vmatprep.subr.bf16.mxu1 %v5939_v8  ;;  %v7119_v6 = vld [vmem:[#allocation55_spill] sm:$0xff] }
 0x675   :  { %2007 = vmatpush1.bf16.msra.mxu0 %v5942_v13  ;;  %2050 = vmatpush1.bf16.msra.mxu1 %v5945_v9 }
 0x676   :  { %2008 = vmatprep.subr.bf16.mxu0 %v6004_v5  ;;  %2051 = vmatprep.subr.bf16.mxu1 %v6007_v11  ;;  %v7120_v5 = vld [vmem:[#allocation56_spill] sm:$0xff] }
 0x679   :  { %2009 = vmatpush1.bf16.msra.mxu0 %v6010_v53  ;;  %2052 = vmatpush1.bf16.msra.mxu1 %v6013_v15 }
 0x67a   :  { %2010 = vmatprep.subr.bf16.mxu0 %v6016_v19  ;;  %2053 = vmatprep.subr.bf16.mxu1 %v6019_v14  ;;  %v7121_v19 = vld [vmem:[#allocation58_spill] sm:$0xff] }
 0x67d   :  { %2011 = vmatpush1.bf16.msra.mxu0 %v6022_v21  ;;  %2054 = vmatpush1.bf16.msra.mxu1 %v6025_v27  ;;  %v7122_v21 = vld [vmem:[#allocation59_spill] sm:$0xff] }
 0x67e   :  { %2012 = vmatprep.subr.bf16.mxu0 %v6028_v23  ;;  %2055 = vmatprep.subr.bf16.mxu1 %v6031_v22 }
 0x681   :  { %2013 = vmatpush1.bf16.msra.mxu0 %v6034_v18  ;;  %2056 = vmatpush1.bf16.msra.mxu1 %v6037_v26  ;;  %v7123_v26 = vld [vmem:[#allocation53_spill] sm:$0xff] }
 0x682   :  { %2014 = vmatprep.subr.bf16.mxu0 %v6040_v29  ;;  %2057 = vmatprep.subr.bf16.mxu1 %v6043_v24 }
 0x685   :  { %2015 = vmatpush1.bf16.msra.mxu0 %v6046_v17  ;;  %2058 = vmatpush1.bf16.msra.mxu1 %v6049_v7 }
 0x686   :  { %2417 = vmatprep.subr.bf16.mxu0 %v4777_v45  ;;  %2530 = vmatprep.subr.bf16.mxu1 %v4780_v46  ;;  %v4785_v45 = vld [vmem:[#allocation10 + $0xc8] ss:$16 sps:$4 sm:$0xff]   ;;  %v4790_v46 = vld [vmem:[#allocation10 + $0xa4] ss:$16 sps:$4 sm:$0xff]  }
 0x728   :  { %v1874_v33 = vpop.f32.mrf.mxu0  ;;  %v1917_v34 = vpop.f32.mrf.mxu1 }
 0x729   :  { %v1926_v48 = vadd.f32 %v1874_v33, %v7117_v47  ;;  %v1928_v29 = vadd.f32 %v1917_v34, %v7123_v26  ;;  %v4793_v33 = vld [vmem:[#allocation10 + $0xac] ss:$16 sps:$4 sm:$0xff]   ;;  %v4788_v34 = vld [vmem:[#allocation10 + $0xa0] ss:$16 sps:$4 sm:$0xff]   ;;  %v4791_v47 = vld [vmem:[#allocation10 + $0xa8] ss:$16 sps:$4 sm:$0xff]  }
 0x72a   :  { %v1876_v49 = vpop.f32.mrf.mxu0  ;;  %v1919_v50 = vpop.f32.mrf.mxu1  ;;  %v4824_v26 = vld [vmem:[#allocation5] sm:$0xff]  }
 0x72b   :  { %5017 = vtanh.f32 %v1926_v48  ;;  %v1927_v62 = vadd.f32 %v1876_v49, %v7118_v32  ;;  %v1929_v8 = vadd.f32 %v1919_v50, %v7119_v6  ;;  %v4796_v48 = vld [vmem:[#allocation10 + $0x84] ss:$16 sps:$4 sm:$0xff]   ;;  %v4799_v49 = vld [vmem:[#allocation10 + $0x8c] ss:$16 sps:$4 sm:$0xff]   ;;  %v4794_v50 = vld [vmem:[#allocation10 + $0x80] ss:$16 sps:$4 sm:$0xff]  }
 0x72c   :  { %v1878_v13 = vpop.f32.mrf.mxu0  ;;  %v1921_v9 = vpop.f32.mrf.mxu1  ;;  %v4797_v32 = vld [vmem:[#allocation10 + $0x88] ss:$16 sps:$4 sm:$0xff]   ;;  %v4805_v6 = vld [vmem:[#allocation10 + $0x6c] ss:$16 sps:$4 sm:$0xff]  }
 0x72d   :  { %5019 = vtanh.f32 %v1927_v62  ;;  %v1930_v11 = vadd.f32 %v1878_v13, %v7120_v5  ;;  %v1932_v63 = vadd.f32 %v1921_v9, %v7124_v43  ;;  %v4802_v62 = vld [vmem:[#allocation10 + $0x64] ss:$16 sps:$4 sm:$0xff]   ;;  %v4803_v13 = vld [vmem:[#allocation10 + $0x68] ss:$16 sps:$4 sm:$0xff]   ;;  %v4811_v5 = vld [vmem:[#allocation10 + $0x4c] ss:$16 sps:$4 sm:$0xff]  }
 0x72e   :  { %5021 = vtanh.f32 %v1929_v8  ;;  %v1880_v53 = vpop.f32.mrf.mxu0  ;;  %v1923_v15 = vpop.f32.mrf.mxu1  ;;  %v4800_v8 = vld [vmem:[#allocation10 + $0x60] ss:$16 sps:$4 sm:$0xff]   ;;  %v4808_v9 = vld [vmem:[#allocation10 + $0x44] ss:$16 sps:$4 sm:$0xff]   ;;  %v4829_v43 = vld [vmem:[#allocation5 + $0x28] sm:$0xff]  }
 0x72f   :  { %5023 = vtanh.f32 %v1930_v11  ;;  %v1931_v14 = vadd.f32 %v1880_v53, %v7121_v19  ;;  %v1933_v27 = vadd.f32 %v1923_v15, %v7122_v21  ;;  %v4806_v11 = vld [vmem:[#allocation10 + $0x40] ss:$16 sps:$4 sm:$0xff]   ;;  %v4809_v53 = vld [vmem:[#allocation10 + $0x48] ss:$16 sps:$4 sm:$0xff]   ;;  %v4814_v15 = vld [vmem:[#allocation10 + $0x24] ss:$16 sps:$4 sm:$0xff]  }
 0x730   :  { %v4817_v19 = vld [vmem:[#allocation10 + $0x2c] ss:$16 sps:$4 sm:$0xff]   ;;  %v4815_v21 = vld [vmem:[#allocation10 + $0x28] ss:$16 sps:$4 sm:$0xff]  }
 0x731   :  { %5025 = vtanh.f32 %v1931_v14  ;;  %v4812_v14 = vld [vmem:[#allocation10 + $0x20] ss:$16 sps:$4 sm:$0xff]  }
 0x732   :  { %5027 = vtanh.f32 %v1933_v27  ;;  %v4820_v27 = vld [vmem:[#allocation10 + $0x4] ss:$16 sps:$4 sm:$0xff]  }
 0x733   :  { %5029 = vtanh.f32 %v1928_v29  ;;  %v4825_v29 = vld [vmem:[#allocation5 + $0x8] sm:$0xff]  }
 0x734   :  { %5031 = vtanh.f32 %v1932_v63 }
 0x738   :  { %v5018_v23 = vpop.eup %5017 }
 0x739   :  { %v1942_v22 = vmul.f32 0.5, %v5018_v23  ;;  %v4823_v23 = vld [vmem:[#allocation10 + $0xc] ss:$16 sps:$4 sm:$0xff]  }
 0x73a   :  { %v5020_v18 = vpop.eup %5019 }
 0x73b   :  { %v5022_v24 = vpop.eup %5021  ;;  %v1948_v17 = vadd.f32 0.5, %v1942_v22  ;;  %v1943_v7 = vmul.f32 0.5, %v5020_v18  ;;  %v4818_v22 = vld [vmem:[#allocation10] ss:$16 sps:$4 sm:$0xff]   ;;  %v4821_v18 = vld [vmem:[#allocation10 + $0x8] ss:$16 sps:$4 sm:$0xff]  }
 0x73c   :  { %v5024_v1 = vpop.eup %5023 }
 0x73d   :  { %v1949_v2 = vadd.f32 0.5, %v1943_v7  ;;  %v1956_v3 = vmul.f32 %v5022_v24, %v1948_v17  ;;  %v1945_v4 = vmul.f32 0.5, %v5024_v1  ;;  %v4826_v24 = vld [vmem:[#allocation5 + $0x10] sm:$0xff]   ;;  %v4827_v17 = vld [vmem:[#allocation5 + $0x18] sm:$0xff]   ;;  %v4828_v7 = vld [vmem:[#allocation5 + $0x20] sm:$0xff]  }
 0x73e   :  { %v5026_v0 = vpop.eup %5025  ;;  %v6237_v1 = vld [vmem:[#allocation11 + $0xe4] ss:$16 sps:$4 sm:$0xff]  }
 0x73f   :  { %v1954_v42 = vmul.f32 %v1949_v2, %v6166_v39  ;;  %v1951_v28 = vadd.f32 0.5, %v1945_v4  ;;  %v1946_v30 = vmul.f32 0.5, %v5026_v0  ;;  %v5028_v44 = vpop.eup %5027  ;;  %v6239_v2 = vld [vmem:[#allocation11 + $0xec] ss:$16 sps:$4 sm:$0xff]   ;;  %v6243_v4 = vld [vmem:[#allocation11 + $0xe8] ss:$16 sps:$4 sm:$0xff]  }
 0x740   :  { %v5030_v56 = vpop.eup %5029  ;;  %v6249_v0 = vld [vmem:[#allocation11 + $0xc4] ss:$16 sps:$4 sm:$0xff]  }
 0x741   :  { %v6214_v31 = vadd.f32 %v1956_v3, %v1954_v42  ;;  %v1952_v36 = vadd.f32 0.5, %v1946_v30  ;;  %v1957_v16 = vmul.f32 %v5028_v44, %v1951_v28  ;;  %v5032_v40 = vpop.eup %5031  ;;  %v1944_v20 = vmul.f32 0.5, %v5030_v56  ;;  %v6241_v3 = vld [vmem:[#allocation11 + $0xe0] ss:$16 sps:$4 sm:$0xff]   ;;  %v6251_v42 = vld [vmem:[#allocation11 + $0xcc] ss:$16 sps:$4 sm:$0xff]  }
 0x742   :  { %v1947_v39 = vmul.f32 0.5, %v5032_v40  ;;  %v6253_v28 = vld [vmem:[#allocation11 + $0xc0] ss:$16 sps:$4 sm:$0xff]   ;;  %v6255_v30 = vld [vmem:[#allocation11 + $0xc8] ss:$16 sps:$4 sm:$0xff]  }
 0x743   :  { %v1955_v37 = vmul.f32 %v1952_v36, %v6170_v41  ;;  %5033 = vtanh.f32 %v6214_v31  ;;  %v1950_v51 = vadd.f32 0.5, %v1944_v20  ;;  %v4775_v41 = vld [vmem:[#allocation10 + $0xe0] ss:$16 sps:$4 sm:$0xff]   ;;  %v6261_v44 = vld [vmem:[#allocation11 + $0xa4] ss:$16 sps:$4 sm:$0xff]  }
 0x744   :  { %v1953_v25 = vadd.f32 0.5, %v1947_v39  ;;  %v6263_v36 = vld [vmem:[#allocation11 + $0xac] ss:$16 sps:$4 sm:$0xff]   ;;  %v6273_v56 = vld [vmem:[#allocation11 + $0x84] ss:$16 sps:$4 sm:$0xff]  }
 0x745   :  { %v6218_v38 = vadd.f32 %v1957_v16, %v1955_v37  ;;  %v6265_v16 = vld [vmem:[#allocation11 + $0xa0] ss:$16 sps:$4 sm:$0xff]   ;;  %v6267_v37 = vld [vmem:[#allocation11 + $0xa8] ss:$16 sps:$4 sm:$0xff]   ;;  %v6275_v40 = vld [vmem:[#allocation11 + $0x8c] ss:$16 sps:$4 sm:$0xff]  }
 0x746   :  { %v6277_v20 = vld [vmem:[#allocation11 + $0x80] ss:$16 sps:$4 sm:$0xff]   ;;  %v6279_v39 = vld [vmem:[#allocation11 + $0x88] ss:$16 sps:$4 sm:$0xff]  }
 0x747   :  { %5035 = vtanh.f32 %v6218_v38 }
 0x750   :  { %v5034_v55 = vpop.eup %5033 }
 0x751   :  { %v1962_v52 = vmul.f32 %v5034_v55, %v1950_v51  ;;  %v6285_v55 = vld [vmem:[#allocation11 + $0x64] ss:$16 sps:$4 sm:$0xff]   ;;  %v6287_v51 = vld [vmem:[#allocation11 + $0x60] ss:$16 sps:$4 sm:$0xff]  }
 0x754   :  { %v5036_v12 = vpop.eup %5035 }
 0x755   :  { %v1963_v58 = vmul.f32 %v5036_v12, %v1953_v25  ;;  %v6289_v25 = vld [vmem:[#allocation11 + $0x6c] ss:$16 sps:$4 sm:$0xff]   ;;  %v6291_v12 = vld [vmem:[#allocation11 + $0x68] ss:$16 sps:$4 sm:$0xff]  }
 0x757   :  { %v4569_v59 = vpack.c.bf16 %v1963_v58, %v1962_v52  ;;  %v6293_v52 = vld [vmem:[#allocation11 + $0x44] ss:$16 sps:$4 sm:$0xff]   ;;  %v6297_v58 = vld [vmem:[#allocation11 + $0x4c] ss:$16 sps:$4 sm:$0xff]  }
 0x759   :  { %4570 = vst [vmem:[#allocation2] sm:$0xff] %v4569_v59   ;;  %4575 = vst [vmem:[#allocation5 + $0x30] sm:$0xff] %v4569_v59   ;;  %v6301_v59 = vld [vmem:[#allocation11 + $0x40] ss:$16 sps:$4 sm:$0xff]  }
 0x760   :  { %v4781_v57 = vld [vmem:[#allocation2] sm:$0xff]  }
 0x761   :  { %2033 = vmatmul.mubr.bf16.vlgmr.msra.gmra.mxu0 %v4781_v57  ;;  %2076 = vmatmul.mubr.bf16.vlgmr.msra.gmra.mxu1 %v4781_v57  ;;  %v4830_v63 = vld [vmem:[#allocation5 + $0x30] sm:$0xff]   ;;  %v6316_v57 = vld [vmem:[#allocation11 + $0x28] ss:$16 sps:$4 sm:$0xff]  }
 0x762   :  { %2418 = vmatpush1.bf16.msra.mxu0 %v4775_v41  ;;  %2531 = vmatpush1.bf16.msra.mxu1 %v4778_v10  ;;  %v6303_v41 = vld [vmem:[#allocation11 + $0x48] ss:$16 sps:$4 sm:$0xff]   ;;  %v6307_v10 = vld [vmem:[#allocation11 + $0x24] ss:$16 sps:$4 sm:$0xff]  }
 0x763   :  { %2419 = vmatprep.subr.bf16.mxu0 %v4784_v60  ;;  %2532 = vmatprep.subr.bf16.mxu1 %v4787_v61  ;;  %v6311_v60 = vld [vmem:[#allocation11 + $0x20] ss:$16 sps:$4 sm:$0xff]   ;;  %v6314_v61 = vld [vmem:[#allocation11 + $0x2c] ss:$16 sps:$4 sm:$0xff]  }
 0x764   :  { %2449 = vmatprep.mubr.bf16.mxu0 %v7081_v35  ;;  %2562 = vmatprep.mubr.bf16.mxu1 %v7081_v35 }
 0x766   :  { %2420 = vmatpush1.bf16.msra.mxu0 %v4782_v54  ;;  %2533 = vmatpush1.bf16.msra.mxu1 %v4785_v45  ;;  %v6321_v54 = vld [vmem:[#allocation11 + $0x4] ss:$16 sps:$4 sm:$0xff]   ;;  %v6323_v45 = vld [vmem:[#allocation11] ss:$16 sps:$4 sm:$0xff]  }
 0x767   :  { %2421 = vmatprep.subr.bf16.mxu0 %v4790_v46  ;;  %2534 = vmatprep.subr.bf16.mxu1 %v4793_v33  ;;  %v6325_v46 = vld [vmem:[#allocation11 + $0xc] ss:$16 sps:$4 sm:$0xff]   ;;  %v6327_v33 = vld [vmem:[#allocation11 + $0x8] ss:$16 sps:$4 sm:$0xff]  }
 0x76a   :  { %2422 = vmatpush1.bf16.msra.mxu0 %v4788_v34  ;;  %2535 = vmatpush1.bf16.msra.mxu1 %v4791_v47 }
 0x76b   :  { %2423 = vmatprep.subr.bf16.mxu0 %v4796_v48  ;;  %2536 = vmatprep.subr.bf16.mxu1 %v4799_v49  ;;  %v7125_v48 = vld [vmem:[#allocation60_spill] sm:$0xff] }
 0x76e   :  { %2424 = vmatpush1.bf16.msra.mxu0 %v4794_v50  ;;  %2537 = vmatpush1.bf16.msra.mxu1 %v4797_v32 }
 0x76f   :  { %2425 = vmatprep.subr.bf16.mxu0 %v4802_v62  ;;  %2538 = vmatprep.subr.bf16.mxu1 %v4805_v6  ;;  %v7126_v62 = vld [vmem:[#allocation62_spill] sm:$0xff] }
 0x772   :  { %2426 = vmatpush1.bf16.msra.mxu0 %v4800_v8  ;;  %2539 = vmatpush1.bf16.msra.mxu1 %v4803_v13  ;;  %v7127_v8 = vld [vmem:[#allocation63_spill] sm:$0xff] }
 0x773   :  { %2427 = vmatprep.subr.bf16.mxu0 %v4808_v9  ;;  %2540 = vmatprep.subr.bf16.mxu1 %v4811_v5 }
 0x776   :  { %2428 = vmatpush1.bf16.msra.mxu0 %v4806_v11  ;;  %2541 = vmatpush1.bf16.msra.mxu1 %v4809_v53  ;;  %v7128_v11 = vld [vmem:[#allocation64_spill] sm:$0xff] }
 0x777   :  { %2429 = vmatprep.subr.bf16.mxu0 %v4814_v15  ;;  %2542 = vmatprep.subr.bf16.mxu1 %v4817_v19 }
 0x77a   :  { %2430 = vmatpush1.bf16.msra.mxu0 %v4812_v14  ;;  %2543 = vmatpush1.bf16.msra.mxu1 %v4815_v21  ;;  %v7129_v14 = vld [vmem:[#allocation66_spill] sm:$0xff] }
 0x77b   :  { %2431 = vmatprep.subr.bf16.mxu0 %v4820_v27  ;;  %2544 = vmatprep.subr.bf16.mxu1 %v4823_v23  ;;  %v7130_v27 = vld [vmem:[#allocation67_spill] sm:$0xff] }
 0x77e   :  { %2432 = vmatpush1.bf16.msra.mxu0 %v4818_v22  ;;  %2545 = vmatpush1.bf16.msra.mxu1 %v4821_v18  ;;  %v7131_v22 = vld [vmem:[#allocation61_spill] sm:$0xff] }
 0x77f   :  { %2919 = vmatprep.subr.bf16.mxu0 %v6237_v1  ;;  %2962 = vmatprep.subr.bf16.mxu1 %v6239_v2 }
 0x781   :  { %2450 = vmatmul.mubr.bf16.vlgmr.msra.gmra.mxu0 %v4824_v26  ;;  %2563 = vmatmul.mubr.bf16.vlgmr.msra.gmra.mxu1 %v4824_v26 }
 0x782   :  { %2459 = vmatprep.mubr.bf16.mxu0 %v7081_v35  ;;  %2572 = vmatprep.mubr.bf16.mxu1 %v7081_v35 }
 0x783   :  { %2920 = vmatpush1.bf16.msra.mxu0 %v6241_v3  ;;  %2963 = vmatpush1.bf16.msra.mxu1 %v6243_v4 }
 0x784   :  { %2921 = vmatprep.subr.bf16.mxu0 %v6249_v0  ;;  %2964 = vmatprep.subr.bf16.mxu1 %v6251_v42 }
 0x787   :  { %2922 = vmatpush1.bf16.msra.mxu0 %v6253_v28  ;;  %2965 = vmatpush1.bf16.msra.mxu1 %v6255_v30 }
 0x788   :  { %2923 = vmatprep.subr.bf16.mxu0 %v6261_v44  ;;  %2966 = vmatprep.subr.bf16.mxu1 %v6263_v36 }
 0x789   :  { %2460 = vmatmul.mubr.bf16.gmra.mxu0 %v4825_v29  ;;  %2573 = vmatmul.mubr.bf16.gmra.mxu1 %v4825_v29 }
 0x78a   :  { %2469 = vmatprep.mubr.bf16.mxu0 %v7081_v35  ;;  %2582 = vmatprep.mubr.bf16.mxu1 %v7081_v35 }
 0x78b   :  { %2924 = vmatpush1.bf16.msra.mxu0 %v6265_v16  ;;  %2967 = vmatpush1.bf16.msra.mxu1 %v6267_v37 }
 0x78c   :  { %2925 = vmatprep.subr.bf16.mxu0 %v6273_v56  ;;  %2968 = vmatprep.subr.bf16.mxu1 %v6275_v40 }
 0x78f   :  { %2926 = vmatpush1.bf16.msra.mxu0 %v6277_v20  ;;  %2969 = vmatpush1.bf16.msra.mxu1 %v6279_v39 }
 0x790   :  { %2927 = vmatprep.subr.bf16.mxu0 %v6285_v55  ;;  %2970 = vmatprep.subr.bf16.mxu1 %v6289_v25 }
 0x791   :  { %2470 = vmatmul.mubr.bf16.gmra.mxu0 %v4826_v24  ;;  %2583 = vmatmul.mubr.bf16.gmra.mxu1 %v4826_v24 }
 0x792   :  { %2479 = vmatprep.mubr.bf16.mxu0 %v7081_v35  ;;  %2592 = vmatprep.mubr.bf16.mxu1 %v7081_v35 }
 0x793   :  { %2928 = vmatpush1.bf16.msra.mxu0 %v6287_v51  ;;  %2971 = vmatpush1.bf16.msra.mxu1 %v6291_v12 }
 0x794   :  { %2929 = vmatprep.subr.bf16.mxu0 %v6293_v52  ;;  %2972 = vmatprep.subr.bf16.mxu1 %v6297_v58 }
 0x797   :  { %2930 = vmatpush1.bf16.msra.mxu0 %v6301_v59  ;;  %2973 = vmatpush1.bf16.msra.mxu1 %v6303_v41 }
 0x798   :  { %2931 = vmatprep.subr.bf16.mxu0 %v6307_v10  ;;  %2974 = vmatprep.subr.bf16.mxu1 %v6314_v61 }
 0x799   :  { %2480 = vmatmul.mubr.bf16.gmra.mxu0 %v4827_v17  ;;  %2593 = vmatmul.mubr.bf16.gmra.mxu1 %v4827_v17 }
 0x79a   :  { %2489 = vmatprep.mubr.bf16.mxu0 %v7081_v35  ;;  %2602 = vmatprep.mubr.bf16.mxu1 %v7081_v35 }
 0x79b   :  { %2932 = vmatpush1.bf16.msra.mxu0 %v6311_v60  ;;  %2975 = vmatpush1.bf16.msra.mxu1 %v6316_v57 }
 0x79c   :  { %2933 = vmatprep.subr.bf16.mxu0 %v6321_v54  ;;  %2976 = vmatprep.subr.bf16.mxu1 %v6325_v46 }
 0x79f   :  { %2934 = vmatpush1.bf16.msra.mxu0 %v6323_v45  ;;  %2977 = vmatpush1.bf16.msra.mxu1 %v6327_v33 }
 0x7a0   :  { %3073 = vmatprep.subr.bf16.mxu0 %v6237_v1  ;;  %3116 = vmatprep.subr.bf16.mxu1 %v6239_v2 }
 0x7a1   :  { %2490 = vmatmul.mubr.bf16.gmra.mxu0 %v4828_v7  ;;  %2603 = vmatmul.mubr.bf16.gmra.mxu1 %v4828_v7 }
 0x7a2   :  { %2499 = vmatprep.mubr.bf16.mxu0 %v7081_v35  ;;  %2612 = vmatprep.mubr.bf16.mxu1 %v7081_v35 }
 0x7a9   :  { %2500 = vmatmul.mubr.bf16.gmra.mxu0 %v4829_v43  ;;  %2613 = vmatmul.mubr.bf16.gmra.mxu1 %v4829_v43 }
 0x7aa   :  { %2509 = vmatprep.mubr.bf16.mxu0 %v7081_v35  ;;  %2622 = vmatprep.mubr.bf16.mxu1 %v7081_v35 }
 0x7b1   :  { %2510 = vmatmul.mubr.bf16.gmra.mxu0 %v4830_v63  ;;  %2623 = vmatmul.mubr.bf16.gmra.mxu1 %v4830_v63  ;;  %v7132_v63 = vld [vmem:[#allocation65_spill] sm:$0xff] }
 0x7b2   :  { %2519 = vmatprep.mubr.bf16.mxu0 %v7081_v35  ;;  %2632 = vmatprep.mubr.bf16.mxu1 %v7081_v35 }
 0x821   :  { %v2034_v34 = vpop.f32.mrf.mxu0  ;;  %v2077_v47 = vpop.f32.mrf.mxu1 }
 0x822   :  { %v2086_v49 = vadd.f32 %v2034_v34, %v7125_v48  ;;  %v2088_v18 = vadd.f32 %v2077_v47, %v7131_v22 }
 0x823   :  { %v2036_v50 = vpop.f32.mrf.mxu0  ;;  %v2079_v32 = vpop.f32.mrf.mxu1 }
 0x824   :  { %5037 = vtanh.f32 %v2086_v49  ;;  %v2087_v6 = vadd.f32 %v2036_v50, %v7126_v62  ;;  %v2089_v13 = vadd.f32 %v2079_v32, %v7127_v8 }
 0x825   :  { %v2038_v9 = vpop.f32.mrf.mxu0  ;;  %v2081_v5 = vpop.f32.mrf.mxu1 }
 0x826   :  { %5039 = vtanh.f32 %v2087_v6  ;;  %v2090_v53 = vadd.f32 %v2038_v9, %v7128_v11  ;;  %v2092_v34 = vadd.f32 %v2081_v5, %v7132_v63 }
 0x827   :  { %5041 = vtanh.f32 %v2089_v13  ;;  %v2040_v15 = vpop.f32.mrf.mxu0  ;;  %v2083_v19 = vpop.f32.mrf.mxu1 }
 0x828   :  { %5043 = vtanh.f32 %v2090_v53  ;;  %v2091_v21 = vadd.f32 %v2040_v15, %v7129_v14  ;;  %v2093_v23 = vadd.f32 %v2083_v19, %v7130_v27 }
 0x82a   :  { %5045 = vtanh.f32 %v2091_v21 }
 0x82b   :  { %5047 = vtanh.f32 %v2093_v23 }
 0x82c   :  { %5049 = vtanh.f32 %v2088_v18 }
 0x82d   :  { %5051 = vtanh.f32 %v2092_v34 }
 0x831   :  { %v5038_v26 = vpop.eup %5037 }
 0x832   :  { %v2102_v29 = vmul.f32 0.5, %v5038_v26 }
 0x833   :  { %v5040_v24 = vpop.eup %5039 }
 0x834   :  { %v5042_v17 = vpop.eup %5041  ;;  %v2108_v7 = vadd.f32 0.5, %v2102_v29  ;;  %v2103_v43 = vmul.f32 0.5, %v5040_v24 }
 0x835   :  { %v5044_v48 = vpop.eup %5043 }
 0x836   :  { %v2109_v49 = vadd.f32 0.5, %v2103_v43  ;;  %v2116_v50 = vmul.f32 %v5042_v17, %v2108_v7  ;;  %v2105_v32 = vmul.f32 0.5, %v5044_v48 }
 0x837   :  { %v5046_v62 = vpop.eup %5045 }
 0x838   :  { %v2114_v6 = vmul.f32 %v2109_v49, %v6214_v31  ;;  %v2111_v8 = vadd.f32 0.5, %v2105_v32  ;;  %v2106_v13 = vmul.f32 0.5, %v5046_v62  ;;  %v5048_v47 = vpop.eup %5047 }
 0x839   :  { %v5050_v5 = vpop.eup %5049 }
 0x83a   :  { %v2118_v9 = vadd.f32 %v2116_v50, %v2114_v6  ;;  %v2112_v11 = vadd.f32 0.5, %v2106_v13  ;;  %v2117_v53 = vmul.f32 %v5048_v47, %v2111_v8  ;;  %v2104_v14 = vmul.f32 0.5, %v5050_v5  ;;  %v5052_v21 = vpop.eup %5051 }
 0x83b   :  { %v2107_v23 = vmul.f32 0.5, %v5052_v21 }
 0x83c   :  { %5053 = vtanh.f32 %v2118_v9  ;;  %v2115_v15 = vmul.f32 %v2112_v11, %v6218_v38  ;;  %v2110_v27 = vadd.f32 0.5, %v2104_v14  ;;  %v4880_v38 = vld [vmem:[#allocation2 + $0x8] sm:$0xff]  }
 0x83d   :  { %v2113_v31 = vadd.f32 0.5, %v2107_v23 }
 0x83e   :  { %v2119_v19 = vadd.f32 %v2117_v53, %v2115_v15 }
 0x840   :  { %5055 = vtanh.f32 %v2119_v19 }
 0x841   :  { %v6381_v7 = vpop.f32.mrf.mxu0  ;;  %v6383_v43 = vpop.f32.mrf.mxu1 }
 0x843   :  { %v6385_v63 = vpop.f32.mrf.mxu0  ;;  %v6387_v34 = vpop.f32.mrf.mxu1 }
 0x845   :  { %v6389_v48 = vpop.f32.mrf.mxu0  ;;  %v6391_v49 = vpop.f32.mrf.mxu1 }
 0x847   :  { %v6393_v50 = vpop.f32.mrf.mxu0  ;;  %v6395_v32 = vpop.f32.mrf.mxu1 }
 0x849   :  { %v5054_v22 = vpop.eup %5053  ;;  %v6397_v62 = vpop.f32.mrf.mxu0 }
 0x84a   :  { %v2122_v18 = vmul.f32 %v5054_v22, %v2110_v27  ;;  %v6399_v6 = vpop.f32.mrf.mxu1 }
 0x84b   :  { %7133 = vst [vmem:[#allocation18_spill] sm:$0xff] %v6399_v6  ;;  %v6401_v8 = vpop.f32.mrf.mxu0 }
 0x84c   :  { %v6403_v13 = vpop.f32.mrf.mxu1 }
 0x84d   :  { %v5056_v26 = vpop.eup %5055  ;;  %v6405_v47 = vpop.f32.mrf.mxu0 }
 0x84e   :  { %v2123_v29 = vmul.f32 %v5056_v26, %v2113_v31  ;;  %7134 = vst [vmem:[#allocation17_spill] sm:$0xff] %v6405_v47  ;;  %v6407_v9 = vpop.f32.mrf.mxu1 }
 0x84f   :  { %7135 = vst [vmem:[#allocation19_spill] sm:$0xff] %v6407_v9  ;;  %v6409_v11 = vpop.f32.mrf.mxu0 }
 0x850   :  { %v4579_v24 = vpack.c.bf16 %v2123_v29, %v2122_v18  ;;  %7136 = vst [vmem:[#allocation20_spill] sm:$0xff] %v6409_v11  ;;  %v6411_v53 = vpop.f32.mrf.mxu1 }
 0x851   :  { %7137 = vst [vmem:[#allocation22_spill] sm:$0xff] %v6411_v53  ;;  %v6413_v15 = vpop.f32.mrf.mxu0 }
 0x852   :  { %4580 = vst [vmem:[#allocation2] sm:$0xff] %v4579_v24   ;;  %4585 = vst [vmem:[#allocation5 + $0x38] sm:$0xff] %v4579_v24   ;;  %v6415_v19 = vpop.f32.mrf.mxu1 }
 0x853   :  { %7138 = vst [vmem:[#allocation23_spill] sm:$0xff] %v6413_v15  ;;  %7139 = vst [vmem:[#allocation26_spill] sm:$0xff] %v6415_v19  ;;  %v6417_v5 = vpop.f32.mrf.mxu0 }
 0x854   :  { %7140 = vst [vmem:[#allocation27_spill] sm:$0xff] %v6417_v5  ;;  %v6419_v14 = vpop.f32.mrf.mxu1 }
 0x855   :  { %7141 = vst [vmem:[#allocation24_spill] sm:$0xff] %v6419_v14  ;;  %v6421_v21 = vpop.f32.mrf.mxu0 }
 0x856   :  { %7142 = vst [vmem:[#allocation21_spill] sm:$0xff] %v6421_v21  ;;  %v6423_v27 = vpop.f32.mrf.mxu1 }
 0x857   :  { %7143 = vst [vmem:[#allocation25_spill] sm:$0xff] %v6423_v27  ;;  %v6425_v23 = vpop.f32.mrf.mxu0 }
 0x858   :  { %7144 = vst [vmem:[#allocation28_spill] sm:$0xff] %v6425_v23  ;;  %v6427_v22 = vpop.f32.mrf.mxu1 }
 0x859   :  { %v4873_v17 = vld [vmem:[#allocation5 + $0x38] sm:$0xff]   ;;  %7145 = vst [vmem:[#allocation30_spill] sm:$0xff] %v6427_v22  ;;  %v6429_v18 = vpop.f32.mrf.mxu0 }
 0x85a   :  { %2520 = vmatmul.mubr.bf16.gmra.mxu0 %v4873_v17  ;;  %2633 = vmatmul.mubr.bf16.gmra.mxu1 %v4873_v17  ;;  %7146 = vst [vmem:[#allocation31_spill] sm:$0xff] %v6429_v18  ;;  %v6431_v31 = vpop.f32.mrf.mxu1 }
 0x85b   :  { %2951 = vmatprep.mubr.bf16.mxu0 %v7081_v35  ;;  %2994 = vmatprep.mubr.bf16.mxu1 %v7081_v35  ;;  %7147 = vst [vmem:[#allocation34_spill] sm:$0xff] %v6431_v31  ;;  %v6433_v26 = vpop.f32.mrf.mxu0 }
 0x85c   :  { %7148 = vst [vmem:[#allocation35_spill] sm:$0xff] %v6433_v26  ;;  %v6435_v29 = vpop.f32.mrf.mxu1 }
 0x85d   :  { %7149 = vst [vmem:[#allocation32_spill] sm:$0xff] %v6435_v29  ;;  %v6437_v24 = vpop.f32.mrf.mxu0 }
 0x85e   :  { %7150 = vst [vmem:[#allocation29_spill] sm:$0xff] %v6437_v24  ;;  %v6439_v17 = vpop.f32.mrf.mxu1 }
 0x85f   :  { %7151 = vst [vmem:[#allocation33_spill] sm:$0xff] %v6439_v17 }
 0x860   :  { %v6443_v19 = vpop.f32.mrf.mxu1 }
 0x861   :  { %7153 = vst [vmem:[#allocation38_spill] sm:$0xff] %v6443_v19 }
 0x862   :  { %2952 = vmatmul.mubr.bf16.vlgmr.msra.gmra.mxu0 %v4880_v38  ;;  %2995 = vmatmul.mubr.bf16.vlgmr.msra.gmra.mxu1 %v4880_v38  ;;  %v6441_v38 = vpop.f32.mrf.mxu0  ;;  %v6447_v23 = vpop.f32.mrf.mxu1 }
 0x863   :  { %3074 = vmatpush1.bf16.msra.mxu0 %v6241_v3  ;;  %3117 = vmatpush1.bf16.msra.mxu1 %v6243_v4  ;;  %7152 = vst [vmem:[#allocation36_spill] sm:$0xff] %v6441_v38  ;;  %7155 = vst [vmem:[#allocation42_spill] sm:$0xff] %v6447_v23 }
 0x864   :  { %3075 = vmatprep.subr.bf16.mxu0 %v6249_v0  ;;  %3118 = vmatprep.subr.bf16.mxu1 %v6251_v42  ;;  %v6445_v27 = vpop.f32.mrf.mxu0  ;;  %v6451_v18 = vpop.f32.mrf.mxu1 }
 0x865   :  { %3105 = vmatprep.mubr.bf16.mxu0 %v7081_v35  ;;  %3148 = vmatprep.mubr.bf16.mxu1 %v7081_v35  ;;  %7154 = vst [vmem:[#allocation39_spill] sm:$0xff] %v6445_v27  ;;  %7157 = vst [vmem:[#allocation43_spill] sm:$0xff] %v6451_v18 }
 0x866   :  { %v6449_v22 = vpop.f32.mrf.mxu0  ;;  %v6455_v26 = vpop.f32.mrf.mxu1 }
 0x867   :  { %3076 = vmatpush1.bf16.msra.mxu0 %v6253_v28  ;;  %3119 = vmatpush1.bf16.msra.mxu1 %v6255_v30  ;;  %7156 = vst [vmem:[#allocation40_spill] sm:$0xff] %v6449_v22  ;;  %7159 = vst [vmem:[#allocation41_spill] sm:$0xff] %v6455_v26 }
 0x868   :  { %3077 = vmatprep.subr.bf16.mxu0 %v6261_v44  ;;  %3120 = vmatprep.subr.bf16.mxu1 %v6263_v36  ;;  %v6453_v31 = vpop.f32.mrf.mxu0  ;;  %v6459_v24 = vpop.f32.mrf.mxu1 }
 0x869   :  { %7158 = vst [vmem:[#allocation37_spill] sm:$0xff] %v6453_v31  ;;  %7161 = vst [vmem:[#allocation46_spill] sm:$0xff] %v6459_v24 }
 0x86a   :  { %v6457_v29 = vpop.f32.mrf.mxu0  ;;  %v6463_v38 = vpop.f32.mrf.mxu1 }
 0x86b   :  { %3078 = vmatpush1.bf16.msra.mxu0 %v6265_v16  ;;  %3121 = vmatpush1.bf16.msra.mxu1 %v6267_v37  ;;  %7160 = vst [vmem:[#allocation44_spill] sm:$0xff] %v6457_v29  ;;  %7163 = vst [vmem:[#allocation48_spill] sm:$0xff] %v6463_v38 }
 0x86c   :  { %3079 = vmatprep.subr.bf16.mxu0 %v6273_v56  ;;  %3122 = vmatprep.subr.bf16.mxu1 %v6275_v40  ;;  %v6461_v17 = vpop.f32.mrf.mxu0  ;;  %v6467_v27 = vpop.f32.mrf.mxu1 }
 0x86d   :  { %7162 = vst [vmem:[#allocation47_spill] sm:$0xff] %v6461_v17  ;;  %7165 = vst [vmem:[#allocation51_spill] sm:$0xff] %v6467_v27 }
 0x86e   :  { %v6465_v19 = vpop.f32.mrf.mxu0  ;;  %v6471_v22 = vpop.f32.mrf.mxu1 }
 0x86f   :  { %3080 = vmatpush1.bf16.msra.mxu0 %v6277_v20  ;;  %3123 = vmatpush1.bf16.msra.mxu1 %v6279_v39  ;;  %7164 = vst [vmem:[#allocation50_spill] sm:$0xff] %v6465_v19  ;;  %7167 = vst [vmem:[#allocation49_spill] sm:$0xff] %v6471_v22  ;;  %v2187_v22 = vld [vmem:[%s7017_s6] sm:$0xf] }
 0x870   :  { %3081 = vmatprep.subr.bf16.mxu0 %v6285_v55  ;;  %3124 = vmatprep.subr.bf16.mxu1 %v6289_v25  ;;  %v6469_v23 = vpop.f32.mrf.mxu0  ;;  %v6475_v31 = vpop.f32.mrf.mxu1 }
 0x871   :  { %7166 = vst [vmem:[#allocation45_spill] sm:$0xff] %v6469_v23  ;;  %7169 = vst [vmem:[#allocation54_spill] sm:$0xff] %v6475_v31 }
 0x872   :  { %v6473_v18 = vpop.f32.mrf.mxu0  ;;  %v6479_v29 = vpop.f32.mrf.mxu1 }
 0x873   :  { %3082 = vmatpush1.bf16.msra.mxu0 %v6287_v51  ;;  %3125 = vmatpush1.bf16.msra.mxu1 %v6291_v12  ;;  %7168 = vst [vmem:[#allocation52_spill] sm:$0xff] %v6473_v18  ;;  %7171 = vst [vmem:[#allocation56_spill] sm:$0xff] %v6479_v29 }
 0x874   :  { %3083 = vmatprep.subr.bf16.mxu0 %v6293_v52  ;;  %3126 = vmatprep.subr.bf16.mxu1 %v6297_v58  ;;  %v6477_v26 = vpop.f32.mrf.mxu0  ;;  %v6483_v17 = vpop.f32.mrf.mxu1 }
 0x875   :  { %7170 = vst [vmem:[#allocation55_spill] sm:$0xff] %v6477_v26  ;;  %7173 = vst [vmem:[#allocation59_spill] sm:$0xff] %v6483_v17  ;;  %v7182_v17 = vld [vmem:[#allocation16_spill] sm:$0xff] }
 0x876   :  { %v6481_v24 = vpop.f32.mrf.mxu0  ;;  %v6487_v19 = vpop.f32.mrf.mxu1 }
 0x877   :  { %3084 = vmatpush1.bf16.msra.mxu0 %v6301_v59  ;;  %3127 = vmatpush1.bf16.msra.mxu1 %v6303_v41  ;;  %7172 = vst [vmem:[#allocation58_spill] sm:$0xff] %v6481_v24  ;;  %7175 = vst [vmem:[#allocation57_spill] sm:$0xff] %v6487_v19 }
 0x878   :  { %3085 = vmatprep.subr.bf16.mxu0 %v6307_v10  ;;  %3128 = vmatprep.subr.bf16.mxu1 %v6314_v61  ;;  %v6485_v38 = vpop.f32.mrf.mxu0  ;;  %v6491_v23 = vpop.f32.mrf.mxu1 }
 0x879   :  { %7174 = vst [vmem:[#allocation53_spill] sm:$0xff] %v6485_v38  ;;  %7177 = vst [vmem:[#allocation62_spill] sm:$0xff] %v6491_v23  ;;  %v7183_v38 = vsub.s32 0, %v7182_v17  ;;  %v7186_v23 = vsub.s32 1, %v7182_v17 }
 0x87a   :  { %v6489_v27 = vpop.f32.mrf.mxu0 }
 0x87b   :  { %3086 = vmatpush1.bf16.msra.mxu0 %v6311_v60  ;;  %3129 = vmatpush1.bf16.msra.mxu1 %v6316_v57  ;;  %7176 = vst [vmem:[#allocation60_spill] sm:$0xff] %v6489_v27  ;;  %v6506_v18 = vrot.slane %v2187_v22, %v7183_v38  ;;  %v6514_v21 = vrot.slane %v2187_v22, %v7186_v23 }
 0x87c   :  { %3087 = vmatprep.subr.bf16.mxu0 %v6321_v54  ;;  %3130 = vmatprep.subr.bf16.mxu1 %v6325_v46 }
 0x87d   :  { %v2452_v38 = vadd.f32 %v6381_v7, %v6506_v18  ;;  %v2458_v7 = vadd.f32 %v6393_v50, %v6514_v21 }
 0x87f   :  { %3088 = vmatpush1.bf16.msra.mxu0 %v6323_v45  ;;  %3131 = vmatpush1.bf16.msra.mxu1 %v6327_v33 }
 0x880   :  { %3227 = vmatprep.subr.bf16.mxu0 %v6237_v1  ;;  %3270 = vmatprep.subr.bf16.mxu1 %v6239_v2 }
 0x91a   :  { %v6496_v31 = vpop.f32.mrf.mxu0  ;;  %v6498_v26 = vpop.f32.mrf.mxu1 }
 0x91b   :  { %7178 = vst [vmem:[#allocation63_spill] sm:$0xff] %v6496_v31  ;;  %7179 = vst [vmem:[#allocation64_spill] sm:$0xff] %v6498_v26  ;;  %v7187_v31 = vsub.s32 3, %v7182_v17 }
 0x91c   :  { %v6500_v29 = vpop.f32.mrf.mxu0  ;;  %v6502_v24 = vpop.f32.mrf.mxu1 }
 0x91d   :  { %7180 = vst [vmem:[#allocation66_spill] sm:$0xff] %v6500_v29  ;;  %7181 = vst [vmem:[#allocation67_spill] sm:$0xff] %v6502_v24  ;;  %v6518_v14 = vrot.slane %v2187_v22, %v7187_v31  ;;  %v2456_v31 = vadd.f32 %v6389_v48, %v6506_v18 }
 0x91e   :  { %v6508_v19 = vpop.f32.mrf.mxu0  ;;  %v6510_v27 = vpop.f32.mrf.mxu1 }
 0x91f   :  { %7184 = vst [vmem:[#allocation61_spill] sm:$0xff] %v6508_v19  ;;  %7185 = vst [vmem:[#allocation65_spill] sm:$0xff] %v6510_v27  ;;  %v2454_v27 = vadd.f32 %v6385_v63, %v6514_v21  ;;  %v2567_v23 = vadd.f32 %v6387_v34, %v6518_v14  ;;  %v2571_v34 = vadd.f32 %v6395_v32, %v6518_v14 }
 0x920   :  { %v6520_v26 = vpop.f32.mrf.mxu0  ;;  %v6522_v29 = vpop.f32.mrf.mxu1 }
 0x921   :  { %7188 = vst [vmem:[#allocation16_spill] sm:$0xff] %v6520_v26  ;;  %7189 = vst [vmem:[#allocation68_spill] sm:$0xff] %v6522_v29 }
 0x922   :  { %v2953_v24 = vpop.f32.mrf.mxu0  ;;  %v2996_v5 = vpop.f32.mrf.mxu1 }
 0x923   :  { %v3005_v19 = vadd.f32 %v2953_v24, %v2452_v38 }
 0x924   :  { %v2955_v15 = vpop.f32.mrf.mxu0  ;;  %v2998_v9 = vpop.f32.mrf.mxu1 }
 0x925   :  { %5057 = vtanh.f32 %v3005_v19  ;;  %v3006_v26 = vadd.f32 %v2955_v15, %v2454_v27  ;;  %v3008_v29 = vadd.f32 %v2998_v9, %v2567_v23  ;;  %v7190_v15 = vsub.s32 2, %v7182_v17 }
 0x926   :  { %v2957_v6 = vpop.f32.mrf.mxu0  ;;  %v3000_v53 = vpop.f32.mrf.mxu1 }
 0x927   :  { %5059 = vtanh.f32 %v3006_v26  ;;  %v3009_v11 = vadd.f32 %v2957_v6, %v2456_v31  ;;  %v6538_v9 = vrot.slane %v2187_v22, %v7190_v15 }
 0x928   :  { %5061 = vtanh.f32 %v3008_v29  ;;  %v2959_v63 = vpop.f32.mrf.mxu0  ;;  %v3002_v47 = vpop.f32.mrf.mxu1 }
 0x929   :  { %5063 = vtanh.f32 %v3009_v11  ;;  %v3010_v24 = vadd.f32 %v2959_v63, %v2458_v7  ;;  %v3012_v48 = vadd.f32 %v3002_v47, %v2571_v34  ;;  %v2565_v50 = vadd.f32 %v6383_v43, %v6538_v9 }
 0x92a   :  { %v2569_v6 = vadd.f32 %v6391_v49, %v6538_v9 }
 0x92b   :  { %5065 = vtanh.f32 %v3010_v24  ;;  %v3007_v29 = vadd.f32 %v2996_v5, %v2565_v50 }
 0x92c   :  { %5067 = vtanh.f32 %v3012_v48  ;;  %v3011_v23 = vadd.f32 %v3000_v53, %v2569_v6 }
 0x92d   :  { %5069 = vtanh.f32 %v3007_v29 }
 0x92e   :  { %5071 = vtanh.f32 %v3011_v23 }
 0x932   :  { %v5058_v19 = vpop.eup %5057 }
 0x933   :  { %v3021_v27 = vmul.f32 0.5, %v5058_v19 }
 0x934   :  { %v5060_v26 = vpop.eup %5059 }
 0x935   :  { %v5062_v32 = vpop.eup %5061  ;;  %v3027_v11 = vadd.f32 0.5, %v3021_v27  ;;  %v3022_v38 = vmul.f32 0.5, %v5060_v26 }
 0x936   :  { %v5064_v47 = vpop.eup %5063 }
 0x937   :  { %v3028_v31 = vadd.f32 0.5, %v3022_v38  ;;  %v3035_v17 = vmul.f32 %v5062_v32, %v3027_v11  ;;  %v3024_v22 = vmul.f32 0.5, %v5064_v47 }
 0x938   :  { %v5066_v7 = vpop.eup %5065 }
 0x939   :  { %v3033_v63 = vmul.f32 0.0, %v3028_v31  ;;  %v3030_v34 = vadd.f32 0.5, %v3024_v22  ;;  %v3025_v43 = vmul.f32 0.5, %v5066_v7  ;;  %v5068_v48 = vpop.eup %5067 }
 0x93a   :  { %v5070_v53 = vpop.eup %5069 }
 0x93b   :  { %v6544_v24 = vadd.f32 %v3035_v17, %v3033_v63  ;;  %v3031_v49 = vadd.f32 0.5, %v3025_v43  ;;  %v3036_v5 = vmul.f32 %v5068_v48, %v3030_v34  ;;  %v5072_v50 = vpop.eup %5071  ;;  %v3023_v6 = vmul.f32 0.5, %v5070_v53 }
 0x93c   :  { %v3026_v27 = vmul.f32 0.5, %v5072_v50  ;;  %v2462_v17 = vadd.f32 %v6397_v62, %v6506_v18  ;;  %v2464_v63 = vadd.f32 %v6401_v8, %v6514_v21  ;;  %v2577_v34 = vadd.f32 %v6403_v13, %v6518_v14  ;;  %v7192_v62 = vld [vmem:[#allocation20_spill] sm:$0xff] }
 0x93d   :  { %v3034_v15 = vmul.f32 0.0, %v3031_v49  ;;  %5073 = vtanh.f32 %v6544_v24  ;;  %v3029_v29 = vadd.f32 0.5, %v3023_v6 }
 0x93e   :  { %v3032_v32 = vadd.f32 0.5, %v3026_v27 }
 0x93f   :  { %v6547_v19 = vadd.f32 %v3036_v5, %v3034_v15  ;;  %v7191_v15 = vld [vmem:[#allocation17_spill] sm:$0xff] }
 0x940   :  { %v2466_v5 = vadd.f32 %v7191_v15, %v6506_v18 }
 0x941   :  { %5075 = vtanh.f32 %v6547_v19 }
 0x94a   :  { %v5074_v26 = vpop.eup %5073 }
 0x94b   :  { %v3041_v38 = vmul.f32 %v5074_v26, %v3029_v29  ;;  %v2468_v26 = vadd.f32 %v7192_v62, %v6514_v21  ;;  %v7193_v29 = vld [vmem:[#allocation22_spill] sm:$0xff] }
 0x94c   :  { %v2581_v8 = vadd.f32 %v7193_v29, %v6518_v14 }
 0x94e   :  { %v5076_v11 = vpop.eup %5075 }
 0x94f   :  { %v3042_v23 = vmul.f32 %v5076_v11, %v3032_v32 }
 0x951   :  { %v4589_v47 = vpack.c.bf16 %v3042_v23, %v3041_v38 }
 0x953   :  { %4590 = vst [vmem:[#allocation2 + $0x8] sm:$0xff] %v4589_v47  }
 0x95a   :  { %v4881_v31 = vld [vmem:[#allocation2 + $0x8] sm:$0xff]  }
 0x95b   :  { %3106 = vmatmul.mubr.bf16.vlgmr.msra.gmra.mxu0 %v4881_v31  ;;  %3149 = vmatmul.mubr.bf16.vlgmr.msra.gmra.mxu1 %v4881_v31  ;;  %v7194_v31 = vld [vmem:[#allocation18_spill] sm:$0xff] }
 0x95c   :  { %3228 = vmatpush1.bf16.msra.mxu0 %v6241_v3  ;;  %3271 = vmatpush1.bf16.msra.mxu1 %v6243_v4 }
 0x95d   :  { %3229 = vmatprep.subr.bf16.mxu0 %v6249_v0  ;;  %3272 = vmatprep.subr.bf16.mxu1 %v6251_v42 }
 0x95e   :  { %3259 = vmatprep.mubr.bf16.mxu0 %v7081_v35  ;;  %3302 = vmatprep.mubr.bf16.mxu1 %v7081_v35 }
 0x960   :  { %3230 = vmatpush1.bf16.msra.mxu0 %v6253_v28  ;;  %3273 = vmatpush1.bf16.msra.mxu1 %v6255_v30 }
 0x961   :  { %3231 = vmatprep.subr.bf16.mxu0 %v6261_v44  ;;  %3274 = vmatprep.subr.bf16.mxu1 %v6263_v36 }
 0x964   :  { %3232 = vmatpush1.bf16.msra.mxu0 %v6265_v16  ;;  %3275 = vmatpush1.bf16.msra.mxu1 %v6267_v37 }
 0x965   :  { %3233 = vmatprep.subr.bf16.mxu0 %v6273_v56  ;;  %3276 = vmatprep.subr.bf16.mxu1 %v6275_v40 }
 0x968   :  { %3234 = vmatpush1.bf16.msra.mxu0 %v6277_v20  ;;  %3277 = vmatpush1.bf16.msra.mxu1 %v6279_v39 }
 0x969   :  { %3235 = vmatprep.subr.bf16.mxu0 %v6285_v55  ;;  %3278 = vmatprep.subr.bf16.mxu1 %v6289_v25 }
 0x96c   :  { %3236 = vmatpush1.bf16.msra.mxu0 %v6287_v51  ;;  %3279 = vmatpush1.bf16.msra.mxu1 %v6291_v12 }
 0x96d   :  { %3237 = vmatprep.subr.bf16.mxu0 %v6293_v52  ;;  %3280 = vmatprep.subr.bf16.mxu1 %v6297_v58 }
 0x970   :  { %3238 = vmatpush1.bf16.msra.mxu0 %v6301_v59  ;;  %3281 = vmatpush1.bf16.msra.mxu1 %v6303_v41 }
 0x971   :  { %3239 = vmatprep.subr.bf16.mxu0 %v6307_v10  ;;  %3282 = vmatprep.subr.bf16.mxu1 %v6314_v61 }
 0x974   :  { %3240 = vmatpush1.bf16.msra.mxu0 %v6311_v60  ;;  %3283 = vmatpush1.bf16.msra.mxu1 %v6316_v57 }
 0x975   :  { %3241 = vmatprep.subr.bf16.mxu0 %v6321_v54  ;;  %3284 = vmatprep.subr.bf16.mxu1 %v6325_v46 }
 0x978   :  { %3242 = vmatpush1.bf16.msra.mxu0 %v6323_v45  ;;  %3285 = vmatpush1.bf16.msra.mxu1 %v6327_v33 }
 0x979   :  { %3381 = vmatprep.subr.bf16.mxu0 %v6237_v1  ;;  %3424 = vmatprep.subr.bf16.mxu1 %v6239_v2 }
 0xa1b   :  { %v3107_v22 = vpop.f32.mrf.mxu0  ;;  %v3150_v7 = vpop.f32.mrf.mxu1 }
 0xa1c   :  { %v3159_v43 = vadd.f32 %v3107_v22, %v2462_v17  ;;  %v2575_v17 = vadd.f32 %v7194_v31, %v6538_v9  ;;  %v7195_v22 = vld [vmem:[#allocation19_spill] sm:$0xff] }
 0xa1d   :  { %v3109_v49 = vpop.f32.mrf.mxu0  ;;  %v3152_v48 = vpop.f32.mrf.mxu1 }
 0xa1e   :  { %5077 = vtanh.f32 %v3159_v43  ;;  %v3160_v53 = vadd.f32 %v3109_v49, %v2464_v63  ;;  %v3162_v50 = vadd.f32 %v3152_v48, %v2577_v34  ;;  %v2579_v63 = vadd.f32 %v7195_v22, %v6538_v9 }
 0xa1f   :  { %v3111_v6 = vpop.f32.mrf.mxu0  ;;  %v3154_v27 = vpop.f32.mrf.mxu1  ;;  %v3161_v49 = vadd.f32 %v3150_v7, %v2575_v17 }
 0xa20   :  { %5079 = vtanh.f32 %v3160_v53  ;;  %v3163_v32 = vadd.f32 %v3111_v6, %v2466_v5  ;;  %v3165_v53 = vadd.f32 %v3154_v27, %v2579_v63 }
 0xa21   :  { %5081 = vtanh.f32 %v3162_v50  ;;  %v3113_v13 = vpop.f32.mrf.mxu0  ;;  %v3156_v11 = vpop.f32.mrf.mxu1 }
 0xa22   :  { %5083 = vtanh.f32 %v3163_v32  ;;  %v3164_v38 = vadd.f32 %v3113_v13, %v2468_v26  ;;  %v3166_v23 = vadd.f32 %v3156_v11, %v2581_v8 }
 0xa24   :  { %5085 = vtanh.f32 %v3164_v38 }
 0xa25   :  { %5087 = vtanh.f32 %v3166_v23 }
 0xa26   :  { %5089 = vtanh.f32 %v3161_v49 }
 0xa27   :  { %5091 = vtanh.f32 %v3165_v53 }
 0xa2b   :  { %v5078_v47 = vpop.eup %5077 }
 0xa2c   :  { %v3175_v34 = vmul.f32 0.5, %v5078_v47 }
 0xa2d   :  { %v5080_v43 = vpop.eup %5079 }
 0xa2e   :  { %v5082_v48 = vpop.eup %5081  ;;  %v3181_v15 = vadd.f32 0.5, %v3175_v34  ;;  %v3176_v5 = vmul.f32 0.5, %v5080_v43 }
 0xa2f   :  { %v5084_v50 = vpop.eup %5083 }
 0xa30   :  { %v3182_v6 = vadd.f32 0.5, %v3176_v5  ;;  %v3189_v62 = vmul.f32 %v5082_v48, %v3181_v15  ;;  %v3178_v26 = vmul.f32 0.5, %v5084_v50 }
 0xa31   :  { %v5086_v29 = vpop.eup %5085 }
 0xa32   :  { %v3187_v8 = vmul.f32 %v3182_v6, %v6544_v24  ;;  %v3184_v32 = vadd.f32 0.5, %v3178_v26  ;;  %v3179_v13 = vmul.f32 0.5, %v5086_v29  ;;  %v5088_v11 = vpop.eup %5087  ;;  %v7199_v29 = vld [vmem:[#allocation21_spill] sm:$0xff] }
 0xa33   :  { %v5090_v31 = vpop.eup %5089 }
 0xa34   :  { %v6601_v38 = vadd.f32 %v3189_v62, %v3187_v8  ;;  %v3185_v23 = vadd.f32 0.5, %v3179_v13  ;;  %v3190_v7 = vmul.f32 %v5088_v11, %v3184_v32  ;;  %v5092_v17 = vpop.eup %5091  ;;  %v3177_v22 = vmul.f32 0.5, %v5090_v31  ;;  %v7200_v11 = vld [vmem:[#allocation28_spill] sm:$0xff] }
 0xa35   :  { %v3180_v24 = vmul.f32 0.5, %v5092_v17  ;;  %v2476_v8 = vadd.f32 %v7199_v29, %v6506_v18 }
 0xa36   :  { %v3188_v47 = vmul.f32 %v3185_v23, %v6547_v19  ;;  %5093 = vtanh.f32 %v6601_v38  ;;  %v3183_v34 = vadd.f32 0.5, %v3177_v22  ;;  %v7198_v19 = vld [vmem:[#allocation24_spill] sm:$0xff]  ;;  %v2478_v23 = vadd.f32 %v7200_v11, %v6514_v21 }
 0xa37   :  { %v3186_v43 = vadd.f32 0.5, %v3180_v24  ;;  %v2587_v50 = vadd.f32 %v7198_v19, %v6518_v14 }
 0xa38   :  { %v6605_v27 = vadd.f32 %v3190_v7, %v3188_v47  ;;  %v7201_v7 = vld [vmem:[#allocation30_spill] sm:$0xff] }
 0xa39   :  { %v2591_v47 = vadd.f32 %v7201_v7, %v6518_v14 }
 0xa3a   :  { %5095 = vtanh.f32 %v6605_v27 }
 0xa43   :  { %v5094_v63 = vpop.eup %5093 }
 0xa44   :  { %v3195_v48 = vmul.f32 %v5094_v63, %v3183_v34 }
 0xa47   :  { %v5096_v49 = vpop.eup %5095 }
 0xa48   :  { %v3196_v15 = vmul.f32 %v5096_v49, %v3186_v43  ;;  %v7202_v43 = vld [vmem:[#allocation26_spill] sm:$0xff] }
 0xa49   :  { %v2585_v49 = vadd.f32 %v7202_v43, %v6538_v9 }
 0xa4a   :  { %v4594_v5 = vpack.c.bf16 %v3196_v15, %v3195_v48  ;;  %v7203_v48 = vld [vmem:[#allocation25_spill] sm:$0xff] }
 0xa4b   :  { %v2589_v15 = vadd.f32 %v7203_v48, %v6538_v9 }
 0xa4c   :  { %4595 = vst [vmem:[#allocation2 + $0x8] sm:$0xff] %v4594_v5  }
 0xa53   :  { %v4882_v53 = vld [vmem:[#allocation2 + $0x8] sm:$0xff]  }
 0xa54   :  { %3260 = vmatmul.mubr.bf16.vlgmr.msra.gmra.mxu0 %v4882_v53  ;;  %3303 = vmatmul.mubr.bf16.vlgmr.msra.gmra.mxu1 %v4882_v53 }
 0xa55   :  { %3382 = vmatpush1.bf16.msra.mxu0 %v6241_v3  ;;  %3425 = vmatpush1.bf16.msra.mxu1 %v6243_v4  ;;  %v7196_v3 = vld [vmem:[#allocation23_spill] sm:$0xff] }
 0xa56   :  { %3383 = vmatprep.subr.bf16.mxu0 %v6249_v0  ;;  %3426 = vmatprep.subr.bf16.mxu1 %v6251_v42  ;;  %v2472_v4 = vadd.f32 %v7196_v3, %v6506_v18 }
 0xa57   :  { %3413 = vmatprep.mubr.bf16.mxu0 %v7081_v35  ;;  %3456 = vmatprep.mubr.bf16.mxu1 %v7081_v35 }
 0xa59   :  { %3384 = vmatpush1.bf16.msra.mxu0 %v6253_v28  ;;  %3427 = vmatpush1.bf16.msra.mxu1 %v6255_v30  ;;  %v7197_v28 = vld [vmem:[#allocation27_spill] sm:$0xff] }
 0xa5a   :  { %3385 = vmatprep.subr.bf16.mxu0 %v6261_v44  ;;  %3428 = vmatprep.subr.bf16.mxu1 %v6263_v36  ;;  %v2474_v30 = vadd.f32 %v7197_v28, %v6514_v21 }
 0xa5d   :  { %3386 = vmatpush1.bf16.msra.mxu0 %v6265_v16  ;;  %3429 = vmatpush1.bf16.msra.mxu1 %v6267_v37 }
 0xa5e   :  { %3387 = vmatprep.subr.bf16.mxu0 %v6273_v56  ;;  %3430 = vmatprep.subr.bf16.mxu1 %v6275_v40 }
 0xa61   :  { %3388 = vmatpush1.bf16.msra.mxu0 %v6277_v20  ;;  %3431 = vmatpush1.bf16.msra.mxu1 %v6279_v39 }
 0xa62   :  { %3389 = vmatprep.subr.bf16.mxu0 %v6285_v55  ;;  %3432 = vmatprep.subr.bf16.mxu1 %v6289_v25 }
 0xa65   :  { %3390 = vmatpush1.bf16.msra.mxu0 %v6287_v51  ;;  %3433 = vmatpush1.bf16.msra.mxu1 %v6291_v12 }
 0xa66   :  { %3391 = vmatprep.subr.bf16.mxu0 %v6293_v52  ;;  %3434 = vmatprep.subr.bf16.mxu1 %v6297_v58 }
 0xa69   :  { %3392 = vmatpush1.bf16.msra.mxu0 %v6301_v59  ;;  %3435 = vmatpush1.bf16.msra.mxu1 %v6303_v41 }
 0xa6a   :  { %3393 = vmatprep.subr.bf16.mxu0 %v6307_v10  ;;  %3436 = vmatprep.subr.bf16.mxu1 %v6314_v61 }
 0xa6d   :  { %3394 = vmatpush1.bf16.msra.mxu0 %v6311_v60  ;;  %3437 = vmatpush1.bf16.msra.mxu1 %v6316_v57 }
 0xa6e   :  { %3395 = vmatprep.subr.bf16.mxu0 %v6321_v54  ;;  %3438 = vmatprep.subr.bf16.mxu1 %v6325_v46 }
 0xa71   :  { %3396 = vmatpush1.bf16.msra.mxu0 %v6323_v45  ;;  %3439 = vmatpush1.bf16.msra.mxu1 %v6327_v33 }
 0xa72   :  { %3535 = vmatprep.subr.bf16.mxu0 %v6237_v1  ;;  %3578 = vmatprep.subr.bf16.mxu1 %v6239_v2 }
 0xb14   :  { %v3261_v0 = vpop.f32.mrf.mxu0  ;;  %v3304_v42 = vpop.f32.mrf.mxu1 }
 0xb15   :  { %v3313_v6 = vadd.f32 %v3261_v0, %v2472_v4  ;;  %v3315_v3 = vadd.f32 %v3304_v42, %v2585_v49 }
 0xb16   :  { %v3263_v62 = vpop.f32.mrf.mxu0  ;;  %v3306_v26 = vpop.f32.mrf.mxu1 }
 0xb17   :  { %5097 = vtanh.f32 %v3313_v6  ;;  %v3314_v1 = vadd.f32 %v3263_v62, %v2474_v30  ;;  %v3316_v2 = vadd.f32 %v3306_v26, %v2587_v50 }
 0xb18   :  { %v3265_v32 = vpop.f32.mrf.mxu0  ;;  %v3308_v13 = vpop.f32.mrf.mxu1 }
 0xb19   :  { %5099 = vtanh.f32 %v3314_v1  ;;  %v3317_v31 = vadd.f32 %v3265_v32, %v2476_v8  ;;  %v3319_v30 = vadd.f32 %v3308_v13, %v2589_v15  ;;  %v6669_v15 = vld [vmem:[#allocation11 + $0xe8] ss:$16 sps:$4 sm:$0xff]  }
 0xb1a   :  { %5101 = vtanh.f32 %v3316_v2  ;;  %v3267_v17 = vpop.f32.mrf.mxu0  ;;  %v3310_v22 = vpop.f32.mrf.mxu1 }
 0xb1b   :  { %5103 = vtanh.f32 %v3317_v31  ;;  %v3318_v24 = vadd.f32 %v3267_v17, %v2478_v23  ;;  %v3320_v63 = vadd.f32 %v3310_v22, %v2591_v47 }
 0xb1d   :  { %5105 = vtanh.f32 %v3318_v24 }
 0xb1e   :  { %5107 = vtanh.f32 %v3320_v63 }
 0xb1f   :  { %5109 = vtanh.f32 %v3315_v3  ;;  %v6680_v3 = vld [vmem:[#allocation11 + $0xc0] ss:$16 sps:$4 sm:$0xff]  }
 0xb20   :  { %5111 = vtanh.f32 %v3319_v30 }
 0xb24   :  { %v5098_v34 = vpop.eup %5097 }
 0xb25   :  { %v3329_v5 = vmul.f32 0.5, %v5098_v34 }
 0xb26   :  { %v5100_v53 = vpop.eup %5099 }
 0xb27   :  { %v5102_v4 = vpop.eup %5101  ;;  %v3335_v0 = vadd.f32 0.5, %v3329_v5  ;;  %v3330_v28 = vmul.f32 0.5, %v5100_v53  ;;  %v6672_v5 = vld [vmem:[#allocation11 + $0xc4] ss:$16 sps:$4 sm:$0xff]   ;;  %v6675_v53 = vld [vmem:[#allocation11 + $0xcc] ss:$16 sps:$4 sm:$0xff]  }
 0xb28   :  { %v5104_v19 = vpop.eup %5103 }
 0xb29   :  { %v3336_v50 = vadd.f32 0.5, %v3330_v28  ;;  %v3343_v6 = vmul.f32 %v5102_v4, %v3335_v0  ;;  %v3332_v62 = vmul.f32 0.5, %v5104_v19  ;;  %v6683_v4 = vld [vmem:[#allocation11 + $0xc8] ss:$16 sps:$4 sm:$0xff]  }
 0xb2a   :  { %v5106_v26 = vpop.eup %5105 }
 0xb2b   :  { %v3341_v29 = vmul.f32 %v3336_v50, %v6601_v38  ;;  %v3338_v8 = vadd.f32 0.5, %v3332_v62  ;;  %v3333_v1 = vmul.f32 0.5, %v5106_v26  ;;  %v5108_v2 = vpop.eup %5107  ;;  %v7211_v26 = vld [vmem:[#allocation33_spill] sm:$0xff] }
 0xb2c   :  { %v5110_v7 = vpop.eup %5109 }
 0xb2d   :  { %v6659_v32 = vadd.f32 %v3343_v6, %v3341_v29  ;;  %v3339_v11 = vadd.f32 0.5, %v3333_v1  ;;  %v3344_v42 = vmul.f32 %v5108_v2, %v3338_v8  ;;  %v5112_v47 = vpop.eup %5111  ;;  %v3331_v31 = vmul.f32 0.5, %v5110_v7  ;;  %v7210_v6 = vld [vmem:[#allocation34_spill] sm:$0xff] }
 0xb2e   :  { %v3334_v38 = vmul.f32 0.5, %v5112_v47  ;;  %v2595_v62 = vadd.f32 %v7210_v6, %v6538_v9  ;;  %v2599_v29 = vadd.f32 %v7211_v26, %v6538_v9  ;;  %v6790_v6 = vld [vmem:[#allocation11 + $0x40] ss:$16 sps:$4 sm:$0xff]   ;;  %v6796_v26 = vld [vmem:[#allocation11 + $0x24] ss:$16 sps:$4 sm:$0xff]  }
 0xb2f   :  { %v3342_v23 = vmul.f32 %v3339_v11, %v6605_v27  ;;  %5113 = vtanh.f32 %v6659_v32  ;;  %v3337_v22 = vadd.f32 0.5, %v3331_v31  ;;  %v6666_v27 = vld [vmem:[#allocation11 + $0xe0] ss:$16 sps:$4 sm:$0xff]  }
 0xb30   :  { %v3340_v24 = vadd.f32 0.5, %v3334_v38 }
 0xb31   :  { %v6663_v13 = vadd.f32 %v3344_v42, %v3342_v23 }
 0xb33   :  { %5115 = vtanh.f32 %v6663_v13 }
 0xb3c   :  { %v5114_v17 = vpop.eup %5113 }
 0xb3d   :  { %v3349_v34 = vmul.f32 %v5114_v17, %v3337_v22 }
 0xb40   :  { %v5116_v63 = vpop.eup %5115 }
 0xb41   :  { %v3350_v43 = vmul.f32 %v5116_v63, %v3340_v24 }
 0xb43   :  { %v4599_v49 = vpack.c.bf16 %v3350_v43, %v3349_v34 }
 0xb45   :  { %4600 = vst [vmem:[#allocation2 + $0x8] sm:$0xff] %v4599_v49  }
 0xb4c   :  { %v4883_v48 = vld [vmem:[#allocation2 + $0x8] sm:$0xff]  }
 0xb4d   :  { %3414 = vmatmul.mubr.bf16.vlgmr.msra.gmra.mxu0 %v4883_v48  ;;  %3457 = vmatmul.mubr.bf16.vlgmr.msra.gmra.mxu1 %v4883_v48 }
 0xb4e   :  { %3536 = vmatpush1.bf16.msra.mxu0 %v6666_v27  ;;  %3579 = vmatpush1.bf16.msra.mxu1 %v6669_v15 }
 0xb4f   :  { %3537 = vmatprep.subr.bf16.mxu0 %v6672_v5  ;;  %3580 = vmatprep.subr.bf16.mxu1 %v6675_v53 }
 0xb50   :  { %3567 = vmatprep.mubr.bf16.mxu0 %v7081_v35  ;;  %3610 = vmatprep.mubr.bf16.mxu1 %v7081_v35 }
 0xb52   :  { %3538 = vmatpush1.bf16.msra.mxu0 %v6680_v3  ;;  %3581 = vmatpush1.bf16.msra.mxu1 %v6683_v4 }
 0xb53   :  { %3539 = vmatprep.subr.bf16.mxu0 %v6261_v44  ;;  %3582 = vmatprep.subr.bf16.mxu1 %v6263_v36  ;;  %v6710_v44 = vld [vmem:[#allocation11 + $0xe4] ss:$16 sps:$4 sm:$0xff]   ;;  %v6713_v36 = vld [vmem:[#allocation11 + $0xec] ss:$16 sps:$4 sm:$0xff]  }
 0xb56   :  { %3540 = vmatpush1.bf16.msra.mxu0 %v6265_v16  ;;  %3583 = vmatpush1.bf16.msra.mxu1 %v6267_v37  ;;  %v7204_v16 = vld [vmem:[#allocation31_spill] sm:$0xff] }
 0xb57   :  { %3541 = vmatprep.subr.bf16.mxu0 %v6273_v56  ;;  %3584 = vmatprep.subr.bf16.mxu1 %v6275_v40  ;;  %v2482_v37 = vadd.f32 %v7204_v16, %v6506_v18 }
 0xb5a   :  { %3542 = vmatpush1.bf16.msra.mxu0 %v6277_v20  ;;  %3585 = vmatpush1.bf16.msra.mxu1 %v6279_v39  ;;  %v7205_v20 = vld [vmem:[#allocation35_spill] sm:$0xff] }
 0xb5b   :  { %3543 = vmatprep.subr.bf16.mxu0 %v6285_v55  ;;  %3586 = vmatprep.subr.bf16.mxu1 %v6289_v25  ;;  %v2484_v39 = vadd.f32 %v7205_v20, %v6514_v21  ;;  %v7206_v55 = vld [vmem:[#allocation32_spill] sm:$0xff] }
 0xb5e   :  { %3544 = vmatpush1.bf16.msra.mxu0 %v6287_v51  ;;  %3587 = vmatpush1.bf16.msra.mxu1 %v6291_v12  ;;  %v2597_v51 = vadd.f32 %v7206_v55, %v6518_v14 }
 0xb5f   :  { %3545 = vmatprep.subr.bf16.mxu0 %v6293_v52  ;;  %3588 = vmatprep.subr.bf16.mxu1 %v6297_v58  ;;  %v7207_v58 = vld [vmem:[#allocation29_spill] sm:$0xff] }
 0xb62   :  { %3546 = vmatpush1.bf16.msra.mxu0 %v6301_v59  ;;  %3589 = vmatpush1.bf16.msra.mxu1 %v6303_v41  ;;  %v2486_v59 = vadd.f32 %v7207_v58, %v6506_v18 }
 0xb63   :  { %3547 = vmatprep.subr.bf16.mxu0 %v6307_v10  ;;  %3590 = vmatprep.subr.bf16.mxu1 %v6314_v61 }
 0xb66   :  { %3548 = vmatpush1.bf16.msra.mxu0 %v6311_v60  ;;  %3591 = vmatpush1.bf16.msra.mxu1 %v6316_v57  ;;  %v7208_v57 = vld [vmem:[#allocation36_spill] sm:$0xff] }
 0xb67   :  { %3549 = vmatprep.subr.bf16.mxu0 %v6321_v54  ;;  %3592 = vmatprep.subr.bf16.mxu1 %v6325_v46  ;;  %v2488_v54 = vadd.f32 %v7208_v57, %v6514_v21  ;;  %v6760_v57 = vld [vmem:[#allocation11 + $0x84] ss:$16 sps:$4 sm:$0xff]  }
 0xb6a   :  { %3550 = vmatpush1.bf16.msra.mxu0 %v6323_v45  ;;  %3593 = vmatpush1.bf16.msra.mxu1 %v6327_v33  ;;  %v7209_v45 = vld [vmem:[#allocation38_spill] sm:$0xff] }
 0xb6b   :  { %3689 = vmatprep.subr.bf16.mxu0 %v6710_v44  ;;  %3732 = vmatprep.subr.bf16.mxu1 %v6713_v36  ;;  %v2601_v46 = vadd.f32 %v7209_v45, %v6518_v14  ;;  %v6766_v45 = vld [vmem:[#allocation11 + $0x80] ss:$16 sps:$4 sm:$0xff]  }
 0xc0d   :  { %v3415_v56 = vpop.f32.mrf.mxu0  ;;  %v3458_v40 = vpop.f32.mrf.mxu1 }
 0xc0e   :  { %v3467_v25 = vadd.f32 %v3415_v56, %v2482_v37  ;;  %v3469_v2 = vadd.f32 %v3458_v40, %v2595_v62  ;;  %v6793_v62 = vld [vmem:[#allocation11 + $0x48] ss:$16 sps:$4 sm:$0xff]  }
 0xc0f   :  { %v3417_v12 = vpop.f32.mrf.mxu0  ;;  %v3460_v52 = vpop.f32.mrf.mxu1 }
 0xc10   :  { %5117 = vtanh.f32 %v3467_v25  ;;  %v3468_v41 = vadd.f32 %v3417_v12, %v2484_v39  ;;  %v3470_v10 = vadd.f32 %v3460_v52, %v2597_v51 }
 0xc11   :  { %v3419_v60 = vpop.f32.mrf.mxu0  ;;  %v3462_v61 = vpop.f32.mrf.mxu1 }
 0xc12   :  { %5119 = vtanh.f32 %v3468_v41  ;;  %v3471_v33 = vadd.f32 %v3419_v60, %v2486_v59  ;;  %v3473_v7 = vadd.f32 %v3462_v61, %v2599_v29  ;;  %v6754_v60 = vld [vmem:[#allocation11 + $0xa0] ss:$16 sps:$4 sm:$0xff]   ;;  %v6757_v61 = vld [vmem:[#allocation11 + $0xa8] ss:$16 sps:$4 sm:$0xff]   ;;  %v6799_v29 = vld [vmem:[#allocation11 + $0x2c] ss:$16 sps:$4 sm:$0xff]  }
 0xc13   :  { %5121 = vtanh.f32 %v3470_v10  ;;  %v3421_v0 = vpop.f32.mrf.mxu0  ;;  %v3464_v28 = vpop.f32.mrf.mxu1  ;;  %v6751_v10 = vld [vmem:[#allocation11 + $0xac] ss:$16 sps:$4 sm:$0xff]  }
 0xc14   :  { %5123 = vtanh.f32 %v3471_v33  ;;  %v3472_v30 = vadd.f32 %v3421_v0, %v2488_v54  ;;  %v3474_v19 = vadd.f32 %v3464_v28, %v2601_v46  ;;  %v6763_v54 = vld [vmem:[#allocation11 + $0x8c] ss:$16 sps:$4 sm:$0xff]   ;;  %v6769_v46 = vld [vmem:[#allocation11 + $0x88] ss:$16 sps:$4 sm:$0xff]   ;;  %v6772_v33 = vld [vmem:[#allocation11 + $0x64] ss:$16 sps:$4 sm:$0xff]  }
 0xc15   :  { %v6775_v0 = vld [vmem:[#allocation11 + $0x6c] ss:$16 sps:$4 sm:$0xff]   ;;  %v6778_v28 = vld [vmem:[#allocation11 + $0x60] ss:$16 sps:$4 sm:$0xff]  }
 0xc16   :  { %5125 = vtanh.f32 %v3472_v30  ;;  %v6781_v30 = vld [vmem:[#allocation11 + $0x68] ss:$16 sps:$4 sm:$0xff]  }
 0xc17   :  { %5127 = vtanh.f32 %v3474_v19  ;;  %v6784_v19 = vld [vmem:[#allocation11 + $0x44] ss:$16 sps:$4 sm:$0xff]  }
 0xc18   :  { %5129 = vtanh.f32 %v3469_v2  ;;  %v6808_v2 = vld [vmem:[#allocation11 + $0x4] ss:$16 sps:$4 sm:$0xff]  }
 0xc19   :  { %5131 = vtanh.f32 %v3473_v7  ;;  %v7212_v7 = vld [vmem:[#allocation39_spill] sm:$0xff] }
 0xc1d   :  { %v5118_v50 = vpop.eup %5117 }
 0xc1e   :  { %v3483_v8 = vmul.f32 0.5, %v5118_v50  ;;  %v6787_v50 = vld [vmem:[#allocation11 + $0x4c] ss:$16 sps:$4 sm:$0xff]  }
 0xc1f   :  { %v5120_v1 = vpop.eup %5119 }
 0xc20   :  { %v5122_v11 = vpop.eup %5121  ;;  %v3489_v42 = vadd.f32 0.5, %v3483_v8  ;;  %v3484_v23 = vmul.f32 0.5, %v5120_v1  ;;  %v6802_v8 = vld [vmem:[#allocation11 + $0x20] ss:$16 sps:$4 sm:$0xff]   ;;  %v6805_v1 = vld [vmem:[#allocation11 + $0x28] ss:$16 sps:$4 sm:$0xff]  }
 0xc21   :  { %v5124_v47 = vpop.eup %5123 }
 0xc22   :  { %v3490_v31 = vadd.f32 0.5, %v3484_v23  ;;  %v3497_v38 = vmul.f32 %v5122_v11, %v3489_v42  ;;  %v3486_v17 = vmul.f32 0.5, %v5124_v47  ;;  %v6811_v11 = vld [vmem:[#allocation11 + $0xc] ss:$16 sps:$4 sm:$0xff]   ;;  %v6814_v42 = vld [vmem:[#allocation11] ss:$16 sps:$4 sm:$0xff]   ;;  %v2492_v47 = vadd.f32 %v7212_v7, %v6506_v18 }
 0xc23   :  { %v5126_v22 = vpop.eup %5125  ;;  %v6817_v23 = vld [vmem:[#allocation11 + $0x8] ss:$16 sps:$4 sm:$0xff]  }
 0xc24   :  { %v3495_v24 = vmul.f32 %v3490_v31, %v6659_v32  ;;  %v3492_v63 = vadd.f32 0.5, %v3486_v17  ;;  %v3487_v34 = vmul.f32 0.5, %v5126_v22  ;;  %v5128_v43 = vpop.eup %5127  ;;  %v7213_v17 = vld [vmem:[#allocation40_spill] sm:$0xff] }
 0xc25   :  { %v5130_v40 = vpop.eup %5129  ;;  %v2494_v22 = vadd.f32 %v7213_v17, %v6514_v21 }
 0xc26   :  { %v6733_v49 = vadd.f32 %v3497_v38, %v3495_v24  ;;  %v3493_v48 = vadd.f32 0.5, %v3487_v34  ;;  %v3498_v16 = vmul.f32 %v5128_v43, %v3492_v63  ;;  %v5132_v20 = vpop.eup %5131  ;;  %v3485_v39 = vmul.f32 0.5, %v5130_v40  ;;  %v7214_v24 = vld [vmem:[#allocation43_spill] sm:$0xff] }
 0xc27   :  { %v3488_v32 = vmul.f32 0.5, %v5132_v20  ;;  %v2607_v63 = vadd.f32 %v7214_v24, %v6518_v14 }
 0xc28   :  { %v3496_v37 = vmul.f32 %v3493_v48, %v6663_v13  ;;  %5133 = vtanh.f32 %v6733_v49  ;;  %v3491_v51 = vadd.f32 0.5, %v3485_v39  ;;  %v6748_v13 = vld [vmem:[#allocation11 + $0xa4] ss:$16 sps:$4 sm:$0xff]  }
 0xc29   :  { %v3494_v25 = vadd.f32 0.5, %v3488_v32 }
 0xc2a   :  { %v6737_v56 = vadd.f32 %v3498_v16, %v3496_v37  ;;  %v7215_v16 = vld [vmem:[#allocation37_spill] sm:$0xff] }
 0xc2b   :  { %v2496_v37 = vadd.f32 %v7215_v16, %v6506_v18 }
 0xc2c   :  { %5135 = vtanh.f32 %v6737_v56 }
 0xc35   :  { %v5134_v55 = vpop.eup %5133 }
 0xc36   :  { %v3503_v52 = vmul.f32 %v5134_v55, %v3491_v51  ;;  %v7216_v55 = vld [vmem:[#allocation44_spill] sm:$0xff] }
 0xc37   :  { %v2498_v51 = vadd.f32 %v7216_v55, %v6514_v21 }
 0xc39   :  { %v5136_v12 = vpop.eup %5135 }
 0xc3a   :  { %v3504_v58 = vmul.f32 %v5136_v12, %v3494_v25  ;;  %v7217_v25 = vld [vmem:[#allocation46_spill] sm:$0xff] }
 0xc3b   :  { %v2611_v12 = vadd.f32 %v7217_v25, %v6518_v14 }
 0xc3c   :  { %v4604_v59 = vpack.c.bf16 %v3504_v58, %v3503_v52 }
 0xc3e   :  { %4605 = vst [vmem:[#allocation2 + $0x8] sm:$0xff] %v4604_v59  }
 0xc45   :  { %v4884_v41 = vld [vmem:[#allocation2 + $0x8] sm:$0xff]  }
 0xc46   :  { %3568 = vmatmul.mubr.bf16.vlgmr.msra.gmra.mxu0 %v4884_v41  ;;  %3611 = vmatmul.mubr.bf16.vlgmr.msra.gmra.mxu1 %v4884_v41 }
 0xc47   :  { %3690 = vmatpush1.bf16.msra.mxu0 %v6666_v27  ;;  %3733 = vmatpush1.bf16.msra.mxu1 %v6669_v15 }
 0xc48   :  { %3691 = vmatprep.subr.bf16.mxu0 %v6672_v5  ;;  %3734 = vmatprep.subr.bf16.mxu1 %v6675_v53 }
 0xc49   :  { %3721 = vmatprep.mubr.bf16.mxu0 %v7081_v35  ;;  %3764 = vmatprep.mubr.bf16.mxu1 %v7081_v35 }
 0xc4b   :  { %3692 = vmatpush1.bf16.msra.mxu0 %v6680_v3  ;;  %3735 = vmatpush1.bf16.msra.mxu1 %v6683_v4 }
 0xc4c   :  { %3693 = vmatprep.subr.bf16.mxu0 %v6748_v13  ;;  %3736 = vmatprep.subr.bf16.mxu1 %v6751_v10 }
 0xc4f   :  { %3694 = vmatpush1.bf16.msra.mxu0 %v6754_v60  ;;  %3737 = vmatpush1.bf16.msra.mxu1 %v6757_v61 }
 0xc50   :  { %3695 = vmatprep.subr.bf16.mxu0 %v6760_v57  ;;  %3738 = vmatprep.subr.bf16.mxu1 %v6763_v54 }
 0xc53   :  { %3696 = vmatpush1.bf16.msra.mxu0 %v6766_v45  ;;  %3739 = vmatpush1.bf16.msra.mxu1 %v6769_v46 }
 0xc54   :  { %3697 = vmatprep.subr.bf16.mxu0 %v6772_v33  ;;  %3740 = vmatprep.subr.bf16.mxu1 %v6775_v0 }
 0xc57   :  { %3698 = vmatpush1.bf16.msra.mxu0 %v6778_v28  ;;  %3741 = vmatpush1.bf16.msra.mxu1 %v6781_v30 }
 0xc58   :  { %3699 = vmatprep.subr.bf16.mxu0 %v6784_v19  ;;  %3742 = vmatprep.subr.bf16.mxu1 %v6787_v50 }
 0xc5b   :  { %3700 = vmatpush1.bf16.msra.mxu0 %v6790_v6  ;;  %3743 = vmatpush1.bf16.msra.mxu1 %v6793_v62 }
 0xc5c   :  { %3701 = vmatprep.subr.bf16.mxu0 %v6796_v26  ;;  %3744 = vmatprep.subr.bf16.mxu1 %v6799_v29 }
 0xc5f   :  { %3702 = vmatpush1.bf16.msra.mxu0 %v6802_v8  ;;  %3745 = vmatpush1.bf16.msra.mxu1 %v6805_v1 }
 0xc60   :  { %3703 = vmatprep.subr.bf16.mxu0 %v6808_v2  ;;  %3746 = vmatprep.subr.bf16.mxu1 %v6811_v11 }
 0xc63   :  { %3704 = vmatpush1.bf16.msra.mxu0 %v6814_v42  ;;  %3747 = vmatpush1.bf16.msra.mxu1 %v6817_v23 }
 0xc64   :  { %3843 = vmatprep.subr.bf16.mxu0 %v6710_v44  ;;  %3886 = vmatprep.subr.bf16.mxu1 %v6713_v36 }
 0xd06   :  { %v3569_v31 = vpop.f32.mrf.mxu0  ;;  %v3612_v38 = vpop.f32.mrf.mxu1 }
 0xd07   :  { %v3621_v34 = vadd.f32 %v3569_v31, %v2492_v47  ;;  %v7218_v31 = vld [vmem:[#allocation42_spill] sm:$0xff] }
 0xd08   :  { %v3571_v43 = vpop.f32.mrf.mxu0  ;;  %v3614_v48 = vpop.f32.mrf.mxu1  ;;  %v2605_v17 = vadd.f32 %v7218_v31, %v6538_v9 }
 0xd09   :  { %5137 = vtanh.f32 %v3621_v34  ;;  %v3622_v40 = vadd.f32 %v3571_v43, %v2494_v22  ;;  %v3624_v20 = vadd.f32 %v3614_v48, %v2607_v63  ;;  %v7219_v22 = vld [vmem:[#allocation41_spill] sm:$0xff] }
 0xd0a   :  { %v3573_v39 = vpop.f32.mrf.mxu0  ;;  %v3616_v32 = vpop.f32.mrf.mxu1  ;;  %v2609_v24 = vadd.f32 %v7219_v22, %v6538_v9  ;;  %v3623_v43 = vadd.f32 %v3612_v38, %v2605_v17 }
 0xd0b   :  { %5139 = vtanh.f32 %v3622_v40  ;;  %v3625_v52 = vadd.f32 %v3573_v39, %v2496_v37 }
 0xd0c   :  { %5141 = vtanh.f32 %v3624_v20  ;;  %v3575_v58 = vpop.f32.mrf.mxu0  ;;  %v3618_v59 = vpop.f32.mrf.mxu1  ;;  %v3627_v40 = vadd.f32 %v3616_v32, %v2609_v24 }
 0xd0d   :  { %5143 = vtanh.f32 %v3625_v52  ;;  %v3626_v41 = vadd.f32 %v3575_v58, %v2498_v51  ;;  %v3628_v7 = vadd.f32 %v3618_v59, %v2611_v12 }
 0xd0f   :  { %5145 = vtanh.f32 %v3626_v41 }
 0xd10   :  { %5147 = vtanh.f32 %v3628_v7 }
 0xd11   :  { %5149 = vtanh.f32 %v3623_v43 }
 0xd12   :  { %5151 = vtanh.f32 %v3627_v40 }
 0xd16   :  { %v5138_v47 = vpop.eup %5137 }
 0xd17   :  { %v3637_v63 = vmul.f32 0.5, %v5138_v47 }
 0xd18   :  { %v5140_v34 = vpop.eup %5139 }
 0xd19   :  { %v5142_v48 = vpop.eup %5141  ;;  %v3643_v16 = vadd.f32 0.5, %v3637_v63  ;;  %v3638_v37 = vmul.f32 0.5, %v5140_v34 }
 0xd1a   :  { %v5144_v20 = vpop.eup %5143 }
 0xd1b   :  { %v3644_v39 = vadd.f32 0.5, %v3638_v37  ;;  %v3651_v55 = vmul.f32 %v5142_v48, %v3643_v16  ;;  %v3640_v51 = vmul.f32 0.5, %v5144_v20 }
 0xd1c   :  { %v5146_v25 = vpop.eup %5145 }
 0xd1d   :  { %v3649_v12 = vmul.f32 %v3644_v39, %v6733_v49  ;;  %v3646_v52 = vadd.f32 0.5, %v3640_v51  ;;  %v3641_v58 = vmul.f32 0.5, %v5146_v25  ;;  %v5148_v59 = vpop.eup %5147  ;;  %v7221_v51 = vld [vmem:[#allocation50_spill] sm:$0xff] }
 0xd1e   :  { %v5150_v31 = vpop.eup %5149  ;;  %v2504_v25 = vadd.f32 %v7221_v51, %v6514_v21 }
 0xd1f   :  { %v6839_v41 = vadd.f32 %v3651_v55, %v3649_v12  ;;  %v3647_v7 = vadd.f32 0.5, %v3641_v58  ;;  %v3652_v38 = vmul.f32 %v5148_v59, %v3646_v52  ;;  %v5152_v17 = vpop.eup %5151  ;;  %v3639_v22 = vmul.f32 0.5, %v5150_v31  ;;  %v7222_v12 = vld [vmem:[#allocation51_spill] sm:$0xff] }
 0xd20   :  { %v3642_v49 = vmul.f32 0.5, %v5152_v17  ;;  %v2617_v52 = vadd.f32 %v7222_v12, %v6518_v14 }
 0xd21   :  { %v3650_v47 = vmul.f32 %v3647_v7, %v6737_v56  ;;  %5153 = vtanh.f32 %v6839_v41  ;;  %v3645_v63 = vadd.f32 0.5, %v3639_v22  ;;  %v7220_v56 = vld [vmem:[#allocation47_spill] sm:$0xff]  ;;  %v7224_v22 = vld [vmem:[#allocation52_spill] sm:$0xff] }
 0xd22   :  { %v3648_v34 = vadd.f32 0.5, %v3642_v49  ;;  %v2502_v20 = vadd.f32 %v7220_v56, %v6506_v18  ;;  %v2508_v49 = vadd.f32 %v7224_v22, %v6514_v21  ;;  %v7226_v56 = vld [vmem:[#allocation48_spill] sm:$0xff] }
 0xd23   :  { %v6843_v32 = vadd.f32 %v3652_v38, %v3650_v47  ;;  %v7223_v38 = vld [vmem:[#allocation45_spill] sm:$0xff] }
 0xd24   :  { %v2506_v47 = vadd.f32 %v7223_v38, %v6506_v18 }
 0xd25   :  { %5155 = vtanh.f32 %v6843_v32 }
 0xd2e   :  { %v5154_v24 = vpop.eup %5153 }
 0xd2f   :  { %v3657_v48 = vmul.f32 %v5154_v24, %v3645_v63  ;;  %v7225_v24 = vld [vmem:[#allocation54_spill] sm:$0xff] }
 0xd30   :  { %v2621_v63 = vadd.f32 %v7225_v24, %v6518_v14 }
 0xd32   :  { %v5156_v43 = vpop.eup %5155 }
 0xd33   :  { %v3658_v16 = vmul.f32 %v5156_v43, %v3648_v34 }
 0xd35   :  { %v4609_v37 = vpack.c.bf16 %v3658_v16, %v3657_v48 }
 0xd37   :  { %4610 = vst [vmem:[#allocation2 + $0x8] sm:$0xff] %v4609_v37  }
 0xd3e   :  { %v4885_v40 = vld [vmem:[#allocation2 + $0x8] sm:$0xff]  }
 0xd3f   :  { %3722 = vmatmul.mubr.bf16.vlgmr.msra.gmra.mxu0 %v4885_v40  ;;  %3765 = vmatmul.mubr.bf16.vlgmr.msra.gmra.mxu1 %v4885_v40 }
 0xd40   :  { %3844 = vmatpush1.bf16.msra.mxu0 %v6666_v27  ;;  %3887 = vmatpush1.bf16.msra.mxu1 %v6669_v15 }
 0xd41   :  { %3845 = vmatprep.subr.bf16.mxu0 %v6672_v5  ;;  %3888 = vmatprep.subr.bf16.mxu1 %v6675_v53 }
 0xd42   :  { %3875 = vmatprep.mubr.bf16.mxu0 %v7081_v35  ;;  %3918 = vmatprep.mubr.bf16.mxu1 %v7081_v35 }
 0xd44   :  { %3846 = vmatpush1.bf16.msra.mxu0 %v6680_v3  ;;  %3889 = vmatpush1.bf16.msra.mxu1 %v6683_v4 }
 0xd45   :  { %3847 = vmatprep.subr.bf16.mxu0 %v6748_v13  ;;  %3890 = vmatprep.subr.bf16.mxu1 %v6751_v10 }
 0xd48   :  { %3848 = vmatpush1.bf16.msra.mxu0 %v6754_v60  ;;  %3891 = vmatpush1.bf16.msra.mxu1 %v6757_v61 }
 0xd49   :  { %3849 = vmatprep.subr.bf16.mxu0 %v6760_v57  ;;  %3892 = vmatprep.subr.bf16.mxu1 %v6763_v54 }
 0xd4c   :  { %3850 = vmatpush1.bf16.msra.mxu0 %v6766_v45  ;;  %3893 = vmatpush1.bf16.msra.mxu1 %v6769_v46 }
 0xd4d   :  { %3851 = vmatprep.subr.bf16.mxu0 %v6772_v33  ;;  %3894 = vmatprep.subr.bf16.mxu1 %v6775_v0 }
 0xd50   :  { %3852 = vmatpush1.bf16.msra.mxu0 %v6778_v28  ;;  %3895 = vmatpush1.bf16.msra.mxu1 %v6781_v30 }
 0xd51   :  { %3853 = vmatprep.subr.bf16.mxu0 %v6784_v19  ;;  %3896 = vmatprep.subr.bf16.mxu1 %v6787_v50 }
 0xd54   :  { %3854 = vmatpush1.bf16.msra.mxu0 %v6790_v6  ;;  %3897 = vmatpush1.bf16.msra.mxu1 %v6793_v62 }
 0xd55   :  { %3855 = vmatprep.subr.bf16.mxu0 %v6796_v26  ;;  %3898 = vmatprep.subr.bf16.mxu1 %v6799_v29 }
 0xd58   :  { %3856 = vmatpush1.bf16.msra.mxu0 %v6802_v8  ;;  %3899 = vmatpush1.bf16.msra.mxu1 %v6805_v1 }
 0xd59   :  { %3857 = vmatprep.subr.bf16.mxu0 %v6808_v2  ;;  %3900 = vmatprep.subr.bf16.mxu1 %v6811_v11 }
 0xd5c   :  { %3858 = vmatpush1.bf16.msra.mxu0 %v6814_v42  ;;  %3901 = vmatpush1.bf16.msra.mxu1 %v6817_v23 }
 0xd5d   :  { %3997 = vmatprep.subr.bf16.mxu0 %v6710_v44  ;;  %4040 = vmatprep.subr.bf16.mxu1 %v6713_v36 }
 0xdff   :  { %v3723_v39 = vpop.f32.mrf.mxu0  ;;  %v3766_v55 = vpop.f32.mrf.mxu1 }
 0xe00   :  { %v3775_v58 = vadd.f32 %v3723_v39, %v2502_v20  ;;  %v2615_v20 = vadd.f32 %v7226_v56, %v6538_v9  ;;  %v7227_v39 = vld [vmem:[#allocation49_spill] sm:$0xff] }
 0xe01   :  { %v3725_v59 = vpop.f32.mrf.mxu0  ;;  %v3768_v7 = vpop.f32.mrf.mxu1  ;;  %v2619_v51 = vadd.f32 %v7227_v39, %v6538_v9 }
 0xe02   :  { %5157 = vtanh.f32 %v3775_v58  ;;  %v3776_v44 = vadd.f32 %v3725_v59, %v2504_v25  ;;  %v3778_v36 = vadd.f32 %v3768_v7, %v2617_v52  ;;  %v3777_v52 = vadd.f32 %v3766_v55, %v2615_v20 }
 0xe03   :  { %v3727_v31 = vpop.f32.mrf.mxu0  ;;  %v3770_v17 = vpop.f32.mrf.mxu1 }
 0xe04   :  { %5159 = vtanh.f32 %v3776_v44  ;;  %v3779_v34 = vadd.f32 %v3727_v31, %v2506_v47  ;;  %v3781_v38 = vadd.f32 %v3770_v17, %v2619_v51 }
 0xe05   :  { %5161 = vtanh.f32 %v3778_v36  ;;  %v3729_v43 = vpop.f32.mrf.mxu0  ;;  %v3772_v48 = vpop.f32.mrf.mxu1 }
 0xe06   :  { %5163 = vtanh.f32 %v3779_v34  ;;  %v3780_v16 = vadd.f32 %v3729_v43, %v2508_v49  ;;  %v3782_v37 = vadd.f32 %v3772_v48, %v2621_v63 }
 0xe08   :  { %5165 = vtanh.f32 %v3780_v16 }
 0xe09   :  { %5167 = vtanh.f32 %v3782_v37 }
 0xe0a   :  { %5169 = vtanh.f32 %v3777_v52 }
 0xe0b   :  { %5171 = vtanh.f32 %v3781_v38 }
 0xe0f   :  { %v5158_v40 = vpop.eup %5157 }
 0xe10   :  { %v3791_v25 = vmul.f32 0.5, %v5158_v40 }
 0xe11   :  { %v5160_v12 = vpop.eup %5159 }
 0xe12   :  { %v5162_v58 = vpop.eup %5161  ;;  %v3797_v59 = vadd.f32 0.5, %v3791_v25  ;;  %v3792_v7 = vmul.f32 0.5, %v5160_v12 }
 0xe13   :  { %v5164_v47 = vpop.eup %5163 }
 0xe14   :  { %v3798_v44 = vadd.f32 0.5, %v3792_v7  ;;  %v3805_v36 = vmul.f32 %v5162_v58, %v3797_v59  ;;  %v3794_v31 = vmul.f32 0.5, %v5164_v47 }
 0xe15   :  { %v5166_v22 = vpop.eup %5165 }
 0xe16   :  { %v3803_v49 = vmul.f32 %v3798_v44, %v6839_v41  ;;  %v3800_v24 = vadd.f32 0.5, %v3794_v31  ;;  %v3795_v63 = vmul.f32 0.5, %v5166_v22  ;;  %v5168_v34 = vpop.eup %5167 }
 0xe17   :  { %v5170_v37 = vpop.eup %5169 }
 0xe18   :  { %v6897_v43 = vadd.f32 %v3805_v36, %v3803_v49  ;;  %v3801_v48 = vadd.f32 0.5, %v3795_v63  ;;  %v3806_v55 = vmul.f32 %v5168_v34, %v3800_v24  ;;  %v5172_v40 = vpop.eup %5171  ;;  %v3793_v56 = vmul.f32 0.5, %v5170_v37 }
 0xe19   :  { %v3796_v41 = vmul.f32 0.5, %v5172_v40 }
 0xe1a   :  { %v3804_v16 = vmul.f32 %v3801_v48, %v6843_v32  ;;  %5173 = vtanh.f32 %v6897_v43  ;;  %v3799_v39 = vadd.f32 0.5, %v3793_v56 }
 0xe1b   :  { %v3802_v51 = vadd.f32 0.5, %v3796_v41 }
 0xe1c   :  { %v6901_v17 = vadd.f32 %v3806_v55, %v3804_v16 }
 0xe1e   :  { %5175 = vtanh.f32 %v6901_v17 }
 0xe27   :  { %v5174_v20 = vpop.eup %5173 }
 0xe28   :  { %v3811_v12 = vmul.f32 %v5174_v20, %v3799_v39 }
 0xe2b   :  { %v5176_v25 = vpop.eup %5175 }
 0xe2c   :  { %v3812_v52 = vmul.f32 %v5176_v25, %v3802_v51 }
 0xe2e   :  { %v4614_v58 = vpack.c.bf16 %v3812_v52, %v3811_v12 }
 0xe30   :  { %4615 = vst [vmem:[#allocation2 + $0x8] sm:$0xff] %v4614_v58  }
 0xe37   :  { %v4886_v59 = vld [vmem:[#allocation2 + $0x8] sm:$0xff]  }
 0xe38   :  { %3876 = vmatmul.mubr.bf16.vlgmr.msra.gmra.mxu0 %v4886_v59  ;;  %3919 = vmatmul.mubr.bf16.vlgmr.msra.gmra.mxu1 %v4886_v59 }
 0xe39   :  { %3998 = vmatpush1.bf16.msra.mxu0 %v6666_v27  ;;  %4041 = vmatpush1.bf16.msra.mxu1 %v6669_v15 }
 0xe3a   :  { %3999 = vmatprep.subr.bf16.mxu0 %v6672_v5  ;;  %4042 = vmatprep.subr.bf16.mxu1 %v6675_v53  ;;  %v7229_v53 = vld [vmem:[#allocation58_spill] sm:$0xff] }
 0xe3b   :  { %4029 = vmatprep.mubr.bf16.mxu0 %v7081_v35  ;;  %4072 = vmatprep.mubr.bf16.mxu1 %v7081_v35  ;;  %v7228_v35 = vld [vmem:[#allocation55_spill] sm:$0xff] }
 0xe3c   :  { %v2512_v27 = vadd.f32 %v7228_v35, %v6506_v18 }
 0xe3d   :  { %4000 = vmatpush1.bf16.msra.mxu0 %v6680_v3  ;;  %4043 = vmatpush1.bf16.msra.mxu1 %v6683_v4  ;;  %v2514_v3 = vadd.f32 %v7229_v53, %v6514_v21  ;;  %v7230_v4 = vld [vmem:[#allocation59_spill] sm:$0xff]  ;;  %v4888_v53 = vld [vmem:[%s7018_s7 + $0x38] sm:$0xff]  }
 0xe3e   :  { %4001 = vmatprep.subr.bf16.mxu0 %v6748_v13  ;;  %4044 = vmatprep.subr.bf16.mxu1 %v6751_v10  ;;  %v2627_v13 = vadd.f32 %v7230_v4, %v6518_v14  ;;  %v4889_v4 = vld [vmem:[%s7018_s7 + $0x30] sm:$0xff]  }
 0xe41   :  { %4002 = vmatpush1.bf16.msra.mxu0 %v6754_v60  ;;  %4045 = vmatpush1.bf16.msra.mxu1 %v6757_v61 }
 0xe42   :  { %4003 = vmatprep.subr.bf16.mxu0 %v6760_v57  ;;  %4046 = vmatprep.subr.bf16.mxu1 %v6763_v54  ;;  %v7231_v57 = vld [vmem:[#allocation53_spill] sm:$0xff] }
 0xe43   :  { %v2516_v54 = vadd.f32 %v7231_v57, %v6506_v18  ;;  %v4894_v57 = vld [vmem:[%s7018_s7 + $0x8] sm:$0xff]  }
 0xe45   :  { %4004 = vmatpush1.bf16.msra.mxu0 %v6766_v45  ;;  %4047 = vmatpush1.bf16.msra.mxu1 %v6769_v46 }
 0xe46   :  { %4005 = vmatprep.subr.bf16.mxu0 %v6772_v33  ;;  %4048 = vmatprep.subr.bf16.mxu1 %v6775_v0 }
 0xe49   :  { %4006 = vmatpush1.bf16.msra.mxu0 %v6778_v28  ;;  %4049 = vmatpush1.bf16.msra.mxu1 %v6781_v30  ;;  %v7232_v28 = vld [vmem:[#allocation60_spill] sm:$0xff] }
 0xe4a   :  { %4007 = vmatprep.subr.bf16.mxu0 %v6784_v19  ;;  %4050 = vmatprep.subr.bf16.mxu1 %v6787_v50  ;;  %v2518_v30 = vadd.f32 %v7232_v28, %v6514_v21  ;;  %v7237_v28 = vld [vmem:[#allocation66_spill] sm:$0xff] }
 0xe4d   :  { %4008 = vmatpush1.bf16.msra.mxu0 %v6790_v6  ;;  %4051 = vmatpush1.bf16.msra.mxu1 %v6793_v62  ;;  %v7233_v62 = vld [vmem:[#allocation62_spill] sm:$0xff] }
 0xe4e   :  { %4009 = vmatprep.subr.bf16.mxu0 %v6796_v26  ;;  %4052 = vmatprep.subr.bf16.mxu1 %v6799_v29  ;;  %v2631_v26 = vadd.f32 %v7233_v62, %v6518_v14 }
 0xe51   :  { %4010 = vmatpush1.bf16.msra.mxu0 %v6802_v8  ;;  %4053 = vmatpush1.bf16.msra.mxu1 %v6805_v1 }
 0xe52   :  { %4011 = vmatprep.subr.bf16.mxu0 %v6808_v2  ;;  %4054 = vmatprep.subr.bf16.mxu1 %v6811_v11  ;;  %v7234_v2 = vld [vmem:[#allocation56_spill] sm:$0xff] }
 0xe53   :  { %v2625_v11 = vadd.f32 %v7234_v2, %v6538_v9 }
 0xe55   :  { %4012 = vmatpush1.bf16.msra.mxu0 %v6814_v42  ;;  %4055 = vmatpush1.bf16.msra.mxu1 %v6817_v23  ;;  %v7235_v42 = vld [vmem:[#allocation57_spill] sm:$0xff] }
 0xe56   :  { %v2629_v23 = vadd.f32 %v7235_v42, %v6538_v9 }
 0xef8   :  { %v3877_v15 = vpop.f32.mrf.mxu0  ;;  %v3920_v5 = vpop.f32.mrf.mxu1 }
 0xef9   :  { %v3929_v10 = vadd.f32 %v3877_v15, %v2512_v27  ;;  %v3931_v38 = vadd.f32 %v3920_v5, %v2625_v11 }
 0xefa   :  { %v3879_v60 = vpop.f32.mrf.mxu0  ;;  %v3922_v61 = vpop.f32.mrf.mxu1 }
 0xefb   :  { %5177 = vtanh.f32 %v3929_v10  ;;  %v3930_v45 = vadd.f32 %v3879_v60, %v2514_v3  ;;  %v3932_v46 = vadd.f32 %v3922_v61, %v2627_v13  ;;  %v5374_v3 = vmov 0.0   ;;  %v4890_v13 = vld [vmem:[%s7018_s7 + $0x28] sm:$0xff]   ;;  %v4891_v10 = vld [vmem:[%s7018_s7 + $0x20] sm:$0xff]   ;;  %v4892_v60 = vld [vmem:[%s7018_s7 + $0x18] sm:$0xff]  }
 0xefc   :  { %v3881_v33 = vpop.f32.mrf.mxu0  ;;  %v3924_v0 = vpop.f32.mrf.mxu1  ;;  %4635 = vmatprep.subr.bf16.mxu0 %v5374_v3  ;;  %v4893_v61 = vld [vmem:[%s7018_s7 + $0x10] sm:$0xff]  }
 0xefd   :  { %5179 = vtanh.f32 %v3930_v45  ;;  %v3933_v19 = vadd.f32 %v3881_v33, %v2516_v54  ;;  %v3935_v31 = vadd.f32 %v3924_v0, %v2629_v23  ;;  %v4895_v54 = vld [vmem:[%s7018_s7] sm:$0xff]   ;;  %v7236_v45 = vld [vmem:[#allocation63_spill] sm:$0xff]  ;;  %v7240_v23 = vld [vmem:[#allocation16_spill] sm:$0xff] }
 0xefe   :  { %5181 = vtanh.f32 %v3932_v46  ;;  %v3883_v50 = vpop.f32.mrf.mxu0  ;;  %v3926_v6 = vpop.f32.mrf.mxu1  ;;  %v2522_v46 = vadd.f32 %v7236_v45, %v6506_v18 }
 0xeff   :  { %5183 = vtanh.f32 %v3933_v19  ;;  %v3934_v29 = vadd.f32 %v3883_v50, %v2518_v30  ;;  %v3936_v8 = vadd.f32 %v3926_v6, %v2631_v26  ;;  %v2524_v30 = vadd.f32 %v7237_v28, %v6514_v21  ;;  %v7238_v19 = vld [vmem:[#allocation67_spill] sm:$0xff] }
 0xf00   :  { %v2637_v50 = vadd.f32 %v7238_v19, %v6518_v14 }
 0xf01   :  { %5185 = vtanh.f32 %v3934_v29  ;;  %v7239_v29 = vld [vmem:[#allocation61_spill] sm:$0xff] }
 0xf02   :  { %5187 = vtanh.f32 %v3936_v8  ;;  %v2526_v8 = vadd.f32 %v7239_v29, %v6506_v18  ;;  %v7242_v18 = vld [vmem:[#allocation64_spill] sm:$0xff] }
 0xf03   :  { %5189 = vtanh.f32 %v3931_v38 }
 0xf04   :  { %5191 = vtanh.f32 %v3935_v31 }
 0xf08   :  { %v5178_v1 = vpop.eup %5177 }
 0xf09   :  { %v3945_v32 = vmul.f32 0.5, %v5178_v1 }
 0xf0a   :  { %v5180_v7 = vpop.eup %5179 }
 0xf0b   :  { %v5182_v47 = vpop.eup %5181  ;;  %v3951_v44 = vadd.f32 0.5, %v3945_v32  ;;  %v3946_v36 = vmul.f32 0.5, %v5180_v7  ;;  %v2528_v32 = vadd.f32 %v7240_v23, %v6514_v21  ;;  %v7241_v7 = vld [vmem:[#allocation68_spill] sm:$0xff]  ;;  %v7243_v21 = vld [vmem:[#allocation65_spill] sm:$0xff] }
 0xf0c   :  { %v5184_v22 = vpop.eup %5183  ;;  %v2641_v38 = vadd.f32 %v7241_v7, %v6518_v14 }
 0xf0d   :  { %v3952_v49 = vadd.f32 0.5, %v3946_v36  ;;  %v3959_v24 = vmul.f32 %v5182_v47, %v3951_v44  ;;  %v3948_v63 = vmul.f32 0.5, %v5184_v22 }
 0xf0e   :  { %v5186_v34 = vpop.eup %5185 }
 0xf0f   :  { %v3957_v48 = vmul.f32 %v3952_v49, %v6897_v43  ;;  %v3954_v55 = vadd.f32 0.5, %v3948_v63  ;;  %v3949_v16 = vmul.f32 0.5, %v5186_v34  ;;  %v5188_v56 = vpop.eup %5187  ;;  %v2635_v49 = vadd.f32 %v7242_v18, %v6538_v9 }
 0xf10   :  { %v5190_v51 = vpop.eup %5189  ;;  %v2639_v34 = vadd.f32 %v7243_v21, %v6538_v9 }
 0xf11   :  { %v6953_v37 = vadd.f32 %v3959_v24, %v3957_v48  ;;  %v3955_v40 = vadd.f32 0.5, %v3949_v16  ;;  %v3960_v20 = vmul.f32 %v5188_v56, %v3954_v55  ;;  %v5192_v25 = vpop.eup %5191  ;;  %v3947_v12 = vmul.f32 0.5, %v5190_v51 }
 0xf12   :  { %v3950_v43 = vmul.f32 0.5, %v5192_v25 }
 0xf13   :  { %v3958_v41 = vmul.f32 %v3955_v40, %v6901_v17  ;;  %5193 = vtanh.f32 %v6953_v37  ;;  %v3953_v58 = vadd.f32 0.5, %v3947_v12 }
 0xf14   :  { %v3956_v59 = vadd.f32 0.5, %v3950_v43 }
 0xf15   :  { %v6957_v39 = vadd.f32 %v3960_v20, %v3958_v41 }
 0xf17   :  { %5195 = vtanh.f32 %v6957_v39 }
 0xf20   :  { %v5194_v52 = vpop.eup %5193 }
 0xf21   :  { %v3965_v27 = vmul.f32 %v5194_v52, %v3953_v58 }
 0xf24   :  { %v5196_v35 = vpop.eup %5195 }
 0xf25   :  { %v3966_v15 = vmul.f32 %v5196_v35, %v3956_v59 }
 0xf27   :  { %v4619_v5 = vpack.c.bf16 %v3966_v15, %v3965_v27 }
 0xf29   :  { %4620 = vst [vmem:[#allocation2 + $0x8] sm:$0xff] %v4619_v5  }
 0xf30   :  { %v4887_v17 = vld [vmem:[#allocation2 + $0x8] sm:$0xff]  }
 0xf31   :  { %4030 = vmatmul.mubr.bf16.vlgmr.msra.gmra.mxu0 %v4887_v17  ;;  %4073 = vmatmul.mubr.bf16.vlgmr.msra.gmra.mxu1 %v4887_v17 }
 0xf32   :  { %4636 = vmatpush3.bf16.msra.mxu0 %v4888_v53  ;;  %4651 = vmatprep.mubr.msk.bf16.mxu0 %vm5375_vm0, %v5374_v3 }
 0xf33   :  { %4637 = vmatprep.subr.bf16.mxu0 %v5374_v3 }
 0xf36   :  { %4638 = vmatpush3.bf16.msra.mxu0 %v4889_v4 }
 0xf37   :  { %4639 = vmatprep.subr.bf16.mxu0 %v5374_v3 }
 0xf3a   :  { %4640 = vmatpush3.bf16.msra.mxu0 %v4890_v13 }
 0xf3b   :  { %4641 = vmatprep.subr.bf16.mxu0 %v5374_v3 }
 0xf3e   :  { %4642 = vmatpush3.bf16.msra.mxu0 %v4891_v10 }
 0xf3f   :  { %4643 = vmatprep.subr.bf16.mxu0 %v5374_v3 }
 0xf42   :  { %4644 = vmatpush3.bf16.msra.mxu0 %v4892_v60 }
 0xf43   :  { %4645 = vmatprep.subr.bf16.mxu0 %v5374_v3 }
 0xf46   :  { %4646 = vmatpush3.bf16.msra.mxu0 %v4893_v61 }
 0xf47   :  { %4647 = vmatprep.subr.bf16.mxu0 %v5374_v3 }
 0xf4a   :  { %4648 = vmatpush3.bf16.msra.mxu0 %v4894_v57 }
 0xf4b   :  { %4649 = vmatprep.subr.bf16.mxu0 %v5374_v3 }
 0xf4e   :  { %4650 = vmatpush3.bf16.msra.mxu0 %v4895_v54 }
 0xff1   :  { %v4031_v33 = vpop.f32.mrf.mxu0  ;;  %v4074_v0 = vpop.f32.mrf.mxu1 }
 0xff2   :  { %v4083_v6 = vadd.f32 %v4031_v33, %v2522_v46  ;;  %v4085_v24 = vadd.f32 %v4074_v0, %v2635_v49 }
 0xff3   :  { %v4033_v62 = vpop.f32.mrf.mxu0  ;;  %v4076_v26 = vpop.f32.mrf.mxu1 }
 0xff4   :  { %5197 = vtanh.f32 %v4083_v6  ;;  %v4084_v1 = vadd.f32 %v4033_v62, %v2524_v30  ;;  %v4086_v2 = vadd.f32 %v4076_v26, %v2637_v50 }
 0xff5   :  { %v4035_v11 = vpop.f32.mrf.mxu0  ;;  %v4078_v42 = vpop.f32.mrf.mxu1 }
 0xff6   :  { %5199 = vtanh.f32 %v4084_v1  ;;  %v4087_v47 = vadd.f32 %v4035_v11, %v2526_v8  ;;  %v4089_v56 = vadd.f32 %v4078_v42, %v2639_v34 }
 0xff7   :  { %5201 = vtanh.f32 %v4086_v2  ;;  %v4037_v44 = vpop.f32.mrf.mxu0  ;;  %v4080_v36 = vpop.f32.mrf.mxu1 }
 0xff8   :  { %5203 = vtanh.f32 %v4087_v47  ;;  %v4088_v31 = vadd.f32 %v4037_v44, %v2528_v32  ;;  %v4090_v22 = vadd.f32 %v4080_v36, %v2641_v38 }
 0xffa   :  { %5205 = vtanh.f32 %v4088_v31 }
 0xffb   :  { %5207 = vtanh.f32 %v4090_v22 }
 0xffc   :  { %5209 = vtanh.f32 %v4085_v24 }
 0xffd   :  { %5211 = vtanh.f32 %v4089_v56 }
0x1001   :  { %v5198_v63 = vpop.eup %5197 }
0x1002   :  { %v4099_v48 = vmul.f32 0.5, %v5198_v63 }
0x1003   :  { %v5200_v14 = vpop.eup %5199 }
0x1004   :  { %v5202_v55 = vpop.eup %5201  ;;  %v4105_v16 = vadd.f32 0.5, %v4099_v48  ;;  %v4100_v40 = vmul.f32 0.5, %v5200_v14 }
0x1005   :  { %v5204_v41 = vpop.eup %5203 }
0x1006   :  { %v4106_v20 = vadd.f32 0.5, %v4100_v40  ;;  %v4113_v51 = vmul.f32 %v5202_v55, %v4105_v16  ;;  %v4102_v25 = vmul.f32 0.5, %v5204_v41 }
0x1007   :  { %v5206_v12 = vpop.eup %5205 }
0x1008   :  { %v4111_v43 = vmul.f32 %v4106_v20, %v6953_v37  ;;  %v4108_v52 = vadd.f32 0.5, %v4102_v25  ;;  %v4103_v58 = vmul.f32 0.5, %v5206_v12  ;;  %v5208_v59 = vpop.eup %5207 }
0x1009   :  { %v5210_v17 = vpop.eup %5209 }
0x100a   :  { %v4115_v35 = vadd.f32 %v4113_v51, %v4111_v43  ;;  %v4109_v9 = vadd.f32 0.5, %v4103_v58  ;;  %v4114_v27 = vmul.f32 %v5208_v59, %v4108_v52  ;;  %v4101_v53 = vmul.f32 0.5, %v5210_v17  ;;  %v5212_v3 = vpop.eup %5211 }
0x100b   :  { %v4104_v13 = vmul.f32 0.5, %v5212_v3 }
0x100c   :  { %5213 = vtanh.f32 %v4115_v35  ;;  %v4112_v15 = vmul.f32 %v4109_v9, %v6957_v39  ;;  %v4107_v4 = vadd.f32 0.5, %v4101_v53  ;;  %v4464_v39 = vld [vmem:[%s7019_s8] ss:$0 sm:$0xff] }
0x100d   :  { %v4110_v37 = vadd.f32 0.5, %v4104_v13 }
0x100e   :  { %v4116_v5 = vadd.f32 %v4114_v27, %v4112_v15 }
0x1010   :  { %5215 = vtanh.f32 %v4116_v5 }
0x1019   :  { %v5214_v10 = vpop.eup %5213 }
0x101a   :  { %v4119_v60 = vmul.f32 %v5214_v10, %v4107_v4 }
0x101d   :  { %v5216_v61 = vpop.eup %5215 }
0x101e   :  { %v4120_v57 = vmul.f32 %v5216_v61, %v4110_v37 }
0x1020   :  { %v4624_v54 = vpack.c.bf16 %v4120_v57, %v4119_v60 }
0x1022   :  { %4625 = vst [vmem:[#allocation2 + $0x8] sm:$0xff] %v4624_v54  }
0x1029   :  { %v4896_v45 = vld [vmem:[#allocation2 + $0x8] sm:$0xff]  }
0x102a   :  { %4652 = vmatmul.mubr.bf16.vlgmr.msra.gmra.mxu0 %v4896_v45 }
0x10ea   :  { %v4249_v46 = vpop.f32.mrf.mxu0 }
0x10eb   :  { %v4250_v33 = vadd.f32 %v4464_v39, %v4249_v46 }
0x10ec   :  { %v4653_v0 = vpop.f32.mrf.mxu0 }
0x10ed   :  { %4256 = vst [vmem:[%s7020_s9] sm:$0xff] %v4250_v33 }
0x10ee   :  { %v4252_v28 = vpop.f32.mrf.mxu0 }
0x10ef   :  { %v4253_v30 = vadd.f32 %v4464_v39, %v4252_v28 }
0x10f0   :  { %v4654_v19 = vpop.f32.mrf.mxu0 }
0x10f1   :  { %4257 = vst [vmem:[%s7020_s9 + $0x8] sm:$0xff] %v4253_v30 }
0x10f2   :  { %4262 = vsyncpa [#allocation7], 1 }
0x10f3   :  { %4263 = vsyncpa [#allocation9], 1 }
0x10f4   :  { %4264 = vsyncpa [#allocation12], 1 }

// kernel: forward.1
= control target key start
LH: loop header
LB: loop body
LE: loop exit
PB: predicated region body
PF: predicated region fallthrough
CT: control target
= control target key end

     0   :  { %14 = vsyncpa [#allocation7], 0  ;;  %s7011_s0 = inlined_call_operand.vmem [shape: bf16[128,128], index: 0, kind: input, shape index: {}]   ;;  %s7012_s1 = inlined_call_operand.hbm [shape: bf16[128,512], index: 1, kind: input, shape index: {}]   ;;  %s7013_s2 = inlined_call_operand.hbm [shape: bf16[128,512], index: 2, kind: input, shape index: {}]   ;;  %s7014_s3 = inlined_call_operand.vmem [shape: f32[1,512], index: 3, kind: input, shape index: {}]   ;;  %s7015_s4 = inlined_call_operand.hbm [shape: bf16[128,512], index: 4, kind: input, shape index: {}]   ;;  %s7016_s5 = inlined_call_operand.hbm [shape: bf16[128,512], index: 5, kind: input, shape index: {}]   ;;  %s7017_s6 = inlined_call_operand.vmem [shape: f32[1,512], index: 6, kind: input, shape index: {}]   ;;  %s7018_s7 = inlined_call_operand.vmem [shape: bf16[128,128], index: 7, kind: input, shape index: {}]   ;;  %s7019_s8 = inlined_call_operand.vmem [shape: f32[1,128], index: 8, kind: input, shape index: {}]   ;;  %s7020_s9 = inlined_call_operand.vmem [shape: f32[16,128], index: 9, kind: output, shape index: {}]  }
   0x1   :  { %15 = vsyncpa [#allocation9], 0 }
   0x2   :  { %16 = vsyncpa [#allocation12], 0  ;;  %s5367_s30 = smov [#allocation8]   ;;  %s5368_s11 = smov [#allocation6]  }
   0x3   :  { %s36_s10 = sshll.u32 %s5367_s30, 4  ;;  %s24_s12 = sshll.u32 %s5368_s11, 4  ;;  %s37_s10 = int_to_ptr.vmem [resolvable:$true] %s36_s10  ;;  %s25_s12 = int_to_ptr.vmem [resolvable:$true] %s24_s12 }
   0x4   :  { %s5289_s13 = scalar_lea.vmem %s37_s10, 4096  ;;  %p5294_p1 = scmp.lt.s32.totalorder %s37_s10, %s37_s10 }
   0x5   :  { %p5290_p0 = scmp.ne.s32.totalorder %s37_s10, %s5289_s13  ;;  %p5295_p2 = scmp.lt.s32.totalorder %s5289_s13, %s5289_s13 }
   0x7   :  { %p5296_p3 = por %p5295_p2, %p5294_p1 }
   0x9   :  { %p5297_p4 = pnand %p5296_p3, %p5290_p0 }
   0xb   :  { %5300 = shalt.err (!%p5297_p4)
}
   0xc   :  { %s5369_s14 = smov 256   ;;  %s5370_s15 = smov 16  }
   0xd   :  { %42 = dma.hbm_to_vmem [thread:$0]  %s7013_s2, 4096, %s37_s10, [#allocation9], %s5369_s14, %s5369_s14, %s5370_s15  }
   0xe   :  { %s5309_s18 = scalar_lea.vmem %s25_s12, 4096  ;;  %p5314_p6 = scmp.lt.s32.totalorder %s25_s12, %s25_s12 }
   0xf   :  { %p5310_p5 = scmp.ne.s32.totalorder %s25_s12, %s5309_s18  ;;  %p5315_p7 = scmp.lt.s32.totalorder %s5309_s18, %s5309_s18 }
  0x11   :  { %p5316_p8 = por %p5315_p7, %p5314_p6 }
  0x13   :  { %p5317_p9 = pnand %p5316_p8, %p5310_p5 }
  0x15   :  { %5320 = shalt.err (!%p5317_p9)
}
  0x16   :  { %30 = dma.hbm_to_vmem [thread:$0]  %s7012_s1, 4096, %s25_s12, [#allocation7], %s5369_s14, %s5369_s14, %s5370_s15  }
  0x17   :  { %s5371_s21 = smov [#allocation10]   ;;  %s5372_s23 = smov [#allocation11]  }
  0x18   :  { %s50_s22 = sshll.u32 %s5371_s21, 4  ;;  %s62_s24 = sshll.u32 %s5372_s23, 4  ;;  %s51_s22 = int_to_ptr.vmem [resolvable:$true] %s50_s22  ;;  %s63_s24 = int_to_ptr.vmem [resolvable:$true] %s62_s24 }
  0x19   :  { %s5329_s2 = scalar_lea.vmem %s51_s22, 4096  ;;  %p5334_p11 = scmp.lt.s32.totalorder %s51_s22, %s51_s22 }
  0x1a   :  { %p5330_p10 = scmp.ne.s32.totalorder %s51_s22, %s5329_s2  ;;  %p5335_p12 = scmp.lt.s32.totalorder %s5329_s2, %s5329_s2 }
  0x1c   :  { %p5336_p13 = por %p5335_p12, %p5334_p11 }
  0x1e   :  { %p5337_p0 = pnand %p5336_p13, %p5330_p10 }
  0x20   :  { %5340 = shalt.err (!%p5337_p0)
}
  0x21   :  { %56 = dma.hbm_to_vmem [thread:$0]  %s7015_s4, 4096, %s51_s22, [#allocation9], %s5369_s14, %s5369_s14, %s5370_s15  }
  0x22   :  { %s5349_s1 = scalar_lea.vmem %s63_s24, 4096  ;;  %p5354_p2 = scmp.lt.s32.totalorder %s63_s24, %s63_s24 }
  0x23   :  { %p5350_p1 = scmp.ne.s32.totalorder %s63_s24, %s5349_s1  ;;  %p5355_p3 = scmp.lt.s32.totalorder %s5349_s1, %s5349_s1 }
  0x25   :  { %p5356_p4 = por %p5355_p3, %p5354_p2 }
  0x27   :  { %p5357_p5 = pnand %p5356_p4, %p5350_p1 }
  0x29   :  { %5360 = shalt.err (!%p5357_p5)
}
  0x2a   :  { %68 = dma.hbm_to_vmem [thread:$0]  %s7016_s5, 4096, %s63_s24, [#allocation12], %s5369_s14, %s5369_s14, %s5370_s15  }
  0x2b   :  { %5361 = dma.done.wait [#allocation7], 4096  }
  0x2c   :  { %5362 = vsyncadd [#allocation7], 4294963200 }
  0x2d   :  { %5363 = dma.done.wait [#allocation9], 8192  }
  0x2e   :  { %5364 = vsyncadd [#allocation9], 4294959104 }
  0x2f   :  { %5365 = dma.done.wait [#allocation12], 4096  }
  0x30   :  { %5366 = vsyncadd [#allocation12], 4294963200  ;;  %v7025_v0 = vmov 0   ;;  %v4664_v1 = vld [vmem:[#allocation6 + $0xe4] ss:$16 sps:$4 sm:$0xff]   ;;  %v4719_v44 = vld [vmem:[%s7011_s0 + $0x8] sm:$0xff]  }
  0x31   :  { %410 = vmatprep.mubr.bf16.mxu0 %v7025_v0  ;;  %92 = vst [vmem:[#allocation2] sm:$0xf] %v7025_v0  ;;  %93 = vst [vmem:[#allocation2 + $0x4] sm:$0xf] %v7025_v0  ;;  %523 = vmatprep.mubr.bf16.mxu1 %v7025_v0  ;;  %v4666_v2 = vld [vmem:[#allocation6 + $0xec] ss:$16 sps:$4 sm:$0xff]  }
  0x32   :  { %94 = vst [vmem:[#allocation2 + $0x8] sm:$0xf] %v7025_v0  ;;  %95 = vst [vmem:[#allocation2 + $0xc] sm:$0xf] %v7025_v0  ;;  %378 = vmatprep.subr.bf16.mxu0 %v4664_v1  ;;  %v4668_v3 = vld [vmem:[#allocation6 + $0xe0] ss:$16 sps:$4 sm:$0xff]   ;;  %491 = vmatprep.subr.bf16.mxu1 %v4666_v2 }
  0x33   :  { %v4669_v4 = vld [vmem:[#allocation6 + $0xe8] ss:$16 sps:$4 sm:$0xff]   ;;  %v4670_v5 = vld [vmem:[#allocation6 + $0xc4] ss:$16 sps:$4 sm:$0xff]   ;;  %379 = vmatpush1.bf16.msra.mxu0 %v4668_v3  ;;  %v4672_v6 = vld [vmem:[#allocation6 + $0xcc] ss:$16 sps:$4 sm:$0xff]  }
  0x34   :  { %492 = vmatpush1.bf16.msra.mxu1 %v4669_v4  ;;  %v4674_v7 = vld [vmem:[#allocation6 + $0xc0] ss:$16 sps:$4 sm:$0xff]   ;;  %380 = vmatprep.subr.bf16.mxu0 %v4670_v5  ;;  %v4675_v8 = vld [vmem:[#allocation6 + $0xc8] ss:$16 sps:$4 sm:$0xff]   ;;  %v4676_v9 = vld [vmem:[#allocation6 + $0xa4] ss:$16 sps:$4 sm:$0xff]  }
  0x35   :  { %493 = vmatprep.subr.bf16.mxu1 %v4672_v6  ;;  %v4678_v10 = vld [vmem:[#allocation6 + $0xac] ss:$16 sps:$4 sm:$0xff]   ;;  %v4680_v11 = vld [vmem:[#allocation6 + $0xa0] ss:$16 sps:$4 sm:$0xff]   ;;  %v4681_v12 = vld [vmem:[#allocation6 + $0xa8] ss:$16 sps:$4 sm:$0xff]  }
  0x36   :  { %v4682_v13 = vld [vmem:[#allocation6 + $0x84] ss:$16 sps:$4 sm:$0xff]   ;;  %v4684_v14 = vld [vmem:[#allocation6 + $0x8c] ss:$16 sps:$4 sm:$0xff]   ;;  %v4686_v15 = vld [vmem:[#allocation6 + $0x80] ss:$16 sps:$4 sm:$0xff]  }
  0x37   :  { %381 = vmatpush1.bf16.msra.mxu0 %v4674_v7  ;;  %v4687_v16 = vld [vmem:[#allocation6 + $0x88] ss:$16 sps:$4 sm:$0xff]   ;;  %v4688_v17 = vld [vmem:[#allocation6 + $0x64] ss:$16 sps:$4 sm:$0xff]   ;;  %v4690_v18 = vld [vmem:[#allocation6 + $0x6c] ss:$16 sps:$4 sm:$0xff]  }
  0x38   :  { %494 = vmatpush1.bf16.msra.mxu1 %v4675_v8  ;;  %382 = vmatprep.subr.bf16.mxu0 %v4676_v9  ;;  %v4692_v19 = vld [vmem:[#allocation6 + $0x60] ss:$16 sps:$4 sm:$0xff]   ;;  %v4693_v20 = vld [vmem:[#allocation6 + $0x68] ss:$16 sps:$4 sm:$0xff]   ;;  %v4694_v21 = vld [vmem:[#allocation6 + $0x44] ss:$16 sps:$4 sm:$0xff]  }
  0x39   :  { %495 = vmatprep.subr.bf16.mxu1 %v4678_v10  ;;  %v4696_v22 = vld [vmem:[#allocation6 + $0x4c] ss:$16 sps:$4 sm:$0xff]   ;;  %v4698_v23 = vld [vmem:[#allocation6 + $0x40] ss:$16 sps:$4 sm:$0xff]   ;;  %v4699_v24 = vld [vmem:[#allocation6 + $0x48] ss:$16 sps:$4 sm:$0xff]  }
  0x3a   :  { %v4700_v25 = vld [vmem:[#allocation6 + $0x24] ss:$16 sps:$4 sm:$0xff]   ;;  %v4702_v26 = vld [vmem:[#allocation6 + $0x2c] ss:$16 sps:$4 sm:$0xff]   ;;  %v4704_v27 = vld [vmem:[#allocation6 + $0x20] ss:$16 sps:$4 sm:$0xff]  }
  0x3b   :  { %383 = vmatpush1.bf16.msra.mxu0 %v4680_v11  ;;  %v4705_v28 = vld [vmem:[#allocation6 + $0x28] ss:$16 sps:$4 sm:$0xff]   ;;  %v4706_v29 = vld [vmem:[#allocation6 + $0x4] ss:$16 sps:$4 sm:$0xff]   ;;  %v4708_v30 = vld [vmem:[#allocation6 + $0xc] ss:$16 sps:$4 sm:$0xff]   ;;  %v150_v11 = vlaneseq }
  0x3c   :  { %496 = vmatpush1.bf16.msra.mxu1 %v4681_v12  ;;  %384 = vmatprep.subr.bf16.mxu0 %v4682_v13  ;;  %v4710_v31 = vld [vmem:[#allocation6] ss:$16 sps:$4 sm:$0xff]   ;;  %v4711_v32 = vld [vmem:[#allocation6 + $0x8] ss:$16 sps:$4 sm:$0xff]   ;;  %v5456_v33 = vld [vmem:[#allocation8 + $0xe4] ss:$16 sps:$4 sm:$0xff]  }
  0x3d   :  { %497 = vmatprep.subr.bf16.mxu1 %v4684_v14  ;;  %v5458_v34 = vld [vmem:[#allocation8 + $0xec] ss:$16 sps:$4 sm:$0xff]   ;;  %v4712_v35 = vld [vmem:[%s7011_s0] sm:$0xff]   ;;  %v5465_v37 = vld [vmem:[#allocation8 + $0xe8] ss:$16 sps:$4 sm:$0xff]   ;;  %v5628_v12 = vshrl.u32 %v150_v11, 7 }
  0x3e   :  { %v5463_v36 = vld [vmem:[#allocation8 + $0xe0] ss:$16 sps:$4 sm:$0xff]   ;;  %v5469_v38 = vld [vmem:[#allocation8 + $0xc4] ss:$16 sps:$4 sm:$0xff]   ;;  %v5471_v39 = vld [vmem:[#allocation8 + $0xcc] ss:$16 sps:$4 sm:$0xff]  }
  0x3f   :  { %385 = vmatpush1.bf16.msra.mxu0 %v4686_v15  ;;  %v5473_v40 = vld [vmem:[#allocation8 + $0xc0] ss:$16 sps:$4 sm:$0xff]   ;;  %v5475_v41 = vld [vmem:[#allocation8 + $0xc8] ss:$16 sps:$4 sm:$0xff]   ;;  %v5479_v42 = vld [vmem:[#allocation8 + $0xa4] ss:$16 sps:$4 sm:$0xff]  }
  0x40   :  { %498 = vmatpush1.bf16.msra.mxu1 %v4687_v16  ;;  %386 = vmatprep.subr.bf16.mxu0 %v4688_v17  ;;  %v5483_v43 = vld [vmem:[#allocation8 + $0xac] ss:$16 sps:$4 sm:$0xff]   ;;  %v5492_v45 = vld [vmem:[#allocation8 + $0xa0] ss:$16 sps:$4 sm:$0xff]   ;;  %v5496_v46 = vld [vmem:[#allocation8 + $0xa8] ss:$16 sps:$4 sm:$0xff]  }
  0x41   :  { %499 = vmatprep.subr.bf16.mxu1 %v4690_v18  ;;  %v5498_v47 = vld [vmem:[#allocation8 + $0x84] ss:$16 sps:$4 sm:$0xff]   ;;  %v5500_v48 = vld [vmem:[#allocation8 + $0x8c] ss:$16 sps:$4 sm:$0xff]   ;;  %v5506_v49 = vld [vmem:[#allocation8 + $0x80] ss:$16 sps:$4 sm:$0xff]  }
  0x42   :  { %v5508_v50 = vld [vmem:[#allocation8 + $0x88] ss:$16 sps:$4 sm:$0xff]   ;;  %v5512_v51 = vld [vmem:[#allocation8 + $0x64] ss:$16 sps:$4 sm:$0xff]   ;;  %v5514_v52 = vld [vmem:[#allocation8 + $0x6c] ss:$16 sps:$4 sm:$0xff]  }
  0x43   :  { %387 = vmatpush1.bf16.msra.mxu0 %v4692_v19  ;;  %v4726_v53 = vld [vmem:[%s7011_s0 + $0x10] sm:$0xff]   ;;  %v5523_v55 = vld [vmem:[#allocation8 + $0x68] ss:$16 sps:$4 sm:$0xff]   ;;  %v5529_v57 = vld [vmem:[#allocation8 + $0x4c] ss:$16 sps:$4 sm:$0xff]   ;;  %7029 = vst [vmem:[#allocation16_spill] sm:$0xff] %v5628_v12 }
  0x44   :  { %500 = vmatpush1.bf16.msra.mxu1 %v4693_v20  ;;  %388 = vmatprep.subr.bf16.mxu0 %v4694_v21  ;;  %v5519_v54 = vld [vmem:[#allocation8 + $0x60] ss:$16 sps:$4 sm:$0xff]   ;;  %v5527_v56 = vld [vmem:[#allocation8 + $0x44] ss:$16 sps:$4 sm:$0xff]   ;;  %v5533_v59 = vld [vmem:[#allocation8 + $0x48] ss:$16 sps:$4 sm:$0xff]  }
  0x45   :  { %501 = vmatprep.subr.bf16.mxu1 %v4696_v22  ;;  %v5531_v58 = vld [vmem:[#allocation8 + $0x40] ss:$16 sps:$4 sm:$0xff]   ;;  %v5537_v60 = vld [vmem:[#allocation8 + $0x24] ss:$16 sps:$4 sm:$0xff]   ;;  %v5539_v61 = vld [vmem:[#allocation8 + $0x2c] ss:$16 sps:$4 sm:$0xff]  }
  0x46   :  { %v4733_v62 = vld [vmem:[%s7011_s0 + $0x18] sm:$0xff]   ;;  %v5548_v63 = vld [vmem:[#allocation8 + $0x20] ss:$16 sps:$4 sm:$0xff]   ;;  %v5552_v2 = vld [vmem:[#allocation8 + $0x4] ss:$16 sps:$4 sm:$0xff]   ;;  %v7024_v17 = vsub.s32 0, %v5628_v12 }
  0x47   :  { %389 = vmatpush1.bf16.msra.mxu0 %v4698_v23  ;;  %v5550_v1 = vld [vmem:[#allocation8 + $0x28] ss:$16 sps:$4 sm:$0xff]   ;;  %v5554_v3 = vld [vmem:[#allocation8 + $0xc] ss:$16 sps:$4 sm:$0xff]   ;;  %v5560_v4 = vld [vmem:[#allocation8] ss:$16 sps:$4 sm:$0xff]  }
  0x48   :  { %502 = vmatpush1.bf16.msra.mxu1 %v4699_v24  ;;  %390 = vmatprep.subr.bf16.mxu0 %v4700_v25  ;;  %v5562_v5 = vld [vmem:[#allocation8 + $0x8] ss:$16 sps:$4 sm:$0xff]   ;;  %v4740_v6 = vld [vmem:[%s7011_s0 + $0x20] sm:$0xff]   ;;  %v4754_v8 = vld [vmem:[%s7011_s0 + $0x30] sm:$0xff]   ;;  %v7021_v18 = vsub.s32 2, %v5628_v12  ;;  %v7023_v22 = vsub.s32 1, %v5628_v12 }
  0x49   :  { %503 = vmatprep.subr.bf16.mxu1 %v4702_v26  ;;  %v4747_v7 = vld [vmem:[%s7011_s0 + $0x28] sm:$0xff]   ;;  %v4761_v9 = vld [vmem:[%s7011_s0 + $0x38] sm:$0xff]   ;;  %v4768_v10 = vld [vmem:[#allocation2] sm:$0xff]   ;;  %v7022_v23 = vsub.s32 3, %v5628_v12  ;;  %vm5375_vm0 = vmmov 0  }
  0x4a   :  { %v148_v19 = vld [vmem:[%s7014_s3] sm:$0xf] }
  0x4b   :  { %391 = vmatpush1.bf16.msra.mxu0 %v4704_v27  ;;  %v5655_v26 = vrot.slane %v148_v19, %v7024_v17  ;;  %v5659_v27 = vrot.slane %v148_v19, %v7021_v18 }
  0x4c   :  { %504 = vmatpush1.bf16.msra.mxu1 %v4705_v28  ;;  %392 = vmatprep.subr.bf16.mxu0 %v4706_v29 }
  0x4d   :  { %505 = vmatprep.subr.bf16.mxu1 %v4708_v30  ;;  %v5663_v30 = vrot.slane %v148_v19, %v7023_v22 }
  0x4f   :  { %393 = vmatpush1.bf16.msra.mxu0 %v4710_v31  ;;  %v5667_v31 = vrot.slane %v148_v19, %v7022_v23 }
  0x50   :  { %506 = vmatpush1.bf16.msra.mxu1 %v4711_v32  ;;  %881 = vmatprep.subr.bf16.mxu0 %v5456_v33 }
  0x51   :  { %924 = vmatprep.subr.bf16.mxu1 %v5458_v34 }
  0x52   :  { %411 = vmatmul.mubr.bf16.vlgmr.msra.gmra.mxu0 %v4712_v35 }
  0x53   :  { %524 = vmatmul.mubr.bf16.vlgmr.msra.gmra.mxu1 %v4712_v35  ;;  %882 = vmatpush1.bf16.msra.mxu0 %v5463_v36 }
  0x54   :  { %925 = vmatpush1.bf16.msra.mxu1 %v5465_v37  ;;  %420 = vmatprep.mubr.bf16.mxu0 %v7025_v0 }
  0x55   :  { %533 = vmatprep.mubr.bf16.mxu1 %v7025_v0  ;;  %883 = vmatprep.subr.bf16.mxu0 %v5469_v38 }
  0x56   :  { %926 = vmatprep.subr.bf16.mxu1 %v5471_v39 }
  0x57   :  { %884 = vmatpush1.bf16.msra.mxu0 %v5473_v40 }
  0x58   :  { %927 = vmatpush1.bf16.msra.mxu1 %v5475_v41  ;;  %885 = vmatprep.subr.bf16.mxu0 %v5479_v42 }
  0x59   :  { %928 = vmatprep.subr.bf16.mxu1 %v5483_v43 }
  0x5a   :  { %421 = vmatmul.mubr.bf16.gmra.mxu0 %v4719_v44 }
  0x5b   :  { %534 = vmatmul.mubr.bf16.gmra.mxu1 %v4719_v44  ;;  %430 = vmatprep.mubr.bf16.mxu0 %v7025_v0 }
  0x5c   :  { %543 = vmatprep.mubr.bf16.mxu1 %v7025_v0  ;;  %886 = vmatpush1.bf16.msra.mxu0 %v5492_v45 }
  0x5d   :  { %929 = vmatpush1.bf16.msra.mxu1 %v5496_v46  ;;  %887 = vmatprep.subr.bf16.mxu0 %v5498_v47 }
  0x5e   :  { %930 = vmatprep.subr.bf16.mxu1 %v5500_v48 }
  0x60   :  { %888 = vmatpush1.bf16.msra.mxu0 %v5506_v49 }
  0x61   :  { %931 = vmatpush1.bf16.msra.mxu1 %v5508_v50  ;;  %889 = vmatprep.subr.bf16.mxu0 %v5512_v51 }
  0x62   :  { %932 = vmatprep.subr.bf16.mxu1 %v5514_v52  ;;  %431 = vmatmul.mubr.bf16.gmra.mxu0 %v4726_v53 }
  0x63   :  { %544 = vmatmul.mubr.bf16.gmra.mxu1 %v4726_v53  ;;  %440 = vmatprep.mubr.bf16.mxu0 %v7025_v0 }
  0x64   :  { %553 = vmatprep.mubr.bf16.mxu1 %v7025_v0  ;;  %890 = vmatpush1.bf16.msra.mxu0 %v5519_v54 }
  0x65   :  { %933 = vmatpush1.bf16.msra.mxu1 %v5523_v55  ;;  %891 = vmatprep.subr.bf16.mxu0 %v5527_v56 }
  0x66   :  { %934 = vmatprep.subr.bf16.mxu1 %v5529_v57 }
  0x68   :  { %892 = vmatpush1.bf16.msra.mxu0 %v5531_v58 }
  0x69   :  { %935 = vmatpush1.bf16.msra.mxu1 %v5533_v59  ;;  %893 = vmatprep.subr.bf16.mxu0 %v5537_v60 }
  0x6a   :  { %936 = vmatprep.subr.bf16.mxu1 %v5539_v61  ;;  %441 = vmatmul.mubr.bf16.gmra.mxu0 %v4733_v62 }
  0x6b   :  { %554 = vmatmul.mubr.bf16.gmra.mxu1 %v4733_v62  ;;  %450 = vmatprep.mubr.bf16.mxu0 %v7025_v0 }
  0x6c   :  { %563 = vmatprep.mubr.bf16.mxu1 %v7025_v0  ;;  %894 = vmatpush1.bf16.msra.mxu0 %v5548_v63 }
  0x6d   :  { %937 = vmatpush1.bf16.msra.mxu1 %v5550_v1  ;;  %895 = vmatprep.subr.bf16.mxu0 %v5552_v2 }
  0x6e   :  { %938 = vmatprep.subr.bf16.mxu1 %v5554_v3 }
  0x70   :  { %896 = vmatpush1.bf16.msra.mxu0 %v5560_v4 }
  0x71   :  { %939 = vmatpush1.bf16.msra.mxu1 %v5562_v5  ;;  %1040 = vmatprep.subr.bf16.mxu0 %v5456_v33 }
  0x72   :  { %1083 = vmatprep.subr.bf16.mxu1 %v5458_v34  ;;  %451 = vmatmul.mubr.bf16.gmra.mxu0 %v4740_v6 }
  0x73   :  { %564 = vmatmul.mubr.bf16.gmra.mxu1 %v4740_v6  ;;  %460 = vmatprep.mubr.bf16.mxu0 %v7025_v0 }
  0x74   :  { %573 = vmatprep.mubr.bf16.mxu1 %v7025_v0 }
  0x7a   :  { %461 = vmatmul.mubr.bf16.gmra.mxu0 %v4747_v7 }
  0x7b   :  { %574 = vmatmul.mubr.bf16.gmra.mxu1 %v4747_v7  ;;  %470 = vmatprep.mubr.bf16.mxu0 %v7025_v0 }
  0x7c   :  { %583 = vmatprep.mubr.bf16.mxu1 %v7025_v0 }
  0x82   :  { %471 = vmatmul.mubr.bf16.gmra.mxu0 %v4754_v8 }
  0x83   :  { %584 = vmatmul.mubr.bf16.gmra.mxu1 %v4754_v8  ;;  %480 = vmatprep.mubr.bf16.mxu0 %v7025_v0 }
  0x84   :  { %593 = vmatprep.mubr.bf16.mxu1 %v7025_v0 }
  0x8a   :  { %481 = vmatmul.mubr.bf16.gmra.mxu0 %v4761_v9 }
  0x8b   :  { %594 = vmatmul.mubr.bf16.gmra.mxu1 %v4761_v9  ;;  %913 = vmatprep.mubr.bf16.mxu0 %v7025_v0 }
  0x8c   :  { %956 = vmatprep.mubr.bf16.mxu1 %v7025_v0 }
  0x92   :  { %914 = vmatmul.mubr.bf16.vlgmr.msra.gmra.mxu0 %v4768_v10 }
  0x93   :  { %957 = vmatmul.mubr.bf16.vlgmr.msra.gmra.mxu1 %v4768_v10  ;;  %1041 = vmatpush1.bf16.msra.mxu0 %v5463_v36 }
  0x94   :  { %1084 = vmatpush1.bf16.msra.mxu1 %v5465_v37  ;;  %1042 = vmatprep.subr.bf16.mxu0 %v5469_v38 }
  0x95   :  { %1085 = vmatprep.subr.bf16.mxu1 %v5471_v39  ;;  %1072 = vmatprep.mubr.bf16.mxu0 %v7025_v0 }
  0x96   :  { %1115 = vmatprep.mubr.bf16.mxu1 %v7025_v0 }
  0x97   :  { %1043 = vmatpush1.bf16.msra.mxu0 %v5473_v40 }
  0x98   :  { %1086 = vmatpush1.bf16.msra.mxu1 %v5475_v41  ;;  %1044 = vmatprep.subr.bf16.mxu0 %v5479_v42 }
  0x99   :  { %1087 = vmatprep.subr.bf16.mxu1 %v5483_v43 }
  0x9b   :  { %1045 = vmatpush1.bf16.msra.mxu0 %v5492_v45 }
  0x9c   :  { %1088 = vmatpush1.bf16.msra.mxu1 %v5496_v46  ;;  %1046 = vmatprep.subr.bf16.mxu0 %v5498_v47 }
  0x9d   :  { %1089 = vmatprep.subr.bf16.mxu1 %v5500_v48 }
  0x9f   :  { %1047 = vmatpush1.bf16.msra.mxu0 %v5506_v49 }
  0xa0   :  { %1090 = vmatpush1.bf16.msra.mxu1 %v5508_v50  ;;  %1048 = vmatprep.subr.bf16.mxu0 %v5512_v51 }
  0xa1   :  { %1091 = vmatprep.subr.bf16.mxu1 %v5514_v52 }
  0xa3   :  { %1049 = vmatpush1.bf16.msra.mxu0 %v5519_v54 }
  0xa4   :  { %1092 = vmatpush1.bf16.msra.mxu1 %v5523_v55  ;;  %1050 = vmatprep.subr.bf16.mxu0 %v5527_v56 }
  0xa5   :  { %1093 = vmatprep.subr.bf16.mxu1 %v5529_v57 }
  0xa7   :  { %1051 = vmatpush1.bf16.msra.mxu0 %v5531_v58 }
  0xa8   :  { %1094 = vmatpush1.bf16.msra.mxu1 %v5533_v59  ;;  %1052 = vmatprep.subr.bf16.mxu0 %v5537_v60 }
  0xa9   :  { %1095 = vmatprep.subr.bf16.mxu1 %v5539_v61 }
  0xab   :  { %1053 = vmatpush1.bf16.msra.mxu0 %v5548_v63 }
  0xac   :  { %1096 = vmatpush1.bf16.msra.mxu1 %v5550_v1  ;;  %1054 = vmatprep.subr.bf16.mxu0 %v5552_v2 }
  0xad   :  { %1097 = vmatprep.subr.bf16.mxu1 %v5554_v3 }
  0xaf   :  { %1055 = vmatpush1.bf16.msra.mxu0 %v5560_v4 }
  0xb0   :  { %1098 = vmatpush1.bf16.msra.mxu1 %v5562_v5  ;;  %1200 = vmatprep.subr.bf16.mxu0 %v5456_v33 }
  0xb1   :  { %1243 = vmatprep.subr.bf16.mxu1 %v5458_v34 }
 0x112   :  { %v5630_v13 = vpop.f32.mrf.mxu0 }
 0x113   :  { %v5632_v14 = vpop.f32.mrf.mxu1 }
 0x114   :  { %v5634_v15 = vpop.f32.mrf.mxu0 }
 0x115   :  { %v5636_v16 = vpop.f32.mrf.mxu1 }
 0x116   :  { %v5643_v20 = vpop.f32.mrf.mxu0 }
 0x117   :  { %v5645_v21 = vpop.f32.mrf.mxu1 }
 0x118   :  { %v5649_v24 = vpop.f32.mrf.mxu0 }
 0x119   :  { %v5651_v25 = vpop.f32.mrf.mxu1 }
 0x11a   :  { %v422_v28 = vpop.f32.mrf.mxu0 }
 0x11b   :  { %v535_v29 = vpop.f32.mrf.mxu1  ;;  %v5670_v32 = vadd.f32 %v422_v28, %v5655_v26 }
 0x11c   :  { %v5673_v35 = vadd.f32 %v535_v29, %v5659_v27  ;;  %v424_v44 = vpop.f32.mrf.mxu0 }
 0x11d   :  { %v537_v53 = vpop.f32.mrf.mxu1  ;;  %v5676_v62 = vadd.f32 %v424_v44, %v5663_v30 }
 0x11e   :  { %7030 = vst [vmem:[#allocation17_spill] sm:$0xff] %v5673_v35  ;;  %v5679_v6 = vadd.f32 %v537_v53, %v5667_v31  ;;  %v426_v7 = vpop.f32.mrf.mxu0 }
 0x11f   :  { %v539_v8 = vpop.f32.mrf.mxu1  ;;  %v5682_v9 = vadd.f32 %v426_v7, %v5655_v26 }
 0x120   :  { %v5685_v10 = vadd.f32 %v539_v8, %v5659_v27  ;;  %v5687_v11 = vpop.f32.mrf.mxu0 }
 0x121   :  { %7031 = vst [vmem:[#allocation18_spill] sm:$0xff] %v5682_v9  ;;  %v5689_v19 = vpop.f32.mrf.mxu1 }
 0x122   :  { %7032 = vst [vmem:[#allocation19_spill] sm:$0xff] %v5685_v10  ;;  %v432_v28 = vpop.f32.mrf.mxu0 }
 0x123   :  { %v545_v29 = vpop.f32.mrf.mxu1  ;;  %v5692_v44 = vadd.f32 %v432_v28, %v5655_v26 }
 0x124   :  { %v5695_v53 = vadd.f32 %v545_v29, %v5659_v27  ;;  %v434_v18 = vpop.f32.mrf.mxu0 }
 0x125   :  { %7033 = vst [vmem:[#allocation20_spill] sm:$0xff] %v5692_v44  ;;  %v547_v23 = vpop.f32.mrf.mxu1  ;;  %v5698_v7 = vadd.f32 %v434_v18, %v5663_v30 }
 0x126   :  { %7034 = vst [vmem:[#allocation21_spill] sm:$0xff] %v5695_v53  ;;  %v5701_v8 = vadd.f32 %v547_v23, %v5667_v31  ;;  %v436_v22 = vpop.f32.mrf.mxu0 }
 0x127   :  { %7035 = vst [vmem:[#allocation22_spill] sm:$0xff] %v5698_v7  ;;  %v549_v17 = vpop.f32.mrf.mxu1  ;;  %v5704_v0 = vadd.f32 %v436_v22, %v5655_v26 }
 0x128   :  { %7036 = vst [vmem:[#allocation23_spill] sm:$0xff] %v5701_v8  ;;  %v5707_v12 = vadd.f32 %v549_v17, %v5659_v27  ;;  %v5709_v28 = vpop.f32.mrf.mxu0 }
 0x129   :  { %7037 = vst [vmem:[#allocation24_spill] sm:$0xff] %v5704_v0  ;;  %7039 = vst [vmem:[#allocation26_spill] sm:$0xff] %v5709_v28  ;;  %v5711_v29 = vpop.f32.mrf.mxu1 }
 0x12a   :  { %7038 = vst [vmem:[#allocation25_spill] sm:$0xff] %v5707_v12  ;;  %7040 = vst [vmem:[#allocation27_spill] sm:$0xff] %v5711_v29  ;;  %v442_v53 = vpop.f32.mrf.mxu0 }
 0x12b   :  { %v555_v44 = vpop.f32.mrf.mxu1  ;;  %v5714_v18 = vadd.f32 %v442_v53, %v5655_v26 }
 0x12c   :  { %v5717_v23 = vadd.f32 %v555_v44, %v5659_v27  ;;  %v444_v8 = vpop.f32.mrf.mxu0 }
 0x12d   :  { %7041 = vst [vmem:[#allocation28_spill] sm:$0xff] %v5714_v18  ;;  %v557_v7 = vpop.f32.mrf.mxu1  ;;  %v5720_v22 = vadd.f32 %v444_v8, %v5663_v30 }
 0x12e   :  { %7042 = vst [vmem:[#allocation29_spill] sm:$0xff] %v5717_v23  ;;  %v5723_v17 = vadd.f32 %v557_v7, %v5667_v31  ;;  %v446_v12 = vpop.f32.mrf.mxu0 }
 0x12f   :  { %7043 = vst [vmem:[#allocation30_spill] sm:$0xff] %v5720_v22  ;;  %v559_v0 = vpop.f32.mrf.mxu1  ;;  %v5726_v29 = vadd.f32 %v446_v12, %v5655_v26 }
 0x130   :  { %7044 = vst [vmem:[#allocation31_spill] sm:$0xff] %v5723_v17  ;;  %v5729_v28 = vadd.f32 %v559_v0, %v5659_v27  ;;  %v5731_v53 = vpop.f32.mrf.mxu0 }
 0x131   :  { %7045 = vst [vmem:[#allocation32_spill] sm:$0xff] %v5726_v29  ;;  %7047 = vst [vmem:[#allocation34_spill] sm:$0xff] %v5731_v53  ;;  %v5733_v44 = vpop.f32.mrf.mxu1 }
 0x132   :  { %7046 = vst [vmem:[#allocation33_spill] sm:$0xff] %v5729_v28  ;;  %7048 = vst [vmem:[#allocation35_spill] sm:$0xff] %v5733_v44  ;;  %v452_v23 = vpop.f32.mrf.mxu0 }
 0x133   :  { %v565_v18 = vpop.f32.mrf.mxu1  ;;  %v5736_v8 = vadd.f32 %v452_v23, %v5655_v26 }
 0x134   :  { %v5739_v7 = vadd.f32 %v565_v18, %v5659_v27  ;;  %v454_v17 = vpop.f32.mrf.mxu0 }
 0x135   :  { %7049 = vst [vmem:[#allocation36_spill] sm:$0xff] %v5736_v8  ;;  %v567_v22 = vpop.f32.mrf.mxu1  ;;  %v5742_v12 = vadd.f32 %v454_v17, %v5663_v30 }
 0x136   :  { %7050 = vst [vmem:[#allocation37_spill] sm:$0xff] %v5739_v7  ;;  %v5745_v0 = vadd.f32 %v567_v22, %v5667_v31  ;;  %v456_v28 = vpop.f32.mrf.mxu0 }
 0x137   :  { %7051 = vst [vmem:[#allocation38_spill] sm:$0xff] %v5742_v12  ;;  %v569_v29 = vpop.f32.mrf.mxu1  ;;  %v5748_v44 = vadd.f32 %v456_v28, %v5655_v26 }
 0x138   :  { %7052 = vst [vmem:[#allocation39_spill] sm:$0xff] %v5745_v0  ;;  %v5751_v53 = vadd.f32 %v569_v29, %v5659_v27  ;;  %v5753_v23 = vpop.f32.mrf.mxu0 }
 0x139   :  { %7053 = vst [vmem:[#allocation40_spill] sm:$0xff] %v5748_v44  ;;  %7055 = vst [vmem:[#allocation42_spill] sm:$0xff] %v5753_v23  ;;  %v571_v18 = vpop.f32.mrf.mxu1 }
 0x13a   :  { %7054 = vst [vmem:[#allocation41_spill] sm:$0xff] %v5751_v53  ;;  %v5756_v7 = vadd.f32 %v571_v18, %v5667_v31  ;;  %v462_v8 = vpop.f32.mrf.mxu0 }
 0x13b   :  { %v575_v17 = vpop.f32.mrf.mxu1  ;;  %v5759_v12 = vadd.f32 %v462_v8, %v5655_v26 }
 0x13c   :  { %7056 = vst [vmem:[#allocation43_spill] sm:$0xff] %v5756_v7  ;;  %v5762_v22 = vadd.f32 %v575_v17, %v5659_v27  ;;  %v464_v0 = vpop.f32.mrf.mxu0 }
 0x13d   :  { %7057 = vst [vmem:[#allocation44_spill] sm:$0xff] %v5759_v12  ;;  %v577_v28 = vpop.f32.mrf.mxu1  ;;  %v5765_v44 = vadd.f32 %v464_v0, %v5663_v30 }
 0x13e   :  { %7058 = vst [vmem:[#allocation45_spill] sm:$0xff] %v5762_v22  ;;  %v5768_v29 = vadd.f32 %v577_v28, %v5667_v31  ;;  %v466_v53 = vpop.f32.mrf.mxu0 }
 0x13f   :  { %7059 = vst [vmem:[#allocation46_spill] sm:$0xff] %v5765_v44  ;;  %v579_v23 = vpop.f32.mrf.mxu1  ;;  %v5771_v18 = vadd.f32 %v466_v53, %v5655_v26 }
 0x140   :  { %7060 = vst [vmem:[#allocation47_spill] sm:$0xff] %v5768_v29  ;;  %v5774_v7 = vadd.f32 %v579_v23, %v5659_v27  ;;  %v468_v8 = vpop.f32.mrf.mxu0 }
 0x141   :  { %7061 = vst [vmem:[#allocation48_spill] sm:$0xff] %v5771_v18  ;;  %v581_v12 = vpop.f32.mrf.mxu1  ;;  %v5777_v17 = vadd.f32 %v468_v8, %v5663_v30 }
 0x142   :  { %7062 = vst [vmem:[#allocation49_spill] sm:$0xff] %v5774_v7  ;;  %v5780_v22 = vadd.f32 %v581_v12, %v5667_v31  ;;  %v472_v0 = vpop.f32.mrf.mxu0 }
 0x143   :  { %7063 = vst [vmem:[#allocation50_spill] sm:$0xff] %v5777_v17  ;;  %v585_v44 = vpop.f32.mrf.mxu1  ;;  %v5783_v28 = vadd.f32 %v472_v0, %v5655_v26 }
 0x144   :  { %7064 = vst [vmem:[#allocation51_spill] sm:$0xff] %v5780_v22  ;;  %v5786_v29 = vadd.f32 %v585_v44, %v5659_v27  ;;  %v474_v53 = vpop.f32.mrf.mxu0 }
 0x145   :  { %7065 = vst [vmem:[#allocation52_spill] sm:$0xff] %v5783_v28  ;;  %v587_v18 = vpop.f32.mrf.mxu1  ;;  %v5789_v23 = vadd.f32 %v474_v53, %v5663_v30 }
 0x146   :  { %7066 = vst [vmem:[#allocation53_spill] sm:$0xff] %v5786_v29  ;;  %v5792_v7 = vadd.f32 %v587_v18, %v5667_v31  ;;  %v476_v8 = vpop.f32.mrf.mxu0 }
 0x147   :  { %7067 = vst [vmem:[#allocation54_spill] sm:$0xff] %v5789_v23  ;;  %v589_v17 = vpop.f32.mrf.mxu1  ;;  %v5795_v12 = vadd.f32 %v476_v8, %v5655_v26 }
 0x148   :  { %7068 = vst [vmem:[#allocation55_spill] sm:$0xff] %v5792_v7  ;;  %v5798_v22 = vadd.f32 %v589_v17, %v5659_v27  ;;  %v478_v0 = vpop.f32.mrf.mxu0 }
 0x149   :  { %7069 = vst [vmem:[#allocation56_spill] sm:$0xff] %v5795_v12  ;;  %v591_v28 = vpop.f32.mrf.mxu1  ;;  %v5801_v44 = vadd.f32 %v478_v0, %v5663_v30 }
 0x14a   :  { %7070 = vst [vmem:[#allocation57_spill] sm:$0xff] %v5798_v22  ;;  %v5804_v29 = vadd.f32 %v591_v28, %v5667_v31  ;;  %v482_v53 = vpop.f32.mrf.mxu0 }
 0x14b   :  { %7071 = vst [vmem:[#allocation58_spill] sm:$0xff] %v5801_v44  ;;  %v595_v23 = vpop.f32.mrf.mxu1  ;;  %v5807_v18 = vadd.f32 %v482_v53, %v5655_v26 }
 0x14c   :  { %7072 = vst [vmem:[#allocation59_spill] sm:$0xff] %v5804_v29  ;;  %v5810_v7 = vadd.f32 %v595_v23, %v5659_v27  ;;  %v484_v8 = vpop.f32.mrf.mxu0  ;;  %v413_v23 = vadd.f32 %v5630_v13, %v5655_v26  ;;  %v417_v13 = vadd.f32 %v5643_v20, %v5655_v26 }
 0x14d   :  { %7073 = vst [vmem:[#allocation60_spill] sm:$0xff] %v5807_v18  ;;  %v597_v12 = vpop.f32.mrf.mxu1  ;;  %v5813_v17 = vadd.f32 %v484_v8, %v5663_v30 }
 0x14e   :  { %7074 = vst [vmem:[#allocation61_spill] sm:$0xff] %v5810_v7  ;;  %v5816_v22 = vadd.f32 %v597_v12, %v5667_v31  ;;  %v486_v0 = vpop.f32.mrf.mxu0 }
 0x14f   :  { %7075 = vst [vmem:[#allocation62_spill] sm:$0xff] %v5813_v17  ;;  %v599_v44 = vpop.f32.mrf.mxu1  ;;  %v5819_v28 = vadd.f32 %v486_v0, %v5655_v26  ;;  %v415_v0 = vadd.f32 %v5634_v15, %v5663_v30 }
 0x150   :  { %7076 = vst [vmem:[#allocation63_spill] sm:$0xff] %v5816_v22  ;;  %v5822_v29 = vadd.f32 %v599_v44, %v5659_v27  ;;  %v488_v53 = vpop.f32.mrf.mxu0  ;;  %v528_v44 = vadd.f32 %v5636_v16, %v5667_v31  ;;  %v532_v16 = vadd.f32 %v5651_v25, %v5667_v31 }
 0x151   :  { %7077 = vst [vmem:[#allocation64_spill] sm:$0xff] %v5819_v28  ;;  %v601_v18 = vpop.f32.mrf.mxu1  ;;  %v5827_v7 = vadd.f32 %v488_v53, %v5663_v30 }
 0x152   :  { %7078 = vst [vmem:[#allocation65_spill] sm:$0xff] %v5822_v29  ;;  %v5830_v8 = vadd.f32 %v601_v18, %v5667_v31  ;;  %v915_v12 = vpop.f32.mrf.mxu0 }
 0x153   :  { %7079 = vst [vmem:[#allocation66_spill] sm:$0xff] %v5827_v7  ;;  %v958_v22 = vpop.f32.mrf.mxu1  ;;  %v967_v29 = vadd.f32 %v915_v12, %v413_v23 }
 0x154   :  { %7080 = vst [vmem:[#allocation67_spill] sm:$0xff] %v5830_v8  ;;  %v917_v28 = vpop.f32.mrf.mxu0  ;;  %v419_v8 = vadd.f32 %v5649_v24, %v5663_v30  ;;  %v530_v24 = vadd.f32 %v5645_v21, %v5659_v27 }
 0x155   :  { %v960_v17 = vpop.f32.mrf.mxu1  ;;  %4897 = vtanh.f32 %v967_v29  ;;  %v968_v53 = vadd.f32 %v917_v28, %v415_v0  ;;  %v526_v29 = vadd.f32 %v5632_v14, %v5659_v27 }
 0x156   :  { %v970_v7 = vadd.f32 %v960_v17, %v528_v44  ;;  %v919_v10 = vpop.f32.mrf.mxu0 }
 0x157   :  { %v962_v18 = vpop.f32.mrf.mxu1  ;;  %4899 = vtanh.f32 %v968_v53  ;;  %v971_v35 = vadd.f32 %v919_v10, %v417_v13 }
 0x158   :  { %4901 = vtanh.f32 %v970_v7  ;;  %v921_v15 = vpop.f32.mrf.mxu0  ;;  %v969_v7 = vadd.f32 %v958_v22, %v526_v29  ;;  %v973_v44 = vadd.f32 %v962_v18, %v530_v24 }
 0x159   :  { %v964_v9 = vpop.f32.mrf.mxu1  ;;  %4903 = vtanh.f32 %v971_v35  ;;  %v972_v23 = vadd.f32 %v921_v15, %v419_v8 }
 0x15a   :  { %v974_v20 = vadd.f32 %v964_v9, %v532_v16 }
 0x15b   :  { %4905 = vtanh.f32 %v972_v23 }
 0x15c   :  { %4907 = vtanh.f32 %v974_v20 }
 0x15d   :  { %4909 = vtanh.f32 %v969_v7 }
 0x15e   :  { %4911 = vtanh.f32 %v973_v44 }
 0x162   :  { %v4898_v26 = vpop.eup %4897 }
 0x163   :  { %v983_v17 = vmul.f32 0.5, %v4898_v26 }
 0x164   :  { %v4900_v10 = vpop.eup %4899 }
 0x165   :  { %v4902_v28 = vpop.eup %4901  ;;  %v989_v12 = vadd.f32 0.5, %v983_v17  ;;  %v984_v0 = vmul.f32 0.5, %v4900_v10 }
 0x166   :  { %v4904_v25 = vpop.eup %4903 }
 0x167   :  { %v990_v35 = vadd.f32 0.5, %v984_v0  ;;  %v997_v8 = vmul.f32 %v4902_v28, %v989_v12  ;;  %v986_v13 = vmul.f32 0.5, %v4904_v25 }
 0x168   :  { %v4906_v9 = vpop.eup %4905 }
 0x169   :  { %v995_v53 = vmul.f32 0.0, %v990_v35  ;;  %v992_v15 = vadd.f32 0.5, %v986_v13  ;;  %v987_v14 = vmul.f32 0.5, %v4906_v9  ;;  %v4908_v27 = vpop.eup %4907  ;;  %v7081_v35 = vmov 0   ;;  %v7083_v13 = vld [vmem:[#allocation17_spill] sm:$0xff] }
 0x16a   :  { %v4910_v18 = vpop.eup %4909 }
 0x16b   :  { %v5846_v16 = vadd.f32 %v997_v8, %v995_v53  ;;  %v993_v21 = vadd.f32 0.5, %v987_v14  ;;  %v998_v22 = vmul.f32 %v4908_v27, %v992_v15  ;;  %v4912_v26 = vpop.eup %4911  ;;  %v985_v29 = vmul.f32 0.5, %v4910_v18 }
 0x16c   :  { %v988_v24 = vmul.f32 0.5, %v4912_v26 }
 0x16d   :  { %v996_v23 = vmul.f32 0.0, %v993_v21  ;;  %4913 = vtanh.f32 %v5846_v16  ;;  %v991_v10 = vadd.f32 0.5, %v985_v29 }
 0x16e   :  { %v994_v7 = vadd.f32 0.5, %v988_v24 }
 0x16f   :  { %v5849_v20 = vadd.f32 %v998_v22, %v996_v23 }
 0x171   :  { %4915 = vtanh.f32 %v5849_v20 }
 0x17a   :  { %v4914_v17 = vpop.eup %4913 }
 0x17b   :  { %v1003_v12 = vmul.f32 %v4914_v17, %v991_v10 }
 0x17e   :  { %v4916_v28 = vpop.eup %4915 }
 0x17f   :  { %v1004_v0 = vmul.f32 %v4916_v28, %v994_v7 }
 0x181   :  { %v4509_v44 = vpack.c.bf16 %v1004_v0, %v1003_v12 }
 0x183   :  { %4515 = vst [vmem:[#allocation5] sm:$0xff] %v4509_v44   ;;  %4510 = vst [vmem:[#allocation2] sm:$0xff] %v4509_v44  }
 0x18a   :  { %v4769_v25 = vld [vmem:[#allocation2] sm:$0xff]  }
 0x18b   :  { %1073 = vmatmul.mubr.bf16.vlgmr.msra.gmra.mxu0 %v4769_v25  ;;  %1116 = vmatmul.mubr.bf16.vlgmr.msra.gmra.mxu1 %v4769_v25 }
 0x18c   :  { %1201 = vmatpush1.bf16.msra.mxu0 %v5463_v36  ;;  %1244 = vmatpush1.bf16.msra.mxu1 %v5465_v37 }
 0x18d   :  { %1202 = vmatprep.subr.bf16.mxu0 %v5469_v38  ;;  %1245 = vmatprep.subr.bf16.mxu1 %v5471_v39 }
 0x18e   :  { %1232 = vmatprep.mubr.bf16.mxu0 %v7081_v35  ;;  %1275 = vmatprep.mubr.bf16.mxu1 %v7081_v35 }
 0x190   :  { %1203 = vmatpush1.bf16.msra.mxu0 %v5473_v40  ;;  %1246 = vmatpush1.bf16.msra.mxu1 %v5475_v41 }
 0x191   :  { %1204 = vmatprep.subr.bf16.mxu0 %v5479_v42  ;;  %1247 = vmatprep.subr.bf16.mxu1 %v5483_v43 }
 0x194   :  { %1205 = vmatpush1.bf16.msra.mxu0 %v5492_v45  ;;  %1248 = vmatpush1.bf16.msra.mxu1 %v5496_v46  ;;  %v429_v46 = vadd.f32 %v5687_v11, %v5663_v30 }
 0x195   :  { %1206 = vmatprep.subr.bf16.mxu0 %v5498_v47  ;;  %1249 = vmatprep.subr.bf16.mxu1 %v5500_v48 }
 0x198   :  { %1207 = vmatpush1.bf16.msra.mxu0 %v5506_v49  ;;  %1250 = vmatpush1.bf16.msra.mxu1 %v5508_v50 }
 0x199   :  { %1208 = vmatprep.subr.bf16.mxu0 %v5512_v51  ;;  %1251 = vmatprep.subr.bf16.mxu1 %v5514_v52 }
 0x19c   :  { %1209 = vmatpush1.bf16.msra.mxu0 %v5519_v54  ;;  %1252 = vmatpush1.bf16.msra.mxu1 %v5523_v55 }
 0x19d   :  { %1210 = vmatprep.subr.bf16.mxu0 %v5527_v56  ;;  %1253 = vmatprep.subr.bf16.mxu1 %v5529_v57 }
 0x1a0   :  { %1211 = vmatpush1.bf16.msra.mxu0 %v5531_v58  ;;  %1254 = vmatpush1.bf16.msra.mxu1 %v5533_v59 }
 0x1a1   :  { %1212 = vmatprep.subr.bf16.mxu0 %v5537_v60  ;;  %1255 = vmatprep.subr.bf16.mxu1 %v5539_v61 }
 0x1a4   :  { %1213 = vmatpush1.bf16.msra.mxu0 %v5548_v63  ;;  %1256 = vmatpush1.bf16.msra.mxu1 %v5550_v1 }
 0x1a5   :  { %1214 = vmatprep.subr.bf16.mxu0 %v5552_v2  ;;  %1257 = vmatprep.subr.bf16.mxu1 %v5554_v3 }
 0x1a8   :  { %1215 = vmatpush1.bf16.msra.mxu0 %v5560_v4  ;;  %1258 = vmatpush1.bf16.msra.mxu1 %v5562_v5 }
 0x1a9   :  { %1360 = vmatprep.subr.bf16.mxu0 %v5456_v33  ;;  %1403 = vmatprep.subr.bf16.mxu1 %v5458_v34  ;;  %v542_v33 = vadd.f32 %v5689_v19, %v5667_v31  ;;  %v7082_v34 = vld [vmem:[#allocation18_spill] sm:$0xff]  ;;  %v7084_v19 = vld [vmem:[#allocation19_spill] sm:$0xff] }
 0x24b   :  { %v1074_v36 = vpop.f32.mrf.mxu0  ;;  %v1117_v37 = vpop.f32.mrf.mxu1 }
 0x24c   :  { %v1126_v38 = vadd.f32 %v1074_v36, %v5670_v32  ;;  %v1128_v9 = vadd.f32 %v1117_v37, %v7083_v13  ;;  %v5942_v13 = vld [vmem:[#allocation8 + $0x80] ss:$16 sps:$4 sm:$0xff]  }
 0x24d   :  { %v1076_v39 = vpop.f32.mrf.mxu0  ;;  %v1119_v40 = vpop.f32.mrf.mxu1 }
 0x24e   :  { %4917 = vtanh.f32 %v1126_v38  ;;  %v1127_v41 = vadd.f32 %v1076_v39, %v5676_v62  ;;  %v1129_v42 = vadd.f32 %v1119_v40, %v5679_v6 }
 0x24f   :  { %v1078_v43 = vpop.f32.mrf.mxu0  ;;  %v1121_v45 = vpop.f32.mrf.mxu1 }
 0x250   :  { %4919 = vtanh.f32 %v1127_v41  ;;  %v1130_v47 = vadd.f32 %v1078_v43, %v7082_v34  ;;  %v1132_v14 = vadd.f32 %v1121_v45, %v7084_v19  ;;  %v5904_v45 = vld [vmem:[#allocation8 + $0xe0] ss:$16 sps:$4 sm:$0xff]   ;;  %v5913_v34 = vld [vmem:[#allocation8 + $0xcc] ss:$16 sps:$4 sm:$0xff]  }
 0x251   :  { %4921 = vtanh.f32 %v1129_v42  ;;  %v1080_v48 = vpop.f32.mrf.mxu0  ;;  %v1123_v49 = vpop.f32.mrf.mxu1 }
 0x252   :  { %4923 = vtanh.f32 %v1130_v47  ;;  %v1131_v50 = vadd.f32 %v1080_v48, %v429_v46  ;;  %v1133_v32 = vadd.f32 %v1123_v49, %v542_v33  ;;  %v5907_v46 = vld [vmem:[#allocation8 + $0xe8] ss:$16 sps:$4 sm:$0xff]   ;;  %v5910_v33 = vld [vmem:[#allocation8 + $0xc4] ss:$16 sps:$4 sm:$0xff]   ;;  %v5918_v47 = vld [vmem:[#allocation8 + $0xc0] ss:$16 sps:$4 sm:$0xff]  }
 0x253   :  { %v5921_v48 = vld [vmem:[#allocation8 + $0xc8] ss:$16 sps:$4 sm:$0xff]   ;;  %v5924_v49 = vld [vmem:[#allocation8 + $0xa4] ss:$16 sps:$4 sm:$0xff]  }
 0x254   :  { %4925 = vtanh.f32 %v1131_v50  ;;  %v5927_v50 = vld [vmem:[#allocation8 + $0xac] ss:$16 sps:$4 sm:$0xff]  }
 0x255   :  { %4927 = vtanh.f32 %v1133_v32  ;;  %v5930_v32 = vld [vmem:[#allocation8 + $0xa0] ss:$16 sps:$4 sm:$0xff]  }
 0x256   :  { %4929 = vtanh.f32 %v1128_v9  ;;  %v5945_v9 = vld [vmem:[#allocation8 + $0x88] ss:$16 sps:$4 sm:$0xff]  }
 0x257   :  { %4931 = vtanh.f32 %v1132_v14 }
 0x25b   :  { %v4918_v62 = vpop.eup %4917 }
 0x25c   :  { %v1142_v6 = vmul.f32 0.5, %v4918_v62  ;;  %v5933_v62 = vld [vmem:[#allocation8 + $0xa8] ss:$16 sps:$4 sm:$0xff]  }
 0x25d   :  { %v4920_v8 = vpop.eup %4919 }
 0x25e   :  { %v4922_v11 = vpop.eup %4921  ;;  %v1148_v53 = vadd.f32 0.5, %v1142_v6  ;;  %v1143_v15 = vmul.f32 0.5, %v4920_v8  ;;  %v5936_v6 = vld [vmem:[#allocation8 + $0x84] ss:$16 sps:$4 sm:$0xff]   ;;  %v5939_v8 = vld [vmem:[#allocation8 + $0x8c] ss:$16 sps:$4 sm:$0xff]  }
 0x25f   :  { %v4924_v21 = vpop.eup %4923 }
 0x260   :  { %v1149_v27 = vadd.f32 0.5, %v1143_v15  ;;  %v1156_v23 = vmul.f32 %v4922_v11, %v1148_v53  ;;  %v1145_v22 = vmul.f32 0.5, %v4924_v21  ;;  %v7089_v11 = vld [vmem:[#allocation27_spill] sm:$0xff]  ;;  %v7090_v15 = vld [vmem:[#allocation24_spill] sm:$0xff] }
 0x261   :  { %v4926_v18 = vpop.eup %4925  ;;  %v552_v53 = vadd.f32 %v7089_v11, %v5667_v31  ;;  %v6007_v11 = vld [vmem:[#allocation8 + $0x6c] ss:$16 sps:$4 sm:$0xff]  }
 0x262   :  { %v1154_v26 = vmul.f32 %v1149_v27, %v5846_v16  ;;  %v1151_v29 = vadd.f32 0.5, %v1145_v22  ;;  %v1146_v24 = vmul.f32 0.5, %v4926_v18  ;;  %v4928_v17 = vpop.eup %4927 }
 0x263   :  { %v4930_v44 = vpop.eup %4929 }
 0x264   :  { %v5897_v10 = vadd.f32 %v1156_v23, %v1154_v26  ;;  %v1152_v7 = vadd.f32 0.5, %v1146_v24  ;;  %v1157_v28 = vmul.f32 %v4928_v17, %v1151_v29  ;;  %v4932_v25 = vpop.eup %4931  ;;  %v1144_v36 = vmul.f32 0.5, %v4930_v44  ;;  %v7091_v29 = vld [vmem:[#allocation21_spill] sm:$0xff] }
 0x265   :  { %v1147_v16 = vmul.f32 0.5, %v4932_v25 }
 0x266   :  { %v1155_v12 = vmul.f32 %v1152_v7, %v5849_v20  ;;  %4933 = vtanh.f32 %v5897_v10  ;;  %v1150_v38 = vadd.f32 0.5, %v1144_v36 }
 0x267   :  { %v1153_v39 = vadd.f32 0.5, %v1147_v16 }
 0x268   :  { %v5901_v0 = vadd.f32 %v1157_v28, %v1155_v12  ;;  %v7092_v12 = vld [vmem:[#allocation25_spill] sm:$0xff] }
 0x26a   :  { %4935 = vtanh.f32 %v5901_v0 }
 0x273   :  { %v4934_v37 = vpop.eup %4933 }
 0x274   :  { %v1162_v41 = vmul.f32 %v4934_v37, %v1150_v38 }
 0x277   :  { %v4936_v40 = vpop.eup %4935 }
 0x278   :  { %v1163_v42 = vmul.f32 %v4936_v40, %v1153_v39 }
 0x27a   :  { %v4519_v43 = vpack.c.bf16 %v1163_v42, %v1162_v41 }
 0x27c   :  { %4520 = vst [vmem:[#allocation2] sm:$0xff] %v4519_v43   ;;  %4525 = vst [vmem:[#allocation5 + $0x8] sm:$0xff] %v4519_v43  }
 0x283   :  { %v4770_v20 = vld [vmem:[#allocation2] sm:$0xff]  }
 0x284   :  { %1233 = vmatmul.mubr.bf16.vlgmr.msra.gmra.mxu0 %v4770_v20  ;;  %1276 = vmatmul.mubr.bf16.vlgmr.msra.gmra.mxu1 %v4770_v20 }
 0x285   :  { %1361 = vmatpush1.bf16.msra.mxu0 %v5904_v45  ;;  %1404 = vmatpush1.bf16.msra.mxu1 %v5907_v46 }
 0x286   :  { %1362 = vmatprep.subr.bf16.mxu0 %v5910_v33  ;;  %1405 = vmatprep.subr.bf16.mxu1 %v5913_v34 }
 0x287   :  { %1392 = vmatprep.mubr.bf16.mxu0 %v7081_v35  ;;  %1435 = vmatprep.mubr.bf16.mxu1 %v7081_v35 }
 0x289   :  { %1363 = vmatpush1.bf16.msra.mxu0 %v5918_v47  ;;  %1406 = vmatpush1.bf16.msra.mxu1 %v5921_v48 }
 0x28a   :  { %1364 = vmatprep.subr.bf16.mxu0 %v5924_v49  ;;  %1407 = vmatprep.subr.bf16.mxu1 %v5927_v50 }
 0x28d   :  { %1365 = vmatpush1.bf16.msra.mxu0 %v5930_v32  ;;  %1408 = vmatpush1.bf16.msra.mxu1 %v5933_v62 }
 0x28e   :  { %1366 = vmatprep.subr.bf16.mxu0 %v5936_v6  ;;  %1409 = vmatprep.subr.bf16.mxu1 %v5939_v8 }
 0x291   :  { %1367 = vmatpush1.bf16.msra.mxu0 %v5942_v13  ;;  %1410 = vmatpush1.bf16.msra.mxu1 %v5945_v9 }
 0x292   :  { %1368 = vmatprep.subr.bf16.mxu0 %v5512_v51  ;;  %1411 = vmatprep.subr.bf16.mxu1 %v5514_v52  ;;  %v5964_v51 = vld [vmem:[#allocation8 + $0xe4] ss:$16 sps:$4 sm:$0xff]   ;;  %v5967_v52 = vld [vmem:[#allocation8 + $0xec] ss:$16 sps:$4 sm:$0xff]  }
 0x295   :  { %1369 = vmatpush1.bf16.msra.mxu0 %v5519_v54  ;;  %1412 = vmatpush1.bf16.msra.mxu1 %v5523_v55 }
 0x296   :  { %1370 = vmatprep.subr.bf16.mxu0 %v5527_v56  ;;  %1413 = vmatprep.subr.bf16.mxu1 %v5529_v57  ;;  %v7085_v56 = vld [vmem:[#allocation20_spill] sm:$0xff] }
 0x299   :  { %1371 = vmatpush1.bf16.msra.mxu0 %v5531_v58  ;;  %1414 = vmatpush1.bf16.msra.mxu1 %v5533_v59 }
 0x29a   :  { %1372 = vmatprep.subr.bf16.mxu0 %v5537_v60  ;;  %1415 = vmatprep.subr.bf16.mxu1 %v5539_v61  ;;  %v7086_v60 = vld [vmem:[#allocation22_spill] sm:$0xff] }
 0x29d   :  { %1373 = vmatpush1.bf16.msra.mxu0 %v5548_v63  ;;  %1416 = vmatpush1.bf16.msra.mxu1 %v5550_v1  ;;  %v7087_v63 = vld [vmem:[#allocation23_spill] sm:$0xff] }
 0x29e   :  { %1374 = vmatprep.subr.bf16.mxu0 %v5552_v2  ;;  %1417 = vmatprep.subr.bf16.mxu1 %v5554_v3 }
 0x2a1   :  { %1375 = vmatpush1.bf16.msra.mxu0 %v5560_v4  ;;  %1418 = vmatpush1.bf16.msra.mxu1 %v5562_v5  ;;  %v7088_v4 = vld [vmem:[#allocation26_spill] sm:$0xff] }
 0x2a2   :  { %1520 = vmatprep.subr.bf16.mxu0 %v5964_v51  ;;  %1563 = vmatprep.subr.bf16.mxu1 %v5967_v52  ;;  %v439_v5 = vadd.f32 %v7088_v4, %v5663_v30 }
 0x344   :  { %v1234_v54 = vpop.f32.mrf.mxu0  ;;  %v1277_v55 = vpop.f32.mrf.mxu1 }
 0x345   :  { %v1286_v57 = vadd.f32 %v1234_v54, %v7085_v56  ;;  %v1288_v24 = vadd.f32 %v1277_v55, %v7091_v29  ;;  %v6040_v29 = vld [vmem:[#allocation8 + $0x4] ss:$16 sps:$4 sm:$0xff]  }
 0x346   :  { %v1236_v58 = vpop.f32.mrf.mxu0  ;;  %v1279_v59 = vpop.f32.mrf.mxu1 }
 0x347   :  { %4937 = vtanh.f32 %v1286_v57  ;;  %v1287_v61 = vadd.f32 %v1236_v58, %v7086_v60  ;;  %v1289_v1 = vadd.f32 %v1279_v59, %v7087_v63 }
 0x348   :  { %v1238_v2 = vpop.f32.mrf.mxu0  ;;  %v1281_v3 = vpop.f32.mrf.mxu1 }
 0x349   :  { %4939 = vtanh.f32 %v1287_v61  ;;  %v1290_v19 = vadd.f32 %v1238_v2, %v7090_v15  ;;  %v1292_v44 = vadd.f32 %v1281_v3, %v7092_v12  ;;  %v6013_v15 = vld [vmem:[#allocation8 + $0x68] ss:$16 sps:$4 sm:$0xff]  }
 0x34a   :  { %4941 = vtanh.f32 %v1289_v1  ;;  %v1240_v14 = vpop.f32.mrf.mxu0  ;;  %v1283_v21 = vpop.f32.mrf.mxu1 }
 0x34b   :  { %4943 = vtanh.f32 %v1290_v19  ;;  %v1291_v27 = vadd.f32 %v1240_v14, %v439_v5  ;;  %v1293_v23 = vadd.f32 %v1283_v21, %v552_v53  ;;  %v6004_v5 = vld [vmem:[#allocation8 + $0x64] ss:$16 sps:$4 sm:$0xff]   ;;  %v6010_v53 = vld [vmem:[#allocation8 + $0x60] ss:$16 sps:$4 sm:$0xff]   ;;  %v6019_v14 = vld [vmem:[#allocation8 + $0x4c] ss:$16 sps:$4 sm:$0xff]  }
 0x34c   :  { %v6016_v19 = vld [vmem:[#allocation8 + $0x44] ss:$16 sps:$4 sm:$0xff]   ;;  %v6022_v21 = vld [vmem:[#allocation8 + $0x40] ss:$16 sps:$4 sm:$0xff]  }
 0x34d   :  { %4945 = vtanh.f32 %v1291_v27  ;;  %v6025_v27 = vld [vmem:[#allocation8 + $0x48] ss:$16 sps:$4 sm:$0xff]  }
 0x34e   :  { %4947 = vtanh.f32 %v1293_v23  ;;  %v6028_v23 = vld [vmem:[#allocation8 + $0x24] ss:$16 sps:$4 sm:$0xff]  }
 0x34f   :  { %4949 = vtanh.f32 %v1288_v24  ;;  %v6043_v24 = vld [vmem:[#allocation8 + $0xc] ss:$16 sps:$4 sm:$0xff]  }
 0x350   :  { %4951 = vtanh.f32 %v1292_v44  ;;  %v7093_v44 = vld [vmem:[#allocation28_spill] sm:$0xff] }
 0x354   :  { %v4938_v22 = vpop.eup %4937 }
 0x355   :  { %v1302_v18 = vmul.f32 0.5, %v4938_v22  ;;  %v6031_v22 = vld [vmem:[#allocation8 + $0x2c] ss:$16 sps:$4 sm:$0xff]  }
 0x356   :  { %v4940_v26 = vpop.eup %4939 }
 0x357   :  { %v4942_v17 = vpop.eup %4941  ;;  %v1308_v7 = vadd.f32 0.5, %v1302_v18  ;;  %v1303_v28 = vmul.f32 0.5, %v4940_v26  ;;  %v6034_v18 = vld [vmem:[#allocation8 + $0x20] ss:$16 sps:$4 sm:$0xff]   ;;  %v6037_v26 = vld [vmem:[#allocation8 + $0x28] ss:$16 sps:$4 sm:$0xff]  }
 0x358   :  { %v4944_v25 = vpop.eup %4943 }
 0x359   :  { %v1309_v36 = vadd.f32 0.5, %v1303_v28  ;;  %v1316_v16 = vmul.f32 %v4942_v17, %v1308_v7  ;;  %v1305_v37 = vmul.f32 0.5, %v4944_v25  ;;  %v6046_v17 = vld [vmem:[#allocation8] ss:$16 sps:$4 sm:$0xff]   ;;  %v6049_v7 = vld [vmem:[#allocation8 + $0x8] ss:$16 sps:$4 sm:$0xff]  }
 0x35a   :  { %v4946_v38 = vpop.eup %4945 }
 0x35b   :  { %v1314_v39 = vmul.f32 %v1309_v36, %v5897_v10  ;;  %v1311_v40 = vadd.f32 0.5, %v1305_v37  ;;  %v1306_v41 = vmul.f32 0.5, %v4946_v38  ;;  %v4948_v42 = vpop.eup %4947  ;;  %v7094_v37 = vld [vmem:[#allocation30_spill] sm:$0xff] }
 0x35c   :  { %v4950_v57 = vpop.eup %4949 }
 0x35d   :  { %v5981_v43 = vadd.f32 %v1316_v16, %v1314_v39  ;;  %v1312_v20 = vadd.f32 0.5, %v1306_v41  ;;  %v1317_v54 = vmul.f32 %v4948_v42, %v1311_v40  ;;  %v4952_v58 = vpop.eup %4951  ;;  %v1304_v59 = vmul.f32 0.5, %v4950_v57  ;;  %v7095_v39 = vld [vmem:[#allocation31_spill] sm:$0xff] }
 0x35e   :  { %v1307_v10 = vmul.f32 0.5, %v4952_v58  ;;  %v7098_v58 = vld [vmem:[#allocation32_spill] sm:$0xff] }
 0x35f   :  { %v1315_v55 = vmul.f32 %v1312_v20, %v5901_v0  ;;  %4953 = vtanh.f32 %v5981_v43  ;;  %v1310_v61 = vadd.f32 0.5, %v1304_v59  ;;  %v7096_v20 = vld [vmem:[#allocation34_spill] sm:$0xff] }
 0x360   :  { %v1313_v63 = vadd.f32 0.5, %v1307_v10 }
 0x361   :  { %v5985_v56 = vadd.f32 %v1317_v54, %v1315_v55  ;;  %v449_v54 = vadd.f32 %v7096_v20, %v5663_v30  ;;  %v7097_v55 = vld [vmem:[#allocation35_spill] sm:$0xff] }
 0x362   :  { %v562_v57 = vadd.f32 %v7097_v55, %v5667_v31  ;;  %v7100_v31 = vld [vmem:[#allocation33_spill] sm:$0xff] }
 0x363   :  { %4955 = vtanh.f32 %v5985_v56 }
 0x36c   :  { %v4954_v60 = vpop.eup %4953 }
 0x36d   :  { %v1322_v2 = vmul.f32 %v4954_v60, %v1310_v61 }
 0x370   :  { %v4956_v1 = vpop.eup %4955 }
 0x371   :  { %v1323_v3 = vmul.f32 %v4956_v1, %v1313_v63 }
 0x373   :  { %v4529_v4 = vpack.c.bf16 %v1323_v3, %v1322_v2 }
 0x375   :  { %4530 = vst [vmem:[#allocation2] sm:$0xff] %v4529_v4   ;;  %4535 = vst [vmem:[#allocation5 + $0x10] sm:$0xff] %v4529_v4   ;;  %v7099_v4 = vld [vmem:[#allocation29_spill] sm:$0xff] }
 0x37c   :  { %v4771_v0 = vld [vmem:[#allocation2] sm:$0xff]  }
 0x37d   :  { %1393 = vmatmul.mubr.bf16.vlgmr.msra.gmra.mxu0 %v4771_v0  ;;  %1436 = vmatmul.mubr.bf16.vlgmr.msra.gmra.mxu1 %v4771_v0 }
 0x37e   :  { %1521 = vmatpush1.bf16.msra.mxu0 %v5904_v45  ;;  %1564 = vmatpush1.bf16.msra.mxu1 %v5907_v46 }
 0x37f   :  { %1522 = vmatprep.subr.bf16.mxu0 %v5910_v33  ;;  %1565 = vmatprep.subr.bf16.mxu1 %v5913_v34 }
 0x380   :  { %1552 = vmatprep.mubr.bf16.mxu0 %v7081_v35  ;;  %1595 = vmatprep.mubr.bf16.mxu1 %v7081_v35 }
 0x382   :  { %1523 = vmatpush1.bf16.msra.mxu0 %v5918_v47  ;;  %1566 = vmatpush1.bf16.msra.mxu1 %v5921_v48 }
 0x383   :  { %1524 = vmatprep.subr.bf16.mxu0 %v5924_v49  ;;  %1567 = vmatprep.subr.bf16.mxu1 %v5927_v50 }
 0x386   :  { %1525 = vmatpush1.bf16.msra.mxu0 %v5930_v32  ;;  %1568 = vmatpush1.bf16.msra.mxu1 %v5933_v62 }
 0x387   :  { %1526 = vmatprep.subr.bf16.mxu0 %v5936_v6  ;;  %1569 = vmatprep.subr.bf16.mxu1 %v5939_v8 }
 0x38a   :  { %1527 = vmatpush1.bf16.msra.mxu0 %v5942_v13  ;;  %1570 = vmatpush1.bf16.msra.mxu1 %v5945_v9 }
 0x38b   :  { %1528 = vmatprep.subr.bf16.mxu0 %v6004_v5  ;;  %1571 = vmatprep.subr.bf16.mxu1 %v6007_v11 }
 0x38e   :  { %1529 = vmatpush1.bf16.msra.mxu0 %v6010_v53  ;;  %1572 = vmatpush1.bf16.msra.mxu1 %v6013_v15 }
 0x38f   :  { %1530 = vmatprep.subr.bf16.mxu0 %v6016_v19  ;;  %1573 = vmatprep.subr.bf16.mxu1 %v6019_v14 }
 0x392   :  { %1531 = vmatpush1.bf16.msra.mxu0 %v6022_v21  ;;  %1574 = vmatpush1.bf16.msra.mxu1 %v6025_v27 }
 0x393   :  { %1532 = vmatprep.subr.bf16.mxu0 %v6028_v23  ;;  %1575 = vmatprep.subr.bf16.mxu1 %v6031_v22 }
 0x396   :  { %1533 = vmatpush1.bf16.msra.mxu0 %v6034_v18  ;;  %1576 = vmatpush1.bf16.msra.mxu1 %v6037_v26 }
 0x397   :  { %1534 = vmatprep.subr.bf16.mxu0 %v6040_v29  ;;  %1577 = vmatprep.subr.bf16.mxu1 %v6043_v24 }
 0x39a   :  { %1535 = vmatpush1.bf16.msra.mxu0 %v6046_v17  ;;  %1578 = vmatpush1.bf16.msra.mxu1 %v6049_v7 }
 0x39b   :  { %1680 = vmatprep.subr.bf16.mxu0 %v5964_v51  ;;  %1723 = vmatprep.subr.bf16.mxu1 %v5967_v52 }
 0x43d   :  { %v1394_v28 = vpop.f32.mrf.mxu0  ;;  %v1437_v12 = vpop.f32.mrf.mxu1 }
 0x43e   :  { %v1446_v25 = vadd.f32 %v1394_v28, %v7093_v44  ;;  %v1448_v0 = vadd.f32 %v1437_v12, %v7099_v4 }
 0x43f   :  { %v1396_v36 = vpop.f32.mrf.mxu0  ;;  %v1439_v16 = vpop.f32.mrf.mxu1 }
 0x440   :  { %4957 = vtanh.f32 %v1446_v25  ;;  %v1447_v38 = vadd.f32 %v1396_v36, %v7094_v37  ;;  %v1449_v40 = vadd.f32 %v1439_v16, %v7095_v39 }
 0x441   :  { %v1398_v41 = vpop.f32.mrf.mxu0  ;;  %v1441_v42 = vpop.f32.mrf.mxu1 }
 0x442   :  { %4959 = vtanh.f32 %v1447_v38  ;;  %v1450_v59 = vadd.f32 %v1398_v41, %v7098_v58  ;;  %v1452_v36 = vadd.f32 %v1441_v42, %v7100_v31  ;;  %v7101_v31 = vld [vmem:[#allocation36_spill] sm:$0xff] }
 0x443   :  { %4961 = vtanh.f32 %v1449_v40  ;;  %v1400_v10 = vpop.f32.mrf.mxu0  ;;  %v1443_v60 = vpop.f32.mrf.mxu1 }
 0x444   :  { %4963 = vtanh.f32 %v1450_v59  ;;  %v1451_v61 = vadd.f32 %v1400_v10, %v449_v54  ;;  %v1453_v63 = vadd.f32 %v1443_v60, %v562_v57 }
 0x446   :  { %4965 = vtanh.f32 %v1451_v61 }
 0x447   :  { %4967 = vtanh.f32 %v1453_v63 }
 0x448   :  { %4969 = vtanh.f32 %v1448_v0 }
 0x449   :  { %4971 = vtanh.f32 %v1452_v36 }
 0x44d   :  { %v4958_v1 = vpop.eup %4957 }
 0x44e   :  { %v1462_v2 = vmul.f32 0.5, %v4958_v1 }
 0x44f   :  { %v4960_v3 = vpop.eup %4959 }
 0x450   :  { %v4962_v28 = vpop.eup %4961  ;;  %v1468_v44 = vadd.f32 0.5, %v1462_v2  ;;  %v1463_v25 = vmul.f32 0.5, %v4960_v3 }
 0x451   :  { %v4964_v16 = vpop.eup %4963 }
 0x452   :  { %v1469_v37 = vadd.f32 0.5, %v1463_v25  ;;  %v1476_v38 = vmul.f32 %v4962_v28, %v1468_v44  ;;  %v1465_v39 = vmul.f32 0.5, %v4964_v16 }
 0x453   :  { %v4966_v40 = vpop.eup %4965 }
 0x454   :  { %v1474_v41 = vmul.f32 %v1469_v37, %v5981_v43  ;;  %v1471_v20 = vadd.f32 0.5, %v1465_v39  ;;  %v1466_v54 = vmul.f32 0.5, %v4966_v40  ;;  %v4968_v55 = vpop.eup %4967  ;;  %v7103_v40 = vld [vmem:[#allocation39_spill] sm:$0xff] }
 0x455   :  { %v4970_v10 = vpop.eup %4969 }
 0x456   :  { %v6065_v57 = vadd.f32 %v1476_v38, %v1474_v41  ;;  %v1472_v12 = vadd.f32 0.5, %v1466_v54  ;;  %v1477_v58 = vmul.f32 %v4968_v55, %v1471_v20  ;;  %v4972_v60 = vpop.eup %4971  ;;  %v1464_v61 = vmul.f32 0.5, %v4970_v10  ;;  %v7102_v38 = vld [vmem:[#allocation38_spill] sm:$0xff] }
 0x457   :  { %v1467_v43 = vmul.f32 0.5, %v4972_v60  ;;  %v7104_v55 = vld [vmem:[#allocation42_spill] sm:$0xff] }
 0x458   :  { %v1475_v59 = vmul.f32 %v1472_v12, %v5985_v56  ;;  %4973 = vtanh.f32 %v6065_v57  ;;  %v1470_v1 = vadd.f32 0.5, %v1464_v61  ;;  %v459_v12 = vadd.f32 %v7104_v55, %v5663_v30 }
 0x459   :  { %v1473_v2 = vadd.f32 0.5, %v1467_v43  ;;  %v7106_v43 = vld [vmem:[#allocation43_spill] sm:$0xff] }
 0x45a   :  { %v6069_v42 = vadd.f32 %v1477_v58, %v1475_v59  ;;  %v7105_v58 = vld [vmem:[#allocation40_spill] sm:$0xff] }
 0x45c   :  { %4975 = vtanh.f32 %v6069_v42 }
 0x465   :  { %v4974_v63 = vpop.eup %4973 }
 0x466   :  { %v1482_v4 = vmul.f32 %v4974_v63, %v1470_v1 }
 0x469   :  { %v4976_v3 = vpop.eup %4975 }
 0x46a   :  { %v1483_v0 = vmul.f32 %v4976_v3, %v1473_v2 }
 0x46c   :  { %v4539_v28 = vpack.c.bf16 %v1483_v0, %v1482_v4  ;;  %v7107_v4 = vld [vmem:[#allocation37_spill] sm:$0xff] }
 0x46e   :  { %4540 = vst [vmem:[#allocation2] sm:$0xff] %v4539_v28   ;;  %4545 = vst [vmem:[#allocation5 + $0x18] sm:$0xff] %v4539_v28  }
 0x475   :  { %v4772_v56 = vld [vmem:[#allocation2] sm:$0xff]  }
 0x476   :  { %1553 = vmatmul.mubr.bf16.vlgmr.msra.gmra.mxu0 %v4772_v56  ;;  %1596 = vmatmul.mubr.bf16.vlgmr.msra.gmra.mxu1 %v4772_v56 }
 0x477   :  { %1681 = vmatpush1.bf16.msra.mxu0 %v5904_v45  ;;  %1724 = vmatpush1.bf16.msra.mxu1 %v5907_v46 }
 0x478   :  { %1682 = vmatprep.subr.bf16.mxu0 %v5910_v33  ;;  %1725 = vmatprep.subr.bf16.mxu1 %v5913_v34 }
 0x479   :  { %1712 = vmatprep.mubr.bf16.mxu0 %v7081_v35  ;;  %1755 = vmatprep.mubr.bf16.mxu1 %v7081_v35 }
 0x47b   :  { %1683 = vmatpush1.bf16.msra.mxu0 %v5918_v47  ;;  %1726 = vmatpush1.bf16.msra.mxu1 %v5921_v48 }
 0x47c   :  { %1684 = vmatprep.subr.bf16.mxu0 %v5924_v49  ;;  %1727 = vmatprep.subr.bf16.mxu1 %v5927_v50 }
 0x47f   :  { %1685 = vmatpush1.bf16.msra.mxu0 %v5930_v32  ;;  %1728 = vmatpush1.bf16.msra.mxu1 %v5933_v62 }
 0x480   :  { %1686 = vmatprep.subr.bf16.mxu0 %v5936_v6  ;;  %1729 = vmatprep.subr.bf16.mxu1 %v5939_v8 }
 0x483   :  { %1687 = vmatpush1.bf16.msra.mxu0 %v5942_v13  ;;  %1730 = vmatpush1.bf16.msra.mxu1 %v5945_v9 }
 0x484   :  { %1688 = vmatprep.subr.bf16.mxu0 %v6004_v5  ;;  %1731 = vmatprep.subr.bf16.mxu1 %v6007_v11 }
 0x487   :  { %1689 = vmatpush1.bf16.msra.mxu0 %v6010_v53  ;;  %1732 = vmatpush1.bf16.msra.mxu1 %v6013_v15 }
 0x488   :  { %1690 = vmatprep.subr.bf16.mxu0 %v6016_v19  ;;  %1733 = vmatprep.subr.bf16.mxu1 %v6019_v14 }
 0x48b   :  { %1691 = vmatpush1.bf16.msra.mxu0 %v6022_v21  ;;  %1734 = vmatpush1.bf16.msra.mxu1 %v6025_v27 }
 0x48c   :  { %1692 = vmatprep.subr.bf16.mxu0 %v6028_v23  ;;  %1735 = vmatprep.subr.bf16.mxu1 %v6031_v22 }
 0x48f   :  { %1693 = vmatpush1.bf16.msra.mxu0 %v6034_v18  ;;  %1736 = vmatpush1.bf16.msra.mxu1 %v6037_v26 }
 0x490   :  { %1694 = vmatprep.subr.bf16.mxu0 %v6040_v29  ;;  %1737 = vmatprep.subr.bf16.mxu1 %v6043_v24 }
 0x493   :  { %1695 = vmatpush1.bf16.msra.mxu0 %v6046_v17  ;;  %1738 = vmatpush1.bf16.msra.mxu1 %v6049_v7 }
 0x494   :  { %1840 = vmatprep.subr.bf16.mxu0 %v5964_v51  ;;  %1883 = vmatprep.subr.bf16.mxu1 %v5967_v52 }
 0x536   :  { %v1554_v44 = vpop.f32.mrf.mxu0  ;;  %v1597_v25 = vpop.f32.mrf.mxu1 }
 0x537   :  { %v1606_v36 = vadd.f32 %v1554_v44, %v7101_v31  ;;  %v1608_v0 = vadd.f32 %v1597_v25, %v7107_v4  ;;  %v7108_v44 = vld [vmem:[#allocation41_spill] sm:$0xff] }
 0x538   :  { %v1556_v16 = vpop.f32.mrf.mxu0  ;;  %v1599_v37 = vpop.f32.mrf.mxu1 }
 0x539   :  { %4977 = vtanh.f32 %v1606_v36  ;;  %v1607_v39 = vadd.f32 %v1556_v16, %v7102_v38  ;;  %v1609_v41 = vadd.f32 %v1599_v37, %v7103_v40 }
 0x53a   :  { %v1558_v20 = vpop.f32.mrf.mxu0  ;;  %v1601_v54 = vpop.f32.mrf.mxu1 }
 0x53b   :  { %4979 = vtanh.f32 %v1607_v39  ;;  %v1610_v59 = vadd.f32 %v1558_v20, %v7105_v58  ;;  %v1612_v31 = vadd.f32 %v1601_v54, %v7108_v44 }
 0x53c   :  { %4981 = vtanh.f32 %v1609_v41  ;;  %v1560_v10 = vpop.f32.mrf.mxu0  ;;  %v1603_v60 = vpop.f32.mrf.mxu1 }
 0x53d   :  { %4983 = vtanh.f32 %v1610_v59  ;;  %v1611_v61 = vadd.f32 %v1560_v10, %v459_v12  ;;  %v1613_v63 = vadd.f32 %v1603_v60, %v7106_v43 }
 0x53f   :  { %4985 = vtanh.f32 %v1611_v61 }
 0x540   :  { %4987 = vtanh.f32 %v1613_v63 }
 0x541   :  { %4989 = vtanh.f32 %v1608_v0 }
 0x542   :  { %4991 = vtanh.f32 %v1612_v31 }
 0x546   :  { %v4978_v1 = vpop.eup %4977 }
 0x547   :  { %v1622_v2 = vmul.f32 0.5, %v4978_v1 }
 0x548   :  { %v4980_v3 = vpop.eup %4979 }
 0x549   :  { %v4982_v28 = vpop.eup %4981  ;;  %v1628_v56 = vadd.f32 0.5, %v1622_v2  ;;  %v1623_v30 = vmul.f32 0.5, %v4980_v3 }
 0x54a   :  { %v4984_v36 = vpop.eup %4983 }
 0x54b   :  { %v1629_v16 = vadd.f32 0.5, %v1623_v30  ;;  %v1636_v37 = vmul.f32 %v4982_v28, %v1628_v56  ;;  %v1625_v38 = vmul.f32 0.5, %v4984_v36  ;;  %v7109_v30 = vld [vmem:[#allocation44_spill] sm:$0xff] }
 0x54c   :  { %v4986_v39 = vpop.eup %4985 }
 0x54d   :  { %v1634_v40 = vmul.f32 %v1629_v16, %v6065_v57  ;;  %v1631_v41 = vadd.f32 0.5, %v1625_v38  ;;  %v1626_v20 = vmul.f32 0.5, %v4986_v39  ;;  %v4988_v55 = vpop.eup %4987  ;;  %v7110_v16 = vld [vmem:[#allocation46_spill] sm:$0xff]  ;;  %v7111_v38 = vld [vmem:[#allocation47_spill] sm:$0xff] }
 0x54e   :  { %v4990_v10 = vpop.eup %4989 }
 0x54f   :  { %v6116_v12 = vadd.f32 %v1636_v37, %v1634_v40  ;;  %v1632_v25 = vadd.f32 0.5, %v1626_v20  ;;  %v1637_v58 = vmul.f32 %v4988_v55, %v1631_v41  ;;  %v4992_v60 = vpop.eup %4991  ;;  %v1624_v61 = vmul.f32 0.5, %v4990_v10  ;;  %v7112_v20 = vld [vmem:[#allocation48_spill] sm:$0xff] }
 0x550   :  { %v1627_v57 = vmul.f32 0.5, %v4992_v60 }
 0x551   :  { %v1635_v59 = vmul.f32 %v1632_v25, %v6069_v42  ;;  %4993 = vtanh.f32 %v6116_v12  ;;  %v1630_v63 = vadd.f32 0.5, %v1624_v61 }
 0x552   :  { %v1633_v1 = vadd.f32 0.5, %v1627_v57 }
 0x553   :  { %v6120_v54 = vadd.f32 %v1637_v58, %v1635_v59  ;;  %v7114_v59 = vld [vmem:[#allocation51_spill] sm:$0xff] }
 0x555   :  { %4995 = vtanh.f32 %v6120_v54 }
 0x55e   :  { %v4994_v43 = vpop.eup %4993 }
 0x55f   :  { %v1642_v3 = vmul.f32 %v4994_v43, %v1630_v63  ;;  %v7115_v43 = vld [vmem:[#allocation45_spill] sm:$0xff] }
 0x562   :  { %v4996_v2 = vpop.eup %4995 }
 0x563   :  { %v1643_v4 = vmul.f32 %v4996_v2, %v1633_v1 }
 0x565   :  { %v4549_v0 = vpack.c.bf16 %v1643_v4, %v1642_v3  ;;  %v7116_v4 = vld [vmem:[#allocation49_spill] sm:$0xff] }
 0x567   :  { %4550 = vst [vmem:[#allocation2] sm:$0xff] %v4549_v0   ;;  %4555 = vst [vmem:[#allocation5 + $0x20] sm:$0xff] %v4549_v0  }
 0x56e   :  { %v4773_v42 = vld [vmem:[#allocation2] sm:$0xff]  }
 0x56f   :  { %1713 = vmatmul.mubr.bf16.vlgmr.msra.gmra.mxu0 %v4773_v42  ;;  %1756 = vmatmul.mubr.bf16.vlgmr.msra.gmra.mxu1 %v4773_v42 }
 0x570   :  { %1841 = vmatpush1.bf16.msra.mxu0 %v5904_v45  ;;  %1884 = vmatpush1.bf16.msra.mxu1 %v5907_v46 }
 0x571   :  { %1842 = vmatprep.subr.bf16.mxu0 %v5910_v33  ;;  %1885 = vmatprep.subr.bf16.mxu1 %v5913_v34 }
 0x572   :  { %1872 = vmatprep.mubr.bf16.mxu0 %v7081_v35  ;;  %1915 = vmatprep.mubr.bf16.mxu1 %v7081_v35 }
 0x574   :  { %1843 = vmatpush1.bf16.msra.mxu0 %v5918_v47  ;;  %1886 = vmatpush1.bf16.msra.mxu1 %v5921_v48 }
 0x575   :  { %1844 = vmatprep.subr.bf16.mxu0 %v5924_v49  ;;  %1887 = vmatprep.subr.bf16.mxu1 %v5927_v50 }
 0x578   :  { %1845 = vmatpush1.bf16.msra.mxu0 %v5930_v32  ;;  %1888 = vmatpush1.bf16.msra.mxu1 %v5933_v62 }
 0x579   :  { %1846 = vmatprep.subr.bf16.mxu0 %v5936_v6  ;;  %1889 = vmatprep.subr.bf16.mxu1 %v5939_v8 }
 0x57c   :  { %1847 = vmatpush1.bf16.msra.mxu0 %v5942_v13  ;;  %1890 = vmatpush1.bf16.msra.mxu1 %v5945_v9 }
 0x57d   :  { %1848 = vmatprep.subr.bf16.mxu0 %v6004_v5  ;;  %1891 = vmatprep.subr.bf16.mxu1 %v6007_v11 }
 0x580   :  { %1849 = vmatpush1.bf16.msra.mxu0 %v6010_v53  ;;  %1892 = vmatpush1.bf16.msra.mxu1 %v6013_v15 }
 0x581   :  { %1850 = vmatprep.subr.bf16.mxu0 %v6016_v19  ;;  %1893 = vmatprep.subr.bf16.mxu1 %v6019_v14 }
 0x584   :  { %1851 = vmatpush1.bf16.msra.mxu0 %v6022_v21  ;;  %1894 = vmatpush1.bf16.msra.mxu1 %v6025_v27 }
 0x585   :  { %1852 = vmatprep.subr.bf16.mxu0 %v6028_v23  ;;  %1895 = vmatprep.subr.bf16.mxu1 %v6031_v22 }
 0x588   :  { %1853 = vmatpush1.bf16.msra.mxu0 %v6034_v18  ;;  %1896 = vmatpush1.bf16.msra.mxu1 %v6037_v26 }
 0x589   :  { %1854 = vmatprep.subr.bf16.mxu0 %v6040_v29  ;;  %1897 = vmatprep.subr.bf16.mxu1 %v6043_v24 }
 0x58c   :  { %1855 = vmatpush1.bf16.msra.mxu0 %v6046_v17  ;;  %1898 = vmatpush1.bf16.msra.mxu1 %v6049_v7 }
 0x58d   :  { %2000 = vmatprep.subr.bf16.mxu0 %v5964_v51  ;;  %2043 = vmatprep.subr.bf16.mxu1 %v5967_v52  ;;  %v7113_v52 = vld [vmem:[#allocation50_spill] sm:$0xff] }
 0x62f   :  { %v1714_v28 = vpop.f32.mrf.mxu0  ;;  %v1757_v56 = vpop.f32.mrf.mxu1 }
 0x630   :  { %v1766_v44 = vadd.f32 %v1714_v28, %v7109_v30  ;;  %v1768_v63 = vadd.f32 %v1757_v56, %v7115_v43  ;;  %v7124_v43 = vld [vmem:[#allocation57_spill] sm:$0xff] }
 0x631   :  { %v1716_v31 = vpop.f32.mrf.mxu0  ;;  %v1759_v36 = vpop.f32.mrf.mxu1 }
 0x632   :  { %4997 = vtanh.f32 %v1766_v44  ;;  %v1767_v37 = vadd.f32 %v1716_v31, %v7110_v16  ;;  %v1769_v39 = vadd.f32 %v1759_v36, %v7111_v38 }
 0x633   :  { %v1718_v40 = vpop.f32.mrf.mxu0  ;;  %v1761_v41 = vpop.f32.mrf.mxu1 }
 0x634   :  { %4999 = vtanh.f32 %v1767_v37  ;;  %v1770_v55 = vadd.f32 %v1718_v40, %v7112_v20  ;;  %v1772_v0 = vadd.f32 %v1761_v41, %v7116_v4 }
 0x635   :  { %5001 = vtanh.f32 %v1769_v39  ;;  %v1720_v51 = vpop.f32.mrf.mxu0  ;;  %v1763_v25 = vpop.f32.mrf.mxu1 }
 0x636   :  { %5003 = vtanh.f32 %v1770_v55  ;;  %v1771_v58 = vadd.f32 %v1720_v51, %v7113_v52  ;;  %v1773_v10 = vadd.f32 %v1763_v25, %v7114_v59 }
 0x638   :  { %5005 = vtanh.f32 %v1771_v58 }
 0x639   :  { %5007 = vtanh.f32 %v1773_v10 }
 0x63a   :  { %5009 = vtanh.f32 %v1768_v63 }
 0x63b   :  { %5011 = vtanh.f32 %v1772_v0 }
 0x63f   :  { %v4998_v60 = vpop.eup %4997 }
 0x640   :  { %v1782_v61 = vmul.f32 0.5, %v4998_v60 }
 0x641   :  { %v5000_v57 = vpop.eup %4999 }
 0x642   :  { %v5002_v1 = vpop.eup %5001  ;;  %v1788_v2 = vadd.f32 0.5, %v1782_v61  ;;  %v1783_v3 = vmul.f32 0.5, %v5000_v57 }
 0x643   :  { %v5004_v42 = vpop.eup %5003 }
 0x644   :  { %v1789_v28 = vadd.f32 0.5, %v1783_v3  ;;  %v1796_v30 = vmul.f32 %v5002_v1, %v1788_v2  ;;  %v1785_v44 = vmul.f32 0.5, %v5004_v42 }
 0x645   :  { %v5006_v31 = vpop.eup %5005 }
 0x646   :  { %v1794_v36 = vmul.f32 %v1789_v28, %v6116_v12  ;;  %v1791_v16 = vadd.f32 0.5, %v1785_v44  ;;  %v1786_v37 = vmul.f32 0.5, %v5006_v31  ;;  %v5008_v38 = vpop.eup %5007 }
 0x647   :  { %v5010_v55 = vpop.eup %5009 }
 0x648   :  { %v6166_v39 = vadd.f32 %v1796_v30, %v1794_v36  ;;  %v1792_v56 = vadd.f32 0.5, %v1786_v37  ;;  %v1797_v40 = vmul.f32 %v5008_v38, %v1791_v16  ;;  %v5012_v51 = vpop.eup %5011  ;;  %v1784_v25 = vmul.f32 0.5, %v5010_v55 }
 0x649   :  { %v1787_v12 = vmul.f32 0.5, %v5012_v51 }
 0x64a   :  { %v1795_v20 = vmul.f32 %v1792_v56, %v6120_v54  ;;  %5013 = vtanh.f32 %v6166_v39  ;;  %v1790_v58 = vadd.f32 0.5, %v1784_v25 }
 0x64b   :  { %v1793_v59 = vadd.f32 0.5, %v1787_v12 }
 0x64c   :  { %v6170_v41 = vadd.f32 %v1797_v40, %v1795_v20 }
 0x64e   :  { %5015 = vtanh.f32 %v6170_v41 }
 0x657   :  { %v5014_v52 = vpop.eup %5013 }
 0x658   :  { %v1802_v60 = vmul.f32 %v5014_v52, %v1790_v58 }
 0x65b   :  { %v5016_v10 = vpop.eup %5015 }
 0x65c   :  { %v1803_v61 = vmul.f32 %v5016_v10, %v1793_v59  ;;  %v4778_v10 = vld [vmem:[#allocation10 + $0xe8] ss:$16 sps:$4 sm:$0xff]  }
 0x65e   :  { %v4559_v57 = vpack.c.bf16 %v1803_v61, %v1802_v60  ;;  %v4784_v60 = vld [vmem:[#allocation10 + $0xc4] ss:$16 sps:$4 sm:$0xff]   ;;  %v4787_v61 = vld [vmem:[#allocation10 + $0xcc] ss:$16 sps:$4 sm:$0xff]  }
 0x660   :  { %4560 = vst [vmem:[#allocation2] sm:$0xff] %v4559_v57   ;;  %4565 = vst [vmem:[#allocation5 + $0x28] sm:$0xff] %v4559_v57  }
 0x667   :  { %v4774_v54 = vld [vmem:[#allocation2] sm:$0xff]  }
 0x668   :  { %1873 = vmatmul.mubr.bf16.vlgmr.msra.gmra.mxu0 %v4774_v54  ;;  %1916 = vmatmul.mubr.bf16.vlgmr.msra.gmra.mxu1 %v4774_v54  ;;  %v4782_v54 = vld [vmem:[#allocation10 + $0xc0] ss:$16 sps:$4 sm:$0xff]  }
 0x669   :  { %2001 = vmatpush1.bf16.msra.mxu0 %v5904_v45  ;;  %2044 = vmatpush1.bf16.msra.mxu1 %v5907_v46  ;;  %v4777_v45 = vld [vmem:[#allocation10 + $0xe4] ss:$16 sps:$4 sm:$0xff]   ;;  %v4780_v46 = vld [vmem:[#allocation10 + $0xec] ss:$16 sps:$4 sm:$0xff]  }
 0x66a   :  { %2002 = vmatprep.subr.bf16.mxu0 %v5910_v33  ;;  %2045 = vmatprep.subr.bf16.mxu1 %v5913_v34 }
 0x66b   :  { %2032 = vmatprep.mubr.bf16.mxu0 %v7081_v35  ;;  %2075 = vmatprep.mubr.bf16.mxu1 %v7081_v35 }
 0x66d   :  { %2003 = vmatpush1.bf16.msra.mxu0 %v5918_v47  ;;  %2046 = vmatpush1.bf16.msra.mxu1 %v5921_v48  ;;  %v7117_v47 = vld [vmem:[#allocation52_spill] sm:$0xff] }
 0x66e   :  { %2004 = vmatprep.subr.bf16.mxu0 %v5924_v49  ;;  %2047 = vmatprep.subr.bf16.mxu1 %v5927_v50 }
 0x671   :  { %2005 = vmatpush1.bf16.msra.mxu0 %v5930_v32  ;;  %2048 = vmatpush1.bf16.msra.mxu1 %v5933_v62  ;;  %v7118_v32 = vld [vmem:[#allocation54_spill] sm:$0xff] }
 0x672   :  { %2006 = vmatprep.subr.bf16.mxu0 %v5936_v6  ;;  %2049 = vmatprep.subr.bf16.mxu1 %v5939_v8  ;;  %v7119_v6 = vld [vmem:[#allocation55_spill] sm:$0xff] }
 0x675   :  { %2007 = vmatpush1.bf16.msra.mxu0 %v5942_v13  ;;  %2050 = vmatpush1.bf16.msra.mxu1 %v5945_v9 }
 0x676   :  { %2008 = vmatprep.subr.bf16.mxu0 %v6004_v5  ;;  %2051 = vmatprep.subr.bf16.mxu1 %v6007_v11  ;;  %v7120_v5 = vld [vmem:[#allocation56_spill] sm:$0xff] }
 0x679   :  { %2009 = vmatpush1.bf16.msra.mxu0 %v6010_v53  ;;  %2052 = vmatpush1.bf16.msra.mxu1 %v6013_v15 }
 0x67a   :  { %2010 = vmatprep.subr.bf16.mxu0 %v6016_v19  ;;  %2053 = vmatprep.subr.bf16.mxu1 %v6019_v14  ;;  %v7121_v19 = vld [vmem:[#allocation58_spill] sm:$0xff] }
 0x67d   :  { %2011 = vmatpush1.bf16.msra.mxu0 %v6022_v21  ;;  %2054 = vmatpush1.bf16.msra.mxu1 %v6025_v27  ;;  %v7122_v21 = vld [vmem:[#allocation59_spill] sm:$0xff] }
 0x67e   :  { %2012 = vmatprep.subr.bf16.mxu0 %v6028_v23  ;;  %2055 = vmatprep.subr.bf16.mxu1 %v6031_v22 }
 0x681   :  { %2013 = vmatpush1.bf16.msra.mxu0 %v6034_v18  ;;  %2056 = vmatpush1.bf16.msra.mxu1 %v6037_v26  ;;  %v7123_v26 = vld [vmem:[#allocation53_spill] sm:$0xff] }
 0x682   :  { %2014 = vmatprep.subr.bf16.mxu0 %v6040_v29  ;;  %2057 = vmatprep.subr.bf16.mxu1 %v6043_v24 }
 0x685   :  { %2015 = vmatpush1.bf16.msra.mxu0 %v6046_v17  ;;  %2058 = vmatpush1.bf16.msra.mxu1 %v6049_v7 }
 0x686   :  { %2417 = vmatprep.subr.bf16.mxu0 %v4777_v45  ;;  %2530 = vmatprep.subr.bf16.mxu1 %v4780_v46  ;;  %v4785_v45 = vld [vmem:[#allocation10 + $0xc8] ss:$16 sps:$4 sm:$0xff]   ;;  %v4790_v46 = vld [vmem:[#allocation10 + $0xa4] ss:$16 sps:$4 sm:$0xff]  }
 0x728   :  { %v1874_v33 = vpop.f32.mrf.mxu0  ;;  %v1917_v34 = vpop.f32.mrf.mxu1 }
 0x729   :  { %v1926_v48 = vadd.f32 %v1874_v33, %v7117_v47  ;;  %v1928_v29 = vadd.f32 %v1917_v34, %v7123_v26  ;;  %v4793_v33 = vld [vmem:[#allocation10 + $0xac] ss:$16 sps:$4 sm:$0xff]   ;;  %v4788_v34 = vld [vmem:[#allocation10 + $0xa0] ss:$16 sps:$4 sm:$0xff]   ;;  %v4791_v47 = vld [vmem:[#allocation10 + $0xa8] ss:$16 sps:$4 sm:$0xff]  }
 0x72a   :  { %v1876_v49 = vpop.f32.mrf.mxu0  ;;  %v1919_v50 = vpop.f32.mrf.mxu1  ;;  %v4824_v26 = vld [vmem:[#allocation5] sm:$0xff]  }
 0x72b   :  { %5017 = vtanh.f32 %v1926_v48  ;;  %v1927_v62 = vadd.f32 %v1876_v49, %v7118_v32  ;;  %v1929_v8 = vadd.f32 %v1919_v50, %v7119_v6  ;;  %v4796_v48 = vld [vmem:[#allocation10 + $0x84] ss:$16 sps:$4 sm:$0xff]   ;;  %v4799_v49 = vld [vmem:[#allocation10 + $0x8c] ss:$16 sps:$4 sm:$0xff]   ;;  %v4794_v50 = vld [vmem:[#allocation10 + $0x80] ss:$16 sps:$4 sm:$0xff]  }
 0x72c   :  { %v1878_v13 = vpop.f32.mrf.mxu0  ;;  %v1921_v9 = vpop.f32.mrf.mxu1  ;;  %v4797_v32 = vld [vmem:[#allocation10 + $0x88] ss:$16 sps:$4 sm:$0xff]   ;;  %v4805_v6 = vld [vmem:[#allocation10 + $0x6c] ss:$16 sps:$4 sm:$0xff]  }
 0x72d   :  { %5019 = vtanh.f32 %v1927_v62  ;;  %v1930_v11 = vadd.f32 %v1878_v13, %v7120_v5  ;;  %v1932_v63 = vadd.f32 %v1921_v9, %v7124_v43  ;;  %v4802_v62 = vld [vmem:[#allocation10 + $0x64] ss:$16 sps:$4 sm:$0xff]   ;;  %v4803_v13 = vld [vmem:[#allocation10 + $0x68] ss:$16 sps:$4 sm:$0xff]   ;;  %v4811_v5 = vld [vmem:[#allocation10 + $0x4c] ss:$16 sps:$4 sm:$0xff]  }
 0x72e   :  { %5021 = vtanh.f32 %v1929_v8  ;;  %v1880_v53 = vpop.f32.mrf.mxu0  ;;  %v1923_v15 = vpop.f32.mrf.mxu1  ;;  %v4800_v8 = vld [vmem:[#allocation10 + $0x60] ss:$16 sps:$4 sm:$0xff]   ;;  %v4808_v9 = vld [vmem:[#allocation10 + $0x44] ss:$16 sps:$4 sm:$0xff]   ;;  %v4829_v43 = vld [vmem:[#allocation5 + $0x28] sm:$0xff]  }
 0x72f   :  { %5023 = vtanh.f32 %v1930_v11  ;;  %v1931_v14 = vadd.f32 %v1880_v53, %v7121_v19  ;;  %v1933_v27 = vadd.f32 %v1923_v15, %v7122_v21  ;;  %v4806_v11 = vld [vmem:[#allocation10 + $0x40] ss:$16 sps:$4 sm:$0xff]   ;;  %v4809_v53 = vld [vmem:[#allocation10 + $0x48] ss:$16 sps:$4 sm:$0xff]   ;;  %v4814_v15 = vld [vmem:[#allocation10 + $0x24] ss:$16 sps:$4 sm:$0xff]  }
 0x730   :  { %v4817_v19 = vld [vmem:[#allocation10 + $0x2c] ss:$16 sps:$4 sm:$0xff]   ;;  %v4815_v21 = vld [vmem:[#allocation10 + $0x28] ss:$16 sps:$4 sm:$0xff]  }
 0x731   :  { %5025 = vtanh.f32 %v1931_v14  ;;  %v4812_v14 = vld [vmem:[#allocation10 + $0x20] ss:$16 sps:$4 sm:$0xff]  }
 0x732   :  { %5027 = vtanh.f32 %v1933_v27  ;;  %v4820_v27 = vld [vmem:[#allocation10 + $0x4] ss:$16 sps:$4 sm:$0xff]  }
 0x733   :  { %5029 = vtanh.f32 %v1928_v29  ;;  %v4825_v29 = vld [vmem:[#allocation5 + $0x8] sm:$0xff]  }
 0x734   :  { %5031 = vtanh.f32 %v1932_v63 }
 0x738   :  { %v5018_v23 = vpop.eup %5017 }
 0x739   :  { %v1942_v22 = vmul.f32 0.5, %v5018_v23  ;;  %v4823_v23 = vld [vmem:[#allocation10 + $0xc] ss:$16 sps:$4 sm:$0xff]  }
 0x73a   :  { %v5020_v18 = vpop.eup %5019 }
 0x73b   :  { %v5022_v24 = vpop.eup %5021  ;;  %v1948_v17 = vadd.f32 0.5, %v1942_v22  ;;  %v1943_v7 = vmul.f32 0.5, %v5020_v18  ;;  %v4818_v22 = vld [vmem:[#allocation10] ss:$16 sps:$4 sm:$0xff]   ;;  %v4821_v18 = vld [vmem:[#allocation10 + $0x8] ss:$16 sps:$4 sm:$0xff]  }
 0x73c   :  { %v5024_v1 = vpop.eup %5023 }
 0x73d   :  { %v1949_v2 = vadd.f32 0.5, %v1943_v7  ;;  %v1956_v3 = vmul.f32 %v5022_v24, %v1948_v17  ;;  %v1945_v4 = vmul.f32 0.5, %v5024_v1  ;;  %v4826_v24 = vld [vmem:[#allocation5 + $0x10] sm:$0xff]   ;;  %v4827_v17 = vld [vmem:[#allocation5 + $0x18] sm:$0xff]   ;;  %v4828_v7 = vld [vmem:[#allocation5 + $0x20] sm:$0xff]  }
 0x73e   :  { %v5026_v0 = vpop.eup %5025  ;;  %v6237_v1 = vld [vmem:[#allocation11 + $0xe4] ss:$16 sps:$4 sm:$0xff]  }
 0x73f   :  { %v1954_v42 = vmul.f32 %v1949_v2, %v6166_v39  ;;  %v1951_v28 = vadd.f32 0.5, %v1945_v4  ;;  %v1946_v30 = vmul.f32 0.5, %v5026_v0  ;;  %v5028_v44 = vpop.eup %5027  ;;  %v6239_v2 = vld [vmem:[#allocation11 + $0xec] ss:$16 sps:$4 sm:$0xff]   ;;  %v6243_v4 = vld [vmem:[#allocation11 + $0xe8] ss:$16 sps:$4 sm:$0xff]  }
 0x740   :  { %v5030_v56 = vpop.eup %5029  ;;  %v6249_v0 = vld [vmem:[#allocation11 + $0xc4] ss:$16 sps:$4 sm:$0xff]  }
 0x741   :  { %v6214_v31 = vadd.f32 %v1956_v3, %v1954_v42  ;;  %v1952_v36 = vadd.f32 0.5, %v1946_v30  ;;  %v1957_v16 = vmul.f32 %v5028_v44, %v1951_v28  ;;  %v5032_v40 = vpop.eup %5031  ;;  %v1944_v20 = vmul.f32 0.5, %v5030_v56  ;;  %v6241_v3 = vld [vmem:[#allocation11 + $0xe0] ss:$16 sps:$4 sm:$0xff]   ;;  %v6251_v42 = vld [vmem:[#allocation11 + $0xcc] ss:$16 sps:$4 sm:$0xff]  }
 0x742   :  { %v1947_v39 = vmul.f32 0.5, %v5032_v40  ;;  %v6253_v28 = vld [vmem:[#allocation11 + $0xc0] ss:$16 sps:$4 sm:$0xff]   ;;  %v6255_v30 = vld [vmem:[#allocation11 + $0xc8] ss:$16 sps:$4 sm:$0xff]  }
 0x743   :  { %v1955_v37 = vmul.f32 %v1952_v36, %v6170_v41  ;;  %5033 = vtanh.f32 %v6214_v31  ;;  %v1950_v51 = vadd.f32 0.5, %v1944_v20  ;;  %v4775_v41 = vld [vmem:[#allocation10 + $0xe0] ss:$16 sps:$4 sm:$0xff]   ;;  %v6261_v44 = vld [vmem:[#allocation11 + $0xa4] ss:$16 sps:$4 sm:$0xff]  }
 0x744   :  { %v1953_v25 = vadd.f32 0.5, %v1947_v39  ;;  %v6263_v36 = vld [vmem:[#allocation11 + $0xac] ss:$16 sps:$4 sm:$0xff]   ;;  %v6273_v56 = vld [vmem:[#allocation11 + $0x84] ss:$16 sps:$4 sm:$0xff]  }
 0x745   :  { %v6218_v38 = vadd.f32 %v1957_v16, %v1955_v37  ;;  %v6265_v16 = vld [vmem:[#allocation11 + $0xa0] ss:$16 sps:$4 sm:$0xff]   ;;  %v6267_v37 = vld [vmem:[#allocation11 + $0xa8] ss:$16 sps:$4 sm:$0xff]   ;;  %v6275_v40 = vld [vmem:[#allocation11 + $0x8c] ss:$16 sps:$4 sm:$0xff]  }
 0x746   :  { %v6277_v20 = vld [vmem:[#allocation11 + $0x80] ss:$16 sps:$4 sm:$0xff]   ;;  %v6279_v39 = vld [vmem:[#allocation11 + $0x88] ss:$16 sps:$4 sm:$0xff]  }
 0x747   :  { %5035 = vtanh.f32 %v6218_v38 }
 0x750   :  { %v5034_v55 = vpop.eup %5033 }
 0x751   :  { %v1962_v52 = vmul.f32 %v5034_v55, %v1950_v51  ;;  %v6285_v55 = vld [vmem:[#allocation11 + $0x64] ss:$16 sps:$4 sm:$0xff]   ;;  %v6287_v51 = vld [vmem:[#allocation11 + $0x60] ss:$16 sps:$4 sm:$0xff]  }
 0x754   :  { %v5036_v12 = vpop.eup %5035 }
 0x755   :  { %v1963_v58 = vmul.f32 %v5036_v12, %v1953_v25  ;;  %v6289_v25 = vld [vmem:[#allocation11 + $0x6c] ss:$16 sps:$4 sm:$0xff]   ;;  %v6291_v12 = vld [vmem:[#allocation11 + $0x68] ss:$16 sps:$4 sm:$0xff]  }
 0x757   :  { %v4569_v59 = vpack.c.bf16 %v1963_v58, %v1962_v52  ;;  %v6293_v52 = vld [vmem:[#allocation11 + $0x44] ss:$16 sps:$4 sm:$0xff]   ;;  %v6297_v58 = vld [vmem:[#allocation11 + $0x4c] ss:$16 sps:$4 sm:$0xff]  }
 0x759   :  { %4570 = vst [vmem:[#allocation2] sm:$0xff] %v4569_v59   ;;  %4575 = vst [vmem:[#allocation5 + $0x30] sm:$0xff] %v4569_v59   ;;  %v6301_v59 = vld [vmem:[#allocation11 + $0x40] ss:$16 sps:$4 sm:$0xff]  }
 0x760   :  { %v4781_v57 = vld [vmem:[#allocation2] sm:$0xff]  }
 0x761   :  { %2033 = vmatmul.mubr.bf16.vlgmr.msra.gmra.mxu0 %v4781_v57  ;;  %2076 = vmatmul.mubr.bf16.vlgmr.msra.gmra.mxu1 %v4781_v57  ;;  %v4830_v63 = vld [vmem:[#allocation5 + $0x30] sm:$0xff]   ;;  %v6316_v57 = vld [vmem:[#allocation11 + $0x28] ss:$16 sps:$4 sm:$0xff]  }
 0x762   :  { %2418 = vmatpush1.bf16.msra.mxu0 %v4775_v41  ;;  %2531 = vmatpush1.bf16.msra.mxu1 %v4778_v10  ;;  %v6303_v41 = vld [vmem:[#allocation11 + $0x48] ss:$16 sps:$4 sm:$0xff]   ;;  %v6307_v10 = vld [vmem:[#allocation11 + $0x24] ss:$16 sps:$4 sm:$0xff]  }
 0x763   :  { %2419 = vmatprep.subr.bf16.mxu0 %v4784_v60  ;;  %2532 = vmatprep.subr.bf16.mxu1 %v4787_v61  ;;  %v6311_v60 = vld [vmem:[#allocation11 + $0x20] ss:$16 sps:$4 sm:$0xff]   ;;  %v6314_v61 = vld [vmem:[#allocation11 + $0x2c] ss:$16 sps:$4 sm:$0xff]  }
 0x764   :  { %2449 = vmatprep.mubr.bf16.mxu0 %v7081_v35  ;;  %2562 = vmatprep.mubr.bf16.mxu1 %v7081_v35 }
 0x766   :  { %2420 = vmatpush1.bf16.msra.mxu0 %v4782_v54  ;;  %2533 = vmatpush1.bf16.msra.mxu1 %v4785_v45  ;;  %v6321_v54 = vld [vmem:[#allocation11 + $0x4] ss:$16 sps:$4 sm:$0xff]   ;;  %v6323_v45 = vld [vmem:[#allocation11] ss:$16 sps:$4 sm:$0xff]  }
 0x767   :  { %2421 = vmatprep.subr.bf16.mxu0 %v4790_v46  ;;  %2534 = vmatprep.subr.bf16.mxu1 %v4793_v33  ;;  %v6325_v46 = vld [vmem:[#allocation11 + $0xc] ss:$16 sps:$4 sm:$0xff]   ;;  %v6327_v33 = vld [vmem:[#allocation11 + $0x8] ss:$16 sps:$4 sm:$0xff]  }
 0x76a   :  { %2422 = vmatpush1.bf16.msra.mxu0 %v4788_v34  ;;  %2535 = vmatpush1.bf16.msra.mxu1 %v4791_v47 }
 0x76b   :  { %2423 = vmatprep.subr.bf16.mxu0 %v4796_v48  ;;  %2536 = vmatprep.subr.bf16.mxu1 %v4799_v49  ;;  %v7125_v48 = vld [vmem:[#allocation60_spill] sm:$0xff] }
 0x76e   :  { %2424 = vmatpush1.bf16.msra.mxu0 %v4794_v50  ;;  %2537 = vmatpush1.bf16.msra.mxu1 %v4797_v32 }
 0x76f   :  { %2425 = vmatprep.subr.bf16.mxu0 %v4802_v62  ;;  %2538 = vmatprep.subr.bf16.mxu1 %v4805_v6  ;;  %v7126_v62 = vld [vmem:[#allocation62_spill] sm:$0xff] }
 0x772   :  { %2426 = vmatpush1.bf16.msra.mxu0 %v4800_v8  ;;  %2539 = vmatpush1.bf16.msra.mxu1 %v4803_v13  ;;  %v7127_v8 = vld [vmem:[#allocation63_spill] sm:$0xff] }
 0x773   :  { %2427 = vmatprep.subr.bf16.mxu0 %v4808_v9  ;;  %2540 = vmatprep.subr.bf16.mxu1 %v4811_v5 }
 0x776   :  { %2428 = vmatpush1.bf16.msra.mxu0 %v4806_v11  ;;  %2541 = vmatpush1.bf16.msra.mxu1 %v4809_v53  ;;  %v7128_v11 = vld [vmem:[#allocation64_spill] sm:$0xff] }
 0x777   :  { %2429 = vmatprep.subr.bf16.mxu0 %v4814_v15  ;;  %2542 = vmatprep.subr.bf16.mxu1 %v4817_v19 }
 0x77a   :  { %2430 = vmatpush1.bf16.msra.mxu0 %v4812_v14  ;;  %2543 = vmatpush1.bf16.msra.mxu1 %v4815_v21  ;;  %v7129_v14 = vld [vmem:[#allocation66_spill] sm:$0xff] }
 0x77b   :  { %2431 = vmatprep.subr.bf16.mxu0 %v4820_v27  ;;  %2544 = vmatprep.subr.bf16.mxu1 %v4823_v23  ;;  %v7130_v27 = vld [vmem:[#allocation67_spill] sm:$0xff] }
 0x77e   :  { %2432 = vmatpush1.bf16.msra.mxu0 %v4818_v22  ;;  %2545 = vmatpush1.bf16.msra.mxu1 %v4821_v18  ;;  %v7131_v22 = vld [vmem:[#allocation61_spill] sm:$0xff] }
 0x77f   :  { %2919 = vmatprep.subr.bf16.mxu0 %v6237_v1  ;;  %2962 = vmatprep.subr.bf16.mxu1 %v6239_v2 }
 0x781   :  { %2450 = vmatmul.mubr.bf16.vlgmr.msra.gmra.mxu0 %v4824_v26  ;;  %2563 = vmatmul.mubr.bf16.vlgmr.msra.gmra.mxu1 %v4824_v26 }
 0x782   :  { %2459 = vmatprep.mubr.bf16.mxu0 %v7081_v35  ;;  %2572 = vmatprep.mubr.bf16.mxu1 %v7081_v35 }
 0x783   :  { %2920 = vmatpush1.bf16.msra.mxu0 %v6241_v3  ;;  %2963 = vmatpush1.bf16.msra.mxu1 %v6243_v4 }
 0x784   :  { %2921 = vmatprep.subr.bf16.mxu0 %v6249_v0  ;;  %2964 = vmatprep.subr.bf16.mxu1 %v6251_v42 }
 0x787   :  { %2922 = vmatpush1.bf16.msra.mxu0 %v6253_v28  ;;  %2965 = vmatpush1.bf16.msra.mxu1 %v6255_v30 }
 0x788   :  { %2923 = vmatprep.subr.bf16.mxu0 %v6261_v44  ;;  %2966 = vmatprep.subr.bf16.mxu1 %v6263_v36 }
 0x789   :  { %2460 = vmatmul.mubr.bf16.gmra.mxu0 %v4825_v29  ;;  %2573 = vmatmul.mubr.bf16.gmra.mxu1 %v4825_v29 }
 0x78a   :  { %2469 = vmatprep.mubr.bf16.mxu0 %v7081_v35  ;;  %2582 = vmatprep.mubr.bf16.mxu1 %v7081_v35 }
 0x78b   :  { %2924 = vmatpush1.bf16.msra.mxu0 %v6265_v16  ;;  %2967 = vmatpush1.bf16.msra.mxu1 %v6267_v37 }
 0x78c   :  { %2925 = vmatprep.subr.bf16.mxu0 %v6273_v56  ;;  %2968 = vmatprep.subr.bf16.mxu1 %v6275_v40 }
 0x78f   :  { %2926 = vmatpush1.bf16.msra.mxu0 %v6277_v20  ;;  %2969 = vmatpush1.bf16.msra.mxu1 %v6279_v39 }
 0x790   :  { %2927 = vmatprep.subr.bf16.mxu0 %v6285_v55  ;;  %2970 = vmatprep.subr.bf16.mxu1 %v6289_v25 }
 0x791   :  { %2470 = vmatmul.mubr.bf16.gmra.mxu0 %v4826_v24  ;;  %2583 = vmatmul.mubr.bf16.gmra.mxu1 %v4826_v24 }
 0x792   :  { %2479 = vmatprep.mubr.bf16.mxu0 %v7081_v35  ;;  %2592 = vmatprep.mubr.bf16.mxu1 %v7081_v35 }
 0x793   :  { %2928 = vmatpush1.bf16.msra.mxu0 %v6287_v51  ;;  %2971 = vmatpush1.bf16.msra.mxu1 %v6291_v12 }
 0x794   :  { %2929 = vmatprep.subr.bf16.mxu0 %v6293_v52  ;;  %2972 = vmatprep.subr.bf16.mxu1 %v6297_v58 }
 0x797   :  { %2930 = vmatpush1.bf16.msra.mxu0 %v6301_v59  ;;  %2973 = vmatpush1.bf16.msra.mxu1 %v6303_v41 }
 0x798   :  { %2931 = vmatprep.subr.bf16.mxu0 %v6307_v10  ;;  %2974 = vmatprep.subr.bf16.mxu1 %v6314_v61 }
 0x799   :  { %2480 = vmatmul.mubr.bf16.gmra.mxu0 %v4827_v17  ;;  %2593 = vmatmul.mubr.bf16.gmra.mxu1 %v4827_v17 }
 0x79a   :  { %2489 = vmatprep.mubr.bf16.mxu0 %v7081_v35  ;;  %2602 = vmatprep.mubr.bf16.mxu1 %v7081_v35 }
 0x79b   :  { %2932 = vmatpush1.bf16.msra.mxu0 %v6311_v60  ;;  %2975 = vmatpush1.bf16.msra.mxu1 %v6316_v57 }
 0x79c   :  { %2933 = vmatprep.subr.bf16.mxu0 %v6321_v54  ;;  %2976 = vmatprep.subr.bf16.mxu1 %v6325_v46 }
 0x79f   :  { %2934 = vmatpush1.bf16.msra.mxu0 %v6323_v45  ;;  %2977 = vmatpush1.bf16.msra.mxu1 %v6327_v33 }
 0x7a0   :  { %3073 = vmatprep.subr.bf16.mxu0 %v6237_v1  ;;  %3116 = vmatprep.subr.bf16.mxu1 %v6239_v2 }
 0x7a1   :  { %2490 = vmatmul.mubr.bf16.gmra.mxu0 %v4828_v7  ;;  %2603 = vmatmul.mubr.bf16.gmra.mxu1 %v4828_v7 }
 0x7a2   :  { %2499 = vmatprep.mubr.bf16.mxu0 %v7081_v35  ;;  %2612 = vmatprep.mubr.bf16.mxu1 %v7081_v35 }
 0x7a9   :  { %2500 = vmatmul.mubr.bf16.gmra.mxu0 %v4829_v43  ;;  %2613 = vmatmul.mubr.bf16.gmra.mxu1 %v4829_v43 }
 0x7aa   :  { %2509 = vmatprep.mubr.bf16.mxu0 %v7081_v35  ;;  %2622 = vmatprep.mubr.bf16.mxu1 %v7081_v35 }
 0x7b1   :  { %2510 = vmatmul.mubr.bf16.gmra.mxu0 %v4830_v63  ;;  %2623 = vmatmul.mubr.bf16.gmra.mxu1 %v4830_v63  ;;  %v7132_v63 = vld [vmem:[#allocation65_spill] sm:$0xff] }
 0x7b2   :  { %2519 = vmatprep.mubr.bf16.mxu0 %v7081_v35  ;;  %2632 = vmatprep.mubr.bf16.mxu1 %v7081_v35 }
 0x821   :  { %v2034_v34 = vpop.f32.mrf.mxu0  ;;  %v2077_v47 = vpop.f32.mrf.mxu1 }
 0x822   :  { %v2086_v49 = vadd.f32 %v2034_v34, %v7125_v48  ;;  %v2088_v18 = vadd.f32 %v2077_v47, %v7131_v22 }
 0x823   :  { %v2036_v50 = vpop.f32.mrf.mxu0  ;;  %v2079_v32 = vpop.f32.mrf.mxu1 }
 0x824   :  { %5037 = vtanh.f32 %v2086_v49  ;;  %v2087_v6 = vadd.f32 %v2036_v50, %v7126_v62  ;;  %v2089_v13 = vadd.f32 %v2079_v32, %v7127_v8 }
 0x825   :  { %v2038_v9 = vpop.f32.mrf.mxu0  ;;  %v2081_v5 = vpop.f32.mrf.mxu1 }
 0x826   :  { %5039 = vtanh.f32 %v2087_v6  ;;  %v2090_v53 = vadd.f32 %v2038_v9, %v7128_v11  ;;  %v2092_v34 = vadd.f32 %v2081_v5, %v7132_v63 }
 0x827   :  { %5041 = vtanh.f32 %v2089_v13  ;;  %v2040_v15 = vpop.f32.mrf.mxu0  ;;  %v2083_v19 = vpop.f32.mrf.mxu1 }
 0x828   :  { %5043 = vtanh.f32 %v2090_v53  ;;  %v2091_v21 = vadd.f32 %v2040_v15, %v7129_v14  ;;  %v2093_v23 = vadd.f32 %v2083_v19, %v7130_v27 }
 0x82a   :  { %5045 = vtanh.f32 %v2091_v21 }
 0x82b   :  { %5047 = vtanh.f32 %v2093_v23 }
 0x82c   :  { %5049 = vtanh.f32 %v2088_v18 }
 0x82d   :  { %5051 = vtanh.f32 %v2092_v34 }
 0x831   :  { %v5038_v26 = vpop.eup %5037 }
 0x832   :  { %v2102_v29 = vmul.f32 0.5, %v5038_v26 }
 0x833   :  { %v5040_v24 = vpop.eup %5039 }
 0x834   :  { %v5042_v17 = vpop.eup %5041  ;;  %v2108_v7 = vadd.f32 0.5, %v2102_v29  ;;  %v2103_v43 = vmul.f32 0.5, %v5040_v24 }
 0x835   :  { %v5044_v48 = vpop.eup %5043 }
 0x836   :  { %v2109_v49 = vadd.f32 0.5, %v2103_v43  ;;  %v2116_v50 = vmul.f32 %v5042_v17, %v2108_v7  ;;  %v2105_v32 = vmul.f32 0.5, %v5044_v48 }
 0x837   :  { %v5046_v62 = vpop.eup %5045 }
 0x838   :  { %v2114_v6 = vmul.f32 %v2109_v49, %v6214_v31  ;;  %v2111_v8 = vadd.f32 0.5, %v2105_v32  ;;  %v2106_v13 = vmul.f32 0.5, %v5046_v62  ;;  %v5048_v47 = vpop.eup %5047 }
 0x839   :  { %v5050_v5 = vpop.eup %5049 }
 0x83a   :  { %v2118_v9 = vadd.f32 %v2116_v50, %v2114_v6  ;;  %v2112_v11 = vadd.f32 0.5, %v2106_v13  ;;  %v2117_v53 = vmul.f32 %v5048_v47, %v2111_v8  ;;  %v2104_v14 = vmul.f32 0.5, %v5050_v5  ;;  %v5052_v21 = vpop.eup %5051 }
 0x83b   :  { %v2107_v23 = vmul.f32 0.5, %v5052_v21 }
 0x83c   :  { %5053 = vtanh.f32 %v2118_v9  ;;  %v2115_v15 = vmul.f32 %v2112_v11, %v6218_v38  ;;  %v2110_v27 = vadd.f32 0.5, %v2104_v14  ;;  %v4880_v38 = vld [vmem:[#allocation2 + $0x8] sm:$0xff]  }
 0x83d   :  { %v2113_v31 = vadd.f32 0.5, %v2107_v23 }
 0x83e   :  { %v2119_v19 = vadd.f32 %v2117_v53, %v2115_v15 }
 0x840   :  { %5055 = vtanh.f32 %v2119_v19 }
 0x841   :  { %v6381_v7 = vpop.f32.mrf.mxu0  ;;  %v6383_v43 = vpop.f32.mrf.mxu1 }
 0x843   :  { %v6385_v63 = vpop.f32.mrf.mxu0  ;;  %v6387_v34 = vpop.f32.mrf.mxu1 }
 0x845   :  { %v6389_v48 = vpop.f32.mrf.mxu0  ;;  %v6391_v49 = vpop.f32.mrf.mxu1 }
 0x847   :  { %v6393_v50 = vpop.f32.mrf.mxu0  ;;  %v6395_v32 = vpop.f32.mrf.mxu1 }
 0x849   :  { %v5054_v22 = vpop.eup %5053  ;;  %v6397_v62 = vpop.f32.mrf.mxu0 }
 0x84a   :  { %v2122_v18 = vmul.f32 %v5054_v22, %v2110_v27  ;;  %v6399_v6 = vpop.f32.mrf.mxu1 }
 0x84b   :  { %7133 = vst [vmem:[#allocation18_spill] sm:$0xff] %v6399_v6  ;;  %v6401_v8 = vpop.f32.mrf.mxu0 }
 0x84c   :  { %v6403_v13 = vpop.f32.mrf.mxu1 }
 0x84d   :  { %v5056_v26 = vpop.eup %5055  ;;  %v6405_v47 = vpop.f32.mrf.mxu0 }
 0x84e   :  { %v2123_v29 = vmul.f32 %v5056_v26, %v2113_v31  ;;  %7134 = vst [vmem:[#allocation17_spill] sm:$0xff] %v6405_v47  ;;  %v6407_v9 = vpop.f32.mrf.mxu1 }
 0x84f   :  { %7135 = vst [vmem:[#allocation19_spill] sm:$0xff] %v6407_v9  ;;  %v6409_v11 = vpop.f32.mrf.mxu0 }
 0x850   :  { %v4579_v24 = vpack.c.bf16 %v2123_v29, %v2122_v18  ;;  %7136 = vst [vmem:[#allocation20_spill] sm:$0xff] %v6409_v11  ;;  %v6411_v53 = vpop.f32.mrf.mxu1 }
 0x851   :  { %7137 = vst [vmem:[#allocation22_spill] sm:$0xff] %v6411_v53  ;;  %v6413_v15 = vpop.f32.mrf.mxu0 }
 0x852   :  { %4580 = vst [vmem:[#allocation2] sm:$0xff] %v4579_v24   ;;  %4585 = vst [vmem:[#allocation5 + $0x38] sm:$0xff] %v4579_v24   ;;  %v6415_v19 = vpop.f32.mrf.mxu1 }
 0x853   :  { %7138 = vst [vmem:[#allocation23_spill] sm:$0xff] %v6413_v15  ;;  %7139 = vst [vmem:[#allocation26_spill] sm:$0xff] %v6415_v19  ;;  %v6417_v5 = vpop.f32.mrf.mxu0 }
 0x854   :  { %7140 = vst [vmem:[#allocation27_spill] sm:$0xff] %v6417_v5  ;;  %v6419_v14 = vpop.f32.mrf.mxu1 }
 0x855   :  { %7141 = vst [vmem:[#allocation24_spill] sm:$0xff] %v6419_v14  ;;  %v6421_v21 = vpop.f32.mrf.mxu0 }
 0x856   :  { %7142 = vst [vmem:[#allocation21_spill] sm:$0xff] %v6421_v21  ;;  %v6423_v27 = vpop.f32.mrf.mxu1 }
 0x857   :  { %7143 = vst [vmem:[#allocation25_spill] sm:$0xff] %v6423_v27  ;;  %v6425_v23 = vpop.f32.mrf.mxu0 }
 0x858   :  { %7144 = vst [vmem:[#allocation28_spill] sm:$0xff] %v6425_v23  ;;  %v6427_v22 = vpop.f32.mrf.mxu1 }
 0x859   :  { %v4873_v17 = vld [vmem:[#allocation5 + $0x38] sm:$0xff]   ;;  %7145 = vst [vmem:[#allocation30_spill] sm:$0xff] %v6427_v22  ;;  %v6429_v18 = vpop.f32.mrf.mxu0 }
 0x85a   :  { %2520 = vmatmul.mubr.bf16.gmra.mxu0 %v4873_v17  ;;  %2633 = vmatmul.mubr.bf16.gmra.mxu1 %v4873_v17  ;;  %7146 = vst [vmem:[#allocation31_spill] sm:$0xff] %v6429_v18  ;;  %v6431_v31 = vpop.f32.mrf.mxu1 }
 0x85b   :  { %2951 = vmatprep.mubr.bf16.mxu0 %v7081_v35  ;;  %2994 = vmatprep.mubr.bf16.mxu1 %v7081_v35  ;;  %7147 = vst [vmem:[#allocation34_spill] sm:$0xff] %v6431_v31  ;;  %v6433_v26 = vpop.f32.mrf.mxu0 }
 0x85c   :  { %7148 = vst [vmem:[#allocation35_spill] sm:$0xff] %v6433_v26  ;;  %v6435_v29 = vpop.f32.mrf.mxu1 }
 0x85d   :  { %7149 = vst [vmem:[#allocation32_spill] sm:$0xff] %v6435_v29  ;;  %v6437_v24 = vpop.f32.mrf.mxu0 }
 0x85e   :  { %7150 = vst [vmem:[#allocation29_spill] sm:$0xff] %v6437_v24  ;;  %v6439_v17 = vpop.f32.mrf.mxu1 }
 0x85f   :  { %7151 = vst [vmem:[#allocation33_spill] sm:$0xff] %v6439_v17 }
 0x860   :  { %v6443_v19 = vpop.f32.mrf.mxu1 }
 0x861   :  { %7153 = vst [vmem:[#allocation38_spill] sm:$0xff] %v6443_v19 }
 0x862   :  { %2952 = vmatmul.mubr.bf16.vlgmr.msra.gmra.mxu0 %v4880_v38  ;;  %2995 = vmatmul.mubr.bf16.vlgmr.msra.gmra.mxu1 %v4880_v38  ;;  %v6441_v38 = vpop.f32.mrf.mxu0  ;;  %v6447_v23 = vpop.f32.mrf.mxu1 }
 0x863   :  { %3074 = vmatpush1.bf16.msra.mxu0 %v6241_v3  ;;  %3117 = vmatpush1.bf16.msra.mxu1 %v6243_v4  ;;  %7152 = vst [vmem:[#allocation36_spill] sm:$0xff] %v6441_v38  ;;  %7155 = vst [vmem:[#allocation42_spill] sm:$0xff] %v6447_v23 }
 0x864   :  { %3075 = vmatprep.subr.bf16.mxu0 %v6249_v0  ;;  %3118 = vmatprep.subr.bf16.mxu1 %v6251_v42  ;;  %v6445_v27 = vpop.f32.mrf.mxu0  ;;  %v6451_v18 = vpop.f32.mrf.mxu1 }
 0x865   :  { %3105 = vmatprep.mubr.bf16.mxu0 %v7081_v35  ;;  %3148 = vmatprep.mubr.bf16.mxu1 %v7081_v35  ;;  %7154 = vst [vmem:[#allocation39_spill] sm:$0xff] %v6445_v27  ;;  %7157 = vst [vmem:[#allocation43_spill] sm:$0xff] %v6451_v18 }
 0x866   :  { %v6449_v22 = vpop.f32.mrf.mxu0  ;;  %v6455_v26 = vpop.f32.mrf.mxu1 }
 0x867   :  { %3076 = vmatpush1.bf16.msra.mxu0 %v6253_v28  ;;  %3119 = vmatpush1.bf16.msra.mxu1 %v6255_v30  ;;  %7156 = vst [vmem:[#allocation40_spill] sm:$0xff] %v6449_v22  ;;  %7159 = vst [vmem:[#allocation41_spill] sm:$0xff] %v6455_v26 }
 0x868   :  { %3077 = vmatprep.subr.bf16.mxu0 %v6261_v44  ;;  %3120 = vmatprep.subr.bf16.mxu1 %v6263_v36  ;;  %v6453_v31 = vpop.f32.mrf.mxu0  ;;  %v6459_v24 = vpop.f32.mrf.mxu1 }
 0x869   :  { %7158 = vst [vmem:[#allocation37_spill] sm:$0xff] %v6453_v31  ;;  %7161 = vst [vmem:[#allocation46_spill] sm:$0xff] %v6459_v24 }
 0x86a   :  { %v6457_v29 = vpop.f32.mrf.mxu0  ;;  %v6463_v38 = vpop.f32.mrf.mxu1 }
 0x86b   :  { %3078 = vmatpush1.bf16.msra.mxu0 %v6265_v16  ;;  %3121 = vmatpush1.bf16.msra.mxu1 %v6267_v37  ;;  %7160 = vst [vmem:[#allocation44_spill] sm:$0xff] %v6457_v29  ;;  %7163 = vst [vmem:[#allocation48_spill] sm:$0xff] %v6463_v38 }
 0x86c   :  { %3079 = vmatprep.subr.bf16.mxu0 %v6273_v56  ;;  %3122 = vmatprep.subr.bf16.mxu1 %v6275_v40  ;;  %v6461_v17 = vpop.f32.mrf.mxu0  ;;  %v6467_v27 = vpop.f32.mrf.mxu1 }
 0x86d   :  { %7162 = vst [vmem:[#allocation47_spill] sm:$0xff] %v6461_v17  ;;  %7165 = vst [vmem:[#allocation51_spill] sm:$0xff] %v6467_v27 }
 0x86e   :  { %v6465_v19 = vpop.f32.mrf.mxu0  ;;  %v6471_v22 = vpop.f32.mrf.mxu1 }
 0x86f   :  { %3080 = vmatpush1.bf16.msra.mxu0 %v6277_v20  ;;  %3123 = vmatpush1.bf16.msra.mxu1 %v6279_v39  ;;  %7164 = vst [vmem:[#allocation50_spill] sm:$0xff] %v6465_v19  ;;  %7167 = vst [vmem:[#allocation49_spill] sm:$0xff] %v6471_v22  ;;  %v2187_v22 = vld [vmem:[%s7017_s6] sm:$0xf] }
 0x870   :  { %3081 = vmatprep.subr.bf16.mxu0 %v6285_v55  ;;  %3124 = vmatprep.subr.bf16.mxu1 %v6289_v25  ;;  %v6469_v23 = vpop.f32.mrf.mxu0  ;;  %v6475_v31 = vpop.f32.mrf.mxu1 }
 0x871   :  { %7166 = vst [vmem:[#allocation45_spill] sm:$0xff] %v6469_v23  ;;  %7169 = vst [vmem:[#allocation54_spill] sm:$0xff] %v6475_v31 }
 0x872   :  { %v6473_v18 = vpop.f32.mrf.mxu0  ;;  %v6479_v29 = vpop.f32.mrf.mxu1 }
 0x873   :  { %3082 = vmatpush1.bf16.msra.mxu0 %v6287_v51  ;;  %3125 = vmatpush1.bf16.msra.mxu1 %v6291_v12  ;;  %7168 = vst [vmem:[#allocation52_spill] sm:$0xff] %v6473_v18  ;;  %7171 = vst [vmem:[#allocation56_spill] sm:$0xff] %v6479_v29 }
 0x874   :  { %3083 = vmatprep.subr.bf16.mxu0 %v6293_v52  ;;  %3126 = vmatprep.subr.bf16.mxu1 %v6297_v58  ;;  %v6477_v26 = vpop.f32.mrf.mxu0  ;;  %v6483_v17 = vpop.f32.mrf.mxu1 }
 0x875   :  { %7170 = vst [vmem:[#allocation55_spill] sm:$0xff] %v6477_v26  ;;  %7173 = vst [vmem:[#allocation59_spill] sm:$0xff] %v6483_v17  ;;  %v7182_v17 = vld [vmem:[#allocation16_spill] sm:$0xff] }
 0x876   :  { %v6481_v24 = vpop.f32.mrf.mxu0  ;;  %v6487_v19 = vpop.f32.mrf.mxu1 }
 0x877   :  { %3084 = vmatpush1.bf16.msra.mxu0 %v6301_v59  ;;  %3127 = vmatpush1.bf16.msra.mxu1 %v6303_v41  ;;  %7172 = vst [vmem:[#allocation58_spill] sm:$0xff] %v6481_v24  ;;  %7175 = vst [vmem:[#allocation57_spill] sm:$0xff] %v6487_v19 }
 0x878   :  { %3085 = vmatprep.subr.bf16.mxu0 %v6307_v10  ;;  %3128 = vmatprep.subr.bf16.mxu1 %v6314_v61  ;;  %v6485_v38 = vpop.f32.mrf.mxu0  ;;  %v6491_v23 = vpop.f32.mrf.mxu1 }
 0x879   :  { %7174 = vst [vmem:[#allocation53_spill] sm:$0xff] %v6485_v38  ;;  %7177 = vst [vmem:[#allocation62_spill] sm:$0xff] %v6491_v23  ;;  %v7183_v38 = vsub.s32 0, %v7182_v17  ;;  %v7186_v23 = vsub.s32 1, %v7182_v17 }
 0x87a   :  { %v6489_v27 = vpop.f32.mrf.mxu0 }
 0x87b   :  { %3086 = vmatpush1.bf16.msra.mxu0 %v6311_v60  ;;  %3129 = vmatpush1.bf16.msra.mxu1 %v6316_v57  ;;  %7176 = vst [vmem:[#allocation60_spill] sm:$0xff] %v6489_v27  ;;  %v6506_v18 = vrot.slane %v2187_v22, %v7183_v38  ;;  %v6514_v21 = vrot.slane %v2187_v22, %v7186_v23 }
 0x87c   :  { %3087 = vmatprep.subr.bf16.mxu0 %v6321_v54  ;;  %3130 = vmatprep.subr.bf16.mxu1 %v6325_v46 }
 0x87d   :  { %v2452_v38 = vadd.f32 %v6381_v7, %v6506_v18  ;;  %v2458_v7 = vadd.f32 %v6393_v50, %v6514_v21 }
 0x87f   :  { %3088 = vmatpush1.bf16.msra.mxu0 %v6323_v45  ;;  %3131 = vmatpush1.bf16.msra.mxu1 %v6327_v33 }
 0x880   :  { %3227 = vmatprep.subr.bf16.mxu0 %v6237_v1  ;;  %3270 = vmatprep.subr.bf16.mxu1 %v6239_v2 }
 0x91a   :  { %v6496_v31 = vpop.f32.mrf.mxu0  ;;  %v6498_v26 = vpop.f32.mrf.mxu1 }
 0x91b   :  { %7178 = vst [vmem:[#allocation63_spill] sm:$0xff] %v6496_v31  ;;  %7179 = vst [vmem:[#allocation64_spill] sm:$0xff] %v6498_v26  ;;  %v7187_v31 = vsub.s32 3, %v7182_v17 }
 0x91c   :  { %v6500_v29 = vpop.f32.mrf.mxu0  ;;  %v6502_v24 = vpop.f32.mrf.mxu1 }
 0x91d   :  { %7180 = vst [vmem:[#allocation66_spill] sm:$0xff] %v6500_v29  ;;  %7181 = vst [vmem:[#allocation67_spill] sm:$0xff] %v6502_v24  ;;  %v6518_v14 = vrot.slane %v2187_v22, %v7187_v31  ;;  %v2456_v31 = vadd.f32 %v6389_v48, %v6506_v18 }
 0x91e   :  { %v6508_v19 = vpop.f32.mrf.mxu0  ;;  %v6510_v27 = vpop.f32.mrf.mxu1 }
 0x91f   :  { %7184 = vst [vmem:[#allocation61_spill] sm:$0xff] %v6508_v19  ;;  %7185 = vst [vmem:[#allocation65_spill] sm:$0xff] %v6510_v27  ;;  %v2454_v27 = vadd.f32 %v6385_v63, %v6514_v21  ;;  %v2567_v23 = vadd.f32 %v6387_v34, %v6518_v14  ;;  %v2571_v34 = vadd.f32 %v6395_v32, %v6518_v14 }
 0x920   :  { %v6520_v26 = vpop.f32.mrf.mxu0  ;;  %v6522_v29 = vpop.f32.mrf.mxu1 }
 0x921   :  { %7188 = vst [vmem:[#allocation16_spill] sm:$0xff] %v6520_v26  ;;  %7189 = vst [vmem:[#allocation68_spill] sm:$0xff] %v6522_v29 }
 0x922   :  { %v2953_v24 = vpop.f32.mrf.mxu0  ;;  %v2996_v5 = vpop.f32.mrf.mxu1 }
 0x923   :  { %v3005_v19 = vadd.f32 %v2953_v24, %v2452_v38 }
 0x924   :  { %v2955_v15 = vpop.f32.mrf.mxu0  ;;  %v2998_v9 = vpop.f32.mrf.mxu1 }
 0x925   :  { %5057 = vtanh.f32 %v3005_v19  ;;  %v3006_v26 = vadd.f32 %v2955_v15, %v2454_v27  ;;  %v3008_v29 = vadd.f32 %v2998_v9, %v2567_v23  ;;  %v7190_v15 = vsub.s32 2, %v7182_v17 }
 0x926   :  { %v2957_v6 = vpop.f32.mrf.mxu0  ;;  %v3000_v53 = vpop.f32.mrf.mxu1 }
 0x927   :  { %5059 = vtanh.f32 %v3006_v26  ;;  %v3009_v11 = vadd.f32 %v2957_v6, %v2456_v31  ;;  %v6538_v9 = vrot.slane %v2187_v22, %v7190_v15 }
 0x928   :  { %5061 = vtanh.f32 %v3008_v29  ;;  %v2959_v63 = vpop.f32.mrf.mxu0  ;;  %v3002_v47 = vpop.f32.mrf.mxu1 }
 0x929   :  { %5063 = vtanh.f32 %v3009_v11  ;;  %v3010_v24 = vadd.f32 %v2959_v63, %v2458_v7  ;;  %v3012_v48 = vadd.f32 %v3002_v47, %v2571_v34  ;;  %v2565_v50 = vadd.f32 %v6383_v43, %v6538_v9 }
 0x92a   :  { %v2569_v6 = vadd.f32 %v6391_v49, %v6538_v9 }
 0x92b   :  { %5065 = vtanh.f32 %v3010_v24  ;;  %v3007_v29 = vadd.f32 %v2996_v5, %v2565_v50 }
 0x92c   :  { %5067 = vtanh.f32 %v3012_v48  ;;  %v3011_v23 = vadd.f32 %v3000_v53, %v2569_v6 }
 0x92d   :  { %5069 = vtanh.f32 %v3007_v29 }
 0x92e   :  { %5071 = vtanh.f32 %v3011_v23 }
 0x932   :  { %v5058_v19 = vpop.eup %5057 }
 0x933   :  { %v3021_v27 = vmul.f32 0.5, %v5058_v19 }
 0x934   :  { %v5060_v26 = vpop.eup %5059 }
 0x935   :  { %v5062_v32 = vpop.eup %5061  ;;  %v3027_v11 = vadd.f32 0.5, %v3021_v27  ;;  %v3022_v38 = vmul.f32 0.5, %v5060_v26 }
 0x936   :  { %v5064_v47 = vpop.eup %5063 }
 0x937   :  { %v3028_v31 = vadd.f32 0.5, %v3022_v38  ;;  %v3035_v17 = vmul.f32 %v5062_v32, %v3027_v11  ;;  %v3024_v22 = vmul.f32 0.5, %v5064_v47 }
 0x938   :  { %v5066_v7 = vpop.eup %5065 }
 0x939   :  { %v3033_v63 = vmul.f32 0.0, %v3028_v31  ;;  %v3030_v34 = vadd.f32 0.5, %v3024_v22  ;;  %v3025_v43 = vmul.f32 0.5, %v5066_v7  ;;  %v5068_v48 = vpop.eup %5067 }
 0x93a   :  { %v5070_v53 = vpop.eup %5069 }
 0x93b   :  { %v6544_v24 = vadd.f32 %v3035_v17, %v3033_v63  ;;  %v3031_v49 = vadd.f32 0.5, %v3025_v43  ;;  %v3036_v5 = vmul.f32 %v5068_v48, %v3030_v34  ;;  %v5072_v50 = vpop.eup %5071  ;;  %v3023_v6 = vmul.f32 0.5, %v5070_v53 }
 0x93c   :  { %v3026_v27 = vmul.f32 0.5, %v5072_v50  ;;  %v2462_v17 = vadd.f32 %v6397_v62, %v6506_v18  ;;  %v2464_v63 = vadd.f32 %v6401_v8, %v6514_v21  ;;  %v2577_v34 = vadd.f32 %v6403_v13, %v6518_v14  ;;  %v7192_v62 = vld [vmem:[#allocation20_spill] sm:$0xff] }
 0x93d   :  { %v3034_v15 = vmul.f32 0.0, %v3031_v49  ;;  %5073 = vtanh.f32 %v6544_v24  ;;  %v3029_v29 = vadd.f32 0.5, %v3023_v6 }
 0x93e   :  { %v3032_v32 = vadd.f32 0.5, %v3026_v27 }
 0x93f   :  { %v6547_v19 = vadd.f32 %v3036_v5, %v3034_v15  ;;  %v7191_v15 = vld [vmem:[#allocation17_spill] sm:$0xff] }
 0x940   :  { %v2466_v5 = vadd.f32 %v7191_v15, %v6506_v18 }
 0x941   :  { %5075 = vtanh.f32 %v6547_v19 }
 0x94a   :  { %v5074_v26 = vpop.eup %5073 }
 0x94b   :  { %v3041_v38 = vmul.f32 %v5074_v26, %v3029_v29  ;;  %v2468_v26 = vadd.f32 %v7192_v62, %v6514_v21  ;;  %v7193_v29 = vld [vmem:[#allocation22_spill] sm:$0xff] }
 0x94c   :  { %v2581_v8 = vadd.f32 %v7193_v29, %v6518_v14 }
 0x94e   :  { %v5076_v11 = vpop.eup %5075 }
 0x94f   :  { %v3042_v23 = vmul.f32 %v5076_v11, %v3032_v32 }
 0x951   :  { %v4589_v47 = vpack.c.bf16 %v3042_v23, %v3041_v38 }
 0x953   :  { %4590 = vst [vmem:[#allocation2 + $0x8] sm:$0xff] %v4589_v47  }
 0x95a   :  { %v4881_v31 = vld [vmem:[#allocation2 + $0x8] sm:$0xff]  }
 0x95b   :  { %3106 = vmatmul.mubr.bf16.vlgmr.msra.gmra.mxu0 %v4881_v31  ;;  %3149 = vmatmul.mubr.bf16.vlgmr.msra.gmra.mxu1 %v4881_v31  ;;  %v7194_v31 = vld [vmem:[#allocation18_spill] sm:$0xff] }
 0x95c   :  { %3228 = vmatpush1.bf16.msra.mxu0 %v6241_v3  ;;  %3271 = vmatpush1.bf16.msra.mxu1 %v6243_v4 }
 0x95d   :  { %3229 = vmatprep.subr.bf16.mxu0 %v6249_v0  ;;  %3272 = vmatprep.subr.bf16.mxu1 %v6251_v42 }
 0x95e   :  { %3259 = vmatprep.mubr.bf16.mxu0 %v7081_v35  ;;  %3302 = vmatprep.mubr.bf16.mxu1 %v7081_v35 }
 0x960   :  { %3230 = vmatpush1.bf16.msra.mxu0 %v6253_v28  ;;  %3273 = vmatpush1.bf16.msra.mxu1 %v6255_v30 }
 0x961   :  { %3231 = vmatprep.subr.bf16.mxu0 %v6261_v44  ;;  %3274 = vmatprep.subr.bf16.mxu1 %v6263_v36 }
 0x964   :  { %3232 = vmatpush1.bf16.msra.mxu0 %v6265_v16  ;;  %3275 = vmatpush1.bf16.msra.mxu1 %v6267_v37 }
 0x965   :  { %3233 = vmatprep.subr.bf16.mxu0 %v6273_v56  ;;  %3276 = vmatprep.subr.bf16.mxu1 %v6275_v40 }
 0x968   :  { %3234 = vmatpush1.bf16.msra.mxu0 %v6277_v20  ;;  %3277 = vmatpush1.bf16.msra.mxu1 %v6279_v39 }
 0x969   :  { %3235 = vmatprep.subr.bf16.mxu0 %v6285_v55  ;;  %3278 = vmatprep.subr.bf16.mxu1 %v6289_v25 }
 0x96c   :  { %3236 = vmatpush1.bf16.msra.mxu0 %v6287_v51  ;;  %3279 = vmatpush1.bf16.msra.mxu1 %v6291_v12 }
 0x96d   :  { %3237 = vmatprep.subr.bf16.mxu0 %v6293_v52  ;;  %3280 = vmatprep.subr.bf16.mxu1 %v6297_v58 }
 0x970   :  { %3238 = vmatpush1.bf16.msra.mxu0 %v6301_v59  ;;  %3281 = vmatpush1.bf16.msra.mxu1 %v6303_v41 }
 0x971   :  { %3239 = vmatprep.subr.bf16.mxu0 %v6307_v10  ;;  %3282 = vmatprep.subr.bf16.mxu1 %v6314_v61 }
 0x974   :  { %3240 = vmatpush1.bf16.msra.mxu0 %v6311_v60  ;;  %3283 = vmatpush1.bf16.msra.mxu1 %v6316_v57 }
 0x975   :  { %3241 = vmatprep.subr.bf16.mxu0 %v6321_v54  ;;  %3284 = vmatprep.subr.bf16.mxu1 %v6325_v46 }
 0x978   :  { %3242 = vmatpush1.bf16.msra.mxu0 %v6323_v45  ;;  %3285 = vmatpush1.bf16.msra.mxu1 %v6327_v33 }
 0x979   :  { %3381 = vmatprep.subr.bf16.mxu0 %v6237_v1  ;;  %3424 = vmatprep.subr.bf16.mxu1 %v6239_v2 }
 0xa1b   :  { %v3107_v22 = vpop.f32.mrf.mxu0  ;;  %v3150_v7 = vpop.f32.mrf.mxu1 }
 0xa1c   :  { %v3159_v43 = vadd.f32 %v3107_v22, %v2462_v17  ;;  %v2575_v17 = vadd.f32 %v7194_v31, %v6538_v9  ;;  %v7195_v22 = vld [vmem:[#allocation19_spill] sm:$0xff] }
 0xa1d   :  { %v3109_v49 = vpop.f32.mrf.mxu0  ;;  %v3152_v48 = vpop.f32.mrf.mxu1 }
 0xa1e   :  { %5077 = vtanh.f32 %v3159_v43  ;;  %v3160_v53 = vadd.f32 %v3109_v49, %v2464_v63  ;;  %v3162_v50 = vadd.f32 %v3152_v48, %v2577_v34  ;;  %v2579_v63 = vadd.f32 %v7195_v22, %v6538_v9 }
 0xa1f   :  { %v3111_v6 = vpop.f32.mrf.mxu0  ;;  %v3154_v27 = vpop.f32.mrf.mxu1  ;;  %v3161_v49 = vadd.f32 %v3150_v7, %v2575_v17 }
 0xa20   :  { %5079 = vtanh.f32 %v3160_v53  ;;  %v3163_v32 = vadd.f32 %v3111_v6, %v2466_v5  ;;  %v3165_v53 = vadd.f32 %v3154_v27, %v2579_v63 }
 0xa21   :  { %5081 = vtanh.f32 %v3162_v50  ;;  %v3113_v13 = vpop.f32.mrf.mxu0  ;;  %v3156_v11 = vpop.f32.mrf.mxu1 }
 0xa22   :  { %5083 = vtanh.f32 %v3163_v32  ;;  %v3164_v38 = vadd.f32 %v3113_v13, %v2468_v26  ;;  %v3166_v23 = vadd.f32 %v3156_v11, %v2581_v8 }
 0xa24   :  { %5085 = vtanh.f32 %v3164_v38 }
 0xa25   :  { %5087 = vtanh.f32 %v3166_v23 }
 0xa26   :  { %5089 = vtanh.f32 %v3161_v49 }
 0xa27   :  { %5091 = vtanh.f32 %v3165_v53 }
 0xa2b   :  { %v5078_v47 = vpop.eup %5077 }
 0xa2c   :  { %v3175_v34 = vmul.f32 0.5, %v5078_v47 }
 0xa2d   :  { %v5080_v43 = vpop.eup %5079 }
 0xa2e   :  { %v5082_v48 = vpop.eup %5081  ;;  %v3181_v15 = vadd.f32 0.5, %v3175_v34  ;;  %v3176_v5 = vmul.f32 0.5, %v5080_v43 }
 0xa2f   :  { %v5084_v50 = vpop.eup %5083 }
 0xa30   :  { %v3182_v6 = vadd.f32 0.5, %v3176_v5  ;;  %v3189_v62 = vmul.f32 %v5082_v48, %v3181_v15  ;;  %v3178_v26 = vmul.f32 0.5, %v5084_v50 }
 0xa31   :  { %v5086_v29 = vpop.eup %5085 }
 0xa32   :  { %v3187_v8 = vmul.f32 %v3182_v6, %v6544_v24  ;;  %v3184_v32 = vadd.f32 0.5, %v3178_v26  ;;  %v3179_v13 = vmul.f32 0.5, %v5086_v29  ;;  %v5088_v11 = vpop.eup %5087  ;;  %v7199_v29 = vld [vmem:[#allocation21_spill] sm:$0xff] }
 0xa33   :  { %v5090_v31 = vpop.eup %5089 }
 0xa34   :  { %v6601_v38 = vadd.f32 %v3189_v62, %v3187_v8  ;;  %v3185_v23 = vadd.f32 0.5, %v3179_v13  ;;  %v3190_v7 = vmul.f32 %v5088_v11, %v3184_v32  ;;  %v5092_v17 = vpop.eup %5091  ;;  %v3177_v22 = vmul.f32 0.5, %v5090_v31  ;;  %v7200_v11 = vld [vmem:[#allocation28_spill] sm:$0xff] }
 0xa35   :  { %v3180_v24 = vmul.f32 0.5, %v5092_v17  ;;  %v2476_v8 = vadd.f32 %v7199_v29, %v6506_v18 }
 0xa36   :  { %v3188_v47 = vmul.f32 %v3185_v23, %v6547_v19  ;;  %5093 = vtanh.f32 %v6601_v38  ;;  %v3183_v34 = vadd.f32 0.5, %v3177_v22  ;;  %v7198_v19 = vld [vmem:[#allocation24_spill] sm:$0xff]  ;;  %v2478_v23 = vadd.f32 %v7200_v11, %v6514_v21 }
 0xa37   :  { %v3186_v43 = vadd.f32 0.5, %v3180_v24  ;;  %v2587_v50 = vadd.f32 %v7198_v19, %v6518_v14 }
 0xa38   :  { %v6605_v27 = vadd.f32 %v3190_v7, %v3188_v47  ;;  %v7201_v7 = vld [vmem:[#allocation30_spill] sm:$0xff] }
 0xa39   :  { %v2591_v47 = vadd.f32 %v7201_v7, %v6518_v14 }
 0xa3a   :  { %5095 = vtanh.f32 %v6605_v27 }
 0xa43   :  { %v5094_v63 = vpop.eup %5093 }
 0xa44   :  { %v3195_v48 = vmul.f32 %v5094_v63, %v3183_v34 }
 0xa47   :  { %v5096_v49 = vpop.eup %5095 }
 0xa48   :  { %v3196_v15 = vmul.f32 %v5096_v49, %v3186_v43  ;;  %v7202_v43 = vld [vmem:[#allocation26_spill] sm:$0xff] }
 0xa49   :  { %v2585_v49 = vadd.f32 %v7202_v43, %v6538_v9 }
 0xa4a   :  { %v4594_v5 = vpack.c.bf16 %v3196_v15, %v3195_v48  ;;  %v7203_v48 = vld [vmem:[#allocation25_spill] sm:$0xff] }
 0xa4b   :  { %v2589_v15 = vadd.f32 %v7203_v48, %v6538_v9 }
 0xa4c   :  { %4595 = vst [vmem:[#allocation2 + $0x8] sm:$0xff] %v4594_v5  }
 0xa53   :  { %v4882_v53 = vld [vmem:[#allocation2 + $0x8] sm:$0xff]  }
 0xa54   :  { %3260 = vmatmul.mubr.bf16.vlgmr.msra.gmra.mxu0 %v4882_v53  ;;  %3303 = vmatmul.mubr.bf16.vlgmr.msra.gmra.mxu1 %v4882_v53 }
 0xa55   :  { %3382 = vmatpush1.bf16.msra.mxu0 %v6241_v3  ;;  %3425 = vmatpush1.bf16.msra.mxu1 %v6243_v4  ;;  %v7196_v3 = vld [vmem:[#allocation23_spill] sm:$0xff] }
 0xa56   :  { %3383 = vmatprep.subr.bf16.mxu0 %v6249_v0  ;;  %3426 = vmatprep.subr.bf16.mxu1 %v6251_v42  ;;  %v2472_v4 = vadd.f32 %v7196_v3, %v6506_v18 }
 0xa57   :  { %3413 = vmatprep.mubr.bf16.mxu0 %v7081_v35  ;;  %3456 = vmatprep.mubr.bf16.mxu1 %v7081_v35 }
 0xa59   :  { %3384 = vmatpush1.bf16.msra.mxu0 %v6253_v28  ;;  %3427 = vmatpush1.bf16.msra.mxu1 %v6255_v30  ;;  %v7197_v28 = vld [vmem:[#allocation27_spill] sm:$0xff] }
 0xa5a   :  { %3385 = vmatprep.subr.bf16.mxu0 %v6261_v44  ;;  %3428 = vmatprep.subr.bf16.mxu1 %v6263_v36  ;;  %v2474_v30 = vadd.f32 %v7197_v28, %v6514_v21 }
 0xa5d   :  { %3386 = vmatpush1.bf16.msra.mxu0 %v6265_v16  ;;  %3429 = vmatpush1.bf16.msra.mxu1 %v6267_v37 }
 0xa5e   :  { %3387 = vmatprep.subr.bf16.mxu0 %v6273_v56  ;;  %3430 = vmatprep.subr.bf16.mxu1 %v6275_v40 }
 0xa61   :  { %3388 = vmatpush1.bf16.msra.mxu0 %v6277_v20  ;;  %3431 = vmatpush1.bf16.msra.mxu1 %v6279_v39 }
 0xa62   :  { %3389 = vmatprep.subr.bf16.mxu0 %v6285_v55  ;;  %3432 = vmatprep.subr.bf16.mxu1 %v6289_v25 }
 0xa65   :  { %3390 = vmatpush1.bf16.msra.mxu0 %v6287_v51  ;;  %3433 = vmatpush1.bf16.msra.mxu1 %v6291_v12 }
 0xa66   :  { %3391 = vmatprep.subr.bf16.mxu0 %v6293_v52  ;;  %3434 = vmatprep.subr.bf16.mxu1 %v6297_v58 }
 0xa69   :  { %3392 = vmatpush1.bf16.msra.mxu0 %v6301_v59  ;;  %3435 = vmatpush1.bf16.msra.mxu1 %v6303_v41 }
 0xa6a   :  { %3393 = vmatprep.subr.bf16.mxu0 %v6307_v10  ;;  %3436 = vmatprep.subr.bf16.mxu1 %v6314_v61 }
 0xa6d   :  { %3394 = vmatpush1.bf16.msra.mxu0 %v6311_v60  ;;  %3437 = vmatpush1.bf16.msra.mxu1 %v6316_v57 }
 0xa6e   :  { %3395 = vmatprep.subr.bf16.mxu0 %v6321_v54  ;;  %3438 = vmatprep.subr.bf16.mxu1 %v6325_v46 }
 0xa71   :  { %3396 = vmatpush1.bf16.msra.mxu0 %v6323_v45  ;;  %3439 = vmatpush1.bf16.msra.mxu1 %v6327_v33 }
 0xa72   :  { %3535 = vmatprep.subr.bf16.mxu0 %v6237_v1  ;;  %3578 = vmatprep.subr.bf16.mxu1 %v6239_v2 }
 0xb14   :  { %v3261_v0 = vpop.f32.mrf.mxu0  ;;  %v3304_v42 = vpop.f32.mrf.mxu1 }
 0xb15   :  { %v3313_v6 = vadd.f32 %v3261_v0, %v2472_v4  ;;  %v3315_v3 = vadd.f32 %v3304_v42, %v2585_v49 }
 0xb16   :  { %v3263_v62 = vpop.f32.mrf.mxu0  ;;  %v3306_v26 = vpop.f32.mrf.mxu1 }
 0xb17   :  { %5097 = vtanh.f32 %v3313_v6  ;;  %v3314_v1 = vadd.f32 %v3263_v62, %v2474_v30  ;;  %v3316_v2 = vadd.f32 %v3306_v26, %v2587_v50 }
 0xb18   :  { %v3265_v32 = vpop.f32.mrf.mxu0  ;;  %v3308_v13 = vpop.f32.mrf.mxu1 }
 0xb19   :  { %5099 = vtanh.f32 %v3314_v1  ;;  %v3317_v31 = vadd.f32 %v3265_v32, %v2476_v8  ;;  %v3319_v30 = vadd.f32 %v3308_v13, %v2589_v15  ;;  %v6669_v15 = vld [vmem:[#allocation11 + $0xe8] ss:$16 sps:$4 sm:$0xff]  }
 0xb1a   :  { %5101 = vtanh.f32 %v3316_v2  ;;  %v3267_v17 = vpop.f32.mrf.mxu0  ;;  %v3310_v22 = vpop.f32.mrf.mxu1 }
 0xb1b   :  { %5103 = vtanh.f32 %v3317_v31  ;;  %v3318_v24 = vadd.f32 %v3267_v17, %v2478_v23  ;;  %v3320_v63 = vadd.f32 %v3310_v22, %v2591_v47 }
 0xb1d   :  { %5105 = vtanh.f32 %v3318_v24 }
 0xb1e   :  { %5107 = vtanh.f32 %v3320_v63 }
 0xb1f   :  { %5109 = vtanh.f32 %v3315_v3  ;;  %v6680_v3 = vld [vmem:[#allocation11 + $0xc0] ss:$16 sps:$4 sm:$0xff]  }
 0xb20   :  { %5111 = vtanh.f32 %v3319_v30 }
 0xb24   :  { %v5098_v34 = vpop.eup %5097 }
 0xb25   :  { %v3329_v5 = vmul.f32 0.5, %v5098_v34 }
 0xb26   :  { %v5100_v53 = vpop.eup %5099 }
 0xb27   :  { %v5102_v4 = vpop.eup %5101  ;;  %v3335_v0 = vadd.f32 0.5, %v3329_v5  ;;  %v3330_v28 = vmul.f32 0.5, %v5100_v53  ;;  %v6672_v5 = vld [vmem:[#allocation11 + $0xc4] ss:$16 sps:$4 sm:$0xff]   ;;  %v6675_v53 = vld [vmem:[#allocation11 + $0xcc] ss:$16 sps:$4 sm:$0xff]  }
 0xb28   :  { %v5104_v19 = vpop.eup %5103 }
 0xb29   :  { %v3336_v50 = vadd.f32 0.5, %v3330_v28  ;;  %v3343_v6 = vmul.f32 %v5102_v4, %v3335_v0  ;;  %v3332_v62 = vmul.f32 0.5, %v5104_v19  ;;  %v6683_v4 = vld [vmem:[#allocation11 + $0xc8] ss:$16 sps:$4 sm:$0xff]  }
 0xb2a   :  { %v5106_v26 = vpop.eup %5105 }
 0xb2b   :  { %v3341_v29 = vmul.f32 %v3336_v50, %v6601_v38  ;;  %v3338_v8 = vadd.f32 0.5, %v3332_v62  ;;  %v3333_v1 = vmul.f32 0.5, %v5106_v26  ;;  %v5108_v2 = vpop.eup %5107  ;;  %v7211_v26 = vld [vmem:[#allocation33_spill] sm:$0xff] }
 0xb2c   :  { %v5110_v7 = vpop.eup %5109 }
 0xb2d   :  { %v6659_v32 = vadd.f32 %v3343_v6, %v3341_v29  ;;  %v3339_v11 = vadd.f32 0.5, %v3333_v1  ;;  %v3344_v42 = vmul.f32 %v5108_v2, %v3338_v8  ;;  %v5112_v47 = vpop.eup %5111  ;;  %v3331_v31 = vmul.f32 0.5, %v5110_v7  ;;  %v7210_v6 = vld [vmem:[#allocation34_spill] sm:$0xff] }
 0xb2e   :  { %v3334_v38 = vmul.f32 0.5, %v5112_v47  ;;  %v2595_v62 = vadd.f32 %v7210_v6, %v6538_v9  ;;  %v2599_v29 = vadd.f32 %v7211_v26, %v6538_v9  ;;  %v6790_v6 = vld [vmem:[#allocation11 + $0x40] ss:$16 sps:$4 sm:$0xff]   ;;  %v6796_v26 = vld [vmem:[#allocation11 + $0x24] ss:$16 sps:$4 sm:$0xff]  }
 0xb2f   :  { %v3342_v23 = vmul.f32 %v3339_v11, %v6605_v27  ;;  %5113 = vtanh.f32 %v6659_v32  ;;  %v3337_v22 = vadd.f32 0.5, %v3331_v31  ;;  %v6666_v27 = vld [vmem:[#allocation11 + $0xe0] ss:$16 sps:$4 sm:$0xff]  }
 0xb30   :  { %v3340_v24 = vadd.f32 0.5, %v3334_v38 }
 0xb31   :  { %v6663_v13 = vadd.f32 %v3344_v42, %v3342_v23 }
 0xb33   :  { %5115 = vtanh.f32 %v6663_v13 }
 0xb3c   :  { %v5114_v17 = vpop.eup %5113 }
 0xb3d   :  { %v3349_v34 = vmul.f32 %v5114_v17, %v3337_v22 }
 0xb40   :  { %v5116_v63 = vpop.eup %5115 }
 0xb41   :  { %v3350_v43 = vmul.f32 %v5116_v63, %v3340_v24 }
 0xb43   :  { %v4599_v49 = vpack.c.bf16 %v3350_v43, %v3349_v34 }
 0xb45   :  { %4600 = vst [vmem:[#allocation2 + $0x8] sm:$0xff] %v4599_v49  }
 0xb4c   :  { %v4883_v48 = vld [vmem:[#allocation2 + $0x8] sm:$0xff]  }
 0xb4d   :  { %3414 = vmatmul.mubr.bf16.vlgmr.msra.gmra.mxu0 %v4883_v48  ;;  %3457 = vmatmul.mubr.bf16.vlgmr.msra.gmra.mxu1 %v4883_v48 }
 0xb4e   :  { %3536 = vmatpush1.bf16.msra.mxu0 %v6666_v27  ;;  %3579 = vmatpush1.bf16.msra.mxu1 %v6669_v15 }
 0xb4f   :  { %3537 = vmatprep.subr.bf16.mxu0 %v6672_v5  ;;  %3580 = vmatprep.subr.bf16.mxu1 %v6675_v53 }
 0xb50   :  { %3567 = vmatprep.mubr.bf16.mxu0 %v7081_v35  ;;  %3610 = vmatprep.mubr.bf16.mxu1 %v7081_v35 }
 0xb52   :  { %3538 = vmatpush1.bf16.msra.mxu0 %v6680_v3  ;;  %3581 = vmatpush1.bf16.msra.mxu1 %v6683_v4 }
 0xb53   :  { %3539 = vmatprep.subr.bf16.mxu0 %v6261_v44  ;;  %3582 = vmatprep.subr.bf16.mxu1 %v6263_v36  ;;  %v6710_v44 = vld [vmem:[#allocation11 + $0xe4] ss:$16 sps:$4 sm:$0xff]   ;;  %v6713_v36 = vld [vmem:[#allocation11 + $0xec] ss:$16 sps:$4 sm:$0xff]  }
 0xb56   :  { %3540 = vmatpush1.bf16.msra.mxu0 %v6265_v16  ;;  %3583 = vmatpush1.bf16.msra.mxu1 %v6267_v37  ;;  %v7204_v16 = vld [vmem:[#allocation31_spill] sm:$0xff] }
 0xb57   :  { %3541 = vmatprep.subr.bf16.mxu0 %v6273_v56  ;;  %3584 = vmatprep.subr.bf16.mxu1 %v6275_v40  ;;  %v2482_v37 = vadd.f32 %v7204_v16, %v6506_v18 }
 0xb5a   :  { %3542 = vmatpush1.bf16.msra.mxu0 %v6277_v20  ;;  %3585 = vmatpush1.bf16.msra.mxu1 %v6279_v39  ;;  %v7205_v20 = vld [vmem:[#allocation35_spill] sm:$0xff] }
 0xb5b   :  { %3543 = vmatprep.subr.bf16.mxu0 %v6285_v55  ;;  %3586 = vmatprep.subr.bf16.mxu1 %v6289_v25  ;;  %v2484_v39 = vadd.f32 %v7205_v20, %v6514_v21  ;;  %v7206_v55 = vld [vmem:[#allocation32_spill] sm:$0xff] }
 0xb5e   :  { %3544 = vmatpush1.bf16.msra.mxu0 %v6287_v51  ;;  %3587 = vmatpush1.bf16.msra.mxu1 %v6291_v12  ;;  %v2597_v51 = vadd.f32 %v7206_v55, %v6518_v14 }
 0xb5f   :  { %3545 = vmatprep.subr.bf16.mxu0 %v6293_v52  ;;  %3588 = vmatprep.subr.bf16.mxu1 %v6297_v58  ;;  %v7207_v58 = vld [vmem:[#allocation29_spill] sm:$0xff] }
 0xb62   :  { %3546 = vmatpush1.bf16.msra.mxu0 %v6301_v59  ;;  %3589 = vmatpush1.bf16.msra.mxu1 %v6303_v41  ;;  %v2486_v59 = vadd.f32 %v7207_v58, %v6506_v18 }
 0xb63   :  { %3547 = vmatprep.subr.bf16.mxu0 %v6307_v10  ;;  %3590 = vmatprep.subr.bf16.mxu1 %v6314_v61 }
 0xb66   :  { %3548 = vmatpush1.bf16.msra.mxu0 %v6311_v60  ;;  %3591 = vmatpush1.bf16.msra.mxu1 %v6316_v57  ;;  %v7208_v57 = vld [vmem:[#allocation36_spill] sm:$0xff] }
 0xb67   :  { %3549 = vmatprep.subr.bf16.mxu0 %v6321_v54  ;;  %3592 = vmatprep.subr.bf16.mxu1 %v6325_v46  ;;  %v2488_v54 = vadd.f32 %v7208_v57, %v6514_v21  ;;  %v6760_v57 = vld [vmem:[#allocation11 + $0x84] ss:$16 sps:$4 sm:$0xff]  }
 0xb6a   :  { %3550 = vmatpush1.bf16.msra.mxu0 %v6323_v45  ;;  %3593 = vmatpush1.bf16.msra.mxu1 %v6327_v33  ;;  %v7209_v45 = vld [vmem:[#allocation38_spill] sm:$0xff] }
 0xb6b   :  { %3689 = vmatprep.subr.bf16.mxu0 %v6710_v44  ;;  %3732 = vmatprep.subr.bf16.mxu1 %v6713_v36  ;;  %v2601_v46 = vadd.f32 %v7209_v45, %v6518_v14  ;;  %v6766_v45 = vld [vmem:[#allocation11 + $0x80] ss:$16 sps:$4 sm:$0xff]  }
 0xc0d   :  { %v3415_v56 = vpop.f32.mrf.mxu0  ;;  %v3458_v40 = vpop.f32.mrf.mxu1 }
 0xc0e   :  { %v3467_v25 = vadd.f32 %v3415_v56, %v2482_v37  ;;  %v3469_v2 = vadd.f32 %v3458_v40, %v2595_v62  ;;  %v6793_v62 = vld [vmem:[#allocation11 + $0x48] ss:$16 sps:$4 sm:$0xff]  }
 0xc0f   :  { %v3417_v12 = vpop.f32.mrf.mxu0  ;;  %v3460_v52 = vpop.f32.mrf.mxu1 }
 0xc10   :  { %5117 = vtanh.f32 %v3467_v25  ;;  %v3468_v41 = vadd.f32 %v3417_v12, %v2484_v39  ;;  %v3470_v10 = vadd.f32 %v3460_v52, %v2597_v51 }
 0xc11   :  { %v3419_v60 = vpop.f32.mrf.mxu0  ;;  %v3462_v61 = vpop.f32.mrf.mxu1 }
 0xc12   :  { %5119 = vtanh.f32 %v3468_v41  ;;  %v3471_v33 = vadd.f32 %v3419_v60, %v2486_v59  ;;  %v3473_v7 = vadd.f32 %v3462_v61, %v2599_v29  ;;  %v6754_v60 = vld [vmem:[#allocation11 + $0xa0] ss:$16 sps:$4 sm:$0xff]   ;;  %v6757_v61 = vld [vmem:[#allocation11 + $0xa8] ss:$16 sps:$4 sm:$0xff]   ;;  %v6799_v29 = vld [vmem:[#allocation11 + $0x2c] ss:$16 sps:$4 sm:$0xff]  }
 0xc13   :  { %5121 = vtanh.f32 %v3470_v10  ;;  %v3421_v0 = vpop.f32.mrf.mxu0  ;;  %v3464_v28 = vpop.f32.mrf.mxu1  ;;  %v6751_v10 = vld [vmem:[#allocation11 + $0xac] ss:$16 sps:$4 sm:$0xff]  }
 0xc14   :  { %5123 = vtanh.f32 %v3471_v33  ;;  %v3472_v30 = vadd.f32 %v3421_v0, %v2488_v54  ;;  %v3474_v19 = vadd.f32 %v3464_v28, %v2601_v46  ;;  %v6763_v54 = vld [vmem:[#allocation11 + $0x8c] ss:$16 sps:$4 sm:$0xff]   ;;  %v6769_v46 = vld [vmem:[#allocation11 + $0x88] ss:$16 sps:$4 sm:$0xff]   ;;  %v6772_v33 = vld [vmem:[#allocation11 + $0x64] ss:$16 sps:$4 sm:$0xff]  }
 0xc15   :  { %v6775_v0 = vld [vmem:[#allocation11 + $0x6c] ss:$16 sps:$4 sm:$0xff]   ;;  %v6778_v28 = vld [vmem:[#allocation11 + $0x60] ss:$16 sps:$4 sm:$0xff]  }
 0xc16   :  { %5125 = vtanh.f32 %v3472_v30  ;;  %v6781_v30 = vld [vmem:[#allocation11 + $0x68] ss:$16 sps:$4 sm:$0xff]  }
 0xc17   :  { %5127 = vtanh.f32 %v3474_v19  ;;  %v6784_v19 = vld [vmem:[#allocation11 + $0x44] ss:$16 sps:$4 sm:$0xff]  }
 0xc18   :  { %5129 = vtanh.f32 %v3469_v2  ;;  %v6808_v2 = vld [vmem:[#allocation11 + $0x4] ss:$16 sps:$4 sm:$0xff]  }
 0xc19   :  { %5131 = vtanh.f32 %v3473_v7  ;;  %v7212_v7 = vld [vmem:[#allocation39_spill] sm:$0xff] }
 0xc1d   :  { %v5118_v50 = vpop.eup %5117 }
 0xc1e   :  { %v3483_v8 = vmul.f32 0.5, %v5118_v50  ;;  %v6787_v50 = vld [vmem:[#allocation11 + $0x4c] ss:$16 sps:$4 sm:$0xff]  }
 0xc1f   :  { %v5120_v1 = vpop.eup %5119 }
 0xc20   :  { %v5122_v11 = vpop.eup %5121  ;;  %v3489_v42 = vadd.f32 0.5, %v3483_v8  ;;  %v3484_v23 = vmul.f32 0.5, %v5120_v1  ;;  %v6802_v8 = vld [vmem:[#allocation11 + $0x20] ss:$16 sps:$4 sm:$0xff]   ;;  %v6805_v1 = vld [vmem:[#allocation11 + $0x28] ss:$16 sps:$4 sm:$0xff]  }
 0xc21   :  { %v5124_v47 = vpop.eup %5123 }
 0xc22   :  { %v3490_v31 = vadd.f32 0.5, %v3484_v23  ;;  %v3497_v38 = vmul.f32 %v5122_v11, %v3489_v42  ;;  %v3486_v17 = vmul.f32 0.5, %v5124_v47  ;;  %v6811_v11 = vld [vmem:[#allocation11 + $0xc] ss:$16 sps:$4 sm:$0xff]   ;;  %v6814_v42 = vld [vmem:[#allocation11] ss:$16 sps:$4 sm:$0xff]   ;;  %v2492_v47 = vadd.f32 %v7212_v7, %v6506_v18 }
 0xc23   :  { %v5126_v22 = vpop.eup %5125  ;;  %v6817_v23 = vld [vmem:[#allocation11 + $0x8] ss:$16 sps:$4 sm:$0xff]  }
 0xc24   :  { %v3495_v24 = vmul.f32 %v3490_v31, %v6659_v32  ;;  %v3492_v63 = vadd.f32 0.5, %v3486_v17  ;;  %v3487_v34 = vmul.f32 0.5, %v5126_v22  ;;  %v5128_v43 = vpop.eup %5127  ;;  %v7213_v17 = vld [vmem:[#allocation40_spill] sm:$0xff] }
 0xc25   :  { %v5130_v40 = vpop.eup %5129  ;;  %v2494_v22 = vadd.f32 %v7213_v17, %v6514_v21 }
 0xc26   :  { %v6733_v49 = vadd.f32 %v3497_v38, %v3495_v24  ;;  %v3493_v48 = vadd.f32 0.5, %v3487_v34  ;;  %v3498_v16 = vmul.f32 %v5128_v43, %v3492_v63  ;;  %v5132_v20 = vpop.eup %5131  ;;  %v3485_v39 = vmul.f32 0.5, %v5130_v40  ;;  %v7214_v24 = vld [vmem:[#allocation43_spill] sm:$0xff] }
 0xc27   :  { %v3488_v32 = vmul.f32 0.5, %v5132_v20  ;;  %v2607_v63 = vadd.f32 %v7214_v24, %v6518_v14 }
 0xc28   :  { %v3496_v37 = vmul.f32 %v3493_v48, %v6663_v13  ;;  %5133 = vtanh.f32 %v6733_v49  ;;  %v3491_v51 = vadd.f32 0.5, %v3485_v39  ;;  %v6748_v13 = vld [vmem:[#allocation11 + $0xa4] ss:$16 sps:$4 sm:$0xff]  }
 0xc29   :  { %v3494_v25 = vadd.f32 0.5, %v3488_v32 }
 0xc2a   :  { %v6737_v56 = vadd.f32 %v3498_v16, %v3496_v37  ;;  %v7215_v16 = vld [vmem:[#allocation37_spill] sm:$0xff] }
 0xc2b   :  { %v2496_v37 = vadd.f32 %v7215_v16, %v6506_v18 }
 0xc2c   :  { %5135 = vtanh.f32 %v6737_v56 }
 0xc35   :  { %v5134_v55 = vpop.eup %5133 }
 0xc36   :  { %v3503_v52 = vmul.f32 %v5134_v55, %v3491_v51  ;;  %v7216_v55 = vld [vmem:[#allocation44_spill] sm:$0xff] }
 0xc37   :  { %v2498_v51 = vadd.f32 %v7216_v55, %v6514_v21 }
 0xc39   :  { %v5136_v12 = vpop.eup %5135 }
 0xc3a   :  { %v3504_v58 = vmul.f32 %v5136_v12, %v3494_v25  ;;  %v7217_v25 = vld [vmem:[#allocation46_spill] sm:$0xff] }
 0xc3b   :  { %v2611_v12 = vadd.f32 %v7217_v25, %v6518_v14 }
 0xc3c   :  { %v4604_v59 = vpack.c.bf16 %v3504_v58, %v3503_v52 }
 0xc3e   :  { %4605 = vst [vmem:[#allocation2 + $0x8] sm:$0xff] %v4604_v59  }
 0xc45   :  { %v4884_v41 = vld [vmem:[#allocation2 + $0x8] sm:$0xff]  }
 0xc46   :  { %3568 = vmatmul.mubr.bf16.vlgmr.msra.gmra.mxu0 %v4884_v41  ;;  %3611 = vmatmul.mubr.bf16.vlgmr.msra.gmra.mxu1 %v4884_v41 }
 0xc47   :  { %3690 = vmatpush1.bf16.msra.mxu0 %v6666_v27  ;;  %3733 = vmatpush1.bf16.msra.mxu1 %v6669_v15 }
 0xc48   :  { %3691 = vmatprep.subr.bf16.mxu0 %v6672_v5  ;;  %3734 = vmatprep.subr.bf16.mxu1 %v6675_v53 }
 0xc49   :  { %3721 = vmatprep.mubr.bf16.mxu0 %v7081_v35  ;;  %3764 = vmatprep.mubr.bf16.mxu1 %v7081_v35 }
 0xc4b   :  { %3692 = vmatpush1.bf16.msra.mxu0 %v6680_v3  ;;  %3735 = vmatpush1.bf16.msra.mxu1 %v6683_v4 }
 0xc4c   :  { %3693 = vmatprep.subr.bf16.mxu0 %v6748_v13  ;;  %3736 = vmatprep.subr.bf16.mxu1 %v6751_v10 }
 0xc4f   :  { %3694 = vmatpush1.bf16.msra.mxu0 %v6754_v60  ;;  %3737 = vmatpush1.bf16.msra.mxu1 %v6757_v61 }
 0xc50   :  { %3695 = vmatprep.subr.bf16.mxu0 %v6760_v57  ;;  %3738 = vmatprep.subr.bf16.mxu1 %v6763_v54 }
 0xc53   :  { %3696 = vmatpush1.bf16.msra.mxu0 %v6766_v45  ;;  %3739 = vmatpush1.bf16.msra.mxu1 %v6769_v46 }
 0xc54   :  { %3697 = vmatprep.subr.bf16.mxu0 %v6772_v33  ;;  %3740 = vmatprep.subr.bf16.mxu1 %v6775_v0 }
 0xc57   :  { %3698 = vmatpush1.bf16.msra.mxu0 %v6778_v28  ;;  %3741 = vmatpush1.bf16.msra.mxu1 %v6781_v30 }
 0xc58   :  { %3699 = vmatprep.subr.bf16.mxu0 %v6784_v19  ;;  %3742 = vmatprep.subr.bf16.mxu1 %v6787_v50 }
 0xc5b   :  { %3700 = vmatpush1.bf16.msra.mxu0 %v6790_v6  ;;  %3743 = vmatpush1.bf16.msra.mxu1 %v6793_v62 }
 0xc5c   :  { %3701 = vmatprep.subr.bf16.mxu0 %v6796_v26  ;;  %3744 = vmatprep.subr.bf16.mxu1 %v6799_v29 }
 0xc5f   :  { %3702 = vmatpush1.bf16.msra.mxu0 %v6802_v8  ;;  %3745 = vmatpush1.bf16.msra.mxu1 %v6805_v1 }
 0xc60   :  { %3703 = vmatprep.subr.bf16.mxu0 %v6808_v2  ;;  %3746 = vmatprep.subr.bf16.mxu1 %v6811_v11 }
 0xc63   :  { %3704 = vmatpush1.bf16.msra.mxu0 %v6814_v42  ;;  %3747 = vmatpush1.bf16.msra.mxu1 %v6817_v23 }
 0xc64   :  { %3843 = vmatprep.subr.bf16.mxu0 %v6710_v44  ;;  %3886 = vmatprep.subr.bf16.mxu1 %v6713_v36 }
 0xd06   :  { %v3569_v31 = vpop.f32.mrf.mxu0  ;;  %v3612_v38 = vpop.f32.mrf.mxu1 }
 0xd07   :  { %v3621_v34 = vadd.f32 %v3569_v31, %v2492_v47  ;;  %v7218_v31 = vld [vmem:[#allocation42_spill] sm:$0xff] }
 0xd08   :  { %v3571_v43 = vpop.f32.mrf.mxu0  ;;  %v3614_v48 = vpop.f32.mrf.mxu1  ;;  %v2605_v17 = vadd.f32 %v7218_v31, %v6538_v9 }
 0xd09   :  { %5137 = vtanh.f32 %v3621_v34  ;;  %v3622_v40 = vadd.f32 %v3571_v43, %v2494_v22  ;;  %v3624_v20 = vadd.f32 %v3614_v48, %v2607_v63  ;;  %v7219_v22 = vld [vmem:[#allocation41_spill] sm:$0xff] }
 0xd0a   :  { %v3573_v39 = vpop.f32.mrf.mxu0  ;;  %v3616_v32 = vpop.f32.mrf.mxu1  ;;  %v2609_v24 = vadd.f32 %v7219_v22, %v6538_v9  ;;  %v3623_v43 = vadd.f32 %v3612_v38, %v2605_v17 }
 0xd0b   :  { %5139 = vtanh.f32 %v3622_v40  ;;  %v3625_v52 = vadd.f32 %v3573_v39, %v2496_v37 }
 0xd0c   :  { %5141 = vtanh.f32 %v3624_v20  ;;  %v3575_v58 = vpop.f32.mrf.mxu0  ;;  %v3618_v59 = vpop.f32.mrf.mxu1  ;;  %v3627_v40 = vadd.f32 %v3616_v32, %v2609_v24 }
 0xd0d   :  { %5143 = vtanh.f32 %v3625_v52  ;;  %v3626_v41 = vadd.f32 %v3575_v58, %v2498_v51  ;;  %v3628_v7 = vadd.f32 %v3618_v59, %v2611_v12 }
 0xd0f   :  { %5145 = vtanh.f32 %v3626_v41 }
 0xd10   :  { %5147 = vtanh.f32 %v3628_v7 }
 0xd11   :  { %5149 = vtanh.f32 %v3623_v43 }
 0xd12   :  { %5151 = vtanh.f32 %v3627_v40 }
 0xd16   :  { %v5138_v47 = vpop.eup %5137 }
 0xd17   :  { %v3637_v63 = vmul.f32 0.5, %v5138_v47 }
 0xd18   :  { %v5140_v34 = vpop.eup %5139 }
 0xd19   :  { %v5142_v48 = vpop.eup %5141  ;;  %v3643_v16 = vadd.f32 0.5, %v3637_v63  ;;  %v3638_v37 = vmul.f32 0.5, %v5140_v34 }
 0xd1a   :  { %v5144_v20 = vpop.eup %5143 }
 0xd1b   :  { %v3644_v39 = vadd.f32 0.5, %v3638_v37  ;;  %v3651_v55 = vmul.f32 %v5142_v48, %v3643_v16  ;;  %v3640_v51 = vmul.f32 0.5, %v5144_v20 }
 0xd1c   :  { %v5146_v25 = vpop.eup %5145 }
 0xd1d   :  { %v3649_v12 = vmul.f32 %v3644_v39, %v6733_v49  ;;  %v3646_v52 = vadd.f32 0.5, %v3640_v51  ;;  %v3641_v58 = vmul.f32 0.5, %v5146_v25  ;;  %v5148_v59 = vpop.eup %5147  ;;  %v7221_v51 = vld [vmem:[#allocation50_spill] sm:$0xff] }
 0xd1e   :  { %v5150_v31 = vpop.eup %5149  ;;  %v2504_v25 = vadd.f32 %v7221_v51, %v6514_v21 }
 0xd1f   :  { %v6839_v41 = vadd.f32 %v3651_v55, %v3649_v12  ;;  %v3647_v7 = vadd.f32 0.5, %v3641_v58  ;;  %v3652_v38 = vmul.f32 %v5148_v59, %v3646_v52  ;;  %v5152_v17 = vpop.eup %5151  ;;  %v3639_v22 = vmul.f32 0.5, %v5150_v31  ;;  %v7222_v12 = vld [vmem:[#allocation51_spill] sm:$0xff] }
 0xd20   :  { %v3642_v49 = vmul.f32 0.5, %v5152_v17  ;;  %v2617_v52 = vadd.f32 %v7222_v12, %v6518_v14 }
 0xd21   :  { %v3650_v47 = vmul.f32 %v3647_v7, %v6737_v56  ;;  %5153 = vtanh.f32 %v6839_v41  ;;  %v3645_v63 = vadd.f32 0.5, %v3639_v22  ;;  %v7220_v56 = vld [vmem:[#allocation47_spill] sm:$0xff]  ;;  %v7224_v22 = vld [vmem:[#allocation52_spill] sm:$0xff] }
 0xd22   :  { %v3648_v34 = vadd.f32 0.5, %v3642_v49  ;;  %v2502_v20 = vadd.f32 %v7220_v56, %v6506_v18  ;;  %v2508_v49 = vadd.f32 %v7224_v22, %v6514_v21  ;;  %v7226_v56 = vld [vmem:[#allocation48_spill] sm:$0xff] }
 0xd23   :  { %v6843_v32 = vadd.f32 %v3652_v38, %v3650_v47  ;;  %v7223_v38 = vld [vmem:[#allocation45_spill] sm:$0xff] }
 0xd24   :  { %v2506_v47 = vadd.f32 %v7223_v38, %v6506_v18 }
 0xd25   :  { %5155 = vtanh.f32 %v6843_v32 }
 0xd2e   :  { %v5154_v24 = vpop.eup %5153 }
 0xd2f   :  { %v3657_v48 = vmul.f32 %v5154_v24, %v3645_v63  ;;  %v7225_v24 = vld [vmem:[#allocation54_spill] sm:$0xff] }
 0xd30   :  { %v2621_v63 = vadd.f32 %v7225_v24, %v6518_v14 }
 0xd32   :  { %v5156_v43 = vpop.eup %5155 }
 0xd33   :  { %v3658_v16 = vmul.f32 %v5156_v43, %v3648_v34 }
 0xd35   :  { %v4609_v37 = vpack.c.bf16 %v3658_v16, %v3657_v48 }
 0xd37   :  { %4610 = vst [vmem:[#allocation2 + $0x8] sm:$0xff] %v4609_v37  }
 0xd3e   :  { %v4885_v40 = vld [vmem:[#allocation2 + $0x8] sm:$0xff]  }
 0xd3f   :  { %3722 = vmatmul.mubr.bf16.vlgmr.msra.gmra.mxu0 %v4885_v40  ;;  %3765 = vmatmul.mubr.bf16.vlgmr.msra.gmra.mxu1 %v4885_v40 }
 0xd40   :  { %3844 = vmatpush1.bf16.msra.mxu0 %v6666_v27  ;;  %3887 = vmatpush1.bf16.msra.mxu1 %v6669_v15 }
 0xd41   :  { %3845 = vmatprep.subr.bf16.mxu0 %v6672_v5  ;;  %3888 = vmatprep.subr.bf16.mxu1 %v6675_v53 }
 0xd42   :  { %3875 = vmatprep.mubr.bf16.mxu0 %v7081_v35  ;;  %3918 = vmatprep.mubr.bf16.mxu1 %v7081_v35 }
 0xd44   :  { %3846 = vmatpush1.bf16.msra.mxu0 %v6680_v3  ;;  %3889 = vmatpush1.bf16.msra.mxu1 %v6683_v4 }
 0xd45   :  { %3847 = vmatprep.subr.bf16.mxu0 %v6748_v13  ;;  %3890 = vmatprep.subr.bf16.mxu1 %v6751_v10 }
 0xd48   :  { %3848 = vmatpush1.bf16.msra.mxu0 %v6754_v60  ;;  %3891 = vmatpush1.bf16.msra.mxu1 %v6757_v61 }
 0xd49   :  { %3849 = vmatprep.subr.bf16.mxu0 %v6760_v57  ;;  %3892 = vmatprep.subr.bf16.mxu1 %v6763_v54 }
 0xd4c   :  { %3850 = vmatpush1.bf16.msra.mxu0 %v6766_v45  ;;  %3893 = vmatpush1.bf16.msra.mxu1 %v6769_v46 }
 0xd4d   :  { %3851 = vmatprep.subr.bf16.mxu0 %v6772_v33  ;;  %3894 = vmatprep.subr.bf16.mxu1 %v6775_v0 }
 0xd50   :  { %3852 = vmatpush1.bf16.msra.mxu0 %v6778_v28  ;;  %3895 = vmatpush1.bf16.msra.mxu1 %v6781_v30 }
 0xd51   :  { %3853 = vmatprep.subr.bf16.mxu0 %v6784_v19  ;;  %3896 = vmatprep.subr.bf16.mxu1 %v6787_v50 }
 0xd54   :  { %3854 = vmatpush1.bf16.msra.mxu0 %v6790_v6  ;;  %3897 = vmatpush1.bf16.msra.mxu1 %v6793_v62 }
 0xd55   :  { %3855 = vmatprep.subr.bf16.mxu0 %v6796_v26  ;;  %3898 = vmatprep.subr.bf16.mxu1 %v6799_v29 }
 0xd58   :  { %3856 = vmatpush1.bf16.msra.mxu0 %v6802_v8  ;;  %3899 = vmatpush1.bf16.msra.mxu1 %v6805_v1 }
 0xd59   :  { %3857 = vmatprep.subr.bf16.mxu0 %v6808_v2  ;;  %3900 = vmatprep.subr.bf16.mxu1 %v6811_v11 }
 0xd5c   :  { %3858 = vmatpush1.bf16.msra.mxu0 %v6814_v42  ;;  %3901 = vmatpush1.bf16.msra.mxu1 %v6817_v23 }
 0xd5d   :  { %3997 = vmatprep.subr.bf16.mxu0 %v6710_v44  ;;  %4040 = vmatprep.subr.bf16.mxu1 %v6713_v36 }
 0xdff   :  { %v3723_v39 = vpop.f32.mrf.mxu0  ;;  %v3766_v55 = vpop.f32.mrf.mxu1 }
 0xe00   :  { %v3775_v58 = vadd.f32 %v3723_v39, %v2502_v20  ;;  %v2615_v20 = vadd.f32 %v7226_v56, %v6538_v9  ;;  %v7227_v39 = vld [vmem:[#allocation49_spill] sm:$0xff] }
 0xe01   :  { %v3725_v59 = vpop.f32.mrf.mxu0  ;;  %v3768_v7 = vpop.f32.mrf.mxu1  ;;  %v2619_v51 = vadd.f32 %v7227_v39, %v6538_v9 }
 0xe02   :  { %5157 = vtanh.f32 %v3775_v58  ;;  %v3776_v44 = vadd.f32 %v3725_v59, %v2504_v25  ;;  %v3778_v36 = vadd.f32 %v3768_v7, %v2617_v52  ;;  %v3777_v52 = vadd.f32 %v3766_v55, %v2615_v20 }
 0xe03   :  { %v3727_v31 = vpop.f32.mrf.mxu0  ;;  %v3770_v17 = vpop.f32.mrf.mxu1 }
 0xe04   :  { %5159 = vtanh.f32 %v3776_v44  ;;  %v3779_v34 = vadd.f32 %v3727_v31, %v2506_v47  ;;  %v3781_v38 = vadd.f32 %v3770_v17, %v2619_v51 }
 0xe05   :  { %5161 = vtanh.f32 %v3778_v36  ;;  %v3729_v43 = vpop.f32.mrf.mxu0  ;;  %v3772_v48 = vpop.f32.mrf.mxu1 }
 0xe06   :  { %5163 = vtanh.f32 %v3779_v34  ;;  %v3780_v16 = vadd.f32 %v3729_v43, %v2508_v49  ;;  %v3782_v37 = vadd.f32 %v3772_v48, %v2621_v63 }
 0xe08   :  { %5165 = vtanh.f32 %v3780_v16 }
 0xe09   :  { %5167 = vtanh.f32 %v3782_v37 }
 0xe0a   :  { %5169 = vtanh.f32 %v3777_v52 }
 0xe0b   :  { %5171 = vtanh.f32 %v3781_v38 }
 0xe0f   :  { %v5158_v40 = vpop.eup %5157 }
 0xe10   :  { %v3791_v25 = vmul.f32 0.5, %v5158_v40 }
 0xe11   :  { %v5160_v12 = vpop.eup %5159 }
 0xe12   :  { %v5162_v58 = vpop.eup %5161  ;;  %v3797_v59 = vadd.f32 0.5, %v3791_v25  ;;  %v3792_v7 = vmul.f32 0.5, %v5160_v12 }
 0xe13   :  { %v5164_v47 = vpop.eup %5163 }
 0xe14   :  { %v3798_v44 = vadd.f32 0.5, %v3792_v7  ;;  %v3805_v36 = vmul.f32 %v5162_v58, %v3797_v59  ;;  %v3794_v31 = vmul.f32 0.5, %v5164_v47 }
 0xe15   :  { %v5166_v22 = vpop.eup %5165 }
 0xe16   :  { %v3803_v49 = vmul.f32 %v3798_v44, %v6839_v41  ;;  %v3800_v24 = vadd.f32 0.5, %v3794_v31  ;;  %v3795_v63 = vmul.f32 0.5, %v5166_v22  ;;  %v5168_v34 = vpop.eup %5167 }
 0xe17   :  { %v5170_v37 = vpop.eup %5169 }
 0xe18   :  { %v6897_v43 = vadd.f32 %v3805_v36, %v3803_v49  ;;  %v3801_v48 = vadd.f32 0.5, %v3795_v63  ;;  %v3806_v55 = vmul.f32 %v5168_v34, %v3800_v24  ;;  %v5172_v40 = vpop.eup %5171  ;;  %v3793_v56 = vmul.f32 0.5, %v5170_v37 }
 0xe19   :  { %v3796_v41 = vmul.f32 0.5, %v5172_v40 }
 0xe1a   :  { %v3804_v16 = vmul.f32 %v3801_v48, %v6843_v32  ;;  %5173 = vtanh.f32 %v6897_v43  ;;  %v3799_v39 = vadd.f32 0.5, %v3793_v56 }
 0xe1b   :  { %v3802_v51 = vadd.f32 0.5, %v3796_v41 }
 0xe1c   :  { %v6901_v17 = vadd.f32 %v3806_v55, %v3804_v16 }
 0xe1e   :  { %5175 = vtanh.f32 %v6901_v17 }
 0xe27   :  { %v5174_v20 = vpop.eup %5173 }
 0xe28   :  { %v3811_v12 = vmul.f32 %v5174_v20, %v3799_v39 }
 0xe2b   :  { %v5176_v25 = vpop.eup %5175 }
 0xe2c   :  { %v3812_v52 = vmul.f32 %v5176_v25, %v3802_v51 }
 0xe2e   :  { %v4614_v58 = vpack.c.bf16 %v3812_v52, %v3811_v12 }
 0xe30   :  { %4615 = vst [vmem:[#allocation2 + $0x8] sm:$0xff] %v4614_v58  }
 0xe37   :  { %v4886_v59 = vld [vmem:[#allocation2 + $0x8] sm:$0xff]  }
 0xe38   :  { %3876 = vmatmul.mubr.bf16.vlgmr.msra.gmra.mxu0 %v4886_v59  ;;  %3919 = vmatmul.mubr.bf16.vlgmr.msra.gmra.mxu1 %v4886_v59 }
 0xe39   :  { %3998 = vmatpush1.bf16.msra.mxu0 %v6666_v27  ;;  %4041 = vmatpush1.bf16.msra.mxu1 %v6669_v15 }
 0xe3a   :  { %3999 = vmatprep.subr.bf16.mxu0 %v6672_v5  ;;  %4042 = vmatprep.subr.bf16.mxu1 %v6675_v53  ;;  %v7229_v53 = vld [vmem:[#allocation58_spill] sm:$0xff] }
 0xe3b   :  { %4029 = vmatprep.mubr.bf16.mxu0 %v7081_v35  ;;  %4072 = vmatprep.mubr.bf16.mxu1 %v7081_v35  ;;  %v7228_v35 = vld [vmem:[#allocation55_spill] sm:$0xff] }
 0xe3c   :  { %v2512_v27 = vadd.f32 %v7228_v35, %v6506_v18 }
 0xe3d   :  { %4000 = vmatpush1.bf16.msra.mxu0 %v6680_v3  ;;  %4043 = vmatpush1.bf16.msra.mxu1 %v6683_v4  ;;  %v2514_v3 = vadd.f32 %v7229_v53, %v6514_v21  ;;  %v7230_v4 = vld [vmem:[#allocation59_spill] sm:$0xff]  ;;  %v4888_v53 = vld [vmem:[%s7018_s7 + $0x38] sm:$0xff]  }
 0xe3e   :  { %4001 = vmatprep.subr.bf16.mxu0 %v6748_v13  ;;  %4044 = vmatprep.subr.bf16.mxu1 %v6751_v10  ;;  %v2627_v13 = vadd.f32 %v7230_v4, %v6518_v14  ;;  %v4889_v4 = vld [vmem:[%s7018_s7 + $0x30] sm:$0xff]  }
 0xe41   :  { %4002 = vmatpush1.bf16.msra.mxu0 %v6754_v60  ;;  %4045 = vmatpush1.bf16.msra.mxu1 %v6757_v61 }
 0xe42   :  { %4003 = vmatprep.subr.bf16.mxu0 %v6760_v57  ;;  %4046 = vmatprep.subr.bf16.mxu1 %v6763_v54  ;;  %v7231_v57 = vld [vmem:[#allocation53_spill] sm:$0xff] }
 0xe43   :  { %v2516_v54 = vadd.f32 %v7231_v57, %v6506_v18  ;;  %v4894_v57 = vld [vmem:[%s7018_s7 + $0x8] sm:$0xff]  }
 0xe45   :  { %4004 = vmatpush1.bf16.msra.mxu0 %v6766_v45  ;;  %4047 = vmatpush1.bf16.msra.mxu1 %v6769_v46 }
 0xe46   :  { %4005 = vmatprep.subr.bf16.mxu0 %v6772_v33  ;;  %4048 = vmatprep.subr.bf16.mxu1 %v6775_v0 }
 0xe49   :  { %4006 = vmatpush1.bf16.msra.mxu0 %v6778_v28  ;;  %4049 = vmatpush1.bf16.msra.mxu1 %v6781_v30  ;;  %v7232_v28 = vld [vmem:[#allocation60_spill] sm:$0xff] }
 0xe4a   :  { %4007 = vmatprep.subr.bf16.mxu0 %v6784_v19  ;;  %4050 = vmatprep.subr.bf16.mxu1 %v6787_v50  ;;  %v2518_v30 = vadd.f32 %v7232_v28, %v6514_v21  ;;  %v7237_v28 = vld [vmem:[#allocation66_spill] sm:$0xff] }
 0xe4d   :  { %4008 = vmatpush1.bf16.msra.mxu0 %v6790_v6  ;;  %4051 = vmatpush1.bf16.msra.mxu1 %v6793_v62  ;;  %v7233_v62 = vld [vmem:[#allocation62_spill] sm:$0xff] }
 0xe4e   :  { %4009 = vmatprep.subr.bf16.mxu0 %v6796_v26  ;;  %4052 = vmatprep.subr.bf16.mxu1 %v6799_v29  ;;  %v2631_v26 = vadd.f32 %v7233_v62, %v6518_v14 }
 0xe51   :  { %4010 = vmatpush1.bf16.msra.mxu0 %v6802_v8  ;;  %4053 = vmatpush1.bf16.msra.mxu1 %v6805_v1 }
 0xe52   :  { %4011 = vmatprep.subr.bf16.mxu0 %v6808_v2  ;;  %4054 = vmatprep.subr.bf16.mxu1 %v6811_v11  ;;  %v7234_v2 = vld [vmem:[#allocation56_spill] sm:$0xff] }
 0xe53   :  { %v2625_v11 = vadd.f32 %v7234_v2, %v6538_v9 }
 0xe55   :  { %4012 = vmatpush1.bf16.msra.mxu0 %v6814_v42  ;;  %4055 = vmatpush1.bf16.msra.mxu1 %v6817_v23  ;;  %v7235_v42 = vld [vmem:[#allocation57_spill] sm:$0xff] }
 0xe56   :  { %v2629_v23 = vadd.f32 %v7235_v42, %v6538_v9 }
 0xef8   :  { %v3877_v15 = vpop.f32.mrf.mxu0  ;;  %v3920_v5 = vpop.f32.mrf.mxu1 }
 0xef9   :  { %v3929_v10 = vadd.f32 %v3877_v15, %v2512_v27  ;;  %v3931_v38 = vadd.f32 %v3920_v5, %v2625_v11 }
 0xefa   :  { %v3879_v60 = vpop.f32.mrf.mxu0  ;;  %v3922_v61 = vpop.f32.mrf.mxu1 }
 0xefb   :  { %5177 = vtanh.f32 %v3929_v10  ;;  %v3930_v45 = vadd.f32 %v3879_v60, %v2514_v3  ;;  %v3932_v46 = vadd.f32 %v3922_v61, %v2627_v13  ;;  %v5374_v3 = vmov 0.0   ;;  %v4890_v13 = vld [vmem:[%s7018_s7 + $0x28] sm:$0xff]   ;;  %v4891_v10 = vld [vmem:[%s7018_s7 + $0x20] sm:$0xff]   ;;  %v4892_v60 = vld [vmem:[%s7018_s7 + $0x18] sm:$0xff]  }
 0xefc   :  { %v3881_v33 = vpop.f32.mrf.mxu0  ;;  %v3924_v0 = vpop.f32.mrf.mxu1  ;;  %4635 = vmatprep.subr.bf16.mxu0 %v5374_v3  ;;  %v4893_v61 = vld [vmem:[%s7018_s7 + $0x10] sm:$0xff]  }
 0xefd   :  { %5179 = vtanh.f32 %v3930_v45  ;;  %v3933_v19 = vadd.f32 %v3881_v33, %v2516_v54  ;;  %v3935_v31 = vadd.f32 %v3924_v0, %v2629_v23  ;;  %v4895_v54 = vld [vmem:[%s7018_s7] sm:$0xff]   ;;  %v7236_v45 = vld [vmem:[#allocation63_spill] sm:$0xff]  ;;  %v7240_v23 = vld [vmem:[#allocation16_spill] sm:$0xff] }
 0xefe   :  { %5181 = vtanh.f32 %v3932_v46  ;;  %v3883_v50 = vpop.f32.mrf.mxu0  ;;  %v3926_v6 = vpop.f32.mrf.mxu1  ;;  %v2522_v46 = vadd.f32 %v7236_v45, %v6506_v18 }
 0xeff   :  { %5183 = vtanh.f32 %v3933_v19  ;;  %v3934_v29 = vadd.f32 %v3883_v50, %v2518_v30  ;;  %v3936_v8 = vadd.f32 %v3926_v6, %v2631_v26  ;;  %v2524_v30 = vadd.f32 %v7237_v28, %v6514_v21  ;;  %v7238_v19 = vld [vmem:[#allocation67_spill] sm:$0xff] }
 0xf00   :  { %v2637_v50 = vadd.f32 %v7238_v19, %v6518_v14 }
 0xf01   :  { %5185 = vtanh.f32 %v3934_v29  ;;  %v7239_v29 = vld [vmem:[#allocation61_spill] sm:$0xff] }
 0xf02   :  { %5187 = vtanh.f32 %v3936_v8  ;;  %v2526_v8 = vadd.f32 %v7239_v29, %v6506_v18  ;;  %v7242_v18 = vld [vmem:[#allocation64_spill] sm:$0xff] }
 0xf03   :  { %5189 = vtanh.f32 %v3931_v38 }
 0xf04   :  { %5191 = vtanh.f32 %v3935_v31 }
 0xf08   :  { %v5178_v1 = vpop.eup %5177 }
 0xf09   :  { %v3945_v32 = vmul.f32 0.5, %v5178_v1 }
 0xf0a   :  { %v5180_v7 = vpop.eup %5179 }
 0xf0b   :  { %v5182_v47 = vpop.eup %5181  ;;  %v3951_v44 = vadd.f32 0.5, %v3945_v32  ;;  %v3946_v36 = vmul.f32 0.5, %v5180_v7  ;;  %v2528_v32 = vadd.f32 %v7240_v23, %v6514_v21  ;;  %v7241_v7 = vld [vmem:[#allocation68_spill] sm:$0xff]  ;;  %v7243_v21 = vld [vmem:[#allocation65_spill] sm:$0xff] }
 0xf0c   :  { %v5184_v22 = vpop.eup %5183  ;;  %v2641_v38 = vadd.f32 %v7241_v7, %v6518_v14 }
 0xf0d   :  { %v3952_v49 = vadd.f32 0.5, %v3946_v36  ;;  %v3959_v24 = vmul.f32 %v5182_v47, %v3951_v44  ;;  %v3948_v63 = vmul.f32 0.5, %v5184_v22 }
 0xf0e   :  { %v5186_v34 = vpop.eup %5185 }
 0xf0f   :  { %v3957_v48 = vmul.f32 %v3952_v49, %v6897_v43  ;;  %v3954_v55 = vadd.f32 0.5, %v3948_v63  ;;  %v3949_v16 = vmul.f32 0.5, %v5186_v34  ;;  %v5188_v56 = vpop.eup %5187  ;;  %v2635_v49 = vadd.f32 %v7242_v18, %v6538_v9 }
 0xf10   :  { %v5190_v51 = vpop.eup %5189  ;;  %v2639_v34 = vadd.f32 %v7243_v21, %v6538_v9 }
 0xf11   :  { %v6953_v37 = vadd.f32 %v3959_v24, %v3957_v48  ;;  %v3955_v40 = vadd.f32 0.5, %v3949_v16  ;;  %v3960_v20 = vmul.f32 %v5188_v56, %v3954_v55  ;;  %v5192_v25 = vpop.eup %5191  ;;  %v3947_v12 = vmul.f32 0.5, %v5190_v51 }
 0xf12   :  { %v3950_v43 = vmul.f32 0.5, %v5192_v25 }
 0xf13   :  { %v3958_v41 = vmul.f32 %v3955_v40, %v6901_v17  ;;  %5193 = vtanh.f32 %v6953_v37  ;;  %v3953_v58 = vadd.f32 0.5, %v3947_v12 }
 0xf14   :  { %v3956_v59 = vadd.f32 0.5, %v3950_v43 }
 0xf15   :  { %v6957_v39 = vadd.f32 %v3960_v20, %v3958_v41 }
 0xf17   :  { %5195 = vtanh.f32 %v6957_v39 }
 0xf20   :  { %v5194_v52 = vpop.eup %5193 }
 0xf21   :  { %v3965_v27 = vmul.f32 %v5194_v52, %v3953_v58 }
 0xf24   :  { %v5196_v35 = vpop.eup %5195 }
 0xf25   :  { %v3966_v15 = vmul.f32 %v5196_v35, %v3956_v59 }
 0xf27   :  { %v4619_v5 = vpack.c.bf16 %v3966_v15, %v3965_v27 }
 0xf29   :  { %4620 = vst [vmem:[#allocation2 + $0x8] sm:$0xff] %v4619_v5  }
 0xf30   :  { %v4887_v17 = vld [vmem:[#allocation2 + $0x8] sm:$0xff]  }
 0xf31   :  { %4030 = vmatmul.mubr.bf16.vlgmr.msra.gmra.mxu0 %v4887_v17  ;;  %4073 = vmatmul.mubr.bf16.vlgmr.msra.gmra.mxu1 %v4887_v17 }
 0xf32   :  { %4636 = vmatpush3.bf16.msra.mxu0 %v4888_v53  ;;  %4651 = vmatprep.mubr.msk.bf16.mxu0 %vm5375_vm0, %v5374_v3 }
 0xf33   :  { %4637 = vmatprep.subr.bf16.mxu0 %v5374_v3 }
 0xf36   :  { %4638 = vmatpush3.bf16.msra.mxu0 %v4889_v4 }
 0xf37   :  { %4639 = vmatprep.subr.bf16.mxu0 %v5374_v3 }
 0xf3a   :  { %4640 = vmatpush3.bf16.msra.mxu0 %v4890_v13 }
 0xf3b   :  { %4641 = vmatprep.subr.bf16.mxu0 %v5374_v3 }
 0xf3e   :  { %4642 = vmatpush3.bf16.msra.mxu0 %v4891_v10 }
 0xf3f   :  { %4643 = vmatprep.subr.bf16.mxu0 %v5374_v3 }
 0xf42   :  { %4644 = vmatpush3.bf16.msra.mxu0 %v4892_v60 }
 0xf43   :  { %4645 = vmatprep.subr.bf16.mxu0 %v5374_v3 }
 0xf46   :  { %4646 = vmatpush3.bf16.msra.mxu0 %v4893_v61 }
 0xf47   :  { %4647 = vmatprep.subr.bf16.mxu0 %v5374_v3 }
 0xf4a   :  { %4648 = vmatpush3.bf16.msra.mxu0 %v4894_v57 }
 0xf4b   :  { %4649 = vmatprep.subr.bf16.mxu0 %v5374_v3 }
 0xf4e   :  { %4650 = vmatpush3.bf16.msra.mxu0 %v4895_v54 }
 0xff1   :  { %v4031_v33 = vpop.f32.mrf.mxu0  ;;  %v4074_v0 = vpop.f32.mrf.mxu1 }
 0xff2   :  { %v4083_v6 = vadd.f32 %v4031_v33, %v2522_v46  ;;  %v4085_v24 = vadd.f32 %v4074_v0, %v2635_v49 }
 0xff3   :  { %v4033_v62 = vpop.f32.mrf.mxu0  ;;  %v4076_v26 = vpop.f32.mrf.mxu1 }
 0xff4   :  { %5197 = vtanh.f32 %v4083_v6  ;;  %v4084_v1 = vadd.f32 %v4033_v62, %v2524_v30  ;;  %v4086_v2 = vadd.f32 %v4076_v26, %v2637_v50 }
 0xff5   :  { %v4035_v11 = vpop.f32.mrf.mxu0  ;;  %v4078_v42 = vpop.f32.mrf.mxu1 }
 0xff6   :  { %5199 = vtanh.f32 %v4084_v1  ;;  %v4087_v47 = vadd.f32 %v4035_v11, %v2526_v8  ;;  %v4089_v56 = vadd.f32 %v4078_v42, %v2639_v34 }
 0xff7   :  { %5201 = vtanh.f32 %v4086_v2  ;;  %v4037_v44 = vpop.f32.mrf.mxu0  ;;  %v4080_v36 = vpop.f32.mrf.mxu1 }
 0xff8   :  { %5203 = vtanh.f32 %v4087_v47  ;;  %v4088_v31 = vadd.f32 %v4037_v44, %v2528_v32  ;;  %v4090_v22 = vadd.f32 %v4080_v36, %v2641_v38 }
 0xffa   :  { %5205 = vtanh.f32 %v4088_v31 }
 0xffb   :  { %5207 = vtanh.f32 %v4090_v22 }
 0xffc   :  { %5209 = vtanh.f32 %v4085_v24 }
 0xffd   :  { %5211 = vtanh.f32 %v4089_v56 }
0x1001   :  { %v5198_v63 = vpop.eup %5197 }
0x1002   :  { %v4099_v48 = vmul.f32 0.5, %v5198_v63 }
0x1003   :  { %v5200_v14 = vpop.eup %5199 }
0x1004   :  { %v5202_v55 = vpop.eup %5201  ;;  %v4105_v16 = vadd.f32 0.5, %v4099_v48  ;;  %v4100_v40 = vmul.f32 0.5, %v5200_v14 }
0x1005   :  { %v5204_v41 = vpop.eup %5203 }
0x1006   :  { %v4106_v20 = vadd.f32 0.5, %v4100_v40  ;;  %v4113_v51 = vmul.f32 %v5202_v55, %v4105_v16  ;;  %v4102_v25 = vmul.f32 0.5, %v5204_v41 }
0x1007   :  { %v5206_v12 = vpop.eup %5205 }
0x1008   :  { %v4111_v43 = vmul.f32 %v4106_v20, %v6953_v37  ;;  %v4108_v52 = vadd.f32 0.5, %v4102_v25  ;;  %v4103_v58 = vmul.f32 0.5, %v5206_v12  ;;  %v5208_v59 = vpop.eup %5207 }
0x1009   :  { %v5210_v17 = vpop.eup %5209 }
0x100a   :  { %v4115_v35 = vadd.f32 %v4113_v51, %v4111_v43  ;;  %v4109_v9 = vadd.f32 0.5, %v4103_v58  ;;  %v4114_v27 = vmul.f32 %v5208_v59, %v4108_v52  ;;  %v4101_v53 = vmul.f32 0.5, %v5210_v17  ;;  %v5212_v3 = vpop.eup %5211 }
0x100b   :  { %v4104_v13 = vmul.f32 0.5, %v5212_v3 }
0x100c   :  { %5213 = vtanh.f32 %v4115_v35  ;;  %v4112_v15 = vmul.f32 %v4109_v9, %v6957_v39  ;;  %v4107_v4 = vadd.f32 0.5, %v4101_v53  ;;  %v4464_v39 = vld [vmem:[%s7019_s8] ss:$0 sm:$0xff] }
0x100d   :  { %v4110_v37 = vadd.f32 0.5, %v4104_v13 }
0x100e   :  { %v4116_v5 = vadd.f32 %v4114_v27, %v4112_v15 }
0x1010   :  { %5215 = vtanh.f32 %v4116_v5 }
0x1019   :  { %v5214_v10 = vpop.eup %5213 }
0x101a   :  { %v4119_v60 = vmul.f32 %v5214_v10, %v4107_v4 }
0x101d   :  { %v5216_v61 = vpop.eup %5215 }
0x101e   :  { %v4120_v57 = vmul.f32 %v5216_v61, %v4110_v37 }
0x1020   :  { %v4624_v54 = vpack.c.bf16 %v4120_v57, %v4119_v60 }
0x1022   :  { %4625 = vst [vmem:[#allocation2 + $0x8] sm:$0xff] %v4624_v54  }
0x1029   :  { %v4896_v45 = vld [vmem:[#allocation2 + $0x8] sm:$0xff]  }
0x102a   :  { %4652 = vmatmul.mubr.bf16.vlgmr.msra.gmra.mxu0 %v4896_v45 }
0x10ea   :  { %v4249_v46 = vpop.f32.mrf.mxu0 }
0x10eb   :  { %v4250_v33 = vadd.f32 %v4464_v39, %v4249_v46 }
0x10ec   :  { %v4653_v0 = vpop.f32.mrf.mxu0 }
0x10ed   :  { %4256 = vst [vmem:[%s7020_s9] sm:$0xff] %v4250_v33 }
0x10ee   :  { %v4252_v28 = vpop.f32.mrf.mxu0 }
0x10ef   :  { %v4253_v30 = vadd.f32 %v4464_v39, %v4252_v28 }
0x10f0   :  { %v4654_v19 = vpop.f32.mrf.mxu0 }
0x10f1   :  { %4257 = vst [vmem:[%s7020_s9 + $0x8] sm:$0xff] %v4253_v30 }
0x10f2   :  { %4262 = vsyncpa [#allocation7], 1 }
0x10f3   :  { %4263 = vsyncpa [#allocation9], 1 }
0x10f4   :  { %4264 = vsyncpa [#allocation12], 1 }

</bundles_post_ra>
